<compile_context>
chip_gen: v6e
topology: v6e:2x2x1
jax: 0.10.0
libtpu: 0.0.40
codegen_flags: <defaults>
</compile_context>

<pallas_src>
import jax
import jax.numpy as jnp
import numpy as np
from jax.experimental import pallas as pl
from jax.experimental.pallas import tpu as pltpu

EPS = 1e-6
_INV_SQRT2 = 0.7071067811865476
_HPAD = 4   # 3 reflect rows needed by the 7x7 depthwise + 1 alignment row
_WPAD = 4   # 3 reflect cols needed by the 7x7 depthwise + 1 alignment col


def _erf(x):
    # Abramowitz & Stegun 7.1.26 rational approximation (|err| < 1.5e-7):
    # matches exact (erf-based) nn.GELU() far below test tolerance.
    p = 0.3275911
    a1, a2, a3, a4, a5 = 0.254829592, -0.284496736, 1.421413741, -1.453152027, 1.061405429
    ax = jnp.abs(x)
    t = pl.reciprocal(1.0 + p * ax, approx=True)          # EUP slot (free vs VPU)
    poly = ((((a5 * t + a4) * t + a3) * t + a2) * t + a1) * t
    y = 1.0 - poly * jnp.exp(-ax * ax)
    return jnp.where(x < 0, -y, y)


def _gelu_exact(x):
    return 0.5 * x * (1.0 + _erf(x * _INV_SQRT2))


def _preact_enc_kernel(x_ref, gsel1_ref, gsel1t_ref, gsel2_ref, gsel2t_ref,
                       mdown_ref, bdown_ref, wdw_ref, vec_ref,
                       bd1_ref, bpw1_ref, bd2_ref, o_ref):
    f32, bf16 = jnp.float32, jnp.bfloat16
    kh, rows, lin = x_ref.shape            # (3 row taps, N*Hp padded rows, W*Cin)
    lout = o_ref.shape[1]                  # Wout*Cout
    lpad = bdown_ref.shape[1]              # Wp*Cout (column-padded)
    cout = lout // gsel2_ref.shape[1]
    wpad = (lpad - lout) // (2 * cout)
    inv_c1 = 1.0 / (lin // gsel1_ref.shape[1])
    inv_c2 = 1.0 / cout

    def dot_f32(a, b):
        return jnp.dot(a, b, preferred_element_type=f32)

    def ln_normalize(z, gsel, gselt, inv_c):
        # LayerNorm statistics over groups of consecutive lanes (f32).  The
        # group reduce/broadcast is a 0/1-selector matmul so the elementwise
        # math stays at full 128-lane width.  Affine params are folded into
        # the following conv weights at prepare time.
        mean = dot_f32(z, gsel) * inv_c
        zc = z - dot_f32(mean, gselt)
        var = dot_f32(zc * zc, gsel) * inv_c
        return zc * jax.lax.rsqrt(dot_f32(var, gselt) + EPS)

    # ---------------- DownsampleLayernorm ----------------
    # LN1 (affine folded) + 3x3 / stride-2 / reflect conv.  Row taps / reflect /
    # stride were folded into the x gather (wrapper), column taps into mdown.
    # One bf16 matmul per row tap, accumulated in f32, emitted directly in
    # reflect-padded (rows & columns) layout for the depthwise below.
    y0p = bdown_ref[...]                                        # (1, Wp*Cout)
    for k in range(kh):
        lnk = ln_normalize(x_ref[k], gsel1_ref[...], gsel1t_ref[...], inv_c1)
        y0p = y0p + jnp.dot(lnk.astype(bf16), mdown_ref[k],
                            preferred_element_type=f32)         # (rows, Wp*Cout)

    # ---------------- ConvNeXt block ----------------
    # 7x7 depthwise reflect conv: row taps = sublane rolls of the row-padded
    # slab (XLU), column taps = static lane slices of the column-padded slab,
    # accumulated with per-tap per-channel weight vectors on the VPU.
    acc = jnp.zeros((rows, lout), f32)
    for a in range(7):
        ya = y0p if a == 3 else pltpu.roll(y0p, shift=(3 - a) % rows, axis=0)
        for b in range(7):
            lo = (b + wpad - 3) * cout
            idx = a * 7 + b
            acc = acc + ya[:, lo:lo + lout] * wdw_ref[idx:idx + 1, :]
    d = acc + vec_ref[0:1, :]                                    # + depthwise bias

    nrm = ln_normalize(d, gsel2_ref[...], gsel2t_ref[...], inv_c2)

    # 1x1 convs as block-diagonal bf16 matmuls (LN2 affine folded into bd1,
    # layer-scale gamma folded into bd2 / its bias), exact GELU in between.
    h = jnp.dot(nrm.astype(bf16), bd1_ref[...], preferred_element_type=f32) + bpw1_ref[...]
    h = _gelu_exact(h)
    p2 = jnp.dot(h.astype(bf16), bd2_ref[...], preferred_element_type=f32) + vec_ref[1:2, :]

    # residual: central (un-padded) columns of the downsample output
    o_ref[...] = y0p[:, wpad * cout:wpad * cout + lout] + p2


def _reflect(q, n):
    # PyTorch 'reflect' padding index map (valid while overhang <= n - 1).
    if q < 0:
        return -q
    if q > n - 1:
        return 2 * (n - 1) - q
    return q


def prepare_params(params, in_shape):
    """One-time weight folding (hoisted out of the per-call path)."""
    f32 = jnp.float32
    N, Cin, H, W = in_shape
    Cout = params["conv_w"].shape[0]
    Dh = params["pw1_w"].shape[0]
    Hout = (H - 1) // 2 + 1
    Wout = (W - 1) // 2 + 1
    if H < 2 or W < 2:
        raise ValueError("reflect pad=1 in the downsample conv needs H, W >= 2")
    if Hout < 4 or Wout < 4:
        raise ValueError("reflect pad=3 in the ConvNeXt block needs Hout, Wout >= 4")
    Hp, Wp = Hout + 2 * _HPAD, Wout + 2 * _WPAD

    def pad_src(p, n):
        # conv-output row/col backing padded position p; the alignment-only
        # extra position (|overhang| == 4) is clamped to the semantic 3.
        return _reflect(min(max(p, -3), n + 2), n)

    # --- row-gather indices: x rows feeding padded output row p, per 3x3 row tap
    row_idx = np.zeros((3, Hp), np.int32)
    for ki in range(3):
        for p in range(Hp):
            oh = pad_src(p - _HPAD, Hout)
            row_idx[ki, p] = _reflect(2 * oh + ki - 1, H)

    # --- LayerNorm group-stat selectors (stay f32) ---
    gsel1 = np.kron(np.eye(W, dtype=np.float32), np.ones((Cin, 1), np.float32))
    gsel2 = np.kron(np.eye(Wout, dtype=np.float32), np.ones((Cout, 1), np.float32))

    # --- 3x3 stride-2 reflect conv: LN1 affine + column taps folded into mdown,
    #     output produced directly in reflect-padded layout ---
    g1 = params["ln1_w"].astype(f32)
    b1 = params["ln1_b"].astype(f32)
    wconv = params["conv_w"].astype(f32)                          # (Cout, Cin, 3, 3)
    wfold = jnp.einsum("ocij,c->ijco", wconv, g1)                 # gamma1 folded
    colsel = np.zeros((3, W, Wp), np.float32)
    for kj in range(3):
        for q in range(Wp):
            ow = pad_src(q - _WPAD, Wout)
            colsel[kj, _reflect(2 * ow + kj - 1, W), q] = 1.0
    mdown = jnp.einsum("jwq,ijco->iwcqo", jnp.asarray(colsel), wfold)
    mdown = mdown.reshape(3, W * Cin, Wp * Cout).astype(jnp.bfloat16)
    bfold = params["conv_b"].astype(f32) + jnp.einsum("ocij,c->o", wconv, b1)  # beta1 fold
    bdown = jnp.tile(bfold, Wp).reshape(1, Wp * Cout)

    # --- 7x7 depthwise: per-tap per-channel weight vectors (VPU path) ---
    wdw = jnp.transpose(params["dw_w"].astype(f32)[:, 0, :, :], (1, 2, 0))     # (7,7,Cout)
    wdw = jnp.tile(wdw[:, :, None, :], (1, 1, Wout, 1)).reshape(49, Wout * Cout)
    dwb_t = jnp.tile(params["dw_b"].astype(f32), Wout)

    # --- 1x1 convs: LN2 affine folded into pw1, layer-scale gamma into pw2 ---
    g2 = params["ln2_w"].astype(f32)
    b2 = params["ln2_b"].astype(f32)
    w1 = params["pw1_w"].astype(f32)[:, :, 0, 0]                  # (Dh, Cout)
    w1f = w1 * g2[None, :]
    b1f = params["pw1_b"].astype(f32) + w1 @ b2
    gam = params["gamma"].astype(f32)
    w2 = params["pw2_w"].astype(f32)[:, :, 0, 0]                  # (Cout, Dh)
    w2f = w2 * gam[:, None]
    b2f = params["pw2_b"].astype(f32) * gam

    eye_w = jnp.eye(Wout, dtype=f32)
    bd1 = jnp.einsum("wx,dc->wcxd", eye_w, w1f).reshape(Wout * Cout, Wout * Dh).astype(jnp.bfloat16)
    bpw1 = jnp.tile(b1f, Wout).reshape(1, Wout * Dh)
    bd2 = jnp.einsum("wx,od->wdxo", eye_w, w2f).reshape(Wout * Dh, Wout * Cout).astype(jnp.bfloat16)
    vec = jnp.stack([dwb_t, jnp.tile(b2f, Wout)], axis=0)          # (2, Wout*Cout)

    return dict(row_idx=jnp.asarray(row_idx),
                gsel1=jnp.asarray(gsel1), gsel1t=jnp.asarray(gsel1.T),
                gsel2=jnp.asarray(gsel2), gsel2t=jnp.asarray(gsel2.T),
                mdown=mdown, bdown=bdown, wdw=wdw, vec=vec,
                bd1=bd1, bpw1=bpw1, bd2=bd2)


def preact_block_enc(x_nchw, prep):
    """PreActBlock_Enc forward (stride=2 / DownsampleLayernorm path). NCHW in/out."""
    f32 = jnp.float32
    N, Cin, H, W = x_nchw.shape
    Hout = (H - 1) // 2 + 1
    Wout = (W - 1) // 2 + 1
    kh, Hp = prep["row_idx"].shape
    lout = prep["vec"].shape[1]
    Cout = lout // Wout
    rows = N * Hp

    # lane-dense NHWC slab + the constant reflect/stride row gather (3 row taps,
    # emitted in row-padded layout so the kernel never gathers rows)
    x_nhwc = jnp.transpose(x_nchw, (0, 2, 3, 1)).astype(f32)            # (N,H,W,Cin)
    xg = jnp.take(x_nhwc, prep["row_idx"].reshape(-1), axis=1)          # (N, 3*Hp, W, Cin)
    xg = xg.reshape(N, kh, Hp, W * Cin).transpose(1, 0, 2, 3).reshape(kh, rows, W * Cin)

    args = (xg, prep["gsel1"], prep["gsel1t"], prep["gsel2"], prep["gsel2t"],
            prep["mdown"], prep["bdown"], prep["wdw"], prep["vec"],
            prep["bd1"], prep["bpw1"], prep["bd2"])

    out = pl.pallas_call(
        _preact_enc_kernel,
        out_shape=jax.ShapeDtypeStruct((rows, lout), f32),
        # Single grid-less invocation: all operands (~0.6 MiB, heavy weights in
        # bf16) fit in VMEM, the batch is folded into the M dim of every matmul,
        # and every load/store is full 128-lane width.
        in_specs=[pl.BlockSpec(memory_space=pltpu.MemorySpace.VMEM)] * len(args),
        out_specs=pl.BlockSpec(memory_space=pltpu.MemorySpace.VMEM),
    )(*args)

    out = out.reshape(N, Hp, Wout, Cout)[:, _HPAD:_HPAD + Hout]          # drop row padding
    return jnp.transpose(out, (0, 3, 1, 2))                              # NCHW


def _reference(x_nchw, params):
    """Pure-JAX (f32, exact GELU) reference matching the PyTorch forward."""
    f32 = jnp.float32
    Cout = params["conv_w"].shape[0]
    x = jnp.transpose(x_nchw, (0, 2, 3, 1)).astype(f32)

    mean = jnp.mean(x, axis=-1, keepdims=True)
    var = jnp.mean(jnp.square(x - mean), axis=-1, keepdims=True)
    ln = (x - mean) / jnp.sqrt(var + EPS) * params["ln1_w"] + params["ln1_b"]
    xp = jnp.pad(ln, ((0, 0), (1, 1), (1, 1), (0, 0)), mode="reflect")
    w = jnp.transpose(params["conv_w"].astype(f32), (2, 3, 1, 0))
    y = jax.lax.conv_general_dilated(
        xp, w, (2, 2), "VALID",
        dimension_numbers=("NHWC", "HWIO", "NHWC")) + params["conv_b"]

    yp = jnp.pad(y, ((0, 0), (3, 3), (3, 3), (0, 0)), mode="reflect")
    wd = jnp.transpose(params["dw_w"].astype(f32), (2, 3, 1, 0))          # (7,7,1,Cout)
    d = jax.lax.conv_general_dilated(
        yp, wd, (1, 1), "VALID",
        dimension_numbers=("NHWC", "HWIO", "NHWC"),
        feature_group_count=Cout) + params["dw_b"]

    m2 = jnp.mean(d, axis=-1, keepdims=True)
    v2 = jnp.mean(jnp.square(d - m2), axis=-1, keepdims=True)
    nrm = (d - m2) / jnp.sqrt(v2 + EPS) * params["ln2_w"] + params["ln2_b"]

    h = jnp.einsum("nhwc,dc->nhwd", nrm, params["pw1_w"][:, :, 0, 0]) + params["pw1_b"]
    g = jax.nn.gelu(h, approximate=False)
    q = jnp.einsum("nhwc,dc->nhwd", g, params["pw2_w"][:, :, 0, 0]) + params["pw2_b"]

    out = y + params["gamma"] * q
    return jnp.transpose(out, (0, 3, 1, 2))


if __name__ == "__main__":
    key = jax.random.PRNGKey(0)
    ks = jax.random.split(key, 14)

    N, Cin, H, W = 2, 8, 16, 16
    Cout = 16
    Dh = 4 * Cout

    x = jax.random.normal(ks[0], (N, Cin, H, W), jnp.float32)
    params = dict(
        ln1_w=1.0 + 0.1 * jax.random.normal(ks[1], (Cin,), jnp.float32),
        ln1_b=0.1 * jax.random.normal(ks[2], (Cin,), jnp.float32),
        conv_w=jax.random.normal(ks[3], (Cout, Cin, 3, 3), jnp.float32) * (1.0 / (9 * Cin)) ** 0.5,
        conv_b=0.05 * jax.random.normal(ks[4], (Cout,), jnp.float32),
        dw_w=jax.random.normal(ks[5], (Cout, 1, 7, 7), jnp.float32) * (1.0 / 49.0) ** 0.5,
        dw_b=0.05 * jax.random.normal(ks[6], (Cout,), jnp.float32),
        ln2_w=1.0 + 0.1 * jax.random.normal(ks[7], (Cout,), jnp.float32),
        ln2_b=0.1 * jax.random.normal(ks[8], (Cout,), jnp.float32),
        pw1_w=jax.random.normal(ks[9], (Dh, Cout, 1, 1), jnp.float32) * (1.0 / Cout) ** 0.5,
        pw1_b=0.05 * jax.random.normal(ks[10], (Dh,), jnp.float32),
        pw2_w=jax.random.normal(ks[11], (Cout, Dh, 1, 1), jnp.float32) * (1.0 / Dh) ** 0.5,
        pw2_b=0.05 * jax.random.normal(ks[12], (Cout,), jnp.float32),
        # Layer-scale gamma: module inits it to 1e-6*ones; random values here so
        # the test actually exercises the ConvNeXt branch.
        gamma=0.2 * jax.random.normal(ks[13], (Cout,), jnp.float32),
    )

    prep = prepare_params(params, x.shape)                 # one-time weight folding
    fwd = jax.jit(preact_block_enc)

    y = jax.block_until_ready(fwd(x, prep))
    assert y.shape == (N, Cout, H // 2, W // 2), y.shape

    y_ref = _reference(x, params)
    err = float(jnp.max(jnp.abs(y - y_ref)))
    # bf16 MXU operands (per perf review) vs. a pure-f32 exact-GELU reference:
    # expected max abs error ~1e-2, so check at 2e-2.
    assert jnp.allclose(y, y_ref, atol=2e-2, rtol=2e-2), err

    print("KERNEL_OK")
</pallas_src>

<mosaic_0001>
module attributes {stable_mosaic.version = 11 : i64} {
  func.func @_preact_enc_kernel(%arg0: memref<3x32x128xf32, #tpu.memory_space<vmem>>, %arg1: memref<128x16xf32, #tpu.memory_space<vmem>>, %arg2: memref<16x128xf32, #tpu.memory_space<vmem>>, %arg3: memref<128x8xf32, #tpu.memory_space<vmem>>, %arg4: memref<8x128xf32, #tpu.memory_space<vmem>>, %arg5: memref<3x128x256xbf16, #tpu.memory_space<vmem>>, %arg6: memref<1x256xf32, #tpu.memory_space<vmem>>, %arg7: memref<49x128xf32, #tpu.memory_space<vmem>>, %arg8: memref<2x128xf32, #tpu.memory_space<vmem>>, %arg9: memref<128x512xbf16, #tpu.memory_space<vmem>>, %arg10: memref<1x512xf32, #tpu.memory_space<vmem>>, %arg11: memref<512x128xbf16, #tpu.memory_space<vmem>>, %arg12: memref<32x128xf32, #tpu.memory_space<vmem>>) attributes {dimension_semantics = [], scalar_prefetch = 0 : i64, scratch_operands = 0 : i64, tpu.core_type = #tpu.core_type<tc>} {
    %c0 = arith.constant 0 : index
    %c0_0 = arith.constant 0 : index
    %0 = vector.load %arg6[%c0, %c0_0] : memref<1x256xf32, #tpu.memory_space<vmem>>, vector<1x256xf32>
    %c0_1 = arith.constant 0 : index
    %c0_2 = arith.constant 0 : index
    %c0_3 = arith.constant 0 : index
    %1 = vector.load %arg0[%c0_1, %c0_2, %c0_3] : memref<3x32x128xf32, #tpu.memory_space<vmem>>, vector<1x32x128xf32>
    %2 = vector.shape_cast %1 : vector<1x32x128xf32> to vector<32x128xf32>
    %c0_4 = arith.constant 0 : index
    %c0_5 = arith.constant 0 : index
    %3 = vector.load %arg1[%c0_4, %c0_5] : memref<128x16xf32, #tpu.memory_space<vmem>>, vector<128x16xf32>
    %c0_6 = arith.constant 0 : index
    %c0_7 = arith.constant 0 : index
    %4 = vector.load %arg2[%c0_6, %c0_7] : memref<16x128xf32, #tpu.memory_space<vmem>>, vector<16x128xf32>
    %cst = arith.constant dense<0.000000e+00> : vector<32x16xf32>
    %5 = tpu.matmul %2, %3, %cst {dimension_numbers = #tpu.dot_dimension_numbers<[1], [0], [0], [1], [0, 0, 1, 1], [], []>} : vector<32x128xf32>, vector<128x16xf32>, vector<32x16xf32> -> vector<32x16xf32>
    %cst_8 = arith.constant 1.250000e-01 : f32
    %6 = vector.broadcast %cst_8 : f32 to vector<32x16xf32>
    %7 = arith.mulf %5, %6 : vector<32x16xf32>
    %cst_9 = arith.constant dense<0.000000e+00> : vector<32x128xf32>
    %8 = tpu.matmul %7, %4, %cst_9 {dimension_numbers = #tpu.dot_dimension_numbers<[1], [0], [0], [1], [0, 0, 1, 1], [], []>} : vector<32x16xf32>, vector<16x128xf32>, vector<32x128xf32> -> vector<32x128xf32>
    %9 = arith.subf %2, %8 : vector<32x128xf32>
    %10 = arith.mulf %9, %9 : vector<32x128xf32>
    %cst_10 = arith.constant dense<0.000000e+00> : vector<32x16xf32>
    %11 = tpu.matmul %10, %3, %cst_10 {dimension_numbers = #tpu.dot_dimension_numbers<[1], [0], [0], [1], [0, 0, 1, 1], [], []>} : vector<32x128xf32>, vector<128x16xf32>, vector<32x16xf32> -> vector<32x16xf32>
    %cst_11 = arith.constant 1.250000e-01 : f32
    %12 = vector.broadcast %cst_11 : f32 to vector<32x16xf32>
    %13 = arith.mulf %11, %12 : vector<32x16xf32>
    %cst_12 = arith.constant dense<0.000000e+00> : vector<32x128xf32>
    %14 = tpu.matmul %13, %4, %cst_12 {dimension_numbers = #tpu.dot_dimension_numbers<[1], [0], [0], [1], [0, 0, 1, 1], [], []>} : vector<32x16xf32>, vector<16x128xf32>, vector<32x128xf32> -> vector<32x128xf32>
    %cst_13 = arith.constant 9.99999997E-7 : f32
    %15 = vector.broadcast %cst_13 : f32 to vector<32x128xf32>
    %16 = arith.addf %14, %15 : vector<32x128xf32>
    %17 = math.rsqrt %16 : vector<32x128xf32>
    %18 = arith.mulf %9, %17 : vector<32x128xf32>
    %19 = arith.truncf %18 : vector<32x128xf32> to vector<32x128xbf16>
    %c0_14 = arith.constant 0 : index
    %c0_15 = arith.constant 0 : index
    %c0_16 = arith.constant 0 : index
    %20 = vector.load %arg5[%c0_14, %c0_15, %c0_16] : memref<3x128x256xbf16, #tpu.memory_space<vmem>>, vector<1x128x256xbf16>
    %21 = vector.shape_cast %20 : vector<1x128x256xbf16> to vector<128x256xbf16>
    %cst_17 = arith.constant dense<0.000000e+00> : vector<32x256xf32>
    %22 = tpu.matmul %19, %21, %cst_17 {dimension_numbers = #tpu.dot_dimension_numbers<[1], [0], [0], [1], [0, 0, 1, 1], [], []>} : vector<32x128xbf16>, vector<128x256xbf16>, vector<32x256xf32> -> vector<32x256xf32>
    %23 = vector.broadcast %0 : vector<1x256xf32> to vector<32x256xf32>
    %24 = arith.addf %23, %22 : vector<32x256xf32>
    %c1 = arith.constant 1 : index
    %c0_18 = arith.constant 0 : index
    %c0_19 = arith.constant 0 : index
    %25 = vector.load %arg0[%c1, %c0_18, %c0_19] : memref<3x32x128xf32, #tpu.memory_space<vmem>>, vector<1x32x128xf32>
    %26 = vector.shape_cast %25 : vector<1x32x128xf32> to vector<32x128xf32>
    %c0_20 = arith.constant 0 : index
    %c0_21 = arith.constant 0 : index
    %27 = vector.load %arg1[%c0_20, %c0_21] : memref<128x16xf32, #tpu.memory_space<vmem>>, vector<128x16xf32>
    %c0_22 = arith.constant 0 : index
    %c0_23 = arith.constant 0 : index
    %28 = vector.load %arg2[%c0_22, %c0_23] : memref<16x128xf32, #tpu.memory_space<vmem>>, vector<16x128xf32>
    %cst_24 = arith.constant dense<0.000000e+00> : vector<32x16xf32>
    %29 = tpu.matmul %26, %27, %cst_24 {dimension_numbers = #tpu.dot_dimension_numbers<[1], [0], [0], [1], [0, 0, 1, 1], [], []>} : vector<32x128xf32>, vector<128x16xf32>, vector<32x16xf32> -> vector<32x16xf32>
    %cst_25 = arith.constant 1.250000e-01 : f32
    %30 = vector.broadcast %cst_25 : f32 to vector<32x16xf32>
    %31 = arith.mulf %29, %30 : vector<32x16xf32>
    %cst_26 = arith.constant dense<0.000000e+00> : vector<32x128xf32>
    %32 = tpu.matmul %31, %28, %cst_26 {dimension_numbers = #tpu.dot_dimension_numbers<[1], [0], [0], [1], [0, 0, 1, 1], [], []>} : vector<32x16xf32>, vector<16x128xf32>, vector<32x128xf32> -> vector<32x128xf32>
    %33 = arith.subf %26, %32 : vector<32x128xf32>
    %34 = arith.mulf %33, %33 : vector<32x128xf32>
    %cst_27 = arith.constant dense<0.000000e+00> : vector<32x16xf32>
    %35 = tpu.matmul %34, %27, %cst_27 {dimension_numbers = #tpu.dot_dimension_numbers<[1], [0], [0], [1], [0, 0, 1, 1], [], []>} : vector<32x128xf32>, vector<128x16xf32>, vector<32x16xf32> -> vector<32x16xf32>
    %cst_28 = arith.constant 1.250000e-01 : f32
    %36 = vector.broadcast %cst_28 : f32 to vector<32x16xf32>
    %37 = arith.mulf %35, %36 : vector<32x16xf32>
    %cst_29 = arith.constant dense<0.000000e+00> : vector<32x128xf32>
    %38 = tpu.matmul %37, %28, %cst_29 {dimension_numbers = #tpu.dot_dimension_numbers<[1], [0], [0], [1], [0, 0, 1, 1], [], []>} : vector<32x16xf32>, vector<16x128xf32>, vector<32x128xf32> -> vector<32x128xf32>
    %cst_30 = arith.constant 9.99999997E-7 : f32
    %39 = vector.broadcast %cst_30 : f32 to vector<32x128xf32>
    %40 = arith.addf %38, %39 : vector<32x128xf32>
    %41 = math.rsqrt %40 : vector<32x128xf32>
    %42 = arith.mulf %33, %41 : vector<32x128xf32>
    %43 = arith.truncf %42 : vector<32x128xf32> to vector<32x128xbf16>
    %c1_31 = arith.constant 1 : index
    %c0_32 = arith.constant 0 : index
    %c0_33 = arith.constant 0 : index
    %44 = vector.load %arg5[%c1_31, %c0_32, %c0_33] : memref<3x128x256xbf16, #tpu.memory_space<vmem>>, vector<1x128x256xbf16>
    %45 = vector.shape_cast %44 : vector<1x128x256xbf16> to vector<128x256xbf16>
    %cst_34 = arith.constant dense<0.000000e+00> : vector<32x256xf32>
    %46 = tpu.matmul %43, %45, %cst_34 {dimension_numbers = #tpu.dot_dimension_numbers<[1], [0], [0], [1], [0, 0, 1, 1], [], []>} : vector<32x128xbf16>, vector<128x256xbf16>, vector<32x256xf32> -> vector<32x256xf32>
    %47 = arith.addf %24, %46 : vector<32x256xf32>
    %c2 = arith.constant 2 : index
    %c0_35 = arith.constant 0 : index
    %c0_36 = arith.constant 0 : index
    %48 = vector.load %arg0[%c2, %c0_35, %c0_36] : memref<3x32x128xf32, #tpu.memory_space<vmem>>, vector<1x32x128xf32>
    %49 = vector.shape_cast %48 : vector<1x32x128xf32> to vector<32x128xf32>
    %c0_37 = arith.constant 0 : index
    %c0_38 = arith.constant 0 : index
    %50 = vector.load %arg1[%c0_37, %c0_38] : memref<128x16xf32, #tpu.memory_space<vmem>>, vector<128x16xf32>
    %c0_39 = arith.constant 0 : index
    %c0_40 = arith.constant 0 : index
    %51 = vector.load %arg2[%c0_39, %c0_40] : memref<16x128xf32, #tpu.memory_space<vmem>>, vector<16x128xf32>
    %cst_41 = arith.constant dense<0.000000e+00> : vector<32x16xf32>
    %52 = tpu.matmul %49, %50, %cst_41 {dimension_numbers = #tpu.dot_dimension_numbers<[1], [0], [0], [1], [0, 0, 1, 1], [], []>} : vector<32x128xf32>, vector<128x16xf32>, vector<32x16xf32> -> vector<32x16xf32>
    %cst_42 = arith.constant 1.250000e-01 : f32
    %53 = vector.broadcast %cst_42 : f32 to vector<32x16xf32>
    %54 = arith.mulf %52, %53 : vector<32x16xf32>
    %cst_43 = arith.constant dense<0.000000e+00> : vector<32x128xf32>
    %55 = tpu.matmul %54, %51, %cst_43 {dimension_numbers = #tpu.dot_dimension_numbers<[1], [0], [0], [1], [0, 0, 1, 1], [], []>} : vector<32x16xf32>, vector<16x128xf32>, vector<32x128xf32> -> vector<32x128xf32>
    %56 = arith.subf %49, %55 : vector<32x128xf32>
    %57 = arith.mulf %56, %56 : vector<32x128xf32>
    %cst_44 = arith.constant dense<0.000000e+00> : vector<32x16xf32>
    %58 = tpu.matmul %57, %50, %cst_44 {dimension_numbers = #tpu.dot_dimension_numbers<[1], [0], [0], [1], [0, 0, 1, 1], [], []>} : vector<32x128xf32>, vector<128x16xf32>, vector<32x16xf32> -> vector<32x16xf32>
    %cst_45 = arith.constant 1.250000e-01 : f32
    %59 = vector.broadcast %cst_45 : f32 to vector<32x16xf32>
    %60 = arith.mulf %58, %59 : vector<32x16xf32>
    %cst_46 = arith.constant dense<0.000000e+00> : vector<32x128xf32>
    %61 = tpu.matmul %60, %51, %cst_46 {dimension_numbers = #tpu.dot_dimension_numbers<[1], [0], [0], [1], [0, 0, 1, 1], [], []>} : vector<32x16xf32>, vector<16x128xf32>, vector<32x128xf32> -> vector<32x128xf32>
    %cst_47 = arith.constant 9.99999997E-7 : f32
    %62 = vector.broadcast %cst_47 : f32 to vector<32x128xf32>
    %63 = arith.addf %61, %62 : vector<32x128xf32>
    %64 = math.rsqrt %63 : vector<32x128xf32>
    %65 = arith.mulf %56, %64 : vector<32x128xf32>
    %66 = arith.truncf %65 : vector<32x128xf32> to vector<32x128xbf16>
    %c2_48 = arith.constant 2 : index
    %c0_49 = arith.constant 0 : index
    %c0_50 = arith.constant 0 : index
    %67 = vector.load %arg5[%c2_48, %c0_49, %c0_50] : memref<3x128x256xbf16, #tpu.memory_space<vmem>>, vector<1x128x256xbf16>
    %68 = vector.shape_cast %67 : vector<1x128x256xbf16> to vector<128x256xbf16>
    %cst_51 = arith.constant dense<0.000000e+00> : vector<32x256xf32>
    %69 = tpu.matmul %66, %68, %cst_51 {dimension_numbers = #tpu.dot_dimension_numbers<[1], [0], [0], [1], [0, 0, 1, 1], [], []>} : vector<32x128xbf16>, vector<128x256xbf16>, vector<32x256xf32> -> vector<32x256xf32>
    %70 = arith.addf %47, %69 : vector<32x256xf32>
    %cst_52 = arith.constant 0.000000e+00 : f32
    %71 = vector.broadcast %cst_52 : f32 to vector<32x128xf32>
    %c3_i32 = arith.constant 3 : i32
    %72 = tpu.dynamic_rotate %70 by %c3_i32 dim 0 : vector<32x256xf32>, i32 -> vector<32x256xf32>
    %73 = vector.extract_strided_slice %72 {offsets = [0, 16], sizes = [32, 128], strides = [1, 1]} : vector<32x256xf32> to vector<32x128xf32>
    %c0_53 = arith.constant 0 : index
    %c0_54 = arith.constant 0 : index
    %74 = vector.load %arg7[%c0_53, %c0_54] : memref<49x128xf32, #tpu.memory_space<vmem>>, vector<1x128xf32>
    %75 = vector.broadcast %74 : vector<1x128xf32> to vector<32x128xf32>
    %76 = arith.mulf %73, %75 : vector<32x128xf32>
    %77 = arith.addf %71, %76 : vector<32x128xf32>
    %78 = vector.extract_strided_slice %72 {offsets = [0, 32], sizes = [32, 128], strides = [1, 1]} : vector<32x256xf32> to vector<32x128xf32>
    %c1_55 = arith.constant 1 : index
    %c0_56 = arith.constant 0 : index
    %79 = vector.load %arg7[%c1_55, %c0_56] : memref<49x128xf32, #tpu.memory_space<vmem>>, vector<1x128xf32>
    %80 = vector.broadcast %79 : vector<1x128xf32> to vector<32x128xf32>
    %81 = arith.mulf %78, %80 : vector<32x128xf32>
    %82 = arith.addf %77, %81 : vector<32x128xf32>
    %83 = vector.extract_strided_slice %72 {offsets = [0, 48], sizes = [32, 128], strides = [1, 1]} : vector<32x256xf32> to vector<32x128xf32>
    %c2_57 = arith.constant 2 : index
    %c0_58 = arith.constant 0 : index
    %84 = vector.load %arg7[%c2_57, %c0_58] : memref<49x128xf32, #tpu.memory_space<vmem>>, vector<1x128xf32>
    %85 = vector.broadcast %84 : vector<1x128xf32> to vector<32x128xf32>
    %86 = arith.mulf %83, %85 : vector<32x128xf32>
    %87 = arith.addf %82, %86 : vector<32x128xf32>
    %88 = vector.extract_strided_slice %72 {offsets = [0, 64], sizes = [32, 128], strides = [1, 1]} : vector<32x256xf32> to vector<32x128xf32>
    %c3 = arith.constant 3 : index
    %c0_59 = arith.constant 0 : index
    %89 = vector.load %arg7[%c3, %c0_59] : memref<49x128xf32, #tpu.memory_space<vmem>>, vector<1x128xf32>
    %90 = vector.broadcast %89 : vector<1x128xf32> to vector<32x128xf32>
    %91 = arith.mulf %88, %90 : vector<32x128xf32>
    %92 = arith.addf %87, %91 : vector<32x128xf32>
    %93 = vector.extract_strided_slice %72 {offsets = [0, 80], sizes = [32, 128], strides = [1, 1]} : vector<32x256xf32> to vector<32x128xf32>
    %c4 = arith.constant 4 : index
    %c0_60 = arith.constant 0 : index
    %94 = vector.load %arg7[%c4, %c0_60] : memref<49x128xf32, #tpu.memory_space<vmem>>, vector<1x128xf32>
    %95 = vector.broadcast %94 : vector<1x128xf32> to vector<32x128xf32>
    %96 = arith.mulf %93, %95 : vector<32x128xf32>
    %97 = arith.addf %92, %96 : vector<32x128xf32>
    %98 = vector.extract_strided_slice %72 {offsets = [0, 96], sizes = [32, 128], strides = [1, 1]} : vector<32x256xf32> to vector<32x128xf32>
    %c5 = arith.constant 5 : index
    %c0_61 = arith.constant 0 : index
    %99 = vector.load %arg7[%c5, %c0_61] : memref<49x128xf32, #tpu.memory_space<vmem>>, vector<1x128xf32>
    %100 = vector.broadcast %99 : vector<1x128xf32> to vector<32x128xf32>
    %101 = arith.mulf %98, %100 : vector<32x128xf32>
    %102 = arith.addf %97, %101 : vector<32x128xf32>
    %103 = vector.extract_strided_slice %72 {offsets = [0, 112], sizes = [32, 128], strides = [1, 1]} : vector<32x256xf32> to vector<32x128xf32>
    %c6 = arith.constant 6 : index
    %c0_62 = arith.constant 0 : index
    %104 = vector.load %arg7[%c6, %c0_62] : memref<49x128xf32, #tpu.memory_space<vmem>>, vector<1x128xf32>
    %105 = vector.broadcast %104 : vector<1x128xf32> to vector<32x128xf32>
    %106 = arith.mulf %103, %105 : vector<32x128xf32>
    %107 = arith.addf %102, %106 : vector<32x128xf32>
    %c2_i32 = arith.constant 2 : i32
    %108 = tpu.dynamic_rotate %70 by %c2_i32 dim 0 : vector<32x256xf32>, i32 -> vector<32x256xf32>
    %109 = vector.extract_strided_slice %108 {offsets = [0, 16], sizes = [32, 128], strides = [1, 1]} : vector<32x256xf32> to vector<32x128xf32>
    %c7 = arith.constant 7 : index
    %c0_63 = arith.constant 0 : index
    %110 = vector.load %arg7[%c7, %c0_63] : memref<49x128xf32, #tpu.memory_space<vmem>>, vector<1x128xf32>
    %111 = vector.broadcast %110 : vector<1x128xf32> to vector<32x128xf32>
    %112 = arith.mulf %109, %111 : vector<32x128xf32>
    %113 = arith.addf %107, %112 : vector<32x128xf32>
    %114 = vector.extract_strided_slice %108 {offsets = [0, 32], sizes = [32, 128], strides = [1, 1]} : vector<32x256xf32> to vector<32x128xf32>
    %c8 = arith.constant 8 : index
    %c0_64 = arith.constant 0 : index
    %115 = vector.load %arg7[%c8, %c0_64] : memref<49x128xf32, #tpu.memory_space<vmem>>, vector<1x128xf32>
    %116 = vector.broadcast %115 : vector<1x128xf32> to vector<32x128xf32>
    %117 = arith.mulf %114, %116 : vector<32x128xf32>
    %118 = arith.addf %113, %117 : vector<32x128xf32>
    %119 = vector.extract_strided_slice %108 {offsets = [0, 48], sizes = [32, 128], strides = [1, 1]} : vector<32x256xf32> to vector<32x128xf32>
    %c9 = arith.constant 9 : index
    %c0_65 = arith.constant 0 : index
    %120 = vector.load %arg7[%c9, %c0_65] : memref<49x128xf32, #tpu.memory_space<vmem>>, vector<1x128xf32>
    %121 = vector.broadcast %120 : vector<1x128xf32> to vector<32x128xf32>
    %122 = arith.mulf %119, %121 : vector<32x128xf32>
    %123 = arith.addf %118, %122 : vector<32x128xf32>
    %124 = vector.extract_strided_slice %108 {offsets = [0, 64], sizes = [32, 128], strides = [1, 1]} : vector<32x256xf32> to vector<32x128xf32>
    %c10 = arith.constant 10 : index
    %c0_66 = arith.constant 0 : index
    %125 = vector.load %arg7[%c10, %c0_66] : memref<49x128xf32, #tpu.memory_space<vmem>>, vector<1x128xf32>
    %126 = vector.broadcast %125 : vector<1x128xf32> to vector<32x128xf32>
    %127 = arith.mulf %124, %126 : vector<32x128xf32>
    %128 = arith.addf %123, %127 : vector<32x128xf32>
    %129 = vector.extract_strided_slice %108 {offsets = [0, 80], sizes = [32, 128], strides = [1, 1]} : vector<32x256xf32> to vector<32x128xf32>
    %c11 = arith.constant 11 : index
    %c0_67 = arith.constant 0 : index
    %130 = vector.load %arg7[%c11, %c0_67] : memref<49x128xf32, #tpu.memory_space<vmem>>, vector<1x128xf32>
    %131 = vector.broadcast %130 : vector<1x128xf32> to vector<32x128xf32>
    %132 = arith.mulf %129, %131 : vector<32x128xf32>
    %133 = arith.addf %128, %132 : vector<32x128xf32>
    %134 = vector.extract_strided_slice %108 {offsets = [0, 96], sizes = [32, 128], strides = [1, 1]} : vector<32x256xf32> to vector<32x128xf32>
    %c12 = arith.constant 12 : index
    %c0_68 = arith.constant 0 : index
    %135 = vector.load %arg7[%c12, %c0_68] : memref<49x128xf32, #tpu.memory_space<vmem>>, vector<1x128xf32>
    %136 = vector.broadcast %135 : vector<1x128xf32> to vector<32x128xf32>
    %137 = arith.mulf %134, %136 : vector<32x128xf32>
    %138 = arith.addf %133, %137 : vector<32x128xf32>
    %139 = vector.extract_strided_slice %108 {offsets = [0, 112], sizes = [32, 128], strides = [1, 1]} : vector<32x256xf32> to vector<32x128xf32>
    %c13 = arith.constant 13 : index
    %c0_69 = arith.constant 0 : index
    %140 = vector.load %arg7[%c13, %c0_69] : memref<49x128xf32, #tpu.memory_space<vmem>>, vector<1x128xf32>
    %141 = vector.broadcast %140 : vector<1x128xf32> to vector<32x128xf32>
    %142 = arith.mulf %139, %141 : vector<32x128xf32>
    %143 = arith.addf %138, %142 : vector<32x128xf32>
    %c1_i32 = arith.constant 1 : i32
    %144 = tpu.dynamic_rotate %70 by %c1_i32 dim 0 : vector<32x256xf32>, i32 -> vector<32x256xf32>
    %145 = vector.extract_strided_slice %144 {offsets = [0, 16], sizes = [32, 128], strides = [1, 1]} : vector<32x256xf32> to vector<32x128xf32>
    %c14 = arith.constant 14 : index
    %c0_70 = arith.constant 0 : index
    %146 = vector.load %arg7[%c14, %c0_70] : memref<49x128xf32, #tpu.memory_space<vmem>>, vector<1x128xf32>
    %147 = vector.broadcast %146 : vector<1x128xf32> to vector<32x128xf32>
    %148 = arith.mulf %145, %147 : vector<32x128xf32>
    %149 = arith.addf %143, %148 : vector<32x128xf32>
    %150 = vector.extract_strided_slice %144 {offsets = [0, 32], sizes = [32, 128], strides = [1, 1]} : vector<32x256xf32> to vector<32x128xf32>
    %c15 = arith.constant 15 : index
    %c0_71 = arith.constant 0 : index
    %151 = vector.load %arg7[%c15, %c0_71] : memref<49x128xf32, #tpu.memory_space<vmem>>, vector<1x128xf32>
    %152 = vector.broadcast %151 : vector<1x128xf32> to vector<32x128xf32>
    %153 = arith.mulf %150, %152 : vector<32x128xf32>
    %154 = arith.addf %149, %153 : vector<32x128xf32>
    %155 = vector.extract_strided_slice %144 {offsets = [0, 48], sizes = [32, 128], strides = [1, 1]} : vector<32x256xf32> to vector<32x128xf32>
    %c16 = arith.constant 16 : index
    %c0_72 = arith.constant 0 : index
    %156 = vector.load %arg7[%c16, %c0_72] : memref<49x128xf32, #tpu.memory_space<vmem>>, vector<1x128xf32>
    %157 = vector.broadcast %156 : vector<1x128xf32> to vector<32x128xf32>
    %158 = arith.mulf %155, %157 : vector<32x128xf32>
    %159 = arith.addf %154, %158 : vector<32x128xf32>
    %160 = vector.extract_strided_slice %144 {offsets = [0, 64], sizes = [32, 128], strides = [1, 1]} : vector<32x256xf32> to vector<32x128xf32>
    %c17 = arith.constant 17 : index
    %c0_73 = arith.constant 0 : index
    %161 = vector.load %arg7[%c17, %c0_73] : memref<49x128xf32, #tpu.memory_space<vmem>>, vector<1x128xf32>
    %162 = vector.broadcast %161 : vector<1x128xf32> to vector<32x128xf32>
    %163 = arith.mulf %160, %162 : vector<32x128xf32>
    %164 = arith.addf %159, %163 : vector<32x128xf32>
    %165 = vector.extract_strided_slice %144 {offsets = [0, 80], sizes = [32, 128], strides = [1, 1]} : vector<32x256xf32> to vector<32x128xf32>
    %c18 = arith.constant 18 : index
    %c0_74 = arith.constant 0 : index
    %166 = vector.load %arg7[%c18, %c0_74] : memref<49x128xf32, #tpu.memory_space<vmem>>, vector<1x128xf32>
    %167 = vector.broadcast %166 : vector<1x128xf32> to vector<32x128xf32>
    %168 = arith.mulf %165, %167 : vector<32x128xf32>
    %169 = arith.addf %164, %168 : vector<32x128xf32>
    %170 = vector.extract_strided_slice %144 {offsets = [0, 96], sizes = [32, 128], strides = [1, 1]} : vector<32x256xf32> to vector<32x128xf32>
    %c19 = arith.constant 19 : index
    %c0_75 = arith.constant 0 : index
    %171 = vector.load %arg7[%c19, %c0_75] : memref<49x128xf32, #tpu.memory_space<vmem>>, vector<1x128xf32>
    %172 = vector.broadcast %171 : vector<1x128xf32> to vector<32x128xf32>
    %173 = arith.mulf %170, %172 : vector<32x128xf32>
    %174 = arith.addf %169, %173 : vector<32x128xf32>
    %175 = vector.extract_strided_slice %144 {offsets = [0, 112], sizes = [32, 128], strides = [1, 1]} : vector<32x256xf32> to vector<32x128xf32>
    %c20 = arith.constant 20 : index
    %c0_76 = arith.constant 0 : index
    %176 = vector.load %arg7[%c20, %c0_76] : memref<49x128xf32, #tpu.memory_space<vmem>>, vector<1x128xf32>
    %177 = vector.broadcast %176 : vector<1x128xf32> to vector<32x128xf32>
    %178 = arith.mulf %175, %177 : vector<32x128xf32>
    %179 = arith.addf %174, %178 : vector<32x128xf32>
    %180 = vector.extract_strided_slice %70 {offsets = [0, 16], sizes = [32, 128], strides = [1, 1]} : vector<32x256xf32> to vector<32x128xf32>
    %c21 = arith.constant 21 : index
    %c0_77 = arith.constant 0 : index
    %181 = vector.load %arg7[%c21, %c0_77] : memref<49x128xf32, #tpu.memory_space<vmem>>, vector<1x128xf32>
    %182 = vector.broadcast %181 : vector<1x128xf32> to vector<32x128xf32>
    %183 = arith.mulf %180, %182 : vector<32x128xf32>
    %184 = arith.addf %179, %183 : vector<32x128xf32>
    %185 = vector.extract_strided_slice %70 {offsets = [0, 32], sizes = [32, 128], strides = [1, 1]} : vector<32x256xf32> to vector<32x128xf32>
    %c22 = arith.constant 22 : index
    %c0_78 = arith.constant 0 : index
    %186 = vector.load %arg7[%c22, %c0_78] : memref<49x128xf32, #tpu.memory_space<vmem>>, vector<1x128xf32>
    %187 = vector.broadcast %186 : vector<1x128xf32> to vector<32x128xf32>
    %188 = arith.mulf %185, %187 : vector<32x128xf32>
    %189 = arith.addf %184, %188 : vector<32x128xf32>
    %190 = vector.extract_strided_slice %70 {offsets = [0, 48], sizes = [32, 128], strides = [1, 1]} : vector<32x256xf32> to vector<32x128xf32>
    %c23 = arith.constant 23 : index
    %c0_79 = arith.constant 0 : index
    %191 = vector.load %arg7[%c23, %c0_79] : memref<49x128xf32, #tpu.memory_space<vmem>>, vector<1x128xf32>
    %192 = vector.broadcast %191 : vector<1x128xf32> to vector<32x128xf32>
    %193 = arith.mulf %190, %192 : vector<32x128xf32>
    %194 = arith.addf %189, %193 : vector<32x128xf32>
    %195 = vector.extract_strided_slice %70 {offsets = [0, 64], sizes = [32, 128], strides = [1, 1]} : vector<32x256xf32> to vector<32x128xf32>
    %c24 = arith.constant 24 : index
    %c0_80 = arith.constant 0 : index
    %196 = vector.load %arg7[%c24, %c0_80] : memref<49x128xf32, #tpu.memory_space<vmem>>, vector<1x128xf32>
    %197 = vector.broadcast %196 : vector<1x128xf32> to vector<32x128xf32>
    %198 = arith.mulf %195, %197 : vector<32x128xf32>
    %199 = arith.addf %194, %198 : vector<32x128xf32>
    %200 = vector.extract_strided_slice %70 {offsets = [0, 80], sizes = [32, 128], strides = [1, 1]} : vector<32x256xf32> to vector<32x128xf32>
    %c25 = arith.constant 25 : index
    %c0_81 = arith.constant 0 : index
    %201 = vector.load %arg7[%c25, %c0_81] : memref<49x128xf32, #tpu.memory_space<vmem>>, vector<1x128xf32>
    %202 = vector.broadcast %201 : vector<1x128xf32> to vector<32x128xf32>
    %203 = arith.mulf %200, %202 : vector<32x128xf32>
    %204 = arith.addf %199, %203 : vector<32x128xf32>
    %205 = vector.extract_strided_slice %70 {offsets = [0, 96], sizes = [32, 128], strides = [1, 1]} : vector<32x256xf32> to vector<32x128xf32>
    %c26 = arith.constant 26 : index
    %c0_82 = arith.constant 0 : index
    %206 = vector.load %arg7[%c26, %c0_82] : memref<49x128xf32, #tpu.memory_space<vmem>>, vector<1x128xf32>
    %207 = vector.broadcast %206 : vector<1x128xf32> to vector<32x128xf32>
    %208 = arith.mulf %205, %207 : vector<32x128xf32>
    %209 = arith.addf %204, %208 : vector<32x128xf32>
    %210 = vector.extract_strided_slice %70 {offsets = [0, 112], sizes = [32, 128], strides = [1, 1]} : vector<32x256xf32> to vector<32x128xf32>
    %c27 = arith.constant 27 : index
    %c0_83 = arith.constant 0 : index
    %211 = vector.load %arg7[%c27, %c0_83] : memref<49x128xf32, #tpu.memory_space<vmem>>, vector<1x128xf32>
    %212 = vector.broadcast %211 : vector<1x128xf32> to vector<32x128xf32>
    %213 = arith.mulf %210, %212 : vector<32x128xf32>
    %214 = arith.addf %209, %213 : vector<32x128xf32>
    %c31_i32 = arith.constant 31 : i32
    %215 = tpu.dynamic_rotate %70 by %c31_i32 dim 0 : vector<32x256xf32>, i32 -> vector<32x256xf32>
    %216 = vector.extract_strided_slice %215 {offsets = [0, 16], sizes = [32, 128], strides = [1, 1]} : vector<32x256xf32> to vector<32x128xf32>
    %c28 = arith.constant 28 : index
    %c0_84 = arith.constant 0 : index
    %217 = vector.load %arg7[%c28, %c0_84] : memref<49x128xf32, #tpu.memory_space<vmem>>, vector<1x128xf32>
    %218 = vector.broadcast %217 : vector<1x128xf32> to vector<32x128xf32>
    %219 = arith.mulf %216, %218 : vector<32x128xf32>
    %220 = arith.addf %214, %219 : vector<32x128xf32>
    %221 = vector.extract_strided_slice %215 {offsets = [0, 32], sizes = [32, 128], strides = [1, 1]} : vector<32x256xf32> to vector<32x128xf32>
    %c29 = arith.constant 29 : index
    %c0_85 = arith.constant 0 : index
    %222 = vector.load %arg7[%c29, %c0_85] : memref<49x128xf32, #tpu.memory_space<vmem>>, vector<1x128xf32>
    %223 = vector.broadcast %222 : vector<1x128xf32> to vector<32x128xf32>
    %224 = arith.mulf %221, %223 : vector<32x128xf32>
    %225 = arith.addf %220, %224 : vector<32x128xf32>
    %226 = vector.extract_strided_slice %215 {offsets = [0, 48], sizes = [32, 128], strides = [1, 1]} : vector<32x256xf32> to vector<32x128xf32>
    %c30 = arith.constant 30 : index
    %c0_86 = arith.constant 0 : index
    %227 = vector.load %arg7[%c30, %c0_86] : memref<49x128xf32, #tpu.memory_space<vmem>>, vector<1x128xf32>
    %228 = vector.broadcast %227 : vector<1x128xf32> to vector<32x128xf32>
    %229 = arith.mulf %226, %228 : vector<32x128xf32>
    %230 = arith.addf %225, %229 : vector<32x128xf32>
    %231 = vector.extract_strided_slice %215 {offsets = [0, 64], sizes = [32, 128], strides = [1, 1]} : vector<32x256xf32> to vector<32x128xf32>
    %c31 = arith.constant 31 : index
    %c0_87 = arith.constant 0 : index
    %232 = vector.load %arg7[%c31, %c0_87] : memref<49x128xf32, #tpu.memory_space<vmem>>, vector<1x128xf32>
    %233 = vector.broadcast %232 : vector<1x128xf32> to vector<32x128xf32>
    %234 = arith.mulf %231, %233 : vector<32x128xf32>
    %235 = arith.addf %230, %234 : vector<32x128xf32>
    %236 = vector.extract_strided_slice %215 {offsets = [0, 80], sizes = [32, 128], strides = [1, 1]} : vector<32x256xf32> to vector<32x128xf32>
    %c32 = arith.constant 32 : index
    %c0_88 = arith.constant 0 : index
    %237 = vector.load %arg7[%c32, %c0_88] : memref<49x128xf32, #tpu.memory_space<vmem>>, vector<1x128xf32>
    %238 = vector.broadcast %237 : vector<1x128xf32> to vector<32x128xf32>
    %239 = arith.mulf %236, %238 : vector<32x128xf32>
    %240 = arith.addf %235, %239 : vector<32x128xf32>
    %241 = vector.extract_strided_slice %215 {offsets = [0, 96], sizes = [32, 128], strides = [1, 1]} : vector<32x256xf32> to vector<32x128xf32>
    %c33 = arith.constant 33 : index
    %c0_89 = arith.constant 0 : index
    %242 = vector.load %arg7[%c33, %c0_89] : memref<49x128xf32, #tpu.memory_space<vmem>>, vector<1x128xf32>
    %243 = vector.broadcast %242 : vector<1x128xf32> to vector<32x128xf32>
    %244 = arith.mulf %241, %243 : vector<32x128xf32>
    %245 = arith.addf %240, %244 : vector<32x128xf32>
    %246 = vector.extract_strided_slice %215 {offsets = [0, 112], sizes = [32, 128], strides = [1, 1]} : vector<32x256xf32> to vector<32x128xf32>
    %c34 = arith.constant 34 : index
    %c0_90 = arith.constant 0 : index
    %247 = vector.load %arg7[%c34, %c0_90] : memref<49x128xf32, #tpu.memory_space<vmem>>, vector<1x128xf32>
    %248 = vector.broadcast %247 : vector<1x128xf32> to vector<32x128xf32>
    %249 = arith.mulf %246, %248 : vector<32x128xf32>
    %250 = arith.addf %245, %249 : vector<32x128xf32>
    %c30_i32 = arith.constant 30 : i32
    %251 = tpu.dynamic_rotate %70 by %c30_i32 dim 0 : vector<32x256xf32>, i32 -> vector<32x256xf32>
    %252 = vector.extract_strided_slice %251 {offsets = [0, 16], sizes = [32, 128], strides = [1, 1]} : vector<32x256xf32> to vector<32x128xf32>
    %c35 = arith.constant 35 : index
    %c0_91 = arith.constant 0 : index
    %253 = vector.load %arg7[%c35, %c0_91] : memref<49x128xf32, #tpu.memory_space<vmem>>, vector<1x128xf32>
    %254 = vector.broadcast %253 : vector<1x128xf32> to vector<32x128xf32>
    %255 = arith.mulf %252, %254 : vector<32x128xf32>
    %256 = arith.addf %250, %255 : vector<32x128xf32>
    %257 = vector.extract_strided_slice %251 {offsets = [0, 32], sizes = [32, 128], strides = [1, 1]} : vector<32x256xf32> to vector<32x128xf32>
    %c36 = arith.constant 36 : index
    %c0_92 = arith.constant 0 : index
    %258 = vector.load %arg7[%c36, %c0_92] : memref<49x128xf32, #tpu.memory_space<vmem>>, vector<1x128xf32>
    %259 = vector.broadcast %258 : vector<1x128xf32> to vector<32x128xf32>
    %260 = arith.mulf %257, %259 : vector<32x128xf32>
    %261 = arith.addf %256, %260 : vector<32x128xf32>
    %262 = vector.extract_strided_slice %251 {offsets = [0, 48], sizes = [32, 128], strides = [1, 1]} : vector<32x256xf32> to vector<32x128xf32>
    %c37 = arith.constant 37 : index
    %c0_93 = arith.constant 0 : index
    %263 = vector.load %arg7[%c37, %c0_93] : memref<49x128xf32, #tpu.memory_space<vmem>>, vector<1x128xf32>
    %264 = vector.broadcast %263 : vector<1x128xf32> to vector<32x128xf32>
    %265 = arith.mulf %262, %264 : vector<32x128xf32>
    %266 = arith.addf %261, %265 : vector<32x128xf32>
    %267 = vector.extract_strided_slice %251 {offsets = [0, 64], sizes = [32, 128], strides = [1, 1]} : vector<32x256xf32> to vector<32x128xf32>
    %c38 = arith.constant 38 : index
    %c0_94 = arith.constant 0 : index
    %268 = vector.load %arg7[%c38, %c0_94] : memref<49x128xf32, #tpu.memory_space<vmem>>, vector<1x128xf32>
    %269 = vector.broadcast %268 : vector<1x128xf32> to vector<32x128xf32>
    %270 = arith.mulf %267, %269 : vector<32x128xf32>
    %271 = arith.addf %266, %270 : vector<32x128xf32>
    %272 = vector.extract_strided_slice %251 {offsets = [0, 80], sizes = [32, 128], strides = [1, 1]} : vector<32x256xf32> to vector<32x128xf32>
    %c39 = arith.constant 39 : index
    %c0_95 = arith.constant 0 : index
    %273 = vector.load %arg7[%c39, %c0_95] : memref<49x128xf32, #tpu.memory_space<vmem>>, vector<1x128xf32>
    %274 = vector.broadcast %273 : vector<1x128xf32> to vector<32x128xf32>
    %275 = arith.mulf %272, %274 : vector<32x128xf32>
    %276 = arith.addf %271, %275 : vector<32x128xf32>
    %277 = vector.extract_strided_slice %251 {offsets = [0, 96], sizes = [32, 128], strides = [1, 1]} : vector<32x256xf32> to vector<32x128xf32>
    %c40 = arith.constant 40 : index
    %c0_96 = arith.constant 0 : index
    %278 = vector.load %arg7[%c40, %c0_96] : memref<49x128xf32, #tpu.memory_space<vmem>>, vector<1x128xf32>
    %279 = vector.broadcast %278 : vector<1x128xf32> to vector<32x128xf32>
    %280 = arith.mulf %277, %279 : vector<32x128xf32>
    %281 = arith.addf %276, %280 : vector<32x128xf32>
    %282 = vector.extract_strided_slice %251 {offsets = [0, 112], sizes = [32, 128], strides = [1, 1]} : vector<32x256xf32> to vector<32x128xf32>
    %c41 = arith.constant 41 : index
    %c0_97 = arith.constant 0 : index
    %283 = vector.load %arg7[%c41, %c0_97] : memref<49x128xf32, #tpu.memory_space<vmem>>, vector<1x128xf32>
    %284 = vector.broadcast %283 : vector<1x128xf32> to vector<32x128xf32>
    %285 = arith.mulf %282, %284 : vector<32x128xf32>
    %286 = arith.addf %281, %285 : vector<32x128xf32>
    %c29_i32 = arith.constant 29 : i32
    %287 = tpu.dynamic_rotate %70 by %c29_i32 dim 0 : vector<32x256xf32>, i32 -> vector<32x256xf32>
    %288 = vector.extract_strided_slice %287 {offsets = [0, 16], sizes = [32, 128], strides = [1, 1]} : vector<32x256xf32> to vector<32x128xf32>
    %c42 = arith.constant 42 : index
    %c0_98 = arith.constant 0 : index
    %289 = vector.load %arg7[%c42, %c0_98] : memref<49x128xf32, #tpu.memory_space<vmem>>, vector<1x128xf32>
    %290 = vector.broadcast %289 : vector<1x128xf32> to vector<32x128xf32>
    %291 = arith.mulf %288, %290 : vector<32x128xf32>
    %292 = arith.addf %286, %291 : vector<32x128xf32>
    %293 = vector.extract_strided_slice %287 {offsets = [0, 32], sizes = [32, 128], strides = [1, 1]} : vector<32x256xf32> to vector<32x128xf32>
    %c43 = arith.constant 43 : index
    %c0_99 = arith.constant 0 : index
    %294 = vector.load %arg7[%c43, %c0_99] : memref<49x128xf32, #tpu.memory_space<vmem>>, vector<1x128xf32>
    %295 = vector.broadcast %294 : vector<1x128xf32> to vector<32x128xf32>
    %296 = arith.mulf %293, %295 : vector<32x128xf32>
    %297 = arith.addf %292, %296 : vector<32x128xf32>
    %298 = vector.extract_strided_slice %287 {offsets = [0, 48], sizes = [32, 128], strides = [1, 1]} : vector<32x256xf32> to vector<32x128xf32>
    %c44 = arith.constant 44 : index
    %c0_100 = arith.constant 0 : index
    %299 = vector.load %arg7[%c44, %c0_100] : memref<49x128xf32, #tpu.memory_space<vmem>>, vector<1x128xf32>
    %300 = vector.broadcast %299 : vector<1x128xf32> to vector<32x128xf32>
    %301 = arith.mulf %298, %300 : vector<32x128xf32>
    %302 = arith.addf %297, %301 : vector<32x128xf32>
    %303 = vector.extract_strided_slice %287 {offsets = [0, 64], sizes = [32, 128], strides = [1, 1]} : vector<32x256xf32> to vector<32x128xf32>
    %c45 = arith.constant 45 : index
    %c0_101 = arith.constant 0 : index
    %304 = vector.load %arg7[%c45, %c0_101] : memref<49x128xf32, #tpu.memory_space<vmem>>, vector<1x128xf32>
    %305 = vector.broadcast %304 : vector<1x128xf32> to vector<32x128xf32>
    %306 = arith.mulf %303, %305 : vector<32x128xf32>
    %307 = arith.addf %302, %306 : vector<32x128xf32>
    %308 = vector.extract_strided_slice %287 {offsets = [0, 80], sizes = [32, 128], strides = [1, 1]} : vector<32x256xf32> to vector<32x128xf32>
    %c46 = arith.constant 46 : index
    %c0_102 = arith.constant 0 : index
    %309 = vector.load %arg7[%c46, %c0_102] : memref<49x128xf32, #tpu.memory_space<vmem>>, vector<1x128xf32>
    %310 = vector.broadcast %309 : vector<1x128xf32> to vector<32x128xf32>
    %311 = arith.mulf %308, %310 : vector<32x128xf32>
    %312 = arith.addf %307, %311 : vector<32x128xf32>
    %313 = vector.extract_strided_slice %287 {offsets = [0, 96], sizes = [32, 128], strides = [1, 1]} : vector<32x256xf32> to vector<32x128xf32>
    %c47 = arith.constant 47 : index
    %c0_103 = arith.constant 0 : index
    %314 = vector.load %arg7[%c47, %c0_103] : memref<49x128xf32, #tpu.memory_space<vmem>>, vector<1x128xf32>
    %315 = vector.broadcast %314 : vector<1x128xf32> to vector<32x128xf32>
    %316 = arith.mulf %313, %315 : vector<32x128xf32>
    %317 = arith.addf %312, %316 : vector<32x128xf32>
    %318 = vector.extract_strided_slice %287 {offsets = [0, 112], sizes = [32, 128], strides = [1, 1]} : vector<32x256xf32> to vector<32x128xf32>
    %c48 = arith.constant 48 : index
    %c0_104 = arith.constant 0 : index
    %319 = vector.load %arg7[%c48, %c0_104] : memref<49x128xf32, #tpu.memory_space<vmem>>, vector<1x128xf32>
    %320 = vector.broadcast %319 : vector<1x128xf32> to vector<32x128xf32>
    %321 = arith.mulf %318, %320 : vector<32x128xf32>
    %322 = arith.addf %317, %321 : vector<32x128xf32>
    %c0_105 = arith.constant 0 : index
    %c0_106 = arith.constant 0 : index
    %323 = vector.load %arg8[%c0_105, %c0_106] : memref<2x128xf32, #tpu.memory_space<vmem>>, vector<1x128xf32>
    %324 = vector.broadcast %323 : vector<1x128xf32> to vector<32x128xf32>
    %325 = arith.addf %322, %324 : vector<32x128xf32>
    %c0_107 = arith.constant 0 : index
    %c0_108 = arith.constant 0 : index
    %326 = vector.load %arg3[%c0_107, %c0_108] : memref<128x8xf32, #tpu.memory_space<vmem>>, vector<128x8xf32>
    %c0_109 = arith.constant 0 : index
    %c0_110 = arith.constant 0 : index
    %327 = vector.load %arg4[%c0_109, %c0_110] : memref<8x128xf32, #tpu.memory_space<vmem>>, vector<8x128xf32>
    %cst_111 = arith.constant dense<0.000000e+00> : vector<32x8xf32>
    %328 = tpu.matmul %325, %326, %cst_111 {dimension_numbers = #tpu.dot_dimension_numbers<[1], [0], [0], [1], [0, 0, 1, 1], [], []>} : vector<32x128xf32>, vector<128x8xf32>, vector<32x8xf32> -> vector<32x8xf32>
    %cst_112 = arith.constant 6.250000e-02 : f32
    %329 = vector.broadcast %cst_112 : f32 to vector<32x8xf32>
    %330 = arith.mulf %328, %329 : vector<32x8xf32>
    %cst_113 = arith.constant dense<0.000000e+00> : vector<32x128xf32>
    %331 = tpu.matmul %330, %327, %cst_113 {dimension_numbers = #tpu.dot_dimension_numbers<[1], [0], [0], [1], [0, 0, 1, 1], [], []>} : vector<32x8xf32>, vector<8x128xf32>, vector<32x128xf32> -> vector<32x128xf32>
    %332 = arith.subf %325, %331 : vector<32x128xf32>
    %333 = arith.mulf %332, %332 : vector<32x128xf32>
    %cst_114 = arith.constant dense<0.000000e+00> : vector<32x8xf32>
    %334 = tpu.matmul %333, %326, %cst_114 {dimension_numbers = #tpu.dot_dimension_numbers<[1], [0], [0], [1], [0, 0, 1, 1], [], []>} : vector<32x128xf32>, vector<128x8xf32>, vector<32x8xf32> -> vector<32x8xf32>
    %cst_115 = arith.constant 6.250000e-02 : f32
    %335 = vector.broadcast %cst_115 : f32 to vector<32x8xf32>
    %336 = arith.mulf %334, %335 : vector<32x8xf32>
    %cst_116 = arith.constant dense<0.000000e+00> : vector<32x128xf32>
    %337 = tpu.matmul %336, %327, %cst_116 {dimension_numbers = #tpu.dot_dimension_numbers<[1], [0], [0], [1], [0, 0, 1, 1], [], []>} : vector<32x8xf32>, vector<8x128xf32>, vector<32x128xf32> -> vector<32x128xf32>
    %cst_117 = arith.constant 9.99999997E-7 : f32
    %338 = vector.broadcast %cst_117 : f32 to vector<32x128xf32>
    %339 = arith.addf %337, %338 : vector<32x128xf32>
    %340 = math.rsqrt %339 : vector<32x128xf32>
    %341 = arith.mulf %332, %340 : vector<32x128xf32>
    %342 = arith.truncf %341 : vector<32x128xf32> to vector<32x128xbf16>
    %c0_118 = arith.constant 0 : index
    %c0_119 = arith.constant 0 : index
    %343 = vector.load %arg9[%c0_118, %c0_119] : memref<128x512xbf16, #tpu.memory_space<vmem>>, vector<128x512xbf16>
    %cst_120 = arith.constant dense<0.000000e+00> : vector<32x512xf32>
    %344 = tpu.matmul %342, %343, %cst_120 {dimension_numbers = #tpu.dot_dimension_numbers<[1], [0], [0], [1], [0, 0, 1, 1], [], []>} : vector<32x128xbf16>, vector<128x512xbf16>, vector<32x512xf32> -> vector<32x512xf32>
    %c0_121 = arith.constant 0 : index
    %c0_122 = arith.constant 0 : index
    %345 = vector.load %arg10[%c0_121, %c0_122] : memref<1x512xf32, #tpu.memory_space<vmem>>, vector<1x512xf32>
    %346 = vector.broadcast %345 : vector<1x512xf32> to vector<32x512xf32>
    %347 = arith.addf %344, %346 : vector<32x512xf32>
    %cst_123 = arith.constant 5.000000e-01 : f32
    %348 = vector.broadcast %cst_123 : f32 to vector<32x512xf32>
    %349 = arith.mulf %348, %347 : vector<32x512xf32>
    %cst_124 = arith.constant 0.707106769 : f32
    %350 = vector.broadcast %cst_124 : f32 to vector<32x512xf32>
    %351 = arith.mulf %347, %350 : vector<32x512xf32>
    %352 = math.absf %351 : vector<32x512xf32>
    %cst_125 = arith.constant 0.327591091 : f32
    %353 = vector.broadcast %cst_125 : f32 to vector<32x512xf32>
    %354 = arith.mulf %353, %352 : vector<32x512xf32>
    %cst_126 = arith.constant 1.000000e+00 : f32
    %355 = vector.broadcast %cst_126 : f32 to vector<32x512xf32>
    %356 = arith.addf %355, %354 : vector<32x512xf32>
    %357 = tpu.reciprocal %356 {approx = true} : vector<32x512xf32> -> vector<32x512xf32>
    %cst_127 = arith.constant 1.06140542 : f32
    %358 = vector.broadcast %cst_127 : f32 to vector<32x512xf32>
    %359 = arith.mulf %358, %357 : vector<32x512xf32>
    %cst_128 = arith.constant -1.45315206 : f32
    %360 = vector.broadcast %cst_128 : f32 to vector<32x512xf32>
    %361 = arith.addf %359, %360 : vector<32x512xf32>
    %362 = arith.mulf %361, %357 : vector<32x512xf32>
    %cst_129 = arith.constant 1.42141378 : f32
    %363 = vector.broadcast %cst_129 : f32 to vector<32x512xf32>
    %364 = arith.addf %362, %363 : vector<32x512xf32>
    %365 = arith.mulf %364, %357 : vector<32x512xf32>
    %cst_130 = arith.constant -0.284496725 : f32
    %366 = vector.broadcast %cst_130 : f32 to vector<32x512xf32>
    %367 = arith.addf %365, %366 : vector<32x512xf32>
    %368 = arith.mulf %367, %357 : vector<32x512xf32>
    %cst_131 = arith.constant 0.254829586 : f32
    %369 = vector.broadcast %cst_131 : f32 to vector<32x512xf32>
    %370 = arith.addf %368, %369 : vector<32x512xf32>
    %371 = arith.mulf %370, %357 : vector<32x512xf32>
    %cst_132 = arith.constant 0.000000e+00 : f32
    %372 = vector.broadcast %cst_132 : f32 to vector<32x512xf32>
    %373 = arith.subf %372, %352 : vector<32x512xf32>
    %374 = arith.mulf %373, %352 : vector<32x512xf32>
    %375 = math.exp %374 : vector<32x512xf32>
    %376 = arith.mulf %371, %375 : vector<32x512xf32>
    %cst_133 = arith.constant 1.000000e+00 : f32
    %377 = vector.broadcast %cst_133 : f32 to vector<32x512xf32>
    %378 = arith.subf %377, %376 : vector<32x512xf32>
    %cst_134 = arith.constant 0.000000e+00 : f32
    %379 = vector.broadcast %cst_134 : f32 to vector<32x512xf32>
    %380 = arith.cmpf olt, %351, %379 : vector<32x512xf32>
    %cst_135 = arith.constant 0.000000e+00 : f32
    %381 = vector.broadcast %cst_135 : f32 to vector<32x512xf32>
    %382 = arith.subf %381, %378 : vector<32x512xf32>
    %383 = arith.select %380, %382, %378 : vector<32x512xi1>, vector<32x512xf32>
    %cst_136 = arith.constant 1.000000e+00 : f32
    %384 = vector.broadcast %cst_136 : f32 to vector<32x512xf32>
    %385 = arith.addf %384, %383 : vector<32x512xf32>
    %386 = arith.mulf %349, %385 : vector<32x512xf32>
    %387 = arith.truncf %386 : vector<32x512xf32> to vector<32x512xbf16>
    %c0_137 = arith.constant 0 : index
    %c0_138 = arith.constant 0 : index
    %388 = vector.load %arg11[%c0_137, %c0_138] : memref<512x128xbf16, #tpu.memory_space<vmem>>, vector<512x128xbf16>
    %cst_139 = arith.constant dense<0.000000e+00> : vector<32x128xf32>
    %389 = tpu.matmul %387, %388, %cst_139 {dimension_numbers = #tpu.dot_dimension_numbers<[1], [0], [0], [1], [0, 0, 1, 1], [], []>} : vector<32x512xbf16>, vector<512x128xbf16>, vector<32x128xf32> -> vector<32x128xf32>
    %c1_140 = arith.constant 1 : index
    %c0_141 = arith.constant 0 : index
    %390 = vector.load %arg8[%c1_140, %c0_141] : memref<2x128xf32, #tpu.memory_space<vmem>>, vector<1x128xf32>
    %391 = vector.broadcast %390 : vector<1x128xf32> to vector<32x128xf32>
    %392 = arith.addf %389, %391 : vector<32x128xf32>
    %393 = vector.extract_strided_slice %70 {offsets = [0, 64], sizes = [32, 128], strides = [1, 1]} : vector<32x256xf32> to vector<32x128xf32>
    %394 = arith.addf %393, %392 : vector<32x128xf32>
    %c0_142 = arith.constant 0 : index
    %c0_143 = arith.constant 0 : index
    %395 = vector.load %arg12[%c0_142, %c0_143] : memref<32x128xf32, #tpu.memory_space<vmem>>, vector<32x128xf32>
    tpu.vector_store %arg12[%c0_142, %c0_143], %394 {strides = array<i32>} : memref<32x128xf32, #tpu.memory_space<vmem>>, vector<32x128xf32>,
    return
  }
}

</mosaic_0001>

<bundles_post_ra>
// kernel: preact_block_enc.1
= control target key start
LH: loop header
LB: loop body
LE: loop exit
PB: predicated region body
PF: predicated region fallthrough
CT: control target
= control target key end

     0   :  { %vm154_vm0 = vcmask 130048   ;;  %s7470_s30 = smov 32   ;;  %s7471_s15 = smov 64   ;;  %vm1815_vm7 = vcmask 916480   ;;  %vm1877_vm8 = vcmask 785408   ;;  %vm1939_vm9 = vcmask 654336   ;;  %s11814_s1 = inlined_call_operand.vmem [shape: f32[128,16], index: 1, kind: input, shape index: {}]   ;;  %s11815_s0 = inlined_call_operand.vmem [shape: f32[3,32,128], index: 0, kind: input, shape index: {}]   ;;  %s11816_s2 = inlined_call_operand.vmem [shape: f32[16,128], index: 2, kind: input, shape index: {}]   ;;  %s11817_s5 = inlined_call_operand.vmem [shape: bf16[3,128,256], index: 5, kind: input, shape index: {}]   ;;  %s11818_s6 = inlined_call_operand.vmem [shape: f32[1,256], index: 6, kind: input, shape index: {}]   ;;  %s11819_s7 = inlined_call_operand.vmem [shape: f32[49,128], index: 7, kind: input, shape index: {}]   ;;  %s11820_s8 = inlined_call_operand.vmem [shape: f32[2,128], index: 8, kind: input, shape index: {}]   ;;  %s11821_s3 = inlined_call_operand.vmem [shape: f32[128,8], index: 3, kind: input, shape index: {}]   ;;  %s11822_s4 = inlined_call_operand.vmem [shape: f32[8,128], index: 4, kind: input, shape index: {}]   ;;  %s11823_s9 = inlined_call_operand.vmem [shape: bf16[128,512], index: 9, kind: input, shape index: {}]   ;;  %s11824_s10 = inlined_call_operand.vmem [shape: f32[1,512], index: 10, kind: input, shape index: {}]   ;;  %s11825_s11 = inlined_call_operand.vmem [shape: bf16[512,128], index: 11, kind: input, shape index: {}]   ;;  %s11826_s12 = inlined_call_operand.vmem [shape: f32[32,128], index: 12, kind: output, shape index: {}]  }
   0x1   :  { %v7545_v0 = vld [vmem:[%s11814_s1 + $0x78] sm:$0xff]  ;;  %v7550_v1 = vld [vmem:[%s11814_s1 + $0x70] sm:$0xff]  ;;  %v7557_v2 = vld [vmem:[%s11814_s1 + $0x68] sm:$0xff]  ;;  %s7473_s23 = smov 80   ;;  %s7475_s29 = smov 112   ;;  %vm2001_vm10 = vcmask 523264  }
   0x2   :  { %6793 = vmatprep.subr.mxu0 %v7545_v0  ;;  %v7564_v3 = vld [vmem:[%s11814_s1 + $0x60] sm:$0xff]  ;;  %v7576_v5 = vld [vmem:[%s11814_s1 + $0x58] sm:$0xff]  ;;  %v7584_v6 = vld [vmem:[%s11814_s1 + $0x50] sm:$0xff]  ;;  %s7476_s22 = smov 16   ;;  %vm2063_vm11 = vcmask 392192   ;;  %vm2125_vm12 = vcmask 261120  }
   0x3   :  { %6794 = vmatpush3.msra.mxu0 %v7545_v0  ;;  %v7570_v4 = vld [vmem:[%s11815_s0] sm:$0xff]  ;;  %v7591_v7 = vld [vmem:[%s11814_s1 + $0x48] sm:$0xff]  ;;  %v7605_v9 = vld [vmem:[%s11814_s1 + $0x38] sm:$0xff]  ;;  %vm4732_vm13 = vcmask 64512  }
   0x4   :  { %6795 = vmatprep.subr.mxu0 %v7550_v1  ;;  %6825 = vmatprep.mubr.f32.mxu0 %v7570_v4  ;;  %v7598_v8 = vld [vmem:[%s11814_s1 + $0x40] sm:$0xff]  ;;  %v7612_v10 = vld [vmem:[%s11814_s1 + $0x30] sm:$0xff]  ;;  %v7619_v11 = vld [vmem:[%s11814_s1 + $0x28] sm:$0xff] }
   0x5   :  { %6796 = vmatpush3.msra.mxu0 %v7550_v1  ;;  %v7626_v12 = vld [vmem:[%s11814_s1 + $0x20] sm:$0xff]  ;;  %v7633_v13 = vld [vmem:[%s11814_s1 + $0x18] sm:$0xff]  ;;  %v7640_v14 = vld [vmem:[%s11814_s1 + $0x10] sm:$0xff] }
   0x6   :  { %6797 = vmatprep.subr.mxu0 %v7557_v2  ;;  %v7647_v15 = vld [vmem:[%s11814_s1 + $0x8] sm:$0xff]  ;;  %v7654_v16 = vld [vmem:[%s11814_s1] sm:$0xff]  ;;  %v7667_v18 = vld [vmem:[%s11815_s0 + $0x10] sm:$0xff]  ;;  %s7472_s1 = smov 48  }
   0x7   :  { %6798 = vmatpush3.msra.mxu0 %v7557_v2  ;;  %v7661_v17 = vld [vmem:[%s11815_s0 + $0x8] sm:$0xff]  ;;  %v7675_v19 = vld [vmem:[%s11815_s0 + $0x18] sm:$0xff]  ;;  %v7689_v21 = vld [vmem:[%s11816_s2] sm:$0xff] }
   0x8   :  { %6799 = vmatprep.subr.mxu0 %v7564_v3  ;;  %v7681_v20 = vld [vmem:[%s11816_s2 + $0x8] sm:$0xff]  ;;  %v7221_v42 = vld [vmem:[%s11817_s5 + $0x70] ss:$8 sps:$4 sm:$0xff]   ;;  %v7223_v43 = vld [vmem:[%s11817_s5 + $0x74] ss:$8 sps:$4 sm:$0xff]  }
   0x9   :  { %6800 = vmatpush3.msra.mxu0 %v7564_v3  ;;  %6831 = vmatprep.subr.mxu1 %v7681_v20  ;;  %v7226_v44 = vld [vmem:[%s11817_s5 + $0x64] ss:$8 sps:$4 sm:$0xff]   ;;  %v7224_v45 = vld [vmem:[%s11817_s5 + $0x60] ss:$8 sps:$4 sm:$0xff]   ;;  %v7229_v46 = vld [vmem:[%s11817_s5 + $0x54] ss:$8 sps:$4 sm:$0xff]  }
   0xa   :  { %6801 = vmatprep.subr.mxu0 %v7576_v5  ;;  %6832 = vmatpush3.msra.mxu1 %v7681_v20  ;;  %v7227_v47 = vld [vmem:[%s11817_s5 + $0x50] ss:$8 sps:$4 sm:$0xff]   ;;  %v7778_v56 = vld [vmem:[%s11815_s0 + $0x20] sm:$0xff]  ;;  %v7813_v57 = vld [vmem:[%s11815_s0 + $0x28] sm:$0xff] }
   0xb   :  { %6802 = vmatpush3.msra.mxu0 %v7576_v5  ;;  %6833 = vmatprep.subr.mxu1 %v7689_v21  ;;  %v7819_v58 = vld [vmem:[%s11815_s0 + $0x30] sm:$0xff]  ;;  %v7828_v59 = vld [vmem:[%s11815_s0 + $0x38] sm:$0xff]  ;;  %v7232_v60 = vld [vmem:[%s11817_s5 + $0x44] ss:$8 sps:$4 sm:$0xff]  }
   0xc   :  { %6803 = vmatprep.subr.mxu0 %v7584_v6  ;;  %6834 = vmatpush3.msra.mxu1 %v7689_v21  ;;  %v7230_v61 = vld [vmem:[%s11817_s5 + $0x40] ss:$8 sps:$4 sm:$0xff]   ;;  %v7235_v62 = vld [vmem:[%s11817_s5 + $0x34] ss:$8 sps:$4 sm:$0xff]   ;;  %v7233_v63 = vld [vmem:[%s11817_s5 + $0x30] ss:$8 sps:$4 sm:$0xff]  }
   0xd   :  { %6804 = vmatpush3.msra.mxu0 %v7584_v6  ;;  %6841 = vmatprep.subr.mxu1 %v7545_v0 }
   0xe   :  { %6805 = vmatprep.subr.mxu0 %v7591_v7 }
   0xf   :  { %6806 = vmatpush3.msra.mxu0 %v7591_v7 }
  0x10   :  { %6807 = vmatprep.subr.mxu0 %v7598_v8 }
  0x11   :  { %6808 = vmatpush3.msra.mxu0 %v7598_v8 }
  0x12   :  { %6809 = vmatprep.subr.mxu0 %v7605_v9 }
  0x13   :  { %6810 = vmatpush3.msra.mxu0 %v7605_v9 }
  0x14   :  { %6811 = vmatprep.subr.mxu0 %v7612_v10 }
  0x15   :  { %6812 = vmatpush3.msra.mxu0 %v7612_v10 }
  0x16   :  { %6813 = vmatprep.subr.mxu0 %v7619_v11 }
  0x17   :  { %6814 = vmatpush3.msra.mxu0 %v7619_v11 }
  0x18   :  { %6815 = vmatprep.subr.mxu0 %v7626_v12 }
  0x19   :  { %6816 = vmatpush3.msra.mxu0 %v7626_v12 }
  0x1a   :  { %6817 = vmatprep.subr.mxu0 %v7633_v13 }
  0x1b   :  { %6818 = vmatpush3.msra.mxu0 %v7633_v13 }
  0x1c   :  { %6819 = vmatprep.subr.mxu0 %v7640_v14 }
  0x1d   :  { %6820 = vmatpush3.msra.mxu0 %v7640_v14 }
  0x1e   :  { %6821 = vmatprep.subr.mxu0 %v7647_v15 }
  0x1f   :  { %6822 = vmatpush3.msra.mxu0 %v7647_v15 }
  0x20   :  { %6823 = vmatprep.subr.mxu0 %v7654_v16 }
  0x21   :  { %6824 = vmatpush3.msra.mxu0 %v7654_v16 }
  0x22   :  { %6826 = vmatmul.mubr.f32.vlgmr.msra.gmra.mxu0 %v7661_v17  ;;  %6879 = vmatprep.subr.mxu0 %v7681_v20 }
  0x23   :  { %6828 = vmatprep.mubr.f32.mxu0 %v7667_v18  ;;  %6880 = vmatpush3.msra.mxu0 %v7681_v20 }
  0x24   :  { %6881 = vmatprep.subr.mxu0 %v7689_v21 }
  0x25   :  { %6882 = vmatpush3.msra.mxu0 %v7689_v21 }
  0x26   :  { %6829 = vmatmul.mubr.f32.gmra.mxu0 %v7675_v19  ;;  %6889 = vmatprep.subr.mxu0 %v7545_v0 }
  0xe2   :  { %v6827_v22 = vpop.f32.mrf.mxu0 }
  0xe3   :  { %v151_v25 = vmul.f32 0.125, %v6827_v22  ;;  %v7239_v22 = vld [vmem:[%s11817_s5 + $0x10] ss:$8 sps:$4 sm:$0xff]  }
  0xe4   :  { %v131_v23 = vpop.f32.mrf.mxu0 }
  0xe5   :  { %v150_v24 = vmul.f32 0.125, %v131_v23  ;;  %v7244_v23 = vld [vmem:[%s11817_s5 + $0x4] ss:$8 sps:$4 sm:$0xff]  }
  0xe6   :  { %v6830_v26 = vpop.f32.mrf.mxu0 }
  0xe7   :  { %6835 = vmatprep.mubr.msk.f32.mxu1 %vm154_vm0, %v150_v24  ;;  %v153_v27 = vmul.f32 0.125, %v6830_v26  ;;  %v7242_v24 = vld [vmem:[%s11817_s5] ss:$8 sps:$4 sm:$0xff]  }
  0xe8   :  { %v141_v28 = vpop.f32.mrf.mxu0  ;;  %6836 = vmatmul.mubr.msk.f32.vlgmr.msra.gmra.mxu1 %vm154_vm0, %v151_v25 }
  0xe9   :  { %v152_v29 = vmul.f32 0.125, %v141_v28  ;;  %6842 = vmatpush3.msra.mxu1 %v7545_v0 }
  0xea   :  { %6843 = vmatprep.subr.mxu1 %v7550_v1 }
  0xeb   :  { %6838 = vmatprep.mubr.msk.f32.mxu1 %vm154_vm0, %v152_v29  ;;  %6844 = vmatpush3.msra.mxu1 %v7550_v1 }
  0xec   :  { %6839 = vmatmul.mubr.msk.f32.gmra.mxu1 %vm154_vm0, %v153_v27  ;;  %6845 = vmatprep.subr.mxu1 %v7557_v2 }
  0xed   :  { %6846 = vmatpush3.msra.mxu1 %v7557_v2 }
  0xee   :  { %6847 = vmatprep.subr.mxu1 %v7564_v3 }
  0xef   :  { %6848 = vmatpush3.msra.mxu1 %v7564_v3 }
  0xf0   :  { %6849 = vmatprep.subr.mxu1 %v7576_v5 }
  0xf1   :  { %6850 = vmatpush3.msra.mxu1 %v7576_v5 }
  0xf2   :  { %6851 = vmatprep.subr.mxu1 %v7584_v6 }
  0xf3   :  { %6852 = vmatpush3.msra.mxu1 %v7584_v6 }
  0xf4   :  { %6853 = vmatprep.subr.mxu1 %v7591_v7 }
  0xf5   :  { %6854 = vmatpush3.msra.mxu1 %v7591_v7 }
  0xf6   :  { %6855 = vmatprep.subr.mxu1 %v7598_v8 }
  0xf7   :  { %6856 = vmatpush3.msra.mxu1 %v7598_v8 }
  0xf8   :  { %6857 = vmatprep.subr.mxu1 %v7605_v9 }
  0xf9   :  { %6858 = vmatpush3.msra.mxu1 %v7605_v9 }
  0xfa   :  { %6859 = vmatprep.subr.mxu1 %v7612_v10 }
  0xfb   :  { %6860 = vmatpush3.msra.mxu1 %v7612_v10 }
  0xfc   :  { %6861 = vmatprep.subr.mxu1 %v7619_v11 }
  0xfd   :  { %6862 = vmatpush3.msra.mxu1 %v7619_v11 }
  0xfe   :  { %6863 = vmatprep.subr.mxu1 %v7626_v12 }
  0xff   :  { %6864 = vmatpush3.msra.mxu1 %v7626_v12 }
 0x100   :  { %6865 = vmatprep.subr.mxu1 %v7633_v13 }
 0x101   :  { %6866 = vmatpush3.msra.mxu1 %v7633_v13 }
 0x102   :  { %6867 = vmatprep.subr.mxu1 %v7640_v14 }
 0x103   :  { %6868 = vmatpush3.msra.mxu1 %v7640_v14 }
 0x104   :  { %6869 = vmatprep.subr.mxu1 %v7647_v15 }
 0x105   :  { %6870 = vmatpush3.msra.mxu1 %v7647_v15 }
 0x106   :  { %6871 = vmatprep.subr.mxu1 %v7654_v16 }
 0x107   :  { %6872 = vmatpush3.msra.mxu1 %v7654_v16 }
 0x108   :  { %552 = vmatprep.subr.bf16.mxu1 %v7223_v43 }
 0x1a8   :  { %v6837_v30 = vpop.f32.mrf.mxu1 }
 0x1a9   :  { %v7734_v31 = vsub.f32 %v7661_v17, %v6837_v30  ;;  %v7238_v17 = vld [vmem:[%s11817_s5 + $0x24] ss:$8 sps:$4 sm:$0xff]  }
 0x1aa   :  { %v233_v32 = vpop.f32.mrf.mxu1 }
 0x1ab   :  { %v7737_v33 = vsub.f32 %v7570_v4, %v233_v32  ;;  %v257_v37 = vmul.f32 %v7734_v31, %v7734_v31  ;;  %v7236_v4 = vld [vmem:[%s11817_s5 + $0x20] ss:$8 sps:$4 sm:$0xff]  }
 0x1ac   :  { %v6840_v34 = vpop.f32.mrf.mxu1 }
 0x1ad   :  { %v256_v35 = vmul.f32 %v7737_v33, %v7737_v33  ;;  %v7742_v36 = vsub.f32 %v7675_v19, %v6840_v34  ;;  %v11829_v19 = vmov 0  }
 0x1ae   :  { %v243_v38 = vpop.f32.mrf.mxu1 }
 0x1af   :  { %v7747_v39 = vsub.f32 %v7667_v18, %v243_v38  ;;  %6873 = vmatprep.mubr.f32.mxu1 %v256_v35  ;;  %v259_v40 = vmul.f32 %v7742_v36, %v7742_v36  ;;  %v7241_v18 = vld [vmem:[%s11817_s5 + $0x14] ss:$8 sps:$4 sm:$0xff]  }
 0x1b0   :  { %6874 = vmatmul.mubr.f32.vlgmr.msra.gmra.mxu1 %v257_v37 }
 0x1b1   :  { %v258_v41 = vmul.f32 %v7747_v39, %v7747_v39  ;;  %553 = vmatpush1.bf16.msra.mxu1 %v7221_v42 }
 0x1b2   :  { %554 = vmatprep.subr.bf16.mxu1 %v7226_v44 }
 0x1b3   :  { %6876 = vmatprep.mubr.f32.mxu1 %v258_v41 }
 0x1b4   :  { %6877 = vmatmul.mubr.f32.gmra.mxu1 %v259_v40 }
 0x1b5   :  { %555 = vmatpush1.bf16.msra.mxu1 %v7224_v45  ;;  %584 = vmatprep.mubr.bf16.mxu1 %v11829_v19 }
 0x1b6   :  { %556 = vmatprep.subr.bf16.mxu1 %v7229_v46 }
 0x1b9   :  { %557 = vmatpush1.bf16.msra.mxu1 %v7227_v47 }
 0x1ba   :  { %558 = vmatprep.subr.bf16.mxu1 %v7232_v60  ;;  %v42_v60 = vld [vmem:[%s11818_s6] sm:$0x3]  ;;  %s7474_s6 = smov 96  }
 0x1bd   :  { %559 = vmatpush1.bf16.msra.mxu1 %v7230_v61 }
 0x1be   :  { %560 = vmatprep.subr.bf16.mxu1 %v7235_v62 }
 0x1c1   :  { %561 = vmatpush1.bf16.msra.mxu1 %v7233_v63 }
 0x1c2   :  { %562 = vmatprep.subr.bf16.mxu1 %v7238_v17 }
 0x1c5   :  { %563 = vmatpush1.bf16.msra.mxu1 %v7236_v4 }
 0x1c6   :  { %564 = vmatprep.subr.bf16.mxu1 %v7241_v18 }
 0x1c9   :  { %565 = vmatpush1.bf16.msra.mxu1 %v7239_v22 }
 0x1ca   :  { %566 = vmatprep.subr.bf16.mxu1 %v7244_v23 }
 0x1cd   :  { %567 = vmatpush1.bf16.msra.mxu1 %v7242_v24 }
 0x1ce   :  { %6937 = vmatprep.subr.mxu1 %v7545_v0 }
 0x270   :  { %v6875_v48 = vpop.f32.mrf.mxu1 }
 0x271   :  { %v346_v51 = vmul.f32 0.125, %v6875_v48 }
 0x272   :  { %v326_v49 = vpop.f32.mrf.mxu1 }
 0x273   :  { %v345_v50 = vmul.f32 0.125, %v326_v49 }
 0x274   :  { %v6878_v52 = vpop.f32.mrf.mxu1 }
 0x275   :  { %6883 = vmatprep.mubr.msk.f32.mxu0 %vm154_vm0, %v345_v50  ;;  %v348_v53 = vmul.f32 0.125, %v6878_v52 }
 0x276   :  { %v336_v54 = vpop.f32.mrf.mxu1  ;;  %6884 = vmatmul.mubr.msk.f32.vlgmr.msra.gmra.mxu0 %vm154_vm0, %v346_v51  ;;  %v606_v51 = vlaneseq }
 0x277   :  { %v347_v55 = vmul.f32 0.125, %v336_v54  ;;  %6890 = vmatpush3.msra.mxu0 %v7545_v0 }
 0x278   :  { %6891 = vmatprep.subr.mxu0 %v7550_v1  ;;  %v7911_v52 = vshrl.u32 %v606_v51, 7 }
 0x279   :  { %6892 = vmatpush3.msra.mxu0 %v7550_v1  ;;  %6886 = vmatprep.mubr.msk.f32.mxu0 %vm154_vm0, %v347_v55 }
 0x27a   :  { %6893 = vmatprep.subr.mxu0 %v7557_v2  ;;  %6887 = vmatmul.mubr.msk.f32.gmra.mxu0 %vm154_vm0, %v348_v53  ;;  %12039 = vst [vmem:[#allocation2_spill] sm:$0xff] %v7911_v52  ;;  %v11828_v55 = vsub.s32 0, %v7911_v52  ;;  %v11827_v62 = vsub.s32 1, %v7911_v52  ;;  %vm1740_vm1 = vcmp.lt.s32.totalorder %v7911_v52, 3  ;;  %vm2154_vm2 = vcmp.lt.s32.totalorder %v7911_v52, 2 }
 0x27b   :  { %6894 = vmatpush3.msra.mxu0 %v7557_v2  ;;  %6921 = vmatprep.mubr.f32.mxu0 %v7778_v56  ;;  %vm2562_vm3 = vcmp.lt.s32.totalorder %v7911_v52, 1  ;;  %vm3769_vm4 = vcmp.lt.s32.totalorder %v7911_v52, 6  ;;  %vm3361_vm5 = vcmp.lt.s32.totalorder %v7911_v52, 7  ;;  %vm4177_vm6 = vcmp.lt.s32.totalorder %v7911_v52, 5 }
 0x27c   :  { %6895 = vmatprep.subr.mxu0 %v7564_v3  ;;  %v7928_v4 = vrot.slane %v42_v60, %v11828_v55  ;;  %v7932_v18 = vrot.slane %v42_v60, %v11827_v62 }
 0x27d   :  { %6896 = vmatpush3.msra.mxu0 %v7564_v3 }
 0x27e   :  { %6897 = vmatprep.subr.mxu0 %v7576_v5 }
 0x27f   :  { %6898 = vmatpush3.msra.mxu0 %v7576_v5 }
 0x280   :  { %6899 = vmatprep.subr.mxu0 %v7584_v6 }
 0x281   :  { %6900 = vmatpush3.msra.mxu0 %v7584_v6 }
 0x282   :  { %6901 = vmatprep.subr.mxu0 %v7591_v7 }
 0x283   :  { %6902 = vmatpush3.msra.mxu0 %v7591_v7 }
 0x284   :  { %6903 = vmatprep.subr.mxu0 %v7598_v8 }
 0x285   :  { %6904 = vmatpush3.msra.mxu0 %v7598_v8 }
 0x286   :  { %6905 = vmatprep.subr.mxu0 %v7605_v9 }
 0x287   :  { %6906 = vmatpush3.msra.mxu0 %v7605_v9 }
 0x288   :  { %6907 = vmatprep.subr.mxu0 %v7612_v10 }
 0x289   :  { %6908 = vmatpush3.msra.mxu0 %v7612_v10 }
 0x28a   :  { %6909 = vmatprep.subr.mxu0 %v7619_v11 }
 0x28b   :  { %6910 = vmatpush3.msra.mxu0 %v7619_v11 }
 0x28c   :  { %6911 = vmatprep.subr.mxu0 %v7626_v12 }
 0x28d   :  { %6912 = vmatpush3.msra.mxu0 %v7626_v12 }
 0x28e   :  { %6913 = vmatprep.subr.mxu0 %v7633_v13 }
 0x28f   :  { %6914 = vmatpush3.msra.mxu0 %v7633_v13 }
 0x290   :  { %6915 = vmatprep.subr.mxu0 %v7640_v14 }
 0x291   :  { %6916 = vmatpush3.msra.mxu0 %v7640_v14 }
 0x292   :  { %6917 = vmatprep.subr.mxu0 %v7647_v15 }
 0x293   :  { %6918 = vmatpush3.msra.mxu0 %v7647_v15 }
 0x294   :  { %6919 = vmatprep.subr.mxu0 %v7654_v16 }
 0x295   :  { %6920 = vmatpush3.msra.mxu0 %v7654_v16 }
 0x296   :  { %6922 = vmatmul.mubr.f32.vlgmr.msra.gmra.mxu0 %v7813_v57  ;;  %6927 = vmatprep.subr.mxu0 %v7681_v20 }
 0x297   :  { %6924 = vmatprep.mubr.f32.mxu0 %v7819_v58  ;;  %6928 = vmatpush3.msra.mxu0 %v7681_v20 }
 0x298   :  { %6929 = vmatprep.subr.mxu0 %v7689_v21 }
 0x299   :  { %6930 = vmatpush3.msra.mxu0 %v7689_v21 }
 0x29a   :  { %6925 = vmatmul.mubr.f32.gmra.mxu0 %v7828_v59  ;;  %6975 = vmatprep.subr.mxu0 %v7681_v20 }
 0x336   :  { %v6885_v25 = vpop.f32.mrf.mxu0 }
 0x337   :  { %v433_v26 = vadd.f32 1e-06, %v6885_v25 }
 0x338   :  { %v427_v27 = vpop.f32.mrf.mxu0 }
 0x339   :  { %7373 = vrsqrt.f32 %v433_v26  ;;  %v428_v28 = vadd.f32 1e-06, %v427_v27 }
 0x33a   :  { %v6888_v29 = vpop.f32.mrf.mxu0 }
 0x33b   :  { %7375 = vrsqrt.f32 %v428_v28  ;;  %v443_v32 = vadd.f32 1e-06, %v6888_v29 }
 0x33c   :  { %v437_v30 = vpop.f32.mrf.mxu0 }
 0x33d   :  { %v438_v34 = vadd.f32 1e-06, %v437_v30 }
 0x33f   :  { %7377 = vrsqrt.f32 %v438_v34 }
 0x340   :  { %7379 = vrsqrt.f32 %v443_v32 }
 0x346   :  { %v7374_v35 = vpop.eup %7373 }
 0x347   :  { %v451_v40 = vmul.f32 %v7374_v35, %v7734_v31 }
 0x348   :  { %v7376_v37 = vpop.eup %7375 }
 0x349   :  { %v450_v38 = vmul.f32 %v7376_v37, %v7737_v33 }
 0x34b   :  { %v454_v41 = vpack.c.bf16 %v451_v40, %v450_v38 }
 0x34c   :  { %v7378_v42 = vpop.eup %7377 }
 0x34d   :  { %585 = vmatmul.mubr.bf16.vlgmr.msra.gmra.mxu1 %v454_v41  ;;  %v7380_v43 = vpop.eup %7379  ;;  %v452_v44 = vmul.f32 %v7378_v42, %v7747_v39  ;;  %v8008_v41 = vld [vmem:[%s11815_s0 + $0x50] sm:$0xff] }
 0x34e   :  { %594 = vmatprep.mubr.bf16.mxu1 %v11829_v19  ;;  %6938 = vmatpush3.msra.mxu1 %v7545_v0  ;;  %v453_v45 = vmul.f32 %v7380_v43, %v7742_v36  ;;  %v7247_v42 = vld [vmem:[%s11817_s5 + $0xf4] ss:$8 sps:$4 sm:$0xff]  }
 0x34f   :  { %6939 = vmatprep.subr.mxu1 %v7550_v1  ;;  %v8019_v43 = vld [vmem:[%s11815_s0 + $0x58] sm:$0xff] }
 0x350   :  { %6940 = vmatpush3.msra.mxu1 %v7550_v1  ;;  %v455_v31 = vpack.c.bf16 %v453_v45, %v452_v44  ;;  %v7259_v44 = vld [vmem:[%s11817_s5 + $0xb4] ss:$8 sps:$4 sm:$0xff]   ;;  %v7257_v45 = vld [vmem:[%s11817_s5 + $0xb0] ss:$8 sps:$4 sm:$0xff]  }
 0x351   :  { %6941 = vmatprep.subr.mxu1 %v7557_v2 }
 0x352   :  { %6942 = vmatpush3.msra.mxu1 %v7557_v2 }
 0x353   :  { %6943 = vmatprep.subr.mxu1 %v7564_v3 }
 0x354   :  { %6944 = vmatpush3.msra.mxu1 %v7564_v3 }
 0x355   :  { %595 = vmatmul.mubr.bf16.gmra.mxu1 %v455_v31  ;;  %6945 = vmatprep.subr.mxu1 %v7576_v5  ;;  %v7260_v31 = vld [vmem:[%s11817_s5 + $0xa0] ss:$8 sps:$4 sm:$0xff]  }
 0x356   :  { %v6923_v33 = vpop.f32.mrf.mxu0  ;;  %6946 = vmatpush3.msra.mxu1 %v7576_v5 }
 0x357   :  { %6947 = vmatprep.subr.mxu1 %v7584_v6  ;;  %v715_v46 = vmul.f32 0.125, %v6923_v33  ;;  %v7262_v33 = vld [vmem:[%s11817_s5 + $0xa4] ss:$8 sps:$4 sm:$0xff]  }
 0x358   :  { %v695_v39 = vpop.f32.mrf.mxu0  ;;  %6948 = vmatpush3.msra.mxu1 %v7584_v6 }
 0x359   :  { %v714_v36 = vmul.f32 0.125, %v695_v39  ;;  %6949 = vmatprep.subr.mxu1 %v7591_v7  ;;  %v7265_v39 = vld [vmem:[%s11817_s5 + $0x94] ss:$8 sps:$4 sm:$0xff]  }
 0x35a   :  { %v6926_v47 = vpop.f32.mrf.mxu0  ;;  %6950 = vmatpush3.msra.mxu1 %v7591_v7 }
 0x35b   :  { %6931 = vmatprep.mubr.msk.f32.mxu0 %vm154_vm0, %v714_v36  ;;  %6951 = vmatprep.subr.mxu1 %v7598_v8  ;;  %v717_v48 = vmul.f32 0.125, %v6926_v47  ;;  %v7263_v36 = vld [vmem:[%s11817_s5 + $0x90] ss:$8 sps:$4 sm:$0xff]   ;;  %v7266_v47 = vld [vmem:[%s11817_s5 + $0x80] ss:$8 sps:$4 sm:$0xff]  }
 0x35c   :  { %v705_v49 = vpop.f32.mrf.mxu0  ;;  %6932 = vmatmul.mubr.msk.f32.vlgmr.msra.gmra.mxu0 %vm154_vm0, %v715_v46  ;;  %6952 = vmatpush3.msra.mxu1 %v7598_v8  ;;  %v7268_v46 = vld [vmem:[%s11817_s5 + $0x84] ss:$8 sps:$4 sm:$0xff]  }
 0x35d   :  { %v716_v50 = vmul.f32 0.125, %v705_v49  ;;  %6953 = vmatprep.subr.mxu1 %v7605_v9  ;;  %6976 = vmatpush3.msra.mxu0 %v7681_v20 }
 0x35e   :  { %6954 = vmatpush3.msra.mxu1 %v7605_v9  ;;  %6977 = vmatprep.subr.mxu0 %v7689_v21 }
 0x35f   :  { %6934 = vmatprep.mubr.msk.f32.mxu0 %vm154_vm0, %v716_v50  ;;  %6955 = vmatprep.subr.mxu1 %v7612_v10 }
 0x360   :  { %6935 = vmatmul.mubr.msk.f32.gmra.mxu0 %vm154_vm0, %v717_v48  ;;  %6956 = vmatpush3.msra.mxu1 %v7612_v10 }
 0x361   :  { %6957 = vmatprep.subr.mxu1 %v7619_v11  ;;  %6978 = vmatpush3.msra.mxu0 %v7689_v21 }
 0x362   :  { %6958 = vmatpush3.msra.mxu1 %v7619_v11  ;;  %1116 = vmatprep.subr.bf16.mxu0 %v7247_v42 }
 0x363   :  { %6959 = vmatprep.subr.mxu1 %v7626_v12 }
 0x364   :  { %6960 = vmatpush3.msra.mxu1 %v7626_v12 }
 0x365   :  { %6961 = vmatprep.subr.mxu1 %v7633_v13 }
 0x366   :  { %6962 = vmatpush3.msra.mxu1 %v7633_v13 }
 0x367   :  { %6963 = vmatprep.subr.mxu1 %v7640_v14 }
 0x368   :  { %6964 = vmatpush3.msra.mxu1 %v7640_v14 }
 0x369   :  { %6965 = vmatprep.subr.mxu1 %v7647_v15 }
 0x36a   :  { %6966 = vmatpush3.msra.mxu1 %v7647_v15 }
 0x36b   :  { %6967 = vmatprep.subr.mxu1 %v7654_v16 }
 0x36c   :  { %6968 = vmatpush3.msra.mxu1 %v7654_v16 }
 0x36d   :  { %6985 = vmatprep.subr.mxu1 %v7545_v0 }
 0x40d   :  { %v7913_v53 = vpop.f32.mrf.mxu1 }
 0x40f   :  { %v7915_v54 = vpop.f32.mrf.mxu1 }
 0x411   :  { %v7921_v61 = vpop.f32.mrf.mxu1 }
 0x413   :  { %v7924_v63 = vpop.f32.mrf.mxu1 }
 0x415   :  { %v596_v17 = vpop.f32.mrf.mxu1 }
 0x416   :  { %v7935_v22 = vadd.f32 %v7928_v4, %v596_v17 }
 0x417   :  { %v598_v23 = vpop.f32.mrf.mxu1 }
 0x418   :  { %v7938_v24 = vadd.f32 %v7932_v18, %v598_v23 }
 0x419   :  { %v600_v25 = vpop.f32.mrf.mxu1 }
 0x41a   :  { %v7941_v26 = vadd.f32 %v7928_v4, %v600_v25 }
 0x41c   :  { %v6933_v27 = vpop.f32.mrf.mxu0 }
 0x41d   :  { %v7944_v28 = vsub.f32 %v7813_v57, %v6933_v27 }
 0x41e   :  { %v796_v29 = vpop.f32.mrf.mxu0 }
 0x41f   :  { %v7947_v30 = vsub.f32 %v7778_v56, %v796_v29  ;;  %v820_v35 = vmul.f32 %v7944_v28, %v7944_v28 }
 0x420   :  { %v6936_v32 = vpop.f32.mrf.mxu0 }
 0x421   :  { %v819_v34 = vmul.f32 %v7947_v30, %v7947_v30  ;;  %v7954_v37 = vsub.f32 %v7828_v59, %v6936_v32  ;;  %v8003_v59 = vld [vmem:[%s11815_s0 + $0x48] sm:$0xff] }
 0x422   :  { %v806_v38 = vpop.f32.mrf.mxu0 }
 0x423   :  { %v7957_v40 = vsub.f32 %v7819_v58, %v806_v38  ;;  %6969 = vmatprep.mubr.f32.mxu1 %v819_v34  ;;  %v822_v57 = vmul.f32 %v7954_v37, %v7954_v37  ;;  %v7998_v58 = vld [vmem:[%s11815_s0 + $0x40] sm:$0xff] }
 0x424   :  { %6970 = vmatmul.mubr.f32.vlgmr.msra.gmra.mxu1 %v820_v35 }
 0x425   :  { %v821_v56 = vmul.f32 %v7957_v40, %v7957_v40  ;;  %6986 = vmatpush3.msra.mxu1 %v7545_v0 }
 0x426   :  { %6987 = vmatprep.subr.mxu1 %v7550_v1 }
 0x427   :  { %6972 = vmatprep.mubr.f32.mxu1 %v821_v56  ;;  %6988 = vmatpush3.msra.mxu1 %v7550_v1 }
 0x428   :  { %6973 = vmatmul.mubr.f32.gmra.mxu1 %v822_v57  ;;  %6989 = vmatprep.subr.mxu1 %v7557_v2 }
 0x429   :  { %6990 = vmatpush3.msra.mxu1 %v7557_v2  ;;  %7017 = vmatprep.mubr.f32.mxu1 %v7998_v58 }
 0x42a   :  { %6991 = vmatprep.subr.mxu1 %v7564_v3 }
 0x42b   :  { %6992 = vmatpush3.msra.mxu1 %v7564_v3 }
 0x42c   :  { %6993 = vmatprep.subr.mxu1 %v7576_v5 }
 0x42d   :  { %6994 = vmatpush3.msra.mxu1 %v7576_v5 }
 0x42e   :  { %6995 = vmatprep.subr.mxu1 %v7584_v6 }
 0x42f   :  { %6996 = vmatpush3.msra.mxu1 %v7584_v6 }
 0x430   :  { %6997 = vmatprep.subr.mxu1 %v7591_v7 }
 0x431   :  { %6998 = vmatpush3.msra.mxu1 %v7591_v7 }
 0x432   :  { %6999 = vmatprep.subr.mxu1 %v7598_v8 }
 0x433   :  { %7000 = vmatpush3.msra.mxu1 %v7598_v8 }
 0x434   :  { %7001 = vmatprep.subr.mxu1 %v7605_v9 }
 0x435   :  { %7002 = vmatpush3.msra.mxu1 %v7605_v9 }
 0x436   :  { %7003 = vmatprep.subr.mxu1 %v7612_v10 }
 0x437   :  { %7004 = vmatpush3.msra.mxu1 %v7612_v10 }
 0x438   :  { %7005 = vmatprep.subr.mxu1 %v7619_v11 }
 0x439   :  { %7006 = vmatpush3.msra.mxu1 %v7619_v11 }
 0x43a   :  { %7007 = vmatprep.subr.mxu1 %v7626_v12 }
 0x43b   :  { %7008 = vmatpush3.msra.mxu1 %v7626_v12 }
 0x43c   :  { %7009 = vmatprep.subr.mxu1 %v7633_v13 }
 0x43d   :  { %7010 = vmatpush3.msra.mxu1 %v7633_v13 }
 0x43e   :  { %7011 = vmatprep.subr.mxu1 %v7640_v14 }
 0x43f   :  { %7012 = vmatpush3.msra.mxu1 %v7640_v14 }
 0x440   :  { %7013 = vmatprep.subr.mxu1 %v7647_v15 }
 0x441   :  { %7014 = vmatpush3.msra.mxu1 %v7647_v15 }
 0x442   :  { %7015 = vmatprep.subr.mxu1 %v7654_v16 }
 0x443   :  { %7016 = vmatpush3.msra.mxu1 %v7654_v16 }
 0x444   :  { %7033 = vmatprep.subr.mxu1 %v7545_v0  ;;  %7018 = vmatmul.mubr.f32.vlgmr.msra.gmra.mxu1 %v8003_v59 }
 0x445   :  { %7020 = vmatprep.mubr.f32.mxu1 %v8008_v41  ;;  %7034 = vmatpush3.msra.mxu1 %v7545_v0  ;;  %v8053_v0 = vpop.f32.mrf.mxu1 }
 0x446   :  { %7035 = vmatprep.subr.mxu1 %v7550_v1 }
 0x447   :  { %7036 = vmatpush3.msra.mxu1 %v7550_v1 }
 0x448   :  { %7021 = vmatmul.mubr.f32.gmra.mxu1 %v8019_v43  ;;  %7037 = vmatprep.subr.mxu1 %v7557_v2 }
 0x449   :  { %7038 = vmatpush3.msra.mxu1 %v7557_v2 }
 0x44a   :  { %7039 = vmatprep.subr.mxu1 %v7564_v3 }
 0x44b   :  { %7040 = vmatpush3.msra.mxu1 %v7564_v3 }
 0x44c   :  { %7041 = vmatprep.subr.mxu1 %v7576_v5 }
 0x44d   :  { %7042 = vmatpush3.msra.mxu1 %v7576_v5  ;;  %v7245_v5 = vld [vmem:[%s11817_s5 + $0xf0] ss:$8 sps:$4 sm:$0xff]  }
 0x44e   :  { %7043 = vmatprep.subr.mxu1 %v7584_v6 }
 0x44f   :  { %7044 = vmatpush3.msra.mxu1 %v7584_v6 }
 0x450   :  { %7045 = vmatprep.subr.mxu1 %v7591_v7 }
 0x451   :  { %7046 = vmatpush3.msra.mxu1 %v7591_v7 }
 0x452   :  { %7047 = vmatprep.subr.mxu1 %v7598_v8 }
 0x453   :  { %7048 = vmatpush3.msra.mxu1 %v7598_v8  ;;  %v7250_v8 = vld [vmem:[%s11817_s5 + $0xe4] ss:$8 sps:$4 sm:$0xff]  }
 0x454   :  { %7049 = vmatprep.subr.mxu1 %v7605_v9 }
 0x455   :  { %7050 = vmatpush3.msra.mxu1 %v7605_v9 }
 0x456   :  { %7051 = vmatprep.subr.mxu1 %v7612_v10 }
 0x457   :  { %7052 = vmatpush3.msra.mxu1 %v7612_v10 }
 0x458   :  { %7053 = vmatprep.subr.mxu1 %v7619_v11 }
 0x459   :  { %7054 = vmatpush3.msra.mxu1 %v7619_v11  ;;  %v7248_v11 = vld [vmem:[%s11817_s5 + $0xe0] ss:$8 sps:$4 sm:$0xff]  }
 0x45a   :  { %7055 = vmatprep.subr.mxu1 %v7626_v12 }
 0x45b   :  { %7056 = vmatpush3.msra.mxu1 %v7626_v12 }
 0x45c   :  { %7057 = vmatprep.subr.mxu1 %v7633_v13 }
 0x45d   :  { %7058 = vmatpush3.msra.mxu1 %v7633_v13  ;;  %v7253_v13 = vld [vmem:[%s11817_s5 + $0xd4] ss:$8 sps:$4 sm:$0xff]  }
 0x45e   :  { %7059 = vmatprep.subr.mxu1 %v7640_v14 }
 0x45f   :  { %7060 = vmatpush3.msra.mxu1 %v7640_v14  ;;  %v7251_v14 = vld [vmem:[%s11817_s5 + $0xd0] ss:$8 sps:$4 sm:$0xff]  }
 0x460   :  { %7061 = vmatprep.subr.mxu1 %v7647_v15 }
 0x461   :  { %7062 = vmatpush3.msra.mxu1 %v7647_v15  ;;  %v7256_v15 = vld [vmem:[%s11817_s5 + $0xc4] ss:$8 sps:$4 sm:$0xff]  }
 0x462   :  { %7063 = vmatprep.subr.mxu1 %v7654_v16 }
 0x463   :  { %7064 = vmatpush3.msra.mxu1 %v7654_v16  ;;  %v7254_v16 = vld [vmem:[%s11817_s5 + $0xc0] ss:$8 sps:$4 sm:$0xff]  }
 0x4e4   :  { %v6971_v1 = vpop.f32.mrf.mxu1 }
 0x4e5   :  { %v909_v6 = vmul.f32 0.125, %v6971_v1 }
 0x4e6   :  { %v889_v2 = vpop.f32.mrf.mxu1 }
 0x4e7   :  { %v908_v3 = vmul.f32 0.125, %v889_v2 }
 0x4e8   :  { %v6974_v7 = vpop.f32.mrf.mxu1 }
 0x4e9   :  { %6979 = vmatprep.mubr.msk.f32.mxu0 %vm154_vm0, %v908_v3  ;;  %v911_v12 = vmul.f32 0.125, %v6974_v7 }
 0x4ea   :  { %v899_v9 = vpop.f32.mrf.mxu1  ;;  %6980 = vmatmul.mubr.msk.f32.vlgmr.msra.gmra.mxu0 %vm154_vm0, %v909_v6 }
 0x4eb   :  { %v910_v10 = vmul.f32 0.125, %v899_v9  ;;  %1117 = vmatpush1.bf16.msra.mxu0 %v7245_v5  ;;  %v617_v9 = vadd.f32 %v7932_v18, %v7915_v54 }
 0x4ec   :  { %1118 = vmatprep.subr.bf16.mxu0 %v7250_v8 }
 0x4ed   :  { %6982 = vmatprep.mubr.msk.f32.mxu0 %vm154_vm0, %v910_v10 }
 0x4ee   :  { %6983 = vmatmul.mubr.msk.f32.gmra.mxu0 %vm154_vm0, %v911_v12  ;;  %v618_v12 = vadd.f32 %v7928_v4, %v7921_v61 }
 0x4ef   :  { %1119 = vmatpush1.bf16.msra.mxu0 %v7248_v11  ;;  %1148 = vmatprep.mubr.bf16.mxu0 %v11829_v19 }
 0x4f0   :  { %1120 = vmatprep.subr.bf16.mxu0 %v7253_v13 }
 0x4f3   :  { %1121 = vmatpush1.bf16.msra.mxu0 %v7251_v14 }
 0x4f4   :  { %1122 = vmatprep.subr.bf16.mxu0 %v7256_v15 }
 0x4f7   :  { %1123 = vmatpush1.bf16.msra.mxu0 %v7254_v16 }
 0x4f8   :  { %1124 = vmatprep.subr.bf16.mxu0 %v7259_v44 }
 0x4fb   :  { %1125 = vmatpush1.bf16.msra.mxu0 %v7257_v45 }
 0x4fc   :  { %1126 = vmatprep.subr.bf16.mxu0 %v7262_v33 }
 0x4ff   :  { %1127 = vmatpush1.bf16.msra.mxu0 %v7260_v31 }
 0x500   :  { %1128 = vmatprep.subr.bf16.mxu0 %v7265_v39 }
 0x503   :  { %1129 = vmatpush1.bf16.msra.mxu0 %v7263_v36 }
 0x504   :  { %1130 = vmatprep.subr.bf16.mxu0 %v7268_v46  ;;  %v7019_v38 = vpop.f32.mrf.mxu1 }
 0x505   :  { %v1268_v7 = vmul.f32 0.125, %v7019_v38  ;;  %v7280_v38 = vld [vmem:[%s11817_s5 + $0x144] ss:$8 sps:$4 sm:$0xff]  }
 0x506   :  { %v1248_v1 = vpop.f32.mrf.mxu1 }
 0x507   :  { %1131 = vmatpush1.bf16.msra.mxu0 %v7266_v47 }
 0x508   :  { %7023 = vmatprep.subr.mxu0 %v7681_v20  ;;  %v7022_v3 = vpop.f32.mrf.mxu1 }
 0x509   :  { %v1270_v8 = vmul.f32 0.125, %v7022_v3  ;;  %v7289_v3 = vld [vmem:[%s11817_s5 + $0x114] ss:$8 sps:$4 sm:$0xff]  }
 0x50a   :  { %v1258_v5 = vpop.f32.mrf.mxu1 }
 0x50b   :  { %v1269_v6 = vmul.f32 0.125, %v1258_v5  ;;  %v7287_v5 = vld [vmem:[%s11817_s5 + $0x110] ss:$8 sps:$4 sm:$0xff]  }
 0x5aa   :  { %v6981_v48 = vpop.f32.mrf.mxu0 }
 0x5ab   :  { %v996_v49 = vadd.f32 1e-06, %v6981_v48 }
 0x5ac   :  { %v990_v50 = vpop.f32.mrf.mxu0 }
 0x5ad   :  { %7381 = vrsqrt.f32 %v996_v49  ;;  %v991_v51 = vadd.f32 1e-06, %v990_v50 }
 0x5ae   :  { %v6984_v60 = vpop.f32.mrf.mxu0 }
 0x5af   :  { %7383 = vrsqrt.f32 %v991_v51  ;;  %v1006_v23 = vadd.f32 1e-06, %v6984_v60 }
 0x5b0   :  { %v1000_v17 = vpop.f32.mrf.mxu0 }
 0x5b1   :  { %v1001_v25 = vadd.f32 1e-06, %v1000_v17 }
 0x5b3   :  { %7385 = vrsqrt.f32 %v1001_v25 }
 0x5b4   :  { %7387 = vrsqrt.f32 %v1006_v23  ;;  %v7274_v23 = vld [vmem:[%s11817_s5 + $0x164] ss:$8 sps:$4 sm:$0xff]  }
 0x5ba   :  { %v7382_v27 = vpop.eup %7381 }
 0x5bb   :  { %v1014_v34 = vmul.f32 %v7382_v27, %v7944_v28  ;;  %v1267_v28 = vmul.f32 0.125, %v1248_v1  ;;  %v7284_v1 = vld [vmem:[%s11817_s5 + $0x120] ss:$8 sps:$4 sm:$0xff]  }
 0x5bc   :  { %v7384_v29 = vpop.eup %7383 }
 0x5bd   :  { %v1013_v32 = vmul.f32 %v7384_v29, %v7947_v30 }
 0x5bf   :  { %v1017_v35 = vpack.c.bf16 %v1014_v34, %v1013_v32  ;;  %v7272_v32 = vld [vmem:[%s11817_s5 + $0x160] ss:$8 sps:$4 sm:$0xff]   ;;  %v7277_v34 = vld [vmem:[%s11817_s5 + $0x154] ss:$8 sps:$4 sm:$0xff]  }
 0x5c0   :  { %v7386_v56 = vpop.eup %7385 }
 0x5c1   :  { %1149 = vmatmul.mubr.bf16.vlgmr.msra.gmra.mxu0 %v1017_v35  ;;  %v7388_v57 = vpop.eup %7387  ;;  %v1015_v42 = vmul.f32 %v7386_v56, %v7957_v40  ;;  %v7275_v35 = vld [vmem:[%s11817_s5 + $0x150] ss:$8 sps:$4 sm:$0xff]   ;;  %v7278_v56 = vld [vmem:[%s11817_s5 + $0x140] ss:$8 sps:$4 sm:$0xff]  }
 0x5c2   :  { %7024 = vmatpush3.msra.mxu0 %v7681_v20  ;;  %1158 = vmatprep.mubr.bf16.mxu0 %v11829_v19  ;;  %v1016_v30 = vmul.f32 %v7388_v57, %v7954_v37  ;;  %v616_v37 = vadd.f32 %v7928_v4, %v7913_v53  ;;  %v623_v4 = vadd.f32 %v7932_v18, %v8053_v0  ;;  %v7283_v57 = vld [vmem:[%s11817_s5 + $0x134] ss:$8 sps:$4 sm:$0xff]  }
 0x5c3   :  { %7025 = vmatprep.subr.mxu0 %v7689_v21 }
 0x5c4   :  { %7026 = vmatpush3.msra.mxu0 %v7689_v21  ;;  %v1018_v2 = vpack.c.bf16 %v1016_v30, %v1015_v42  ;;  %v7281_v42 = vld [vmem:[%s11817_s5 + $0x130] ss:$8 sps:$4 sm:$0xff]   ;;  %v7286_v30 = vld [vmem:[%s11817_s5 + $0x124] ss:$8 sps:$4 sm:$0xff]  }
 0x5c5   :  { %7071 = vmatprep.subr.mxu0 %v7681_v20 }
 0x5c9   :  { %1159 = vmatmul.mubr.bf16.gmra.mxu0 %v1018_v2  ;;  %v6411_v2 = vld [vmem:[%s11819_s7 + $0x3] ss:$0 sm:$0xff] }
 0x5ca   :  { %7027 = vmatprep.mubr.msk.f32.mxu0 %vm154_vm0, %v1267_v28  ;;  %v6409_v28 = vld [vmem:[%s11819_s7 + $0x1] ss:$0 sm:$0xff]  ;;  %1904 = vrot.lane.b32.xlu1 %v6411_v2, %s7471_s15  ;;  %v6429_v2 = vld [vmem:[%s11819_s7 + $0x15] ss:$0 sm:$0xff] }
 0x5cb   :  { %1780 = vrot.lane.b32.xlu0 %v6409_v28, %s7470_s30  ;;  %v6456_v28 = vld [vmem:[%s11819_s7 + $0x30] ss:$0 sm:$0xff] }
 0x5d1   :  { %7028 = vmatmul.mubr.msk.f32.vlgmr.msra.gmra.mxu0 %vm154_vm0, %v1268_v7  ;;  %v6412_v7 = vld [vmem:[%s11819_s7 + $0x4] ss:$0 sm:$0xff] }
 0x5d2   :  { %7030 = vmatprep.mubr.msk.f32.mxu0 %vm154_vm0, %v1269_v6  ;;  %7072 = vmatpush3.msra.mxu0 %v7681_v20  ;;  %v6410_v6 = vld [vmem:[%s11819_s7 + $0x2] ss:$0 sm:$0xff] }
 0x5d3   :  { %7073 = vmatprep.subr.mxu0 %v7689_v21  ;;  %1842 = vrot.lane.b32.xlu0 %v6410_v6, %s7472_s1  ;;  %v6450_v6 = vld [vmem:[%s11819_s7 + $0x2a] ss:$0 sm:$0xff] }
 0x5d4   :  { %7074 = vmatpush3.msra.mxu0 %v7689_v21  ;;  %v619_v21 = vadd.f32 %v7932_v18, %v7924_v63  ;;  %1966 = vrot.lane.b32.xlu1 %v6412_v7, %s7473_s23 }
 0x5d5   :  { %7031 = vmatmul.mubr.msk.f32.gmra.mxu0 %vm154_vm0, %v1270_v8  ;;  %v7292_v8 = vld [vmem:[%s11817_s5 + $0x104] ss:$8 sps:$4 sm:$0xff]  }
 0x681   :  { %v1150_v40 = vpop.f32.mrf.mxu0 }
 0x682   :  { %v8126_v10 = vadd.f32 %v1150_v40, %v616_v37  ;;  %v7290_v37 = vld [vmem:[%s11817_s5 + $0x100] ss:$8 sps:$4 sm:$0xff]   ;;  %v6413_v40 = vld [vmem:[%s11819_s7 + $0x5] ss:$0 sm:$0xff] }
 0x683   :  { %v1152_v11 = vpop.f32.mrf.mxu0  ;;  %2028 = vrot.lane.b32.xlu0 %v6413_v40, %s7474_s6 }
 0x684   :  { %v8130_v20 = vadd.f32 %v1152_v11, %v617_v9  ;;  %v6414_v9 = vld [vmem:[%s11819_s7 + $0x6] ss:$0 sm:$0xff]  ;;  %v6416_v11 = vld [vmem:[%s11819_s7 + $0x8] ss:$0 sm:$0xff] }
 0x685   :  { %v1154_v13 = vpop.f32.mrf.mxu0  ;;  %2090 = vrot.lane.b32.xlu1 %v6414_v9, %s7475_s29 }
 0x686   :  { %v8134_v14 = vadd.f32 %v1154_v13, %v618_v12  ;;  %v6417_v12 = vld [vmem:[%s11819_s7 + $0x9] ss:$0 sm:$0xff]  ;;  %v6418_v13 = vld [vmem:[%s11819_s7 + $0xa] ss:$0 sm:$0xff] }
 0x687   :  { %v1156_v15 = vpop.f32.mrf.mxu0  ;;  %2194 = vrot.lane.b32.xlu0 %v6416_v11, %s7470_s30 }
 0x688   :  { %v8136_v53 = vadd.f32 %v1156_v15, %v619_v21  ;;  %v6419_v21 = vld [vmem:[%s11819_s7 + $0xb] ss:$0 sm:$0xff]  ;;  %v6420_v15 = vld [vmem:[%s11819_s7 + $0xc] ss:$0 sm:$0xff] }
 0x689   :  { %v1160_v16 = vpop.f32.mrf.mxu0  ;;  %2255 = vrot.lane.b32.xlu1 %v6417_v12, %s7472_s1 }
 0x68a   :  { %v8139_v54 = vadd.f32 %v1160_v16, %v7935_v22  ;;  %v6421_v16 = vld [vmem:[%s11819_s7 + $0xd] ss:$0 sm:$0xff] }
 0x68b   :  { %v1162_v44 = vpop.f32.mrf.mxu0  ;;  %2316 = vrot.lane.b32.xlu0 %v6418_v13, %s7471_s15 }
 0x68c   :  { %v8142_v45 = vadd.f32 %v1162_v44, %v7938_v24  ;;  %v6423_v44 = vld [vmem:[%s11819_s7 + $0xf] ss:$0 sm:$0xff] }
 0x68d   :  { %v1164_v61 = vpop.f32.mrf.mxu0  ;;  %2377 = vrot.lane.b32.xlu1 %v6419_v21, %s7473_s23 }
 0x68e   :  { %v8147_v31 = vadd.f32 %v1164_v61, %v7941_v26  ;;  %v6424_v61 = vld [vmem:[%s11819_s7 + $0x10] ss:$0 sm:$0xff] }
 0x68f   :  { %v1166_v63 = vpop.f32.mrf.mxu0  ;;  %2438 = vrot.lane.b32.xlu0 %v6420_v15, %s7474_s6 }
 0x690   :  { %12040 = vst [vmem:[#allocation3_spill] sm:$0xff] %v8147_v31  ;;  %v8149_v33 = vadd.f32 %v1166_v63, %v623_v4  ;;  %v6425_v4 = vld [vmem:[%s11819_s7 + $0x11] ss:$0 sm:$0xff]  ;;  %v6426_v63 = vld [vmem:[%s11819_s7 + $0x12] ss:$0 sm:$0xff] }
 0x691   :  { %v7029_v39 = vpop.f32.mrf.mxu0  ;;  %2499 = vrot.lane.b32.xlu1 %v6421_v16, %s7475_s29 }
 0x692   :  { %12041 = vst [vmem:[#allocation4_spill] sm:$0xff] %v8149_v33  ;;  %v8152_v36 = vsub.f32 %v8003_v59, %v7029_v39  ;;  %v6427_v39 = vld [vmem:[%s11819_s7 + $0x13] ss:$0 sm:$0xff] }
 0x693   :  { %v1349_v22 = vpop.f32.mrf.mxu0  ;;  %2602 = vrot.lane.b32.xlu0 %v6423_v44, %s7470_s30 }
 0x694   :  { %v8155_v46 = vsub.f32 %v7998_v58, %v1349_v22  ;;  %v1373_v26 = vmul.f32 %v8152_v36, %v8152_v36  ;;  %v6428_v22 = vld [vmem:[%s11819_s7 + $0x14] ss:$0 sm:$0xff] }
 0x695   :  { %v7032_v24 = vpop.f32.mrf.mxu0  ;;  %2663 = vrot.lane.b32.xlu1 %v6424_v61, %s7472_s1 }
 0x696   :  { %v1372_v47 = vmul.f32 %v8155_v46, %v8155_v46  ;;  %v8160_v18 = vsub.f32 %v8019_v43, %v7032_v24  ;;  %v7271_v43 = vld [vmem:[%s11817_s5 + $0x174] ss:$8 sps:$4 sm:$0xff]  }
 0x697   :  { %v1359_v0 = vpop.f32.mrf.mxu0  ;;  %1669 = vmatprep.subr.bf16.mxu0 %v7271_v43  ;;  %2724 = vrot.lane.b32.xlu0 %v6425_v4, %s7471_s15  ;;  %v6430_v24 = vld [vmem:[%s11819_s7 + $0x16] ss:$0 sm:$0xff]  ;;  %v6437_v43 = vld [vmem:[%s11819_s7 + $0x1d] ss:$0 sm:$0xff] }
 0x698   :  { %v8165_v48 = vsub.f32 %v8008_v41, %v1359_v0  ;;  %7065 = vmatprep.mubr.f32.mxu1 %v1372_v47  ;;  %v1375_v59 = vmul.f32 %v8160_v18, %v8160_v18  ;;  %v7269_v41 = vld [vmem:[%s11817_s5 + $0x170] ss:$8 sps:$4 sm:$0xff]   ;;  %v6431_v47 = vld [vmem:[%s11819_s7 + $0x17] ss:$0 sm:$0xff] }
 0x699   :  { %7066 = vmatmul.mubr.f32.vlgmr.msra.gmra.mxu1 %v1373_v26  ;;  %2785 = vrot.lane.b32.xlu1 %v6426_v63, %s7473_s23  ;;  %v6432_v26 = vld [vmem:[%s11819_s7 + $0x18] ss:$0 sm:$0xff]  ;;  %v6433_v0 = vld [vmem:[%s11819_s7 + $0x19] ss:$0 sm:$0xff] }
 0x69a   :  { %v1374_v58 = vmul.f32 %v8165_v48, %v8165_v48 }
 0x69b   :  { %2846 = vrot.lane.b32.xlu0 %v6427_v39, %s7474_s6 }
 0x69c   :  { %7068 = vmatprep.mubr.f32.mxu1 %v1374_v58  ;;  %v6435_v58 = vld [vmem:[%s11819_s7 + $0x1b] ss:$0 sm:$0xff] }
 0x69d   :  { %7069 = vmatmul.mubr.f32.gmra.mxu1 %v1375_v59  ;;  %2907 = vrot.lane.b32.xlu1 %v6428_v22, %s7475_s29  ;;  %v6434_v59 = vld [vmem:[%s11819_s7 + $0x1a] ss:$0 sm:$0xff] }
 0x69f   :  { %2993 = vrot.lane.b32.xlu0 %v6430_v24, %s7470_s30 }
 0x6a1   :  { %3054 = vrot.lane.b32.xlu1 %v6431_v47, %s7472_s1  ;;  %v6457_v47 = vld [vmem:[%s11820_s8] ss:$0 sm:$0xff] }
 0x6a3   :  { %3115 = vrot.lane.b32.xlu0 %v6432_v26, %s7471_s15 }
 0x6a5   :  { %3176 = vrot.lane.b32.xlu1 %v6433_v0, %s7473_s23 }
 0x6a7   :  { %3237 = vrot.lane.b32.xlu0 %v6434_v59, %s7474_s6 }
 0x6a9   :  { %3298 = vrot.lane.b32.xlu1 %v6435_v58, %s7475_s29 }
 0x6ab   :  { %3401 = vrot.lane.b32.xlu0 %v6437_v43, %s7470_s30 }
 0x759   :  { %v7067_v49 = vpop.f32.mrf.mxu1 }
 0x75a   :  { %v1462_v60 = vmul.f32 0.125, %v7067_v49  ;;  %v6438_v49 = vld [vmem:[%s11819_s7 + $0x1e] ss:$0 sm:$0xff] }
 0x75b   :  { %v1442_v50 = vpop.f32.mrf.mxu1  ;;  %3462 = vrot.lane.b32.xlu1 %v6438_v49, %s7472_s1 }
 0x75c   :  { %v1461_v51 = vmul.f32 0.125, %v1442_v50  ;;  %v6408_v50 = vld [vmem:[%s11819_s7] ss:$0 sm:$0xff] }
 0x75d   :  { %v7070_v17 = vpop.f32.mrf.mxu1  ;;  %1755 = vrot.lane.b32.xlu0 %v6408_v50, %s7476_s22 }
 0x75e   :  { %7075 = vmatprep.mubr.msk.f32.mxu0 %vm154_vm0, %v1461_v51  ;;  %v1464_v25 = vmul.f32 0.125, %v7070_v17  ;;  %v6439_v51 = vld [vmem:[%s11819_s7 + $0x1f] ss:$0 sm:$0xff]  ;;  %v6442_v17 = vld [vmem:[%s11819_s7 + $0x22] ss:$0 sm:$0xff] }
 0x75f   :  { %v1452_v27 = vpop.f32.mrf.mxu1  ;;  %7076 = vmatmul.mubr.msk.f32.vlgmr.msra.gmra.mxu0 %vm154_vm0, %v1462_v60  ;;  %3523 = vrot.lane.b32.xlu1 %v6439_v51, %s7471_s15  ;;  %v6441_v60 = vld [vmem:[%s11819_s7 + $0x21] ss:$0 sm:$0xff] }
 0x760   :  { %v1463_v29 = vmul.f32 0.125, %v1452_v27  ;;  %1670 = vmatpush1.bf16.msra.mxu0 %v7269_v41  ;;  %v6440_v41 = vld [vmem:[%s11819_s7 + $0x20] ss:$0 sm:$0xff]  ;;  %v6445_v27 = vld [vmem:[%s11819_s7 + $0x25] ss:$0 sm:$0xff] }
 0x761   :  { %1671 = vmatprep.subr.bf16.mxu0 %v7274_v23  ;;  %3584 = vrot.lane.b32.xlu0 %v6440_v41, %s7473_s23  ;;  %v6444_v23 = vld [vmem:[%s11819_s7 + $0x24] ss:$0 sm:$0xff] }
 0x762   :  { %7078 = vmatprep.mubr.msk.f32.mxu0 %vm154_vm0, %v1463_v29  ;;  %v6446_v29 = vld [vmem:[%s11819_s7 + $0x26] ss:$0 sm:$0xff] }
 0x763   :  { %7079 = vmatmul.mubr.msk.f32.gmra.mxu0 %vm154_vm0, %v1464_v25  ;;  %3645 = vrot.lane.b32.xlu1 %v6441_v60, %s7474_s6  ;;  %v6415_v25 = vld [vmem:[%s11819_s7 + $0x7] ss:$0 sm:$0xff] }
 0x764   :  { %1672 = vmatpush1.bf16.msra.mxu0 %v7272_v32  ;;  %1701 = vmatprep.mubr.bf16.mxu0 %v11829_v19  ;;  %v6447_v32 = vld [vmem:[%s11819_s7 + $0x27] ss:$0 sm:$0xff] }
 0x765   :  { %1673 = vmatprep.subr.bf16.mxu0 %v7277_v34  ;;  %3706 = vrot.lane.b32.xlu0 %v6442_v17, %s7475_s29  ;;  %v6448_v34 = vld [vmem:[%s11819_s7 + $0x28] ss:$0 sm:$0xff] }
 0x767   :  { %3809 = vrot.lane.b32.xlu1 %v6444_v23, %s7470_s30 }
 0x768   :  { %1674 = vmatpush1.bf16.msra.mxu0 %v7275_v35  ;;  %v6449_v35 = vld [vmem:[%s11819_s7 + $0x29] ss:$0 sm:$0xff] }
 0x769   :  { %1675 = vmatprep.subr.bf16.mxu0 %v7280_v38  ;;  %2169 = vrot.lane.b32.xlu0 %v6415_v25, %s7476_s22  ;;  %v6451_v38 = vld [vmem:[%s11819_s7 + $0x2b] ss:$0 sm:$0xff] }
 0x76b   :  { %3870 = vrot.lane.b32.xlu1 %v6445_v27, %s7472_s1 }
 0x76c   :  { %1676 = vmatpush1.bf16.msra.mxu0 %v7278_v56  ;;  %v6422_v56 = vld [vmem:[%s11819_s7 + $0xe] ss:$0 sm:$0xff] }
 0x76d   :  { %1677 = vmatprep.subr.bf16.mxu0 %v7283_v57  ;;  %3931 = vrot.lane.b32.xlu0 %v6446_v29, %s7471_s15  ;;  %v6452_v57 = vld [vmem:[%s11819_s7 + $0x2c] ss:$0 sm:$0xff] }
 0x76f   :  { %3992 = vrot.lane.b32.xlu1 %v6447_v32, %s7473_s23 }
 0x770   :  { %1678 = vmatpush1.bf16.msra.mxu0 %v7281_v42  ;;  %v6453_v42 = vld [vmem:[%s11819_s7 + $0x2d] ss:$0 sm:$0xff] }
 0x771   :  { %1679 = vmatprep.subr.bf16.mxu0 %v7286_v30  ;;  %4053 = vrot.lane.b32.xlu0 %v6448_v34, %s7474_s6  ;;  %v6455_v30 = vld [vmem:[%s11819_s7 + $0x2f] ss:$0 sm:$0xff] }
 0x773   :  { %4114 = vrot.lane.b32.xlu1 %v6449_v35, %s7475_s29 }
 0x774   :  { %1680 = vmatpush1.bf16.msra.mxu0 %v7284_v1  ;;  %v6454_v1 = vld [vmem:[%s11819_s7 + $0x2e] ss:$0 sm:$0xff] }
 0x775   :  { %1681 = vmatprep.subr.bf16.mxu0 %v7289_v3  ;;  %4217 = vrot.lane.b32.xlu0 %v6451_v38, %s7470_s30  ;;  %v6436_v3 = vld [vmem:[%s11819_s7 + $0x1c] ss:$0 sm:$0xff] }
 0x777   :  { %2577 = vrot.lane.b32.xlu1 %v6422_v56, %s7476_s22 }
 0x778   :  { %1682 = vmatpush1.bf16.msra.mxu0 %v7287_v5  ;;  %v6443_v5 = vld [vmem:[%s11819_s7 + $0x23] ss:$0 sm:$0xff] }
 0x779   :  { %1683 = vmatprep.subr.bf16.mxu0 %v7292_v8  ;;  %4278 = vrot.lane.b32.xlu0 %v6452_v57, %s7472_s1 }
 0x77b   :  { %4339 = vrot.lane.b32.xlu1 %v6453_v42, %s7471_s15 }
 0x77c   :  { %1684 = vmatpush1.bf16.msra.mxu0 %v7290_v37 }
 0x77d   :  { %4400 = vrot.lane.b32.xlu0 %v6454_v1, %s7473_s23 }
 0x77f   :  { %4461 = vrot.lane.b32.xlu1 %v6455_v30, %s7474_s6 }
 0x781   :  { %4522 = vrot.lane.b32.xlu0 %v6456_v28, %s7475_s29 }
 0x783   :  { %2968 = vrot.lane.b32.xlu1 %v6429_v2, %s7476_s22 }
 0x785   :  { %3376 = vrot.lane.b32.xlu0 %v6436_v3, %s7476_s22 }
 0x787   :  { %3784 = vrot.lane.b32.xlu1 %v6443_v5, %s7476_s22 }
 0x789   :  { %4192 = vrot.lane.b32.xlu0 %v6450_v6, %s7476_s22 }
 0x78b   :  { %4583 = vrot.lane.b32.xlu1 %v6457_v47, %s7476_s22 }
 0x81f   :  { %v7077_v7 = vpop.f32.mrf.mxu0 }
 0x820   :  { %v1549_v8 = vadd.f32 1e-06, %v7077_v7 }
 0x821   :  { %v1543_v37 = vpop.f32.mrf.mxu0 }
 0x822   :  { %7389 = vrsqrt.f32 %v1549_v8  ;;  %v1544_v40 = vadd.f32 1e-06, %v1543_v37 }
 0x823   :  { %v7080_v9 = vpop.f32.mrf.mxu0 }
 0x824   :  { %7391 = vrsqrt.f32 %v1544_v40  ;;  %v1559_v12 = vadd.f32 1e-06, %v7080_v9 }
 0x825   :  { %v1553_v11 = vpop.f32.mrf.mxu0 }
 0x826   :  { %v1554_v13 = vadd.f32 1e-06, %v1553_v11 }
 0x828   :  { %7393 = vrsqrt.f32 %v1554_v13 }
 0x829   :  { %7395 = vrsqrt.f32 %v1559_v12 }
 0x82f   :  { %v7390_v21 = vpop.eup %7389 }
 0x830   :  { %v1567_v44 = vmul.f32 %v7390_v21, %v8152_v36  ;;  %v8431_v36 = vpop.permute.xlu1 %1904 }
 0x831   :  { %v7392_v15 = vpop.eup %7391  ;;  %12043 = vst [vmem:[#allocation6_spill] sm:$0xff] %v8431_v36 }
 0x832   :  { %v1566_v16 = vmul.f32 %v7392_v15, %v8155_v46  ;;  %v8429_v46 = vpop.permute.xlu0 %1780 }
 0x833   :  { %12042 = vst [vmem:[#allocation5_spill] sm:$0xff] %v8429_v46 }
 0x834   :  { %v1570_v61 = vpack.c.bf16 %v1567_v44, %v1566_v16  ;;  %v8435_v0 = vpop.permute.xlu1 %1966 }
 0x835   :  { %v7394_v4 = vpop.eup %7393  ;;  %12045 = vst [vmem:[#allocation8_spill] sm:$0xff] %v8435_v0 }
 0x836   :  { %1702 = vmatmul.mubr.bf16.vlgmr.msra.gmra.mxu0 %v1570_v61  ;;  %v7396_v63 = vpop.eup %7395  ;;  %v1568_v39 = vmul.f32 %v7394_v4, %v8165_v48  ;;  %v8433_v26 = vpop.permute.xlu0 %1842 }
 0x837   :  { %1711 = vmatprep.mubr.bf16.mxu0 %v11829_v19  ;;  %v1569_v22 = vmul.f32 %v7396_v63, %v8160_v18  ;;  %12044 = vst [vmem:[#allocation7_spill] sm:$0xff] %v8433_v26 }
 0x838   :  { %v8439_v48 = vpop.permute.xlu1 %2090 }
 0x839   :  { %v1571_v24 = vpack.c.bf16 %v1569_v22, %v1568_v39  ;;  %12047 = vst [vmem:[#allocation10_spill] sm:$0xff] %v8439_v48 }
 0x83a   :  { %v8437_v59 = vpop.permute.xlu0 %2028 }
 0x83b   :  { %12046 = vst [vmem:[#allocation9_spill] sm:$0xff] %v8437_v59 }
 0x83c   :  { %v8443_v58 = vpop.permute.xlu1 %2255 }
 0x83d   :  { %12049 = vst [vmem:[#allocation12_spill] sm:$0xff] %v8443_v58 }
 0x83e   :  { %1712 = vmatmul.mubr.bf16.gmra.mxu0 %v1571_v24  ;;  %v8441_v18 = vpop.permute.xlu0 %2194 }
 0x83f   :  { %12048 = vst [vmem:[#allocation11_spill] sm:$0xff] %v8441_v18 }
 0x840   :  { %v8447_v49 = vpop.permute.xlu1 %2377 }
 0x842   :  { %v8445_v43 = vpop.permute.xlu0 %2316 }
 0x843   :  { %12050 = vst [vmem:[#allocation13_spill] sm:$0xff] %v8445_v43 }
 0x844   :  { %v8451_v51 = vpop.permute.xlu1 %2499 }
 0x846   :  { %v8449_v50 = vpop.permute.xlu0 %2438 }
 0x847   :  { %12051 = vst [vmem:[#allocation14_spill] sm:$0xff] %v8449_v50 }
 0x848   :  { %v8455_v60 = vpop.permute.xlu1 %2663 }
 0x84a   :  { %v8453_v41 = vpop.permute.xlu0 %2602 }
 0x84c   :  { %v8459_v23 = vpop.permute.xlu1 %2785 }
 0x84d   :  { %12053 = vst [vmem:[#allocation16_spill] sm:$0xff] %v8459_v23 }
 0x84e   :  { %v8457_v17 = vpop.permute.xlu0 %2724 }
 0x84f   :  { %12052 = vst [vmem:[#allocation15_spill] sm:$0xff] %v8457_v17 }
 0x850   :  { %v8463_v27 = vpop.permute.xlu1 %2907 }
 0x851   :  { %12055 = vst [vmem:[#allocation18_spill] sm:$0xff] %v8463_v27 }
 0x852   :  { %v8461_v25 = vpop.permute.xlu0 %2846 }
 0x853   :  { %12054 = vst [vmem:[#allocation17_spill] sm:$0xff] %v8461_v25 }
 0x854   :  { %v8478_v42 = vpop.permute.xlu1 %3054 }
 0x856   :  { %v8468_v34 = vpop.permute.xlu0 %2993 }
 0x858   :  { %v8494_v2 = vpop.permute.xlu1 %3176 }
 0x85a   :  { %v8486_v1 = vpop.permute.xlu0 %3115 }
 0x85c   :  { %v8510_v40 = vpop.permute.xlu1 %3298 }
 0x85d   :  { %12058 = vst [vmem:[#allocation21_spill] sm:$0xff] %v8510_v40 }
 0x85e   :  { %v8502_v6 = vpop.permute.xlu0 %3237 }
 0x862   :  { %v8548_v39 = vpop.permute.xlu0 %3401 }
 0x8f6   :  { %v1703_v29 = vpop.f32.mrf.mxu0 }
 0x8f7   :  { %v8466_v32 = vadd.f32 %v1703_v29, %v8126_v10 }
 0x8f8   :  { %v1705_v35 = vpop.f32.mrf.mxu0 }
 0x8f9   :  { %12056 = vst [vmem:[#allocation19_spill] sm:$0xff] %v8466_v32  ;;  %v8471_v38 = vadd.f32 %v1705_v35, %v8130_v20  ;;  %v2996_v56 = vmul.f32 %v8468_v34, %v8466_v32  ;;  %v3057_v10 = vmul.f32 %v8478_v42, %v8466_v32  ;;  %v3118_v30 = vmul.f32 %v8486_v1, %v8466_v32  ;;  %v8559_v35 = vpop.permute.xlu1 %3462 }
 0x8fa   :  { %v3179_v3 = vmul.f32 %v8494_v2, %v8466_v32  ;;  %v1707_v7 = vpop.f32.mrf.mxu0  ;;  %v3240_v8 = vmul.f32 %v8502_v6, %v8466_v32  ;;  %v3301_v12 = vmul.f32 %v8510_v40, %v8466_v32  ;;  %v11834_v29 = vrot.slane %v8466_v32, 5  ;;  %12061 = vst [vmem:[#allocation24_spill] sm:$0xff] %v8559_v35 }
 0x8fb   :  { %12057 = vst [vmem:[#allocation20_spill] sm:$0xff] %v8471_v38  ;;  %3012 = vrot.lane.b32.xlu0 %v2996_v56, %s7475_s29  ;;  %v2997_v57 = vmul.f32 %v8468_v34, %v8471_v38  ;;  %v3058_v20 = vmul.f32 %v8478_v42, %v8471_v38  ;;  %v3119_v28 = vmul.f32 %v8486_v1, %v8471_v38 }
 0x8fc   :  { %v3180_v5 = vmul.f32 %v8494_v2, %v8471_v38  ;;  %v3241_v37 = vmul.f32 %v8502_v6, %v8471_v38  ;;  %v1709_v9 = vpop.f32.mrf.mxu0  ;;  %v8513_v11 = vadd.f32 %v1707_v7, %v8134_v14  ;;  %v3302_v21 = vmul.f32 %v8510_v40, %v8471_v38 }
 0x8fd   :  { %3014 = vrot.lane.b32.xlu1 %v2997_v57, %s7475_s29  ;;  %v8519_v13 = vadd.f32 %v1709_v9, %v8136_v53  ;;  %v11833_v9 = vrot.slane %v8466_v32, 6 }
 0x8fe   :  { %12059 = vst [vmem:[#allocation22_spill] sm:$0xff] %v8513_v11  ;;  %v2998_v15 = vmul.f32 %v8468_v34, %v8513_v11  ;;  %v3059_v53 = vmul.f32 %v8478_v42, %v8513_v11  ;;  %v3120_v44 = vmul.f32 %v8486_v1, %v8513_v11  ;;  %v3181_v4 = vmul.f32 %v8494_v2, %v8513_v11 }
 0x8ff   :  { %3073 = vrot.lane.b32.xlu0 %v3057_v10, %s7474_s6  ;;  %12060 = vst [vmem:[#allocation23_spill] sm:$0xff] %v8519_v13  ;;  %v2999_v14 = vmul.f32 %v8468_v34, %v8519_v13  ;;  %v3060_v16 = vmul.f32 %v8478_v42, %v8519_v13  ;;  %v3121_v61 = vmul.f32 %v8486_v1, %v8519_v13  ;;  %v11840_v24 = vrot.slane %v8513_v11, 5  ;;  %v8572_v10 = vpop.permute.xlu0 %1755 }
 0x900   :  { %v3182_v63 = vmul.f32 %v8494_v2, %v8519_v13  ;;  %v3242_v22 = vmul.f32 %v8502_v6, %v8513_v11  ;;  %v3243_v47 = vmul.f32 %v8502_v6, %v8519_v13  ;;  %v3303_v56 = vmul.f32 %v8510_v40, %v8513_v11  ;;  %12062 = vst [vmem:[#allocation25_spill] sm:$0xff] %v8572_v10 }
 0x901   :  { %3075 = vrot.lane.b32.xlu1 %v3058_v20, %s7474_s6  ;;  %v8570_v57 = vsel %vm1740_vm1, %v11834_v29, %v11840_v24  ;;  %v3304_v20 = vmul.f32 %v8510_v40, %v8519_v13 }
 0x902   :  { %v1909_v7 = vmul.f32 %v8431_v36, %v8570_v57 }
 0x903   :  { %3134 = vrot.lane.b32.xlu0 %v3118_v30, %s7473_s23  ;;  %v1785_v30 = vmul.f32 %v8429_v46, %v8570_v57 }
 0x905   :  { %3136 = vrot.lane.b32.xlu1 %v3119_v28, %s7473_s23  ;;  %v8580_v28 = vpop.permute.xlu1 %3523 }
 0x907   :  { %3195 = vrot.lane.b32.xlu0 %v3179_v3, %s7471_s15  ;;  %v1847_v3 = vmul.f32 %v8433_v26, %v8570_v57 }
 0x909   :  { %3197 = vrot.lane.b32.xlu1 %v3180_v5, %s7471_s15  ;;  %v8585_v5 = vpop.permute.xlu0 %3584 }
 0x90a   :  { %12063 = vst [vmem:[#allocation26_spill] sm:$0xff] %v8585_v5 }
 0x90b   :  { %3256 = vrot.lane.b32.xlu0 %v3240_v8, %s7472_s1  ;;  %v11839_v8 = vrot.slane %v8513_v11, 6 }
 0x90d   :  { %3258 = vrot.lane.b32.xlu1 %v3241_v37, %s7472_s1  ;;  %v1971_v37 = vmul.f32 %v8435_v0, %v8570_v57 }
 0x90f   :  { %3317 = vrot.lane.b32.xlu0 %v3301_v12, %s7470_s30  ;;  %v8596_v12 = vpop.permute.xlu1 %3645 }
 0x910   :  { %12064 = vst [vmem:[#allocation27_spill] sm:$0xff] %v8596_v12 }
 0x911   :  { %3319 = vrot.lane.b32.xlu1 %v3302_v21, %s7470_s30  ;;  %v2095_v21 = vmul.f32 %v8439_v48, %v8570_v57 }
 0x913   :  { %3016 = vrot.lane.b32.xlu0 %v2998_v15, %s7475_s29  ;;  %v8607_v15 = vsel %vm2154_vm2, %v11833_v9, %v11839_v8 }
 0x914   :  { %12065 = vst [vmem:[#allocation28_spill] sm:$0xff] %v8607_v15 }
 0x915   :  { %3018 = vrot.lane.b32.xlu1 %v2999_v14, %s7475_s29  ;;  %v8609_v14 = vpop.permute.xlu0 %3706 }
 0x916   :  { %12066 = vst [vmem:[#allocation29_spill] sm:$0xff] %v8609_v14 }
 0x917   :  { %3077 = vrot.lane.b32.xlu0 %v3059_v53, %s7474_s6  ;;  %v2033_v53 = vmul.f32 %v8437_v59, %v8570_v57 }
 0x919   :  { %3079 = vrot.lane.b32.xlu1 %v3060_v16, %s7474_s6  ;;  %v2260_v16 = vmul.f32 %v8443_v58, %v8607_v15 }
 0x91b   :  { %3138 = vrot.lane.b32.xlu0 %v3120_v44, %s7473_s23  ;;  %v8617_v44 = vpop.permute.xlu1 %3809 }
 0x91c   :  { %12067 = vst [vmem:[#allocation30_spill] sm:$0xff] %v8617_v44 }
 0x91d   :  { %3140 = vrot.lane.b32.xlu1 %v3121_v61, %s7473_s23  ;;  %v2199_v61 = vmul.f32 %v8441_v18, %v8607_v15 }
 0x91f   :  { %3199 = vrot.lane.b32.xlu0 %v3181_v4, %s7471_s15  ;;  %v8622_v4 = vpop.permute.xlu0 %2169 }
 0x920   :  { %12068 = vst [vmem:[#allocation31_spill] sm:$0xff] %v8622_v4 }
 0x921   :  { %3201 = vrot.lane.b32.xlu1 %v3182_v63, %s7471_s15  ;;  %v2382_v63 = vmul.f32 %v8447_v49, %v8607_v15 }
 0x923   :  { %3260 = vrot.lane.b32.xlu0 %v3242_v22, %s7472_s1  ;;  %v11838_v22 = vrot.slane %v8513_v11, 7 }
 0x925   :  { %3262 = vrot.lane.b32.xlu1 %v3243_v47, %s7472_s1  ;;  %v2321_v47 = vmul.f32 %v8445_v43, %v8607_v15 }
 0x927   :  { %3321 = vrot.lane.b32.xlu0 %v3303_v56, %s7470_s30  ;;  %v11832_v56 = vrot.slane %v8466_v32, 7 }
 0x929   :  { %3323 = vrot.lane.b32.xlu1 %v3304_v20, %s7470_s30  ;;  %v8633_v20 = vpop.permute.xlu1 %3870 }
 0x92a   :  { %12069 = vst [vmem:[#allocation32_spill] sm:$0xff] %v8633_v20 }
 0x92b   :  { %1803 = vrot.lane.b32.xlu0 %v1785_v30, %s7475_s29  ;;  %v2443_v30 = vmul.f32 %v8449_v50, %v8607_v15 }
 0x92d   :  { %1865 = vrot.lane.b32.xlu1 %v1847_v3, %s7474_s6  ;;  %v8644_v3 = vsel %vm2562_vm3, %v11832_v56, %v11838_v22  ;;  %v1713_v22 = vpop.f32.mrf.mxu0 }
 0x92e   :  { %12070 = vst [vmem:[#allocation33_spill] sm:$0xff] %v8644_v3  ;;  %v2851_v19 = vmul.f32 %v8461_v25, %v8644_v3 }
 0x92f   :  { %1927 = vrot.lane.b32.xlu0 %v1909_v7, %s7473_s23  ;;  %v8646_v7 = vpop.permute.xlu0 %3931 }
 0x930   :  { %12071 = vst [vmem:[#allocation34_spill] sm:$0xff] %v8646_v7 }
 0x931   :  { %1989 = vrot.lane.b32.xlu1 %v1971_v37, %s7471_s15  ;;  %v2504_v37 = vmul.f32 %v8451_v51, %v8607_v15 }
 0x933   :  { %2113 = vrot.lane.b32.xlu0 %v2095_v21, %s7470_s30  ;;  %v2607_v21 = vmul.f32 %v8453_v41, %v8644_v3 }
 0x935   :  { %2051 = vrot.lane.b32.xlu1 %v2033_v53, %s7472_s1  ;;  %v11835_v53 = vrot.slane %v8513_v11, 2 }
 0x937   :  { %2278 = vrot.lane.b32.xlu0 %v2260_v16, %s7474_s6  ;;  %v8655_v16 = vpop.permute.xlu1 %3992 }
 0x938   :  { %12072 = vst [vmem:[#allocation35_spill] sm:$0xff] %v8655_v16 }
 0x939   :  { %2217 = vrot.lane.b32.xlu1 %v2199_v61, %s7475_s29  ;;  %v2668_v61 = vmul.f32 %v8455_v60, %v8644_v3 }
 0x93b   :  { %2400 = vrot.lane.b32.xlu0 %v2382_v63, %s7471_s15  ;;  %v11831_v63 = vrot.slane %v8466_v32, 2  ;;  %v8678_v62 = vpop.permute.xlu1 %4114 }
 0x93c   :  { %12075 = vst [vmem:[#allocation38_spill] sm:$0xff] %v8678_v62 }
 0x93d   :  { %2339 = vrot.lane.b32.xlu1 %v2321_v47, %s7473_s23  ;;  %v8662_v47 = vpop.permute.xlu0 %4053 }
 0x93e   :  { %12073 = vst [vmem:[#allocation36_spill] sm:$0xff] %v8662_v47 }
 0x93f   :  { %2461 = vrot.lane.b32.xlu0 %v2443_v30, %s7472_s1  ;;  %v2729_v30 = vmul.f32 %v8457_v17, %v8644_v3  ;;  %v8694_v56 = vpop.permute.xlu1 %2577 }
 0x940   :  { %12077 = vst [vmem:[#allocation40_spill] sm:$0xff] %v8694_v56 }
 0x941   :  { %2522 = vrot.lane.b32.xlu1 %v2504_v37, %s7470_s30  ;;  %v8673_v37 = vsel %vm3769_vm4, %v11831_v63, %v11835_v53  ;;  %v8683_v55 = vpop.permute.xlu0 %4217  ;;  %v11837_v63 = vrot.slane %v8513_v11, 1 }
 0x942   :  { %12074 = vst [vmem:[#allocation37_spill] sm:$0xff] %v8673_v37  ;;  %12076 = vst [vmem:[#allocation39_spill] sm:$0xff] %v8683_v55  ;;  %v3934_v29 = vmul.f32 %v8646_v7, %v8673_v37 }
 0x943   :  { %2625 = vrot.lane.b32.xlu0 %v2607_v21, %s7475_s29  ;;  %v2790_v21 = vmul.f32 %v8459_v23, %v8644_v3  ;;  %v8715_v53 = vpop.permute.xlu1 %4339 }
 0x944   :  { %12080 = vst [vmem:[#allocation43_spill] sm:$0xff] %v8715_v53 }
 0x945   :  { %2686 = vrot.lane.b32.xlu1 %v2668_v61, %s7474_s6  ;;  %v3812_v61 = vmul.f32 %v8617_v44, %v8673_v37  ;;  %v8707_v9 = vpop.permute.xlu0 %4278 }
 0x946   :  { %12079 = vst [vmem:[#allocation42_spill] sm:$0xff] %v8707_v9 }
 0x947   :  { %2747 = vrot.lane.b32.xlu0 %v2729_v30, %s7473_s23  ;;  %v3873_v30 = vmul.f32 %v8633_v20, %v8673_v37  ;;  %v8728_v8 = vpop.permute.xlu1 %4461 }
 0x948   :  { %12082 = vst [vmem:[#allocation45_spill] sm:$0xff] %v8728_v8 }
 0x949   :  { %2808 = vrot.lane.b32.xlu1 %v2790_v21, %s7471_s15  ;;  %v11836_v21 = vrot.slane %v8466_v32, 1 }
 0x94b   :  { %3828 = vrot.lane.b32.xlu0 %v3812_v61, %s7475_s29  ;;  %v2912_v61 = vmul.f32 %v8463_v27, %v8644_v3  ;;  %v8744_v3 = vpop.permute.xlu1 %2968 }
 0x94c   :  { %12085 = vst [vmem:[#allocation48_spill] sm:$0xff] %v8744_v3 }
 0x94d   :  { %2869 = vrot.lane.b32.xlu1 %v2851_v19, %s7472_s1  ;;  %v8705_v19 = vsel %vm3361_vm5, %v11836_v21, %v11837_v63  ;;  %v3995_v21 = vmul.f32 %v8655_v16, %v8673_v37  ;;  %v8720_v63 = vpop.permute.xlu0 %4400 }
 0x94e   :  { %12078 = vst [vmem:[#allocation41_spill] sm:$0xff] %v8705_v19  ;;  %12081 = vst [vmem:[#allocation44_spill] sm:$0xff] %v8720_v63  ;;  %v3587_v33 = vmul.f32 %v8585_v5, %v8705_v19 }
 0x94f   :  { %3889 = vrot.lane.b32.xlu0 %v3873_v30, %s7474_s6  ;;  %v3404_v30 = vmul.f32 %v8548_v39, %v8705_v19  ;;  %v8757_v56 = vpop.permute.xlu1 %3784 }
 0x950   :  { %12087 = vst [vmem:[#allocation50_spill] sm:$0xff] %v8757_v56 }
 0x951   :  { %2930 = vrot.lane.b32.xlu1 %v2912_v61, %s7470_s30  ;;  %v3465_v61 = vmul.f32 %v8559_v35, %v8705_v19  ;;  %v8733_v24 = vpop.permute.xlu0 %4522 }
 0x952   :  { %12083 = vst [vmem:[#allocation46_spill] sm:$0xff] %v8733_v24 }
 0x953   :  { %3950 = vrot.lane.b32.xlu0 %v3934_v29, %s7473_s23  ;;  %v4056_v29 = vmul.f32 %v8662_v47, %v8673_v37 }
 0x955   :  { %3420 = vrot.lane.b32.xlu1 %v3404_v30, %s7475_s29  ;;  %v3526_v30 = vmul.f32 %v8580_v28, %v8705_v19 }
 0x957   :  { %4011 = vrot.lane.b32.xlu0 %v3995_v21, %s7471_s15  ;;  %v8736_v21 = vadd.f32 %v1713_v22, %v8139_v54  ;;  %v11848_v54 = vrot.slane %v8519_v13, 5  ;;  %v8750_v22 = vpop.permute.xlu0 %3376 }
 0x958   :  { %12086 = vst [vmem:[#allocation49_spill] sm:$0xff] %v8750_v22  ;;  %v11850_v22 = vrot.slane %v8466_v32, 3 }
 0x959   :  { %3481 = vrot.lane.b32.xlu1 %v3465_v61, %s7474_s6  ;;  %12084 = vst [vmem:[#allocation47_spill] sm:$0xff] %v8736_v21  ;;  %v4117_v61 = vmul.f32 %v8678_v62, %v8673_v37  ;;  %v11851_v37 = vrot.slane %v8513_v11, 3 }
 0x95b   :  { %4072 = vrot.lane.b32.xlu0 %v4056_v29, %s7472_s1  ;;  %v3000_v29 = vmul.f32 %v8468_v34, %v8736_v21  ;;  %v8781_v56 = vsel %vm4177_vm6, %v11850_v22, %v11851_v37  ;;  %v8783_v3 = vpop.permute.xlu0 %4192  ;;  %v11858_v37 = vrot.slane %v8519_v13, 6 }
 0x95c   :  { %12088 = vst [vmem:[#allocation51_spill] sm:$0xff] %v8781_v56  ;;  %12089 = vst [vmem:[#allocation52_spill] sm:$0xff] %v8783_v3 }
 0x95d   :  { %3542 = vrot.lane.b32.xlu1 %v3526_v30, %s7473_s23  ;;  %v3648_v30 = vmul.f32 %v8596_v12, %v8705_v19 }
 0x95f   :  { %4133 = vrot.lane.b32.xlu0 %v4117_v61, %s7470_s30  ;;  %v11847_v61 = vrot.slane %v8471_v38, 5 }
 0x961   :  { %3603 = vrot.lane.b32.xlu1 %v3587_v33, %s7471_s15  ;;  %v3061_v33 = vmul.f32 %v8478_v42, %v8736_v21 }
 0x963   :  { %3020 = vrot.lane.b32.xlu0 %v3000_v29, %s7475_s29  ;;  %v8769_v29 = vsel %vm1740_vm1, %v11847_v61, %v11848_v54  ;;  %v8786_v61 = vpop.permute.xlu1 %4583  ;;  %v4220_v54 = vmul.f32 %v8683_v55, %v8781_v56 }
 0x964   :  { %12090 = vst [vmem:[#allocation53_spill] sm:$0xff] %v8786_v61  ;;  %v1972_v22 = vmul.f32 %v8435_v0, %v8769_v29  ;;  %v4281_v61 = vmul.f32 %v8707_v9, %v8781_v56 }
 0x965   :  { %3664 = vrot.lane.b32.xlu1 %v3648_v30, %s7472_s1  ;;  %v3709_v30 = vmul.f32 %v8609_v14, %v8705_v19 }
 0x967   :  { %3081 = vrot.lane.b32.xlu0 %v3061_v33, %s7474_s6  ;;  %v1848_v33 = vmul.f32 %v8433_v26, %v8769_v29 }
 0x969   :  { %3725 = vrot.lane.b32.xlu1 %v3709_v30, %s7470_s30 }
 0x96b   :  { %1867 = vrot.lane.b32.xlu0 %v1848_v33, %s7474_s6  ;;  %v11857_v33 = vrot.slane %v8471_v38, 6 }
 0x96d   :  { %v8793_v19 = vpop.permute.xlu0 %3012  ;;  %4236 = vrot.lane.b32.xlu1 %v4220_v54, %s7475_s29  ;;  %v2034_v54 = vmul.f32 %v8437_v59, %v8769_v29 }
 0x96e   :  { %12091 = vst [vmem:[#allocation54_spill] sm:$0xff] %v8793_v19  ;;  %v8816_v19 = vsel %vm2154_vm2, %v11857_v33, %v11858_v37  ;;  %v4403_v33 = vmul.f32 %v8720_v63, %v8781_v56 }
 0x96f   :  { %v8799_v30 = vpop.permute.xlu1 %3014  ;;  %1991 = vrot.lane.b32.xlu0 %v1972_v22, %s7471_s15  ;;  %12094 = vst [vmem:[#allocation57_spill] sm:$0xff] %v8816_v19  ;;  %v2383_v4 = vmul.f32 %v8447_v49, %v8816_v19 }
 0x970   :  { %12092 = vst [vmem:[#allocation55_spill] sm:$0xff] %v8799_v30 }
 0x971   :  { %v8805_v3 = vpop.permute.xlu0 %3073  ;;  %4297 = vrot.lane.b32.xlu1 %v4281_v61, %s7474_s6  ;;  %v2200_v61 = vmul.f32 %v8441_v18, %v8816_v19 }
 0x972   :  { %12093 = vst [vmem:[#allocation56_spill] sm:$0xff] %v8805_v3  ;;  %v4342_v3 = vmul.f32 %v8715_v53, %v8781_v56 }
 0x973   :  { %v8818_v22 = vpop.permute.xlu1 %3075  ;;  %2053 = vrot.lane.b32.xlu0 %v2034_v54, %s7472_s1  ;;  %v2322_v54 = vmul.f32 %v8445_v43, %v8816_v19 }
 0x974   :  { %12095 = vst [vmem:[#allocation58_spill] sm:$0xff] %v8818_v22 }
 0x975   :  { %v8823_v30 = vpop.permute.xlu0 %3134  ;;  %4358 = vrot.lane.b32.xlu1 %v4342_v3, %s7473_s23 }
 0x976   :  { %12096 = vst [vmem:[#allocation59_spill] sm:$0xff] %v8823_v30  ;;  %v11864_v30 = vrot.slane %v8519_v13, 7 }
 0x977   :  { %v8828_v32 = vpop.permute.xlu1 %3136  ;;  %2219 = vrot.lane.b32.xlu0 %v2200_v61, %s7475_s29  ;;  %v11863_v61 = vrot.slane %v8471_v38, 7 }
 0x978   :  { %12097 = vst [vmem:[#allocation60_spill] sm:$0xff] %v8828_v32  ;;  %v4464_v32 = vmul.f32 %v8728_v8, %v8781_v56 }
 0x979   :  { %v8833_v37 = vpop.permute.xlu0 %3195  ;;  %4419 = vrot.lane.b32.xlu1 %v4403_v33, %s7471_s15  ;;  %v2505_v33 = vmul.f32 %v8451_v51, %v8816_v19 }
 0x97a   :  { %12098 = vst [vmem:[#allocation61_spill] sm:$0xff] %v8833_v37  ;;  %v8856_v37 = vsel %vm2562_vm3, %v11863_v61, %v11864_v30  ;;  %v3122_v61 = vmul.f32 %v8486_v1, %v8736_v21 }
 0x97b   :  { %v8839_v3 = vpop.permute.xlu1 %3197  ;;  %2341 = vrot.lane.b32.xlu0 %v2322_v54, %s7473_s23  ;;  %12101 = vst [vmem:[#allocation64_spill] sm:$0xff] %v8856_v37 }
 0x97c   :  { %12099 = vst [vmem:[#allocation62_spill] sm:$0xff] %v8839_v3 }
 0x97d   :  { %v8845_v22 = vpop.permute.xlu0 %3256  ;;  %4480 = vrot.lane.b32.xlu1 %v4464_v32, %s7472_s1  ;;  %v2669_v32 = vmul.f32 %v8455_v60, %v8856_v37 }
 0x97e   :  { %12100 = vst [vmem:[#allocation63_spill] sm:$0xff] %v8845_v22  ;;  %v4525_v22 = vmul.f32 %v8733_v24, %v8781_v56 }
 0x97f   :  { %v8858_v54 = vpop.permute.xlu1 %3258  ;;  %2524 = vrot.lane.b32.xlu0 %v2505_v33, %s7470_s30  ;;  %v2791_v33 = vmul.f32 %v8459_v23, %v8856_v37 }
 0x980   :  { %12102 = vst [vmem:[#allocation65_spill] sm:$0xff] %v8858_v54  ;;  %v3244_v54 = vmul.f32 %v8502_v6, %v8736_v21 }
 0x981   :  { %v8863_v3 = vpop.permute.xlu0 %3317  ;;  %4541 = vrot.lane.b32.xlu1 %v4525_v22, %s7470_s30  ;;  %v3183_v22 = vmul.f32 %v8494_v2, %v8736_v21 }
 0x982   :  { %12103 = vst [vmem:[#allocation66_spill] sm:$0xff] %v8863_v3 }
 0x983   :  { %v8868_v15 = vpop.permute.xlu1 %3319  ;;  %2688 = vrot.lane.b32.xlu0 %v2669_v32, %s7474_s6  ;;  %v2852_v32 = vmul.f32 %v8461_v25, %v8856_v37 }
 0x984   :  { %12104 = vst [vmem:[#allocation67_spill] sm:$0xff] %v8868_v15  ;;  %v11871_v15 = vrot.slane %v8519_v13, 1 }
 0x985   :  { %v8873_v30 = vpop.permute.xlu0 %3016  ;;  %3142 = vrot.lane.b32.xlu1 %v3122_v61, %s7473_s23 }
 0x986   :  { %12105 = vst [vmem:[#allocation68_spill] sm:$0xff] %v8873_v30 }
 0x987   :  { %v8878_v56 = vpop.permute.xlu1 %3018  ;;  %2810 = vrot.lane.b32.xlu0 %v2791_v33, %s7471_s15  ;;  %v11870_v33 = vrot.slane %v8471_v38, 1 }
 0x988   :  { %12106 = vst [vmem:[#allocation69_spill] sm:$0xff] %v8878_v56 }
 0x989   :  { %v8883_v3 = vpop.permute.xlu0 %3077  ;;  %3203 = vrot.lane.b32.xlu1 %v3183_v22, %s7471_s15  ;;  %v2913_v22 = vmul.f32 %v8463_v27, %v8856_v37 }
 0x98a   :  { %12107 = vst [vmem:[#allocation70_spill] sm:$0xff] %v8883_v3  ;;  %v8906_v3 = vsel %vm3361_vm5, %v11870_v33, %v11871_v15  ;;  %v1786_v33 = vmul.f32 %v8429_v46, %v8769_v29 }
 0x98b   :  { %v8889_v61 = vpop.permute.xlu1 %3079  ;;  %2871 = vrot.lane.b32.xlu0 %v2852_v32, %s7472_s1  ;;  %12110 = vst [vmem:[#allocation73_spill] sm:$0xff] %v8906_v3 }
 0x98c   :  { %12108 = vst [vmem:[#allocation71_spill] sm:$0xff] %v8889_v61 }
 0x98d   :  { %v8895_v30 = vpop.permute.xlu0 %3138  ;;  %3264 = vrot.lane.b32.xlu1 %v3244_v54, %s7472_s1  ;;  %v3405_v54 = vmul.f32 %v8548_v39, %v8906_v3 }
 0x98e   :  { %12109 = vst [vmem:[#allocation72_spill] sm:$0xff] %v8895_v30  ;;  %v3305_v30 = vmul.f32 %v8510_v40, %v8736_v21 }
 0x98f   :  { %v8908_v32 = vpop.permute.xlu1 %3140  ;;  %2932 = vrot.lane.b32.xlu0 %v2913_v22, %s7470_s30  ;;  %v3466_v22 = vmul.f32 %v8559_v35, %v8906_v3 }
 0x990   :  { %12111 = vst [vmem:[#allocation74_spill] sm:$0xff] %v8908_v32  ;;  %v11879_v32 = vrot.slane %v8519_v13, 3 }
 0x991   :  { %v8913_v61 = vpop.permute.xlu0 %3199  ;;  %3325 = vrot.lane.b32.xlu1 %v3305_v30, %s7470_s30  ;;  %v1910_v30 = vmul.f32 %v8431_v36, %v8769_v29 }
 0x992   :  { %12112 = vst [vmem:[#allocation75_spill] sm:$0xff] %v8913_v61 }
 0x993   :  { %v8918_v56 = vpop.permute.xlu1 %3201  ;;  %3422 = vrot.lane.b32.xlu0 %v3405_v54, %s7475_s29  ;;  %v3527_v54 = vmul.f32 %v8580_v28, %v8906_v3 }
 0x994   :  { %12113 = vst [vmem:[#allocation76_spill] sm:$0xff] %v8918_v56 }
 0x995   :  { %v8923_v15 = vpop.permute.xlu0 %3260  ;;  %1805 = vrot.lane.b32.xlu1 %v1786_v33, %s7475_s29  ;;  %v2096_v33 = vmul.f32 %v8439_v48, %v8769_v29 }
 0x996   :  { %12114 = vst [vmem:[#allocation77_spill] sm:$0xff] %v8923_v15 }
 0x997   :  { %v8928_v61 = vpop.permute.xlu1 %3262  ;;  %3483 = vrot.lane.b32.xlu0 %v3466_v22, %s7474_s6  ;;  %v3588_v22 = vmul.f32 %v8585_v5, %v8906_v3 }
 0x998   :  { %12115 = vst [vmem:[#allocation78_spill] sm:$0xff] %v8928_v61 }
 0x999   :  { %v8933_v56 = vpop.permute.xlu0 %3321  ;;  %1929 = vrot.lane.b32.xlu1 %v1910_v30, %s7473_s23  ;;  %v2261_v30 = vmul.f32 %v8443_v58, %v8816_v19 }
 0x99a   :  { %12116 = vst [vmem:[#allocation79_spill] sm:$0xff] %v8933_v56 }
 0x99b   :  { %v8938_v15 = vpop.permute.xlu1 %3323  ;;  %3544 = vrot.lane.b32.xlu0 %v3527_v54, %s7473_s23  ;;  %v3649_v54 = vmul.f32 %v8596_v12, %v8906_v3 }
 0x99c   :  { %12117 = vst [vmem:[#allocation80_spill] sm:$0xff] %v8938_v15 }
 0x99d   :  { %v8943_v61 = vpop.permute.xlu0 %1803  ;;  %2115 = vrot.lane.b32.xlu1 %v2096_v33, %s7470_s30 }
 0x99f   :  { %v8948_v56 = vpop.permute.xlu1 %1865  ;;  %3605 = vrot.lane.b32.xlu0 %v3588_v22, %s7471_s15  ;;  %v11878_v22 = vrot.slane %v8471_v38, 3 }
 0x9a1   :  { %v8953_v15 = vpop.permute.xlu0 %1927  ;;  %2280 = vrot.lane.b32.xlu1 %v2261_v30, %s7474_s6  ;;  %v3710_v30 = vmul.f32 %v8609_v14, %v8906_v3 }
 0x9a2   :  { %12118 = vst [vmem:[#allocation81_spill] sm:$0xff] %v8953_v15 }
 0x9a3   :  { %v8959_v33 = vpop.permute.xlu1 %1989  ;;  %3666 = vrot.lane.b32.xlu0 %v3649_v54, %s7472_s1 }
 0x9a4   :  { %12119 = vst [vmem:[#allocation82_spill] sm:$0xff] %v8959_v33  ;;  %v8976_v33 = vsel %vm4177_vm6, %v11878_v22, %v11879_v32  ;;  %v2608_v22 = vmul.f32 %v8453_v41, %v8856_v37  ;;  %v11883_v32 = vrot.slane %v8519_v13, 2 }
 0x9a5   :  { %v8965_v31 = vpop.permute.xlu0 %2113  ;;  %2402 = vrot.lane.b32.xlu1 %v2383_v4, %s7471_s15  ;;  %12121 = vst [vmem:[#allocation84_spill] sm:$0xff] %v8976_v33  ;;  %v4221_v4 = vmul.f32 %v8683_v55, %v8976_v33 }
 0x9a6   :  { %12120 = vst [vmem:[#allocation83_spill] sm:$0xff] %v8965_v31  ;;  %v2444_v31 = vmul.f32 %v8449_v50, %v8816_v19 }
 0x9a7   :  { %v8978_v54 = vpop.permute.xlu1 %2051  ;;  %3727 = vrot.lane.b32.xlu0 %v3710_v30, %s7470_s30 }
 0x9a9   :  { %v8983_v15 = vpop.permute.xlu0 %2278  ;;  %2463 = vrot.lane.b32.xlu1 %v2444_v31, %s7472_s1  ;;  %v11882_v31 = vrot.slane %v8471_v38, 2 }
 0x9aa   :  { %12122 = vst [vmem:[#allocation85_spill] sm:$0xff] %v8983_v15  ;;  %v4282_v15 = vmul.f32 %v8707_v9, %v8976_v33 }
 0x9ab   :  { %v8988_v3 = vpop.permute.xlu1 %2217  ;;  %4238 = vrot.lane.b32.xlu0 %v4221_v4, %s7475_s29  ;;  %v2730_v4 = vmul.f32 %v8457_v17, %v8856_v37 }
 0x9ac   :  { %12123 = vst [vmem:[#allocation86_spill] sm:$0xff] %v8988_v3 }
 0x9ad   :  { %v8994_v30 = vpop.permute.xlu0 %2400  ;;  %2627 = vrot.lane.b32.xlu1 %v2608_v22, %s7475_s29 }
 0x9ae   :  { %12124 = vst [vmem:[#allocation87_spill] sm:$0xff] %v8994_v30  ;;  %v9011_v30 = vsel %vm3769_vm4, %v11882_v31, %v11883_v32  ;;  %v4404_v31 = vmul.f32 %v8720_v63, %v8976_v33 }
 0x9af   :  { %v9000_v19 = vpop.permute.xlu1 %2339  ;;  %4299 = vrot.lane.b32.xlu0 %v4282_v15, %s7474_s6  ;;  %12126 = vst [vmem:[#allocation89_spill] sm:$0xff] %v9011_v30  ;;  %v3813_v15 = vmul.f32 %v8617_v44, %v9011_v30 }
 0x9b0   :  { %12125 = vst [vmem:[#allocation88_spill] sm:$0xff] %v9000_v19  ;;  %v4343_v19 = vmul.f32 %v8715_v53, %v8976_v33 }
 0x9b1   :  { %v9013_v22 = vpop.permute.xlu0 %2461  ;;  %2749 = vrot.lane.b32.xlu1 %v2730_v4, %s7473_s23  ;;  %v3874_v4 = vmul.f32 %v8633_v20, %v9011_v30 }
 0x9b3   :  { %v9018_v3 = vpop.permute.xlu1 %2522  ;;  %4360 = vrot.lane.b32.xlu0 %v4343_v19, %s7473_s23  ;;  %v4465_v19 = vmul.f32 %v8728_v8, %v8976_v33 }
 0x9b4   :  { %12127 = vst [vmem:[#allocation90_spill] sm:$0xff] %v9018_v3 }
 0x9b5   :  { %v9023_v37 = vpop.permute.xlu0 %2625  ;;  %3830 = vrot.lane.b32.xlu1 %v3813_v15, %s7475_s29  ;;  %v3935_v15 = vmul.f32 %v8646_v7, %v9011_v30 }
 0x9b6   :  { %12128 = vst [vmem:[#allocation91_spill] sm:$0xff] %v9023_v37  ;;  %v1715_v37 = vpop.f32.mrf.mxu0 }
 0x9b7   :  { %v9028_v32 = vpop.permute.xlu1 %2686  ;;  %4421 = vrot.lane.b32.xlu0 %v4404_v31, %s7471_s15  ;;  %v9044_v31 = vadd.f32 %v1715_v37, %v8142_v45 }
 0x9b8   :  { %12129 = vst [vmem:[#allocation92_spill] sm:$0xff] %v9028_v32 }
 0x9b9   :  { %v9033_v38 = vpop.permute.xlu0 %2747  ;;  %3891 = vrot.lane.b32.xlu1 %v3874_v4, %s7474_s6  ;;  %12132 = vst [vmem:[#allocation95_spill] sm:$0xff] %v9044_v31  ;;  %v4526_v4 = vmul.f32 %v8733_v24, %v8976_v33  ;;  %v3123_v45 = vmul.f32 %v8486_v1, %v9044_v31 }
 0x9ba   :  { %12130 = vst [vmem:[#allocation93_spill] sm:$0xff] %v9033_v38 }
 0x9bb   :  { %v9038_v3 = vpop.permute.xlu1 %2808  ;;  %4482 = vrot.lane.b32.xlu0 %v4465_v19, %s7472_s1  ;;  %v3996_v19 = vmul.f32 %v8655_v16, %v9011_v30 }
 0x9bc   :  { %12131 = vst [vmem:[#allocation94_spill] sm:$0xff] %v9038_v3 }
 0x9bd   :  { %v9046_v32 = vpop.permute.xlu0 %3828  ;;  %3952 = vrot.lane.b32.xlu1 %v3935_v15, %s7473_s23  ;;  %v4057_v15 = vmul.f32 %v8662_v47, %v9011_v30 }
 0x9be   :  { %12133 = vst [vmem:[#allocation96_spill] sm:$0xff] %v9046_v32 }
 0x9bf   :  { %v9051_v38 = vpop.permute.xlu1 %2869  ;;  %4543 = vrot.lane.b32.xlu0 %v4526_v4, %s7470_s30  ;;  %v3184_v4 = vmul.f32 %v8494_v2, %v9044_v31 }
 0x9c1   :  { %v9056_v3 = vpop.permute.xlu0 %3889  ;;  %4013 = vrot.lane.b32.xlu1 %v3996_v19, %s7471_s15  ;;  %v4118_v19 = vmul.f32 %v8678_v62, %v9011_v30 }
 0x9c2   :  { %12134 = vst [vmem:[#allocation97_spill] sm:$0xff] %v9056_v3 }
 0x9c3   :  { %v9061_v37 = vpop.permute.xlu1 %2930  ;;  %3144 = vrot.lane.b32.xlu0 %v3123_v45, %s7473_s23  ;;  %v3245_v45 = vmul.f32 %v8502_v6, %v9044_v31 }
 0x9c4   :  { %12135 = vst [vmem:[#allocation98_spill] sm:$0xff] %v9061_v37 }
 0x9c5   :  { %v9066_v33 = vpop.permute.xlu0 %3950  ;;  %4074 = vrot.lane.b32.xlu1 %v4057_v15, %s7472_s1 }
 0x9c6   :  { %12136 = vst [vmem:[#allocation99_spill] sm:$0xff] %v9066_v33  ;;  %v11890_v33 = vrot.slane %v8736_v21, 5 }
 0x9c7   :  { %v9071_v3 = vpop.permute.xlu1 %3420  ;;  %3205 = vrot.lane.b32.xlu0 %v3184_v4, %s7471_s15 }
 0x9c8   :  { %12137 = vst [vmem:[#allocation100_spill] sm:$0xff] %v9071_v3  ;;  %v3001_v3 = vmul.f32 %v8468_v34, %v9044_v31 }
 0x9c9   :  { %v9076_v32 = vpop.permute.xlu0 %4011  ;;  %4135 = vrot.lane.b32.xlu1 %v4118_v19, %s7470_s30  ;;  %v12141_v19 = vrot.slane %v8513_v11, 5 }
 0x9ca   :  { %12138 = vst [vmem:[#allocation101_spill] sm:$0xff] %v9076_v32  ;;  %v3306_v32 = vmul.f32 %v8510_v40, %v9044_v31  ;;  %v11891_v40 = vrot.slane %v8736_v21, 6 }
 0x9cb   :  { %v9082_v15 = vpop.permute.xlu1 %3481  ;;  %3266 = vrot.lane.b32.xlu0 %v3245_v45, %s7472_s1  ;;  %v9098_v30 = vsel %vm1740_vm1, %v12141_v19, %v11890_v33  ;;  %v3062_v45 = vmul.f32 %v8478_v42, %v9044_v31 }
 0x9cc   :  { %12139 = vst [vmem:[#allocation102_spill] sm:$0xff] %v9082_v15  ;;  %12142 = vst [vmem:[#allocation104_spill] sm:$0xff] %v9098_v30  ;;  %v1787_v19 = vmul.f32 %v8429_v46, %v9098_v30  ;;  %v2097_v33 = vmul.f32 %v8439_v48, %v9098_v30 }
 0x9cd   :  { %v9087_v4 = vpop.permute.xlu0 %4072  ;;  %3022 = vrot.lane.b32.xlu1 %v3001_v3, %s7475_s29  ;;  %v1973_v3 = vmul.f32 %v8435_v0, %v9098_v30 }
 0x9ce   :  { %12140 = vst [vmem:[#allocation103_spill] sm:$0xff] %v9087_v4 }
 0x9cf   :  { %v9100_v15 = vpop.permute.xlu1 %3542  ;;  %3327 = vrot.lane.b32.xlu0 %v3306_v32, %s7470_s30 }
 0x9d0   :  { %12143 = vst [vmem:[#allocation105_spill] sm:$0xff] %v9100_v15 }
 0x9d1   :  { %v9105_v4 = vpop.permute.xlu0 %4133  ;;  %3083 = vrot.lane.b32.xlu1 %v3062_v45, %s7474_s6  ;;  %v12147_v45 = vrot.slane %v8513_v11, 6 }
 0x9d2   :  { %12144 = vst [vmem:[#allocation106_spill] sm:$0xff] %v9105_v4 }
 0x9d3   :  { %v9111_v37 = vpop.permute.xlu1 %3603  ;;  %1993 = vrot.lane.b32.xlu0 %v1973_v3, %s7471_s15  ;;  %v9127_v4 = vsel %vm2154_vm2, %v12147_v45, %v11891_v40  ;;  %v1849_v3 = vmul.f32 %v8433_v26, %v9098_v30  ;;  %v1911_v45 = vmul.f32 %v8431_v36, %v9098_v30 }
 0x9d4   :  { %12145 = vst [vmem:[#allocation107_spill] sm:$0xff] %v9111_v37  ;;  %12148 = vst [vmem:[#allocation109_spill] sm:$0xff] %v9127_v4 }
 0x9d5   :  { %v9116_v32 = vpop.permute.xlu0 %3020  ;;  %1807 = vrot.lane.b32.xlu1 %v1787_v19, %s7475_s29  ;;  %v2201_v19 = vmul.f32 %v8441_v18, %v9127_v4 }
 0x9d6   :  { %12146 = vst [vmem:[#allocation108_spill] sm:$0xff] %v9116_v32 }
 0x9d7   :  { %v9129_v37 = vpop.permute.xlu1 %3664  ;;  %2117 = vrot.lane.b32.xlu0 %v2097_v33, %s7470_s30  ;;  %v2262_v33 = vmul.f32 %v8443_v58, %v9127_v4 }
 0x9d8   :  { %12149 = vst [vmem:[#allocation110_spill] sm:$0xff] %v9129_v37 }
 0x9d9   :  { %v9134_v15 = vpop.permute.xlu0 %3081  ;;  %1869 = vrot.lane.b32.xlu1 %v1849_v3, %s7474_s6  ;;  %v2035_v3 = vmul.f32 %v8437_v59, %v9098_v30  ;;  %v2445_v30 = vmul.f32 %v8449_v50, %v9127_v4 }
 0x9da   :  { %12150 = vst [vmem:[#allocation111_spill] sm:$0xff] %v9134_v15  ;;  %v11899_v15 = vrot.slane %v8736_v21, 7 }
 0x9db   :  { %v9139_v32 = vpop.permute.xlu1 %3725  ;;  %2221 = vrot.lane.b32.xlu0 %v2201_v19, %s7475_s29  ;;  %v2323_v19 = vmul.f32 %v8445_v43, %v9127_v4 }
 0x9dc   :  { %12151 = vst [vmem:[#allocation112_spill] sm:$0xff] %v9139_v32 }
 0x9dd   :  { %v9144_v40 = vpop.permute.xlu0 %1867  ;;  %1931 = vrot.lane.b32.xlu1 %v1911_v45, %s7473_s23 }
 0x9df   :  { %v9149_v37 = vpop.permute.xlu1 %4236  ;;  %2282 = vrot.lane.b32.xlu0 %v2262_v33, %s7474_s6 }
 0x9e0   :  { %12152 = vst [vmem:[#allocation113_spill] sm:$0xff] %v9149_v37  ;;  %v2384_v37 = vmul.f32 %v8447_v49, %v9127_v4 }
 0x9e1   :  { %v9154_v32 = vpop.permute.xlu0 %1991  ;;  %2055 = vrot.lane.b32.xlu1 %v2035_v3, %s7472_s1  ;;  %v12154_v3 = vrot.slane %v8513_v11, 7 }
 0x9e3   :  { %v9160_v45 = vpop.permute.xlu1 %4297  ;;  %2343 = vrot.lane.b32.xlu0 %v2323_v19, %s7473_s23  ;;  %v9176_v43 = vsel %vm2562_vm3, %v12154_v3, %v11899_v15  ;;  %v2506_v19 = vmul.f32 %v8451_v51, %v9127_v4  ;;  %v11907_v15 = vrot.slane %v8736_v21, 1 }
 0x9e4   :  { %12153 = vst [vmem:[#allocation114_spill] sm:$0xff] %v9160_v45  ;;  %12155 = vst [vmem:[#allocation115_spill] sm:$0xff] %v9176_v43  ;;  %v2609_v3 = vmul.f32 %v8453_v41, %v9176_v43 }
 0x9e5   :  { %v9165_v33 = vpop.permute.xlu0 %2053  ;;  %2404 = vrot.lane.b32.xlu1 %v2384_v37, %s7471_s15  ;;  %v2731_v37 = vmul.f32 %v8457_v17, %v9176_v43 }
 0x9e7   :  { %v9178_v45 = vpop.permute.xlu1 %4358  ;;  %2465 = vrot.lane.b32.xlu0 %v2445_v30, %s7472_s1 }
 0x9e8   :  { %12156 = vst [vmem:[#allocation116_spill] sm:$0xff] %v9178_v45  ;;  %v2792_v45 = vmul.f32 %v8459_v23, %v9176_v43 }
 0x9e9   :  { %v9183_v58 = vpop.permute.xlu0 %2219  ;;  %2526 = vrot.lane.b32.xlu1 %v2506_v19, %s7470_s30 }
 0x9eb   :  { %v9188_v50 = vpop.permute.xlu1 %4419  ;;  %2751 = vrot.lane.b32.xlu0 %v2731_v37, %s7473_s23  ;;  %v12159_v37 = vrot.slane %v8513_v11, 1 }
 0x9ec   :  { %12157 = vst [vmem:[#allocation117_spill] sm:$0xff] %v9188_v50  ;;  %v2670_v50 = vmul.f32 %v8455_v60, %v9176_v43 }
 0x9ed   :  { %v9194_v30 = vpop.permute.xlu0 %2341  ;;  %2629 = vrot.lane.b32.xlu1 %v2609_v3, %s7475_s29  ;;  %v9210_v4 = vsel %vm3361_vm5, %v12159_v37, %v11907_v15  ;;  %v2853_v3 = vmul.f32 %v8461_v25, %v9176_v43  ;;  %v2914_v37 = vmul.f32 %v8463_v27, %v9176_v43  ;;  %v1717_v27 = vpop.f32.mrf.mxu0 }
 0x9ee   :  { %v3406_v23 = vmul.f32 %v8548_v39, %v9210_v4 }
 0x9ef   :  { %v9199_v19 = vpop.permute.xlu1 %4480  ;;  %2812 = vrot.lane.b32.xlu0 %v2792_v45, %s7471_s15  ;;  %v11911_v45 = vrot.slane %v8736_v21, 2 }
 0x9f0   :  { %12158 = vst [vmem:[#allocation118_spill] sm:$0xff] %v9199_v19 }
 0x9f1   :  { %v9212_v17 = vpop.permute.xlu0 %2524  ;;  %2690 = vrot.lane.b32.xlu1 %v2670_v50, %s7474_s6  ;;  %v12161_v50 = vrot.slane %v8513_v11, 2 }
 0x9f3   :  { %v9218_v19 = vpop.permute.xlu1 %4541  ;;  %2873 = vrot.lane.b32.xlu0 %v2853_v3, %s7472_s1  ;;  %v9234_v15 = vsel %vm3769_vm4, %v12161_v50, %v11911_v45  ;;  %v3467_v3 = vmul.f32 %v8559_v35, %v9210_v4  ;;  %v3528_v50 = vmul.f32 %v8580_v28, %v9210_v4 }
 0x9f4   :  { %12160 = vst [vmem:[#allocation119_spill] sm:$0xff] %v9218_v19  ;;  %12162 = vst [vmem:[#allocation120_spill] sm:$0xff] %v9234_v15 }
 0x9f5   :  { %v9223_v18 = vpop.permute.xlu0 %2688  ;;  %3424 = vrot.lane.b32.xlu1 %v3406_v23, %s7475_s29  ;;  %v3814_v23 = vmul.f32 %v8617_v44, %v9234_v15 }
 0x9f7   :  { %v9236_v19 = vpop.permute.xlu1 %3142  ;;  %2934 = vrot.lane.b32.xlu0 %v2914_v37, %s7470_s30  ;;  %v3875_v37 = vmul.f32 %v8633_v20, %v9234_v15  ;;  %v3997_v20 = vmul.f32 %v8655_v16, %v9234_v15  ;;  %v12169_v16 = vrot.slane %v8513_v11, 3 }
 0x9f8   :  { %12163 = vst [vmem:[#allocation121_spill] sm:$0xff] %v9236_v19 }
 0x9f9   :  { %v9241_v25 = vpop.permute.xlu0 %2810  ;;  %3485 = vrot.lane.b32.xlu1 %v3467_v3, %s7474_s6  ;;  %v3589_v3 = vmul.f32 %v8585_v5, %v9210_v4 }
 0x9fb   :  { %v9246_v43 = vpop.permute.xlu1 %3203  ;;  %3832 = vrot.lane.b32.xlu0 %v3814_v23, %s7475_s29  ;;  %v3936_v23 = vmul.f32 %v8646_v7, %v9234_v15  ;;  %v12168_v7 = vrot.slane %v8736_v21, 3 }
 0x9fc   :  { %12164 = vst [vmem:[#allocation122_spill] sm:$0xff] %v9246_v43 }
 0x9fd   :  { %v9251_v45 = vpop.permute.xlu0 %2871  ;;  %3546 = vrot.lane.b32.xlu1 %v3528_v50, %s7473_s23  ;;  %v3650_v50 = vmul.f32 %v8596_v12, %v9210_v4 }
 0x9ff   :  { %v9256_v19 = vpop.permute.xlu1 %3264  ;;  %3893 = vrot.lane.b32.xlu0 %v3875_v37, %s7474_s6 }
 0xa00   :  { %12165 = vst [vmem:[#allocation123_spill] sm:$0xff] %v9256_v19  ;;  %v3711_v19 = vmul.f32 %v8609_v14, %v9210_v4 }
 0xa01   :  { %v9261_v43 = vpop.permute.xlu0 %2932  ;;  %3607 = vrot.lane.b32.xlu1 %v3589_v3, %s7471_s15  ;;  %v1761_v3 = vmul.f32 %v8572_v10, %v8769_v29  ;;  %v9292_v29 = vsel %vm4177_vm6, %v12169_v16, %v12168_v7  ;;  %v12172_v16 = vld [vmem:[#allocation81_spill] sm:$0xff] }
 0xa02   :  { %12170 = vst [vmem:[#allocation126_spill] sm:$0xff] %v9292_v29 }
 0xa03   :  { %v9266_v44 = vpop.permute.xlu1 %3325  ;;  %3954 = vrot.lane.b32.xlu0 %v3936_v23, %s7473_s23 }
 0xa04   :  { %12166 = vst [vmem:[#allocation124_spill] sm:$0xff] %v9266_v44  ;;  %v1760_v44 = vmul.f32 %v8572_v10, %v8570_v57 }
 0xa05   :  { %v9272_v37 = vpop.permute.xlu0 %3422  ;;  %3668 = vrot.lane.b32.xlu1 %v3650_v50, %s7472_s1 }
 0xa06   :  { %12167 = vst [vmem:[#allocation125_spill] sm:$0xff] %v9272_v37 }
 0xa07   :  { %v1806_v23 = vpop.permute.xlu1 %1805  ;;  %4015 = vrot.lane.b32.xlu0 %v3997_v20, %s7471_s15  ;;  %v4058_v20 = vmul.f32 %v8662_v47, %v9234_v15 }
 0xa08   :  { %v1817_v37 = vsel %vm1815_vm7, %v8943_v61, %v1806_v23  ;;  %v1831_v50 = vadd.f32 %v1806_v23, %v1761_v3  ;;  %v1879_v61 = vsel %vm1877_vm8, %v8948_v56, %v9144_v40 }
 0xa09   :  { %v1830_v57 = vadd.f32 %v1817_v37, %v1760_v44  ;;  %v9294_v10 = vpop.permute.xlu0 %3483  ;;  %3729 = vrot.lane.b32.xlu1 %v3711_v19, %s7470_s30  ;;  %v4222_v44 = vmul.f32 %v8683_v55, %v9292_v29 }
 0xa0a   :  { %12171 = vst [vmem:[#allocation127_spill] sm:$0xff] %v9294_v10  ;;  %v1893_v3 = vadd.f32 %v9144_v40, %v1831_v50  ;;  %v12173_v10 = vld [vmem:[#allocation3_spill] sm:$0xff]  ;;  %v4119_v40 = vmul.f32 %v8678_v62, %v9234_v15  ;;  %v12176_v50 = vld [vmem:[#allocation82_spill] sm:$0xff] }
 0xa0b   :  { %v1930_v23 = vpop.permute.xlu1 %1929  ;;  %v1892_v7 = vadd.f32 %v1879_v61, %v1830_v57  ;;  %4076 = vrot.lane.b32.xlu0 %v4058_v20, %s7472_s1  ;;  %v9309_v21 = vadd.f32 %v1717_v27, %v12173_v10  ;;  %v2003_v57 = vsel %vm2001_vm10, %v12176_v50, %v9154_v32  ;;  %v4283_v27 = vmul.f32 %v8707_v9, %v9292_v29 }
 0xa0c   :  { %v1941_v19 = vsel %vm1939_vm9, %v12172_v16, %v1930_v23  ;;  %v1955_v37 = vadd.f32 %v1930_v23, %v1893_v3  ;;  %v2065_v10 = vsel %vm2063_vm11, %v8978_v54, %v9165_v33  ;;  %v12179_v16 = vld [vmem:[#allocation31_spill] sm:$0xff]  ;;  %v11932_v54 = vrot.slane %v9044_v31, 5 }
 0xa0d   :  { %12174 = vst [vmem:[#allocation81_spill] sm:$0xff] %v9309_v21  ;;  %v1954_v47 = vadd.f32 %v1941_v19, %v1892_v7  ;;  %v9311_v56 = vpop.permute.xlu0 %3544  ;;  %4240 = vrot.lane.b32.xlu1 %v4222_v44, %s7475_s29 }
 0xa0e   :  { %12175 = vst [vmem:[#allocation3_spill] sm:$0xff] %v9311_v56  ;;  %v2017_v20 = vadd.f32 %v9154_v32, %v1955_v37  ;;  %v12178_v32 = vld [vmem:[#allocation57_spill] sm:$0xff]  ;;  %v12180_v37 = vld [vmem:[#allocation83_spill] sm:$0xff] }
 0xa0f   :  { %v2016_v61 = vadd.f32 %v2003_v57, %v1954_v47  ;;  %v2116_v3 = vpop.permute.xlu1 %2115  ;;  %4137 = vrot.lane.b32.xlu0 %v4119_v40, %s7470_s30  ;;  %v3002_v47 = vmul.f32 %v8468_v34, %v9309_v21  ;;  %v2175_v19 = vmul.f32 %v12179_v16, %v12178_v32  ;;  %v12181_v57 = vld [vmem:[#allocation28_spill] sm:$0xff] }
 0xa10   :  { %v2079_v23 = vadd.f32 %v9165_v33, %v2017_v20  ;;  %v2127_v40 = vsel %vm2125_vm12, %v12180_v37, %v2116_v3  ;;  %v2174_v33 = vmul.f32 %v12179_v16, %v12181_v57  ;;  %v12185_v57 = vld [vmem:[#allocation85_spill] sm:$0xff] }
 0xa11   :  { %v2078_v7 = vadd.f32 %v2065_v10, %v2016_v61  ;;  %v9327_v44 = vpop.permute.xlu0 %3605  ;;  %4301 = vrot.lane.b32.xlu1 %v4283_v27, %s7474_s6  ;;  %v4344_v27 = vmul.f32 %v8715_v53, %v9292_v29 }
 0xa12   :  { %12177 = vst [vmem:[#allocation82_spill] sm:$0xff] %v9327_v44  ;;  %v2141_v50 = vadd.f32 %v2116_v3, %v2079_v23  ;;  %v3063_v3 = vmul.f32 %v8478_v42, %v9309_v21  ;;  %v12183_v23 = vld [vmem:[#allocation86_spill] sm:$0xff] }
 0xa13   :  { %v2140_v20 = vadd.f32 %v2127_v40, %v2078_v7  ;;  %v2281_v61 = vpop.permute.xlu1 %2280  ;;  %3024 = vrot.lane.b32.xlu0 %v3002_v47, %s7475_s29  ;;  %v2230_v32 = vsel %vm1815_vm7, %v12183_v23, %v9183_v58  ;;  %v12184_v47 = vrot.slane %v8519_v13, 5 }
 0xa14   :  { %v2183_v10 = vadd.f32 %v2175_v19, %v2141_v50  ;;  %v4405_v50 = vmul.f32 %v8720_v63, %v9292_v29 }
 0xa15   :  { %v2182_v44 = vadd.f32 %v2174_v33, %v2140_v20  ;;  %v9342_v56 = vpop.permute.xlu0 %3666  ;;  %4362 = vrot.lane.b32.xlu1 %v4344_v27, %s7473_s23  ;;  %v9357_v19 = vsel %vm1740_vm1, %v12184_v47, %v11932_v54  ;;  %v2291_v33 = vsel %vm1877_vm8, %v12185_v57, %v2281_v61 }
 0xa16   :  { %12182 = vst [vmem:[#allocation57_spill] sm:$0xff] %v9342_v56  ;;  %v2244_v7 = vadd.f32 %v9183_v58, %v2183_v10  ;;  %v1788_v10 = vmul.f32 %v8429_v46, %v9357_v19 }
 0xa17   :  { %v2243_v37 = vadd.f32 %v2230_v32, %v2182_v44  ;;  %v2403_v40 = vpop.permute.xlu1 %2402  ;;  %3085 = vrot.lane.b32.xlu0 %v3063_v3, %s7474_s6  ;;  %v12187_v44 = vld [vmem:[#allocation88_spill] sm:$0xff] }
 0xa18   :  { %v2305_v20 = vadd.f32 %v2281_v61, %v2244_v7  ;;  %v2352_v23 = vsel %vm1939_vm9, %v12187_v44, %v9194_v30  ;;  %v4466_v61 = vmul.f32 %v8728_v8, %v9292_v29  ;;  %v12188_v7 = vld [vmem:[#allocation87_spill] sm:$0xff]  ;;  %v1850_v44 = vmul.f32 %v8433_v26, %v9357_v19 }
 0xa19   :  { %v2304_v58 = vadd.f32 %v2291_v33, %v2243_v37  ;;  %v9364_v27 = vpop.permute.xlu0 %3727  ;;  %4423 = vrot.lane.b32.xlu1 %v4405_v50, %s7471_s15  ;;  %v2413_v37 = vsel %vm2001_vm10, %v12188_v7, %v2403_v40  ;;  %v12192_v7 = vld [vmem:[#allocation40_spill] sm:$0xff] }
 0xa1a   :  { %12186 = vst [vmem:[#allocation31_spill] sm:$0xff] %v9364_v27  ;;  %v2366_v3 = vadd.f32 %v9194_v30, %v2305_v20 }
 0xa1b   :  { %v2365_v32 = vadd.f32 %v2352_v23, %v2304_v58  ;;  %v2464_v47 = vpop.permute.xlu1 %2463  ;;  %1809 = vrot.lane.b32.xlu0 %v1788_v10, %s7475_s29  ;;  %v4527_v23 = vmul.f32 %v8733_v24, %v9292_v29 }
 0xa1c   :  { %v2427_v50 = vadd.f32 %v2403_v40, %v2366_v3  ;;  %v2474_v30 = vsel %vm2063_vm11, %v9013_v22, %v2464_v47  ;;  %v12190_v40 = vld [vmem:[#allocation90_spill] sm:$0xff] }
 0xa1d   :  { %v2426_v57 = vadd.f32 %v2413_v37, %v2365_v32  ;;  %v9378_v33 = vpop.permute.xlu0 %4238  ;;  %4484 = vrot.lane.b32.xlu1 %v4466_v61, %s7472_s1  ;;  %v2535_v3 = vsel %vm2125_vm12, %v12190_v40, %v9212_v17  ;;  %v12191_v61 = vld [vmem:[#allocation64_spill] sm:$0xff] }
 0xa1e   :  { %12189 = vst [vmem:[#allocation83_spill] sm:$0xff] %v9378_v33  ;;  %v2488_v20 = vadd.f32 %v2464_v47, %v2427_v50  ;;  %v2583_v37 = vmul.f32 %v12192_v7, %v12191_v61  ;;  %v12193_v33 = vld [vmem:[#allocation33_spill] sm:$0xff]  ;;  %v1912_v50 = vmul.f32 %v8431_v36, %v9357_v19 }
 0xa1f   :  { %v2487_v58 = vadd.f32 %v2474_v30, %v2426_v57  ;;  %v2628_v10 = vpop.permute.xlu1 %2627  ;;  %1871 = vrot.lane.b32.xlu0 %v1850_v44, %s7474_s6  ;;  %v2582_v22 = vmul.f32 %v12192_v7, %v12193_v33  ;;  %v11934_v44 = vrot.slane %v9044_v31, 6 }
 0xa20   :  { %v2549_v32 = vadd.f32 %v9212_v17, %v2488_v20  ;;  %v3124_v17 = vmul.f32 %v8486_v1, %v9309_v21  ;;  %v12195_v20 = vld [vmem:[#allocation91_spill] sm:$0xff] }
 0xa21   :  { %v2548_v54 = vadd.f32 %v2535_v3, %v2487_v58  ;;  %v9396_v47 = vpop.permute.xlu0 %4299  ;;  %4545 = vrot.lane.b32.xlu1 %v4527_v23, %s7470_s30  ;;  %v2638_v33 = vsel %vm1815_vm7, %v12195_v20, %v2628_v10  ;;  %v2036_v23 = vmul.f32 %v8437_v59, %v9357_v19 }
 0xa22   :  { %12194 = vst [vmem:[#allocation28_spill] sm:$0xff] %v9396_v47  ;;  %v2591_v57 = vadd.f32 %v2583_v37, %v2549_v32  ;;  %v12222_v47 = vld [vmem:[#allocation75_spill] sm:$0xff] }
 0xa23   :  { %v2590_v30 = vadd.f32 %v2582_v22, %v2548_v54  ;;  %v2750_v40 = vpop.permute.xlu1 %2749  ;;  %1933 = vrot.lane.b32.xlu0 %v1912_v50, %s7473_s23  ;;  %v12197_v54 = vld [vmem:[#allocation92_spill] sm:$0xff]  ;;  %v12198_v22 = vrot.slane %v8519_v13, 6 }
 0xa24   :  { %v2652_v58 = vadd.f32 %v2628_v10, %v2591_v57  ;;  %v2699_v32 = vsel %vm1877_vm8, %v12197_v54, %v9223_v18 }
 0xa25   :  { %v2651_v3 = vadd.f32 %v2638_v33, %v2590_v30  ;;  %v9407_v61 = vpop.permute.xlu0 %4360  ;;  %3146 = vrot.lane.b32.xlu1 %v3124_v17, %s7473_s23  ;;  %v9422_v10 = vsel %vm2154_vm2, %v12198_v22, %v11934_v44  ;;  %v3185_v30 = vmul.f32 %v8494_v2, %v9309_v21  ;;  %v12200_v17 = vld [vmem:[#allocation93_spill] sm:$0xff]  ;;  %v11936_v22 = vrot.slane %v9044_v31, 7 }
 0xa26   :  { %12196 = vst [vmem:[#allocation86_spill] sm:$0xff] %v9407_v61  ;;  %v2713_v37 = vadd.f32 %v9223_v18, %v2652_v58  ;;  %v2760_v20 = vsel %vm1939_vm9, %v12200_v17, %v2750_v40  ;;  %v2385_v54 = vmul.f32 %v8447_v49, %v9422_v10 }
 0xa27   :  { %v2712_v50 = vadd.f32 %v2699_v32, %v2651_v3  ;;  %v9424_v57 = vpop.permute.xlu1 %3830  ;;  %2057 = vrot.lane.b32.xlu0 %v2036_v23, %s7472_s1  ;;  %v12202_v3 = vld [vmem:[#allocation94_spill] sm:$0xff] }
 0xa28   :  { %12199 = vst [vmem:[#allocation85_spill] sm:$0xff] %v9424_v57  ;;  %v2774_v18 = vadd.f32 %v2750_v40, %v2713_v37  ;;  %v2821_v32 = vsel %vm2001_vm10, %v12202_v3, %v9241_v25  ;;  %v3246_v40 = vmul.f32 %v8502_v6, %v9309_v21  ;;  %v2882_v37 = vsel %vm2063_vm11, %v9051_v38, %v9251_v45 }
 0xa29   :  { %v2773_v33 = vadd.f32 %v2760_v20, %v2712_v50  ;;  %v9431_v58 = vpop.permute.xlu0 %4421  ;;  %3207 = vrot.lane.b32.xlu1 %v3185_v30, %s7471_s15  ;;  %v12205_v20 = vld [vmem:[#allocation98_spill] sm:$0xff]  ;;  %v12207_v38 = vrot.slane %v8519_v13, 7 }
 0xa2a   :  { %12201 = vst [vmem:[#allocation88_spill] sm:$0xff] %v9431_v58  ;;  %v2835_v23 = vadd.f32 %v9241_v25, %v2774_v18  ;;  %v2507_v25 = vmul.f32 %v8451_v51, %v9422_v10  ;;  %v2943_v18 = vsel %vm2125_vm12, %v12205_v20, %v9261_v43 }
 0xa2b   :  { %v2834_v44 = vadd.f32 %v2821_v32, %v2773_v33  ;;  %v9441_v61 = vpop.permute.xlu1 %3891  ;;  %2406 = vrot.lane.b32.xlu0 %v2385_v54, %s7471_s15  ;;  %v12206_v33 = vld [vmem:[#allocation48_spill] sm:$0xff] }
 0xa2c   :  { %12203 = vst [vmem:[#allocation87_spill] sm:$0xff] %v9441_v61  ;;  %v2896_v50 = vadd.f32 %v9251_v45, %v2835_v23  ;;  %v2974_v54 = vmul.f32 %v12206_v33, %v8519_v13  ;;  %v9467_v45 = vsel %vm2562_vm3, %v12207_v38, %v11936_v22  ;;  %v12211_v22 = vld [vmem:[#allocation69_spill] sm:$0xff]  ;;  %v12229_v61 = vld [vmem:[#allocation79_spill] sm:$0xff] }
 0xa2d   :  { %v2895_v30 = vadd.f32 %v2882_v37, %v2834_v44  ;;  %v9450_v17 = vpop.permute.xlu0 %4482  ;;  %3268 = vrot.lane.b32.xlu1 %v3246_v40, %s7472_s1  ;;  %v2973_v44 = vmul.f32 %v12206_v33, %v8513_v11  ;;  %v12209_v40 = vld [vmem:[#allocation21_spill] sm:$0xff]  ;;  %v2610_v38 = vmul.f32 %v8453_v41, %v9467_v45 }
 0xa2e   :  { %12204 = vst [vmem:[#allocation90_spill] sm:$0xff] %v9450_v17  ;;  %v2957_v3 = vadd.f32 %v9261_v43, %v2896_v50  ;;  %v3307_v37 = vmul.f32 %v12209_v40, %v9309_v21  ;;  %v12212_v17 = vld [vmem:[#allocation68_spill] sm:$0xff] }
 0xa2f   :  { %v2956_v32 = vadd.f32 %v2943_v18, %v2895_v30  ;;  %v9471_v23 = vpop.permute.xlu1 %3952  ;;  %2528 = vrot.lane.b32.xlu0 %v2507_v25, %s7470_s30  ;;  %v3029_v30 = vsel %vm1815_vm7, %v12212_v17, %v12211_v22  ;;  %v11944_v25 = vrot.slane %v9044_v31, 1 }
 0xa30   :  { %12208 = vst [vmem:[#allocation64_spill] sm:$0xff] %v9471_v23  ;;  %v2982_v43 = vadd.f32 %v2974_v54, %v2957_v3  ;;  %v1974_v54 = vmul.f32 %v8435_v0, %v9357_v19  ;;  %v12214_v3 = vld [vmem:[#allocation71_spill] sm:$0xff] }
 0xa31   :  { %v2981_v50 = vadd.f32 %v2973_v44, %v2956_v32  ;;  %v9476_v20 = vpop.permute.xlu0 %4543  ;;  %3329 = vrot.lane.b32.xlu1 %v3307_v37, %s7470_s30  ;;  %v12215_v44 = vld [vmem:[#allocation70_spill] sm:$0xff] }
 0xa32   :  { %12210 = vst [vmem:[#allocation33_spill] sm:$0xff] %v9476_v20  ;;  %v3043_v18 = vadd.f32 %v12211_v22, %v2982_v43  ;;  %v3090_v32 = vsel %vm1877_vm8, %v12215_v44, %v12214_v3  ;;  %v2671_v22 = vmul.f32 %v8455_v60, %v9467_v45  ;;  %v12217_v43 = vld [vmem:[#allocation74_spill] sm:$0xff] }
 0xa33   :  { %v3042_v11 = vadd.f32 %v3029_v30, %v2981_v50  ;;  %v9486_v58 = vpop.permute.xlu1 %4013  ;;  %2631 = vrot.lane.b32.xlu0 %v2610_v38, %s7475_s29  ;;  %v12218_v50 = vld [vmem:[#allocation72_spill] sm:$0xff]  ;;  %v12219_v30 = vrot.slane %v8519_v13, 1 }
 0xa34   :  { %12213 = vst [vmem:[#allocation91_spill] sm:$0xff] %v9486_v58  ;;  %v3104_v37 = vadd.f32 %v12214_v3, %v3043_v18  ;;  %v3151_v38 = vsel %vm1939_vm9, %v12218_v50, %v12217_v43 }
 0xa35   :  { %v9495_v20 = vpop.permute.xlu0 %3144  ;;  %1995 = vrot.lane.b32.xlu1 %v1974_v54, %s7471_s15  ;;  %v3103_v17 = vadd.f32 %v3090_v32, %v3042_v11  ;;  %v3365_v44 = vsel %vm3361_vm5, %v12219_v30, %v11944_v25  ;;  %v2098_v11 = vmul.f32 %v8439_v48, %v9357_v19  ;;  %v12221_v32 = vld [vmem:[#allocation76_spill] sm:$0xff]  ;;  %v12224_v30 = vld [vmem:[#allocation78_spill] sm:$0xff]  ;;  %v12225_v25 = vld [vmem:[#allocation77_spill] sm:$0xff] }
 0xa36   :  { %12216 = vst [vmem:[#allocation92_spill] sm:$0xff] %v9495_v20  ;;  %v3165_v18 = vadd.f32 %v12217_v43, %v3104_v37  ;;  %v3212_v50 = vsel %vm2001_vm10, %v12222_v47, %v12221_v32  ;;  %v3407_v37 = vmul.f32 %v8548_v39, %v3365_v44  ;;  %v12227_v47 = vld [vmem:[#allocation11_spill] sm:$0xff] }
 0xa37   :  { %v9510_v3 = vpop.permute.xlu1 %4074  ;;  %2692 = vrot.lane.b32.xlu0 %v2671_v22, %s7474_s6  ;;  %v3164_v54 = vadd.f32 %v3151_v38, %v3103_v17  ;;  %v3273_v22 = vsel %vm2063_vm11, %v12225_v25, %v12224_v30  ;;  %v2202_v38 = vmul.f32 %v12227_v47, %v9422_v10 }
 0xa38   :  { %12220 = vst [vmem:[#allocation93_spill] sm:$0xff] %v9510_v3  ;;  %v3226_v58 = vadd.f32 %v12221_v32, %v3165_v18  ;;  %v12228_v32 = vld [vmem:[#allocation80_spill] sm:$0xff] }
 0xa39   :  { %v9519_v23 = vpop.permute.xlu0 %3205  ;;  %2119 = vrot.lane.b32.xlu1 %v2098_v11, %s7470_s30  ;;  %v3225_v43 = vadd.f32 %v3212_v50, %v3164_v54  ;;  %v3334_v11 = vsel %vm2125_vm12, %v12229_v61, %v12228_v32  ;;  %v12230_v50 = vld [vmem:[#allocation49_spill] sm:$0xff]  ;;  %v12233_v61 = vld [vmem:[#allocation12_spill] sm:$0xff] }
 0xa3a   :  { %12223 = vst [vmem:[#allocation94_spill] sm:$0xff] %v9519_v23  ;;  %v3287_v3 = vadd.f32 %v12224_v30, %v3226_v58  ;;  %v3382_v57 = vmul.f32 %v12230_v50, %v3365_v44  ;;  %v3468_v58 = vmul.f32 %v8559_v35, %v3365_v44 }
 0xa3b   :  { %v9527_v17 = vpop.permute.xlu1 %4135  ;;  %3426 = vrot.lane.b32.xlu0 %v3407_v37, %s7475_s29  ;;  %v3286_v18 = vadd.f32 %v3273_v22, %v3225_v43  ;;  %v3381_v37 = vmul.f32 %v12230_v50, %v9210_v4  ;;  %v12236_v4 = vld [vmem:[#allocation13_spill] sm:$0xff] }
 0xa3c   :  { %12226 = vst [vmem:[#allocation98_spill] sm:$0xff] %v9527_v17  ;;  %v3348_v54 = vadd.f32 %v12228_v32, %v3287_v3  ;;  %v2263_v3 = vmul.f32 %v12233_v61, %v9422_v10  ;;  %v11957_v17 = vrot.slane %v9044_v31, 3 }
 0xa3d   :  { %v9537_v27 = vpop.permute.xlu0 %3266  ;;  %2223 = vrot.lane.b32.xlu1 %v2202_v38, %s7475_s29  ;;  %v3347_v25 = vadd.f32 %v3334_v11, %v3286_v18  ;;  %v3529_v38 = vmul.f32 %v8580_v28, %v3365_v44 }
 0xa3e   :  { %12231 = vst [vmem:[#allocation21_spill] sm:$0xff] %v9537_v27  ;;  %v9543_v30 = vadd.f32 %v3382_v57, %v3348_v54  ;;  %v2324_v57 = vmul.f32 %v12236_v4, %v9422_v10  ;;  %v3590_v54 = vmul.f32 %v8585_v5, %v3365_v44 }
 0xa3f   :  { %v9545_v43 = vpop.permute.xlu1 %3022  ;;  %3487 = vrot.lane.b32.xlu0 %v3468_v58, %s7474_s6  ;;  %v9550_v22 = vadd.f32 %v3381_v37, %v3347_v25  ;;  %v12237_v25 = vld [vmem:[#allocation14_spill] sm:$0xff] }
 0xa40   :  { %12232 = vst [vmem:[#allocation69_spill] sm:$0xff] %v9545_v43  ;;  %v2446_v37 = vmul.f32 %v12237_v25, %v9422_v10 }
 0xa41   :  { %v9552_v32 = vpop.permute.xlu0 %3327  ;;  %2284 = vrot.lane.b32.xlu1 %v2263_v3, %s7474_s6 }
 0xa42   :  { %12234 = vst [vmem:[#allocation68_spill] sm:$0xff] %v9552_v32 }
 0xa43   :  { %v9556_v18 = vpop.permute.xlu1 %3083  ;;  %3548 = vrot.lane.b32.xlu0 %v3529_v38, %s7473_s23  ;;  %v3651_v38 = vmul.f32 %v8596_v12, %v3365_v44 }
 0xa44   :  { %12235 = vst [vmem:[#allocation71_spill] sm:$0xff] %v9556_v18 }
 0xa45   :  { %v9561_v11 = vpop.permute.xlu0 %1993  ;;  %2345 = vrot.lane.b32.xlu1 %v2324_v57, %s7473_s23  ;;  %v12238_v57 = vld [vmem:[#allocation15_spill] sm:$0xff] }
 0xa46   :  { %v2732_v29 = vmul.f32 %v12238_v57, %v9467_v45 }
 0xa47   :  { %v9565_v58 = vpop.permute.xlu1 %1807  ;;  %3609 = vrot.lane.b32.xlu0 %v3590_v54, %s7471_s15  ;;  %v3712_v54 = vmul.f32 %v8609_v14, %v3365_v44  ;;  %v11973_v14 = vrot.slane %v9044_v31, 2 }
 0xa49   :  { %v9570_v3 = vpop.permute.xlu0 %2117  ;;  %2467 = vrot.lane.b32.xlu1 %v2446_v37, %s7472_s1  ;;  %v12239_v37 = vrot.slane %v8519_v13, 3 }
 0xa4b   :  { %v9575_v56 = vpop.permute.xlu1 %1869  ;;  %3670 = vrot.lane.b32.xlu0 %v3651_v38, %s7472_s1  ;;  %v9590_v50 = vsel %vm4177_vm6, %v12239_v37, %v11957_v17  ;;  %v12241_v38 = vld [vmem:[#allocation16_spill] sm:$0xff]  ;;  %v12242_v37 = vld [vmem:[#allocation17_spill] sm:$0xff] }
 0xa4c   :  { %12240 = vst [vmem:[#allocation70_spill] sm:$0xff] %v9590_v50  ;;  %v2793_v23 = vmul.f32 %v12241_v38, %v9467_v45  ;;  %v2854_v17 = vmul.f32 %v12242_v37, %v9467_v45  ;;  %v4284_v18 = vmul.f32 %v8707_v9, %v9590_v50 }
 0xa4d   :  { %v9580_v32 = vpop.permute.xlu0 %2221  ;;  %2753 = vrot.lane.b32.xlu1 %v2732_v29, %s7473_s23  ;;  %v4223_v29 = vmul.f32 %v8683_v55, %v9590_v50  ;;  %v12243_v55 = vld [vmem:[#allocation18_spill] sm:$0xff] }
 0xa4e   :  { %v2915_v12 = vmul.f32 %v12243_v55, %v9467_v45 }
 0xa4f   :  { %v9592_v27 = vpop.permute.xlu1 %1931  ;;  %3731 = vrot.lane.b32.xlu0 %v3712_v54, %s7470_s30 }
 0xa51   :  { %v9597_v20 = vpop.permute.xlu0 %2282  ;;  %2814 = vrot.lane.b32.xlu1 %v2793_v23, %s7471_s15 }
 0xa53   :  { %v9602_v44 = vpop.permute.xlu1 %2055  ;;  %4242 = vrot.lane.b32.xlu0 %v4223_v29, %s7475_s29  ;;  %v12244_v29 = vrot.slane %v8519_v13, 2 }
 0xa55   :  { %v9608_v54 = vpop.permute.xlu0 %2343  ;;  %2875 = vrot.lane.b32.xlu1 %v2854_v17, %s7472_s1  ;;  %v9624_v43 = vsel %vm3769_vm4, %v12244_v29, %v11973_v14  ;;  %v4345_v17 = vmul.f32 %v8715_v53, %v9590_v50  ;;  %v4406_v29 = vmul.f32 %v8720_v63, %v9590_v50 }
 0xa57   :  { %v9613_v23 = vpop.permute.xlu1 %2404  ;;  %4303 = vrot.lane.b32.xlu0 %v4284_v18, %s7474_s6  ;;  %v12245_v18 = vld [vmem:[#allocation30_spill] sm:$0xff] }
 0xa58   :  { %v3815_v31 = vmul.f32 %v12245_v18, %v9624_v43  ;;  %v1719_v18 = vpop.f32.mrf.mxu0 }
 0xa59   :  { %v9626_v33 = vpop.permute.xlu0 %2465  ;;  %2936 = vrot.lane.b32.xlu1 %v2915_v12, %s7470_s30  ;;  %v12247_v12 = vld [vmem:[#allocation32_spill] sm:$0xff] }
 0xa5a   :  { %v3876_v13 = vmul.f32 %v12247_v12, %v9624_v43 }
 0xa5b   :  { %v9631_v9 = vpop.permute.xlu1 %2526  ;;  %4364 = vrot.lane.b32.xlu0 %v4345_v17, %s7473_s23  ;;  %v4467_v17 = vmul.f32 %v8728_v8, %v9590_v50  ;;  %v12252_v8 = vld [vmem:[#allocation35_spill] sm:$0xff] }
 0xa5d   :  { %v9636_v35 = vpop.permute.xlu0 %2751  ;;  %3834 = vrot.lane.b32.xlu1 %v3815_v31, %s7475_s29  ;;  %v12249_v31 = vld [vmem:[#allocation34_spill] sm:$0xff] }
 0xa5e   :  { %12246 = vst [vmem:[#allocation74_spill] sm:$0xff] %v9636_v35  ;;  %v3937_v63 = vmul.f32 %v12249_v31, %v9624_v43  ;;  %v12250_v35 = vld [vmem:[#allocation4_spill] sm:$0xff] }
 0xa5f   :  { %v9641_v14 = vpop.permute.xlu1 %2629  ;;  %4425 = vrot.lane.b32.xlu0 %v4406_v29, %s7471_s15  ;;  %v9657_v29 = vadd.f32 %v1719_v18, %v12250_v35 }
 0xa61   :  { %v9646_v53 = vpop.permute.xlu0 %2812  ;;  %3895 = vrot.lane.b32.xlu1 %v3876_v13, %s7474_s6  ;;  %12251 = vst [vmem:[#allocation76_spill] sm:$0xff] %v9657_v29  ;;  %v4528_v13 = vmul.f32 %v8733_v24, %v9590_v50  ;;  %v3125_v35 = vmul.f32 %v8486_v1, %v9657_v29  ;;  %v4120_v1 = vmul.f32 %v8678_v62, %v9624_v43 }
 0xa62   :  { %12248 = vst [vmem:[#allocation72_spill] sm:$0xff] %v9646_v53  ;;  %v3308_v62 = vmul.f32 %v12209_v40, %v9657_v29 }
 0xa63   :  { %v9651_v5 = vpop.permute.xlu1 %2690  ;;  %4486 = vrot.lane.b32.xlu0 %v4467_v17, %s7472_s1  ;;  %v3998_v17 = vmul.f32 %v12252_v8, %v9624_v43 }
 0xa65   :  { %v9659_v15 = vpop.permute.xlu0 %2873  ;;  %3956 = vrot.lane.b32.xlu1 %v3937_v63, %s7473_s23  ;;  %v12254_v63 = vld [vmem:[#allocation36_spill] sm:$0xff] }
 0xa66   :  { %v4059_v24 = vmul.f32 %v12254_v63, %v9624_v43  ;;  %v1736_v63 = vrot.slane %v9309_v21, 5 }
 0xa67   :  { %v9664_v12 = vpop.permute.xlu1 %3424  ;;  %4547 = vrot.lane.b32.xlu0 %v4528_v13, %s7470_s30  ;;  %v3186_v13 = vmul.f32 %v8494_v2, %v9657_v29  ;;  %v3003_v2 = vmul.f32 %v8468_v34, %v9657_v29  ;;  %v3064_v34 = vmul.f32 %v8478_v42, %v9657_v29  ;;  %v12263_v42 = vld [vmem:[#allocation47_spill] sm:$0xff] }
 0xa69   :  { %v9669_v53 = vpop.permute.xlu0 %2934  ;;  %4017 = vrot.lane.b32.xlu1 %v3998_v17, %s7471_s15 }
 0xa6a   :  { %12253 = vst [vmem:[#allocation75_spill] sm:$0xff] %v9669_v53 }
 0xa6b   :  { %v9674_v18 = vpop.permute.xlu1 %3485  ;;  %3148 = vrot.lane.b32.xlu0 %v3125_v35, %s7473_s23  ;;  %v3247_v35 = vmul.f32 %v8502_v6, %v9657_v29 }
 0xa6d   :  { %v9679_v50 = vpop.permute.xlu0 %3832  ;;  %4078 = vrot.lane.b32.xlu1 %v4059_v24, %s7472_s1 }
 0xa6e   :  { %12255 = vst [vmem:[#allocation78_spill] sm:$0xff] %v9679_v50 }
 0xa6f   :  { %v9684_v8 = vpop.permute.xlu1 %3546  ;;  %3209 = vrot.lane.b32.xlu0 %v3186_v13, %s7471_s15 }
 0xa71   :  { %v9689_v17 = vpop.permute.xlu0 %3893  ;;  %4139 = vrot.lane.b32.xlu1 %v4120_v1, %s7470_s30  ;;  %v12258_v1 = vld [vmem:[#allocation19_spill] sm:$0xff] }
 0xa72   :  { %12256 = vst [vmem:[#allocation77_spill] sm:$0xff] %v9689_v17  ;;  %v12259_v17 = vrot.slane %v12258_v1, 5 }
 0xa73   :  { %v9695_v24 = vpop.permute.xlu1 %3607  ;;  %3270 = vrot.lane.b32.xlu0 %v3247_v35, %s7472_s1 }
 0xa74   :  { %v9709_v6 = vsel %vm1740_vm1, %v1736_v63, %v12259_v17 }
 0xa75   :  { %v9700_v13 = vpop.permute.xlu0 %3954  ;;  %3026 = vrot.lane.b32.xlu1 %v3003_v2, %s7475_s29  ;;  %12260 = vst [vmem:[#allocation79_spill] sm:$0xff] %v9709_v6  ;;  %v1845_v40 = vmul.f32 %v8433_v26, %v9709_v6  ;;  %v1783_v17 = vmul.f32 %v8429_v46, %v9709_v6 }
 0xa76   :  { %12257 = vst [vmem:[#allocation80_spill] sm:$0xff] %v9700_v13 }
 0xa77   :  { %v9711_v50 = vpop.permute.xlu1 %3668  ;;  %3331 = vrot.lane.b32.xlu0 %v3308_v62, %s7470_s30  ;;  %v1969_v62 = vmul.f32 %v8435_v0, %v9709_v6 }
 0xa79   :  { %v9716_v35 = vpop.permute.xlu0 %4015  ;;  %3087 = vrot.lane.b32.xlu1 %v3064_v34, %s7474_s6 }
 0xa7a   :  { %12261 = vst [vmem:[#allocation13_spill] sm:$0xff] %v9716_v35  ;;  %v12264_v35 = vrot.slane %v12263_v42, 5 }
 0xa7b   :  { %v9721_v2 = vpop.permute.xlu1 %3729  ;;  %1861 = vrot.lane.b32.xlu0 %v1845_v40, %s7474_s6  ;;  %v1907_v40 = vmul.f32 %v8431_v36, %v9709_v6 }
 0xa7c   :  { %v9735_v34 = vsel %vm1740_vm1, %v12264_v35, %v1736_v63  ;;  %v2031_v63 = vmul.f32 %v8437_v59, %v9709_v6 }
 0xa7d   :  { %v9726_v13 = vpop.permute.xlu0 %4076  ;;  %1799 = vrot.lane.b32.xlu1 %v1783_v17, %s7475_s29  ;;  %12265 = vst [vmem:[#allocation15_spill] sm:$0xff] %v9735_v34  ;;  %v1851_v17 = vmul.f32 %v8433_v26, %v9735_v34 }
 0xa7e   :  { %12262 = vst [vmem:[#allocation14_spill] sm:$0xff] %v9726_v13  ;;  %v2152_v13 = vrot.slane %v9309_v21, 6 }
 0xa7f   :  { %v9737_v31 = vpop.permute.xlu1 %4240  ;;  %1985 = vrot.lane.b32.xlu0 %v1969_v62, %s7471_s15  ;;  %v1913_v62 = vmul.f32 %v8431_v36, %v9735_v34 }
 0xa80   :  { %12266 = vst [vmem:[#allocation16_spill] sm:$0xff] %v9737_v31 }
 0xa81   :  { %v9742_v29 = vpop.permute.xlu0 %4137  ;;  %1923 = vrot.lane.b32.xlu1 %v1907_v40, %s7473_s23  ;;  %v12270_v40 = vrot.slane %v12258_v1, 6 }
 0xa82   :  { %12267 = vst [vmem:[#allocation17_spill] sm:$0xff] %v9742_v29 }
 0xa83   :  { %v9748_v53 = vpop.permute.xlu1 %4301  ;;  %1873 = vrot.lane.b32.xlu0 %v1851_v17, %s7474_s6  ;;  %v9762_v31 = vsel %vm2154_vm2, %v2152_v13, %v12270_v40  ;;  %v1789_v17 = vmul.f32 %v8429_v46, %v9735_v34  ;;  %v2093_v40 = vmul.f32 %v8439_v48, %v9709_v6 }
 0xa84   :  { %12268 = vst [vmem:[#allocation18_spill] sm:$0xff] %v9748_v53  ;;  %12271 = vst [vmem:[#allocation128_spill] sm:$0xff] %v9762_v31 }
 0xa85   :  { %v9753_v35 = vpop.permute.xlu0 %3024  ;;  %2047 = vrot.lane.b32.xlu1 %v2031_v63, %s7472_s1  ;;  %v2197_v63 = vmul.f32 %v12227_v47, %v9762_v31 }
 0xa86   :  { %12269 = vst [vmem:[#allocation4_spill] sm:$0xff] %v9753_v35 }
 0xa87   :  { %v9764_v26 = vpop.permute.xlu1 %4362  ;;  %1935 = vrot.lane.b32.xlu0 %v1913_v62, %s7473_s23  ;;  %v2037_v62 = vmul.f32 %v8437_v59, %v9735_v34 }
 0xa88   :  { %12272 = vst [vmem:[#allocation129_spill] sm:$0xff] %v9764_v26 }
 0xa89   :  { %v9769_v53 = vpop.permute.xlu0 %3085  ;;  %1811 = vrot.lane.b32.xlu1 %v1789_v17, %s7475_s29  ;;  %v1975_v17 = vmul.f32 %v8435_v0, %v9735_v34 }
 0xa8a   :  { %12273 = vst [vmem:[#allocation130_spill] sm:$0xff] %v9769_v53 }
 0xa8b   :  { %v9774_v35 = vpop.permute.xlu1 %4423  ;;  %2213 = vrot.lane.b32.xlu0 %v2197_v63, %s7475_s29  ;;  %v2319_v63 = vmul.f32 %v12236_v4, %v9762_v31 }
 0xa8c   :  { %12274 = vst [vmem:[#allocation131_spill] sm:$0xff] %v9774_v35 }
 0xa8d   :  { %v1810_v26 = vpop.permute.xlu0 %1809  ;;  %2109 = vrot.lane.b32.xlu1 %v2093_v40, %s7470_s30  ;;  %v2258_v40 = vmul.f32 %v12233_v61, %v9762_v31 }
 0xa8f   :  { %v9782_v36 = vpop.permute.xlu1 %4484  ;;  %2059 = vrot.lane.b32.xlu0 %v2037_v62, %s7472_s1  ;;  %v2441_v62 = vmul.f32 %v12237_v25, %v9762_v31 }
 0xa90   :  { %12275 = vst [vmem:[#allocation132_spill] sm:$0xff] %v9782_v36  ;;  %v12277_v36 = vrot.slane %v12263_v42, 6 }
 0xa91   :  { %v1872_v53 = vpop.permute.xlu0 %1871  ;;  %1997 = vrot.lane.b32.xlu1 %v1975_v17, %s7471_s15 }
 0xa92   :  { %v9802_v17 = vsel %vm2154_vm2, %v12277_v36, %v2152_v13  ;;  %v2380_v36 = vmul.f32 %v8447_v49, %v9762_v31 }
 0xa93   :  { %v9790_v35 = vpop.permute.xlu1 %4545  ;;  %2335 = vrot.lane.b32.xlu0 %v2319_v63, %s7473_s23  ;;  %12278 = vst [vmem:[#allocation134_spill] sm:$0xff] %v9802_v17  ;;  %v2099_v63 = vmul.f32 %v8439_v48, %v9735_v34  ;;  %v12283_v48 = vld [vmem:[#allocation104_spill] sm:$0xff] }
 0xa94   :  { %12276 = vst [vmem:[#allocation133_spill] sm:$0xff] %v9790_v35 }
 0xa95   :  { %v1934_v6 = vpop.permute.xlu0 %1933  ;;  %2274 = vrot.lane.b32.xlu1 %v2258_v40, %s7474_s6  ;;  %v2203_v40 = vmul.f32 %v12227_v47, %v9802_v17  ;;  %v1818_v47 = vsel %vm1815_vm7, %v9565_v58, %v1810_v26 }
 0xa97   :  { %v9804_v0 = vpop.permute.xlu1 %3146  ;;  %2457 = vrot.lane.b32.xlu0 %v2441_v62, %s7472_s1  ;;  %v2502_v62 = vmul.f32 %v8451_v51, %v9762_v31  ;;  %v1880_v31 = vsel %vm1877_vm8, %v9575_v56, %v1872_v53 }
 0xa98   :  { %12279 = vst [vmem:[#allocation135_spill] sm:$0xff] %v9804_v0  ;;  %v2560_v0 = vrot.slane %v9309_v21, 7 }
 0xa99   :  { %v2058_v35 = vpop.permute.xlu0 %2057  ;;  %2121 = vrot.lane.b32.xlu1 %v2099_v63, %s7470_s30 }
 0xa9b   :  { %v9812_v59 = vpop.permute.xlu1 %3207  ;;  %2225 = vrot.lane.b32.xlu0 %v2203_v40, %s7475_s29  ;;  %v12282_v40 = vld [vmem:[#allocation25_spill] sm:$0xff] }
 0xa9c   :  { %12280 = vst [vmem:[#allocation136_spill] sm:$0xff] %v9812_v59  ;;  %v2264_v59 = vmul.f32 %v12233_v61, %v9802_v17  ;;  %v1763_v34 = vmul.f32 %v12282_v40, %v9357_v19  ;;  %v12284_v61 = vrot.slane %v12258_v1, 7 }
 0xa9d   :  { %v9817_v13 = vpop.permute.xlu0 %2406  ;;  %2396 = vrot.lane.b32.xlu1 %v2380_v36, %s7471_s15  ;;  %v1762_v36 = vmul.f32 %v12282_v40, %v12283_v48 }
 0xa9e   :  { %v9845_v19 = vsel %vm2562_vm3, %v2560_v0, %v12284_v61 }
 0xa9f   :  { %v9823_v63 = vpop.permute.xlu1 %3268  ;;  %2518 = vrot.lane.b32.xlu0 %v2502_v62, %s7470_s30  ;;  %v1833_v62 = vadd.f32 %v1810_v26, %v1763_v34  ;;  %12285 = vst [vmem:[#allocation25_spill] sm:$0xff] %v9845_v19  ;;  %v1832_v58 = vadd.f32 %v1818_v47, %v1762_v36  ;;  %v1942_v26 = vsel %vm1939_vm9, %v9592_v27, %v1934_v6 }
 0xaa0   :  { %12281 = vst [vmem:[#allocation137_spill] sm:$0xff] %v9823_v63  ;;  %v2386_v63 = vmul.f32 %v8447_v49, %v9802_v17  ;;  %v2666_v61 = vmul.f32 %v8455_v60, %v9845_v19 }
 0xaa1   :  { %v9834_v46 = vpop.permute.xlu0 %2528  ;;  %2286 = vrot.lane.b32.xlu1 %v2264_v59, %s7474_s6  ;;  %v2325_v59 = vmul.f32 %v12236_v4, %v9802_v17  ;;  %v1895_v48 = vadd.f32 %v1872_v53, %v1833_v62  ;;  %v1894_v34 = vadd.f32 %v1880_v31, %v1832_v58  ;;  %v2508_v58 = vmul.f32 %v8451_v51, %v9802_v17 }
 0xaa3   :  { %v9847_v29 = vpop.permute.xlu1 %3329  ;;  %2408 = vrot.lane.b32.xlu0 %v2386_v63, %s7471_s15  ;;  %v1957_v47 = vadd.f32 %v1934_v6, %v1895_v48  ;;  %v1956_v36 = vadd.f32 %v1942_v26, %v1894_v34  ;;  %v2605_v63 = vmul.f32 %v8453_v41, %v9845_v19  ;;  %v2066_v6 = vsel %vm2063_vm11, %v9602_v44, %v2058_v35  ;;  %v12287_v44 = vld [vmem:[#allocation109_spill] sm:$0xff] }
 0xaa4   :  { %12286 = vst [vmem:[#allocation104_spill] sm:$0xff] %v9847_v29 }
 0xaa5   :  { %v9854_v56 = vpop.permute.xlu0 %2631  ;;  %2347 = vrot.lane.b32.xlu1 %v2325_v59, %s7473_s23 }
 0xaa7   :  { %v1996_v29 = vpop.permute.xlu1 %1995  ;;  %2682 = vrot.lane.b32.xlu0 %v2666_v61, %s7474_s6  ;;  %v2177_v61 = vmul.f32 %v12179_v16, %v9422_v10  ;;  %v2727_v10 = vmul.f32 %v12238_v57, %v9845_v19 }
 0xaa8   :  { %v2004_v53 = vsel %vm2001_vm10, %v9561_v11, %v1996_v29  ;;  %v2019_v27 = vadd.f32 %v1996_v29, %v1957_v47  ;;  %v2447_v11 = vmul.f32 %v12237_v25, %v9802_v17  ;;  %v12366_v17 = vld [vmem:[#allocation6_spill] sm:$0xff] }
 0xaa9   :  { %v2018_v31 = vadd.f32 %v2004_v53, %v1956_v36  ;;  %v9864_v62 = vpop.permute.xlu0 %2692  ;;  %2621 = vrot.lane.b32.xlu1 %v2605_v63, %s7475_s29  ;;  %v2788_v63 = vmul.f32 %v12241_v38, %v9845_v19 }
 0xaaa   :  { %v2081_v59 = vadd.f32 %v2058_v35, %v2019_v27  ;;  %v2176_v35 = vmul.f32 %v12179_v16, %v12287_v44  ;;  %v12288_v27 = vrot.slane %v12263_v42, 7 }
 0xaab   :  { %v2120_v48 = vpop.permute.xlu1 %2119  ;;  %v2080_v26 = vadd.f32 %v2066_v6, %v2018_v31  ;;  %2530 = vrot.lane.b32.xlu0 %v2508_v58, %s7470_s30 }
 0xaac   :  { %v2128_v29 = vsel %vm2125_vm12, %v9570_v3, %v2120_v48  ;;  %v2143_v34 = vadd.f32 %v2120_v48, %v2081_v59  ;;  %v9887_v3 = vsel %vm2562_vm3, %v12288_v27, %v2560_v0  ;;  %v2849_v0 = vmul.f32 %v12242_v37, %v9845_v19 }
 0xaad   :  { %v2142_v47 = vadd.f32 %v2128_v29, %v2080_v26  ;;  %v3427_v36 = vpop.permute.xlu0 %3426  ;;  %2469 = vrot.lane.b32.xlu1 %v2447_v11, %s7472_s1  ;;  %12289 = vst [vmem:[#allocation109_spill] sm:$0xff] %v9887_v3  ;;  %v2733_v59 = vmul.f32 %v12238_v57, %v9887_v3 }
 0xaae   :  { %v2185_v53 = vadd.f32 %v2177_v61, %v2143_v34 }
 0xaaf   :  { %v2224_v31 = vpop.permute.xlu1 %2223  ;;  %v2184_v58 = vadd.f32 %v2176_v35, %v2142_v47  ;;  %2804 = vrot.lane.b32.xlu0 %v2788_v63, %s7471_s15  ;;  %v2794_v47 = vmul.f32 %v12241_v38, %v9887_v3 }
 0xab0   :  { %v2231_v48 = vsel %vm1815_vm7, %v9580_v32, %v2224_v31  ;;  %v2246_v11 = vadd.f32 %v2224_v31, %v2185_v53  ;;  %v3437_v32 = vsel %vm1815_vm7, %v9664_v12, %v3427_v36  ;;  %v2611_v53 = vmul.f32 %v8453_v41, %v9887_v3 }
 0xab1   :  { %v3488_v6 = vpop.permute.xlu0 %3487  ;;  %2743 = vrot.lane.b32.xlu1 %v2727_v10, %s7473_s23  ;;  %v2245_v34 = vadd.f32 %v2231_v48, %v2184_v58  ;;  %v3450_v10 = vadd.f32 %v3437_v32, %v9550_v22  ;;  %v2855_v48 = vmul.f32 %v12242_v37, %v9887_v3 }
 0xab2   :  { %v3498_v27 = vsel %vm1877_vm8, %v9674_v18, %v3488_v6 }
 0xab3   :  { %v2285_v26 = vpop.permute.xlu1 %2284  ;;  %2755 = vrot.lane.b32.xlu0 %v2733_v59, %s7473_s23  ;;  %v3511_v22 = vadd.f32 %v3498_v27, %v3450_v10  ;;  %v12291_v27 = vld [vmem:[#allocation115_spill] sm:$0xff] }
 0xab4   :  { %v2292_v29 = vsel %vm1877_vm8, %v9597_v20, %v2285_v26  ;;  %v2307_v44 = vadd.f32 %v2285_v26, %v2246_v11  ;;  %v3451_v20 = vadd.f32 %v3427_v36, %v9543_v30  ;;  %v3359_v26 = vrot.slane %v9309_v21, 1 }
 0xab5   :  { %v3549_v61 = vpop.permute.xlu0 %3548  ;;  %2865 = vrot.lane.b32.xlu1 %v2849_v0, %s7472_s1  ;;  %v2306_v35 = vadd.f32 %v2292_v29, %v2245_v34  ;;  %v2414_v30 = vsel %vm2001_vm10, %v9613_v23, %v9817_v13  ;;  %v2585_v0 = vmul.f32 %v12192_v7, %v9467_v45  ;;  %v2910_v34 = vmul.f32 %v12243_v55, %v9845_v19 }
 0xab6   :  { %v3512_v18 = vadd.f32 %v3488_v6, %v3451_v20  ;;  %v2916_v45 = vmul.f32 %v12243_v55, %v9887_v3 }
 0xab7   :  { %v2346_v63 = vpop.permute.xlu1 %2345  ;;  %2816 = vrot.lane.b32.xlu0 %v2794_v47, %s7471_s15 }
 0xab8   :  { %v2353_v31 = vsel %vm1939_vm9, %v9608_v54, %v2346_v63  ;;  %v2368_v58 = vadd.f32 %v2346_v63, %v2307_v44  ;;  %v3559_v54 = vsel %vm1939_vm9, %v9684_v8, %v3549_v61  ;;  %v3573_v47 = vadd.f32 %v3549_v61, %v3512_v18 }
 0xab9   :  { %v2367_v12 = vadd.f32 %v2353_v31, %v2306_v35  ;;  %v3610_v59 = vpop.permute.xlu0 %3609  ;;  %2633 = vrot.lane.b32.xlu1 %v2611_v53, %s7475_s29  ;;  %v12290_v35 = vrot.slane %v12263_v42, 1  ;;  %v2584_v31 = vmul.f32 %v12192_v7, %v12291_v27 }
 0xaba   :  { %v2429_v36 = vadd.f32 %v9817_v13, %v2368_v58  ;;  %v3620_v23 = vsel %vm2001_vm10, %v9695_v24, %v3610_v59  ;;  %v3572_v13 = vadd.f32 %v3559_v54, %v3511_v22  ;;  %v2536_v24 = vsel %vm2125_vm12, %v9631_v9, %v9834_v46  ;;  %v12292_v9 = vld [vmem:[#allocation50_spill] sm:$0xff] }
 0xabb   :  { %v2468_v11 = vpop.permute.xlu1 %2467  ;;  %v2428_v29 = vadd.f32 %v2414_v30, %v2367_v12  ;;  %2877 = vrot.lane.b32.xlu0 %v2855_v48, %s7472_s1  ;;  %v9942_v61 = vsel %vm3361_vm5, %v12290_v35, %v3359_v26  ;;  %v2672_v12 = vmul.f32 %v8455_v60, %v9887_v3  ;;  %v12296_v35 = vld [vmem:[#allocation74_spill] sm:$0xff]  ;;  %v12330_v3 = vld [vmem:[#allocation80_spill] sm:$0xff] }
 0xabc   :  { %v2475_v8 = vsel %vm2063_vm11, %v9626_v33, %v2468_v11  ;;  %v2490_v6 = vadd.f32 %v2468_v11, %v2429_v36  ;;  %v3634_v33 = vadd.f32 %v3610_v59, %v3573_v47  ;;  %v3633_v20 = vadd.f32 %v3620_v23, %v3572_v13 }
 0xabd   :  { %v2489_v32 = vadd.f32 %v2475_v8, %v2428_v29  ;;  %v3671_v44 = vpop.permute.xlu0 %3670  ;;  %2926 = vrot.lane.b32.xlu1 %v2910_v34, %s7470_s30  ;;  %v3790_v59 = vmul.f32 %v12292_v9, %v9624_v43  ;;  %v12293_v36 = vrot.slane %v12258_v1, 1  ;;  %v3408_v8 = vmul.f32 %v8548_v39, %v9942_v61 }
 0xabe   :  { %v2551_v63 = vadd.f32 %v9834_v46, %v2490_v6  ;;  %v3681_v53 = vsel %vm2063_vm11, %v9711_v50, %v3671_v44  ;;  %v3695_v30 = vadd.f32 %v3671_v44, %v3634_v33  ;;  %v3530_v50 = vmul.f32 %v8580_v28, %v9942_v61 }
 0xabf   :  { %v2550_v58 = vadd.f32 %v2536_v24, %v2489_v32  ;;  %v2754_v10 = vpop.permute.xlu1 %2753  ;;  %2938 = vrot.lane.b32.xlu0 %v2916_v45, %s7470_s30  ;;  %v3694_v18 = vadd.f32 %v3681_v53, %v3633_v20  ;;  %v9964_v22 = vsel %vm3361_vm5, %v3359_v26, %v12293_v36  ;;  %v12295_v26 = vld [vmem:[#allocation120_spill] sm:$0xff] }
 0xac0   :  { %v2593_v48 = vadd.f32 %v2585_v0, %v2551_v63  ;;  %12294 = vst [vmem:[#allocation115_spill] sm:$0xff] %v9964_v22  ;;  %v2639_v0 = vsel %vm1815_vm7, %v9641_v14, %v9854_v56  ;;  %v3789_v6 = vmul.f32 %v12292_v9, %v12295_v26  ;;  %v2700_v14 = vsel %vm1877_vm8, %v9651_v5, %v9864_v62  ;;  %v12297_v53 = vld [vmem:[#allocation72_spill] sm:$0xff] }
 0xac1   :  { %v2592_v46 = vadd.f32 %v2584_v31, %v2550_v58  ;;  %v3732_v54 = vpop.permute.xlu0 %3731  ;;  %2694 = vrot.lane.b32.xlu1 %v2672_v12, %s7474_s6  ;;  %v3532_v44 = vmul.f32 %v8580_v28, %v9964_v22  ;;  %v2761_v24 = vsel %vm1939_vm9, %v12296_v35, %v2754_v10  ;;  %v12298_v12 = vld [vmem:[#allocation26_spill] sm:$0xff]  ;;  %v12301_v36 = vld [vmem:[#allocation48_spill] sm:$0xff] }
 0xac2   :  { %v2654_v43 = vadd.f32 %v9854_v56, %v2593_v48  ;;  %v3742_v11 = vsel %vm2125_vm12, %v9721_v2, %v3732_v54  ;;  %v3756_v29 = vadd.f32 %v3732_v54, %v3695_v30  ;;  %v3591_v48 = vmul.f32 %v12298_v12, %v9942_v61 }
 0xac3   :  { %v2653_v34 = vadd.f32 %v2639_v0, %v2592_v46  ;;  %v3755_v47 = vadd.f32 %v3742_v11, %v3694_v18  ;;  %v2815_v23 = vpop.permute.xlu1 %2814  ;;  %3550 = vrot.lane.b32.xlu0 %v3530_v50, %s7473_s23  ;;  %v12299_v18 = vld [vmem:[#allocation24_spill] sm:$0xff]  ;;  %v12300_v50 = vld [vmem:[#allocation95_spill] sm:$0xff] }
 0xac4   :  { %v2715_v56 = vadd.f32 %v9864_v62, %v2654_v43  ;;  %v9981_v13 = vadd.f32 %v3790_v59, %v3756_v29  ;;  %v3410_v62 = vmul.f32 %v8548_v39, %v9964_v22  ;;  %v2822_v20 = vsel %vm2001_vm10, %v12297_v53, %v2815_v23  ;;  %v12302_v43 = vld [vmem:[#allocation75_spill] sm:$0xff] }
 0xac5   :  { %v2714_v2 = vadd.f32 %v2700_v14, %v2653_v34  ;;  %v9983_v32 = vpop.permute.xlu0 %4242  ;;  %3428 = vrot.lane.b32.xlu1 %v3408_v8, %s7475_s29  ;;  %v9988_v45 = vadd.f32 %v3789_v6, %v3755_v47  ;;  %v3469_v54 = vmul.f32 %v12299_v18, %v9942_v61  ;;  %v2976_v0 = vmul.f32 %v12301_v36, %v12300_v50  ;;  %v12307_v53 = vld [vmem:[#allocation27_spill] sm:$0xff] }
 0xac6   :  { %v2776_v33 = vadd.f32 %v2754_v10, %v2715_v56  ;;  %v3767_v34 = vrot.slane %v9309_v21, 2  ;;  %v3593_v8 = vmul.f32 %v12298_v12, %v9964_v22  ;;  %v3471_v56 = vmul.f32 %v12299_v18, %v9964_v22 }
 0xac7   :  { %v2775_v63 = vadd.f32 %v2761_v24, %v2714_v2  ;;  %v2876_v5 = vpop.permute.xlu1 %2875  ;;  %3554 = vrot.lane.b32.xlu0 %v3532_v44, %s7473_s23  ;;  %v12303_v2 = vld [vmem:[#allocation69_spill] sm:$0xff]  ;;  %v12304_v44 = vld [vmem:[#allocation108_spill] sm:$0xff] }
 0xac8   :  { %v2837_v27 = vadd.f32 %v2815_v23, %v2776_v33  ;;  %v2883_v10 = vsel %vm2063_vm11, %v9659_v15, %v2876_v5  ;;  %v2975_v15 = vmul.f32 %v12301_v36, %v12263_v42  ;;  %v3030_v35 = vsel %vm1815_vm7, %v12304_v44, %v12303_v2  ;;  %v12317_v44 = vld [vmem:[#allocation94_spill] sm:$0xff] }
 0xac9   :  { %v2836_v31 = vadd.f32 %v2822_v20, %v2775_v63  ;;  %v9997_v58 = vpop.permute.xlu0 %4303  ;;  %3432 = vrot.lane.b32.xlu1 %v3410_v62, %s7475_s29  ;;  %v12305_v33 = vrot.slane %v12263_v42, 2  ;;  %v3652_v20 = vmul.f32 %v12307_v53, %v9942_v61 }
 0xaca   :  { %v2898_v30 = vadd.f32 %v2876_v5, %v2837_v27  ;;  %v12308_v27 = vld [vmem:[#allocation71_spill] sm:$0xff] }
 0xacb   :  { %v2897_v59 = vadd.f32 %v2883_v10, %v2836_v31  ;;  %v2937_v46 = vpop.permute.xlu1 %2936  ;;  %3611 = vrot.lane.b32.xlu0 %v3591_v48, %s7471_s15  ;;  %v10030_v63 = vsel %vm3769_vm4, %v12305_v33, %v3767_v34  ;;  %v12309_v31 = vld [vmem:[#allocation111_spill] sm:$0xff]  ;;  %v12319_v33 = vrot.slane %v12300_v50, 1 }
 0xacc   :  { %v2944_v11 = vsel %vm2125_vm12, %v12302_v43, %v2937_v46  ;;  %v2959_v29 = vadd.f32 %v2937_v46, %v2898_v30  ;;  %12306 = vst [vmem:[#allocation120_spill] sm:$0xff] %v10030_v63  ;;  %v3091_v48 = vsel %vm1877_vm8, %v12309_v31, %v12308_v27  ;;  %v12310_v30 = vld [vmem:[#allocation76_spill] sm:$0xff] }
 0xacd   :  { %v2958_v47 = vadd.f32 %v2944_v11, %v2897_v59  ;;  %v10014_v23 = vpop.permute.xlu0 %4364  ;;  %3489 = vrot.lane.b32.xlu1 %v3469_v54, %s7474_s6  ;;  %v12008_v59 = vrot.slane %v12310_v30, 1  ;;  %v12312_v11 = vld [vmem:[#allocation92_spill] sm:$0xff] }
 0xace   :  { %v2984_v26 = vadd.f32 %v2976_v0, %v2959_v29  ;;  %v12311_v0 = vld [vmem:[#allocation34_spill] sm:$0xff]  ;;  %v12313_v29 = vld [vmem:[#allocation121_spill] sm:$0xff] }
 0xacf   :  { %v2983_v6 = vadd.f32 %v2975_v15, %v2958_v47  ;;  %v3835_v14 = vpop.permute.xlu1 %3834  ;;  %3615 = vrot.lane.b32.xlu0 %v3593_v8, %s7471_s15  ;;  %v3938_v43 = vmul.f32 %v12311_v0, %v10030_v63  ;;  %v3152_v15 = vsel %vm1939_vm9, %v12313_v29, %v12312_v11  ;;  %v12314_v8 = vrot.slane %v12258_v1, 2 }
 0xad0   :  { %v3045_v24 = vadd.f32 %v12303_v2, %v2984_v26  ;;  %v3654_v2 = vmul.f32 %v12307_v53, %v9964_v22 }
 0xad1   :  { %v3044_v5 = vadd.f32 %v3030_v35, %v2983_v6  ;;  %v10032_v62 = vpop.permute.xlu0 %4425  ;;  %3493 = vrot.lane.b32.xlu1 %v3471_v56, %s7474_s6  ;;  %v10053_v26 = vsel %vm3769_vm4, %v3767_v34, %v12314_v8  ;;  %v12318_v35 = vld [vmem:[#allocation122_spill] sm:$0xff]  ;;  %v10069_v34 = vsel %vm3361_vm5, %v12319_v33, %v12008_v59 }
 0xad2   :  { %v3106_v10 = vadd.f32 %v12308_v27, %v3045_v24  ;;  %12315 = vst [vmem:[#allocation74_spill] sm:$0xff] %v10053_v26  ;;  %v3213_v24 = vsel %vm2001_vm10, %v12318_v35, %v12317_v44  ;;  %v3940_v27 = vmul.f32 %v12311_v0, %v10053_v26  ;;  %v12326_v35 = vld [vmem:[#allocation68_spill] sm:$0xff] }
 0xad3   :  { %v3105_v46 = vadd.f32 %v3091_v48, %v3044_v5  ;;  %v3896_v54 = vpop.permute.xlu1 %3895  ;;  %3672 = vrot.lane.b32.xlu0 %v3652_v20, %s7472_s1  ;;  %v12320_v48 = vld [vmem:[#allocation21_spill] sm:$0xff] }
 0xad4   :  { %v3167_v47 = vadd.f32 %v12312_v11, %v3106_v10  ;;  %v12321_v10 = vld [vmem:[#allocation123_spill] sm:$0xff] }
 0xad5   :  { %v3166_v6 = vadd.f32 %v3152_v15, %v3105_v46  ;;  %v10055_v56 = vpop.permute.xlu0 %4486  ;;  %3958 = vrot.lane.b32.xlu1 %v3938_v43, %s7473_s23  ;;  %v3274_v46 = vsel %vm2063_vm11, %v12321_v10, %v12320_v48  ;;  %v12322_v43 = vld [vmem:[#allocation78_spill] sm:$0xff]  ;;  %v3859_v10 = vadd.f32 %v3835_v14, %v9981_v13 }
 0xad6   :  { %12316 = vst [vmem:[#allocation72_spill] sm:$0xff] %v10055_v56  ;;  %v3228_v5 = vadd.f32 %v12317_v44, %v3167_v47  ;;  %v3845_v11 = vsel %vm1815_vm7, %v12322_v43, %v3835_v14  ;;  %v12324_v47 = vld [vmem:[#allocation29_spill] sm:$0xff] }
 0xad7   :  { %v3957_v20 = vpop.permute.xlu1 %3956  ;;  %3676 = vrot.lane.b32.xlu0 %v3654_v2, %s7472_s1  ;;  %v3227_v31 = vadd.f32 %v3213_v24, %v3166_v6  ;;  %v3713_v8 = vmul.f32 %v12324_v47, %v9942_v61  ;;  %v12325_v44 = vld [vmem:[#allocation49_spill] sm:$0xff]  ;;  %v12327_v24 = vld [vmem:[#allocation124_spill] sm:$0xff] }
 0xad8   :  { %v3289_v29 = vadd.f32 %v12320_v48, %v3228_v5  ;;  %v3384_v6 = vmul.f32 %v12325_v44, %v10069_v34  ;;  %v3335_v33 = vsel %vm2125_vm12, %v12327_v24, %v12326_v35  ;;  %v12328_v43 = vld [vmem:[#allocation77_spill] sm:$0xff]  ;;  %v3383_v36 = vmul.f32 %v12325_v44, %v9942_v61 }
 0xad9   :  { %v10081_v15 = vpop.permute.xlu0 %4547  ;;  %3962 = vrot.lane.b32.xlu1 %v3940_v27, %s7473_s23  ;;  %v3288_v2 = vadd.f32 %v3274_v46, %v3227_v31  ;;  %v3906_v5 = vsel %vm1877_vm8, %v12328_v43, %v3896_v54  ;;  %v3858_v27 = vadd.f32 %v3845_v11, %v9988_v45  ;;  %v12329_v31 = vld [vmem:[#allocation35_spill] sm:$0xff]  ;;  %v3920_v24 = vadd.f32 %v3896_v54, %v3859_v10 }
 0xada   :  { %12323 = vst [vmem:[#allocation26_spill] sm:$0xff] %v10081_v15  ;;  %v3350_v48 = vadd.f32 %v12326_v35, %v3289_v29  ;;  %v3999_v46 = vmul.f32 %v12329_v31, %v10030_v63  ;;  %v3967_v13 = vsel %vm1939_vm9, %v12330_v3, %v3957_v20  ;;  %v3715_v45 = vmul.f32 %v12324_v47, %v9964_v22 }
 0xadb   :  { %v4018_v59 = vpop.permute.xlu1 %4017  ;;  %3733 = vrot.lane.b32.xlu0 %v3713_v8, %s7470_s30  ;;  %v3349_v9 = vadd.f32 %v3335_v33, %v3288_v2  ;;  %v3919_v43 = vadd.f32 %v3906_v5, %v3858_v27  ;;  %v3981_v8 = vadd.f32 %v3957_v20, %v3920_v24  ;;  %v12334_v2 = vld [vmem:[#allocation13_spill] sm:$0xff]  ;;  %v4001_v3 = vmul.f32 %v12329_v31, %v10053_v26  ;;  %v12335_v33 = vld [vmem:[#allocation14_spill] sm:$0xff]  ;;  %v12338_v24 = vld [vmem:[#allocation36_spill] sm:$0xff] }
 0xadc   :  { %v10103_v14 = vadd.f32 %v3384_v6, %v3350_v48  ;;  %v4028_v61 = vsel %vm2001_vm10, %v12334_v2, %v4018_v59 }
 0xadd   :  { %v10105_v29 = vpop.permute.xlu0 %3148  ;;  %4019 = vrot.lane.b32.xlu1 %v3999_v46, %s7471_s15  ;;  %v10110_v11 = vadd.f32 %v3383_v36, %v3349_v9  ;;  %v3980_v54 = vadd.f32 %v3967_v13, %v3919_v43  ;;  %v4042_v6 = vadd.f32 %v4018_v59, %v3981_v8  ;;  %v12337_v9 = vld [vmem:[#allocation30_spill] sm:$0xff]  ;;  %v4060_v13 = vmul.f32 %v12338_v24, %v10030_v63  ;;  %v12340_v43 = vld [vmem:[#allocation52_spill] sm:$0xff]  ;;  %v12341_v8 = vld [vmem:[#allocation17_spill] sm:$0xff] }
 0xade   :  { %12331 = vst [vmem:[#allocation24_spill] sm:$0xff] %v10103_v14  ;;  %12332 = vst [vmem:[#allocation75_spill] sm:$0xff] %v10105_v29  ;;  %v3816_v36 = vmul.f32 %v12337_v9, %v10030_v63  ;;  %v12339_v59 = vld [vmem:[#allocation70_spill] sm:$0xff] }
 0xadf   :  { %12333 = vst [vmem:[#allocation69_spill] sm:$0xff] %v10110_v11  ;;  %v4079_v35 = vpop.permute.xlu1 %4078  ;;  %3737 = vrot.lane.b32.xlu0 %v3715_v45, %s7470_s30  ;;  %v4041_v5 = vadd.f32 %v4028_v61, %v3980_v54  ;;  %v4198_v45 = vmul.f32 %v12340_v43, %v12339_v59  ;;  %v12342_v54 = vld [vmem:[#allocation126_spill] sm:$0xff] }
 0xae0   :  { %v4089_v10 = vsel %vm2063_vm11, %v12335_v33, %v4079_v35  ;;  %v4103_v20 = vadd.f32 %v4079_v35, %v4042_v6  ;;  %v3818_v35 = vmul.f32 %v12337_v9, %v10053_v26 }
 0xae1   :  { %v10119_v48 = vpop.permute.xlu0 %3209  ;;  %4023 = vrot.lane.b32.xlu1 %v4001_v3, %s7471_s15  ;;  %v4102_v27 = vadd.f32 %v4089_v10, %v4041_v5  ;;  %v4197_v3 = vmul.f32 %v12340_v43, %v12342_v54  ;;  %v12349_v54 = vrot.slane %v12263_v42, 3  ;;  %v12352_v42 = vrot.slane %v12258_v1, 3  ;;  %v12354_v43 = vld [vmem:[#allocation39_spill] sm:$0xff] }
 0xae2   :  { %12336 = vst [vmem:[#allocation108_spill] sm:$0xff] %v10119_v48 }
 0xae3   :  { %v4140_v46 = vpop.permute.xlu1 %4139  ;;  %3836 = vrot.lane.b32.xlu0 %v3816_v36, %s7475_s29  ;;  %v4062_v36 = vmul.f32 %v12338_v24, %v10053_v26 }
 0xae4   :  { %v4150_v2 = vsel %vm2125_vm12, %v12341_v8, %v4140_v46  ;;  %v4164_v61 = vadd.f32 %v4140_v46, %v4103_v20 }
 0xae5   :  { %v4163_v33 = vadd.f32 %v4150_v2, %v4102_v27  ;;  %v10133_v11 = vpop.permute.xlu0 %3270  ;;  %4080 = vrot.lane.b32.xlu1 %v4060_v13, %s7472_s1  ;;  %v12346_v27 = vld [vmem:[#allocation32_spill] sm:$0xff]  ;;  %v4175_v13 = vrot.slane %v9309_v21, 3 }
 0xae6   :  { %12343 = vst [vmem:[#allocation27_spill] sm:$0xff] %v10133_v11  ;;  %v10138_v6 = vadd.f32 %v4198_v45, %v4164_v61  ;;  %v3877_v46 = vmul.f32 %v12346_v27, %v10030_v63  ;;  %v12348_v45 = vld [vmem:[#allocation38_spill] sm:$0xff]  ;;  %v3879_v61 = vmul.f32 %v12346_v27, %v10053_v26 }
 0xae7   :  { %v10140_v10 = vadd.f32 %v4197_v3, %v4163_v33  ;;  %3840 = vrot.lane.b32.xlu0 %v3818_v35, %s7475_s29  ;;  %v10143_v5 = vpop.permute.xlu1 %3026  ;;  %v4121_v8 = vmul.f32 %v12348_v45, %v10030_v63  ;;  %v10167_v3 = vsel %vm4177_vm6, %v12349_v54, %v4175_v13  ;;  %v4123_v35 = vmul.f32 %v12348_v45, %v10053_v26 }
 0xae8   :  { %12344 = vst [vmem:[#allocation71_spill] sm:$0xff] %v10143_v5  ;;  %12350 = vst [vmem:[#allocation34_spill] sm:$0xff] %v10167_v3  ;;  %v10183_v54 = vsel %vm4177_vm6, %v4175_v13, %v12352_v42  ;;  %v4224_v26 = vmul.f32 %v12354_v43, %v10167_v3  ;;  %v4267_v52 = vadd.f32 %v9983_v32, %v10138_v6  ;;  %v12429_v6 = vld [vmem:[#allocation18_spill] sm:$0xff] }
 0xae9   :  { %v10147_v20 = vpop.permute.xlu0 %3331  ;;  %4084 = vrot.lane.b32.xlu1 %v4062_v36, %s7472_s1  ;;  %12353 = vst [vmem:[#allocation92_spill] sm:$0xff] %v10183_v54  ;;  %v4226_v42 = vmul.f32 %v12354_v43, %v10183_v54 }
 0xaea   :  { %12345 = vst [vmem:[#allocation111_spill] sm:$0xff] %v10147_v20  ;;  %v1737_v20 = vrot.slane %v12310_v30, 5 }
 0xaeb   :  { %3897 = vrot.lane.b32.xlu0 %v3877_v46, %s7474_s6  ;;  %v10154_v59 = vpop.permute.xlu1 %3087  ;;  %v12351_v46 = vld [vmem:[#allocation44_spill] sm:$0xff] }
 0xaec   :  { %12347 = vst [vmem:[#allocation76_spill] sm:$0xff] %v10154_v59 }
 0xaed   :  { %v10158_v2 = vpop.permute.xlu0 %1861  ;;  %4141 = vrot.lane.b32.xlu1 %v4121_v8, %s7470_s30  ;;  %v4407_v8 = vmul.f32 %v12351_v46, %v10167_v3 }
 0xaef   :  { %3901 = vrot.lane.b32.xlu0 %v3879_v61, %s7474_s6  ;;  %v10170_v33 = vpop.permute.xlu1 %1799 }
 0xaf1   :  { %v10174_v36 = vpop.permute.xlu0 %1985  ;;  %4145 = vrot.lane.b32.xlu1 %v4123_v35, %s7470_s30  ;;  %v4409_v35 = vmul.f32 %v12351_v46, %v10183_v54 }
 0xaf3   :  { %4427 = vrot.lane.b32.xlu0 %v4407_v8, %s7471_s15  ;;  %v10186_v61 = vpop.permute.xlu1 %1923  ;;  %v12356_v8 = vld [vmem:[#allocation45_spill] sm:$0xff] }
 0xaf4   :  { %v4468_v14 = vmul.f32 %v12356_v8, %v10167_v3  ;;  %v4470_v29 = vmul.f32 %v12356_v8, %v10183_v54 }
 0xaf5   :  { %v10190_v63 = vpop.permute.xlu0 %1873  ;;  %4244 = vrot.lane.b32.xlu1 %v4224_v26, %s7475_s29 }
 0xaf7   :  { %4431 = vrot.lane.b32.xlu0 %v4409_v35, %s7471_s15  ;;  %v10196_v22 = vpop.permute.xlu1 %2047  ;;  %v12357_v35 = vld [vmem:[#allocation42_spill] sm:$0xff] }
 0xaf8   :  { %v4285_v11 = vmul.f32 %v12357_v35, %v10167_v3  ;;  %v4287_v44 = vmul.f32 %v12357_v35, %v10183_v54 }
 0xaf9   :  { %v10200_v13 = vpop.permute.xlu0 %1935  ;;  %4248 = vrot.lane.b32.xlu1 %v4226_v42, %s7475_s29  ;;  %v12359_v42 = vld [vmem:[#allocation20_spill] sm:$0xff] }
 0xafa   :  { %12355 = vst [vmem:[#allocation121_spill] sm:$0xff] %v10200_v13  ;;  %v12360_v59 = vrot.slane %v12359_v42, 5 }
 0xafb   :  { %4488 = vrot.lane.b32.xlu0 %v4468_v14, %s7472_s1  ;;  %v10207_v26 = vpop.permute.xlu1 %1811 }
 0xafc   :  { %v10220_v5 = vsel %vm1740_vm1, %v1737_v20, %v12360_v59  ;;  %v12364_v59 = vld [vmem:[#allocation43_spill] sm:$0xff] }
 0xafd   :  { %v10211_v48 = vpop.permute.xlu0 %2213  ;;  %4305 = vrot.lane.b32.xlu1 %v4285_v11, %s7474_s6  ;;  %v12362_v11 = vld [vmem:[#allocation5_spill] sm:$0xff]  ;;  %v4346_v7 = vmul.f32 %v12364_v59, %v10167_v3 }
 0xafe   :  { %12358 = vst [vmem:[#allocation94_spill] sm:$0xff] %v10211_v48  ;;  %v1784_v1 = vmul.f32 %v12362_v11, %v10220_v5  ;;  %v1908_v48 = vmul.f32 %v12366_v17, %v10220_v5 }
 0xaff   :  { %4492 = vrot.lane.b32.xlu0 %v4470_v29, %s7472_s1  ;;  %v10223_v14 = vpop.permute.xlu1 %2109 }
 0xb01   :  { %v10227_v21 = vpop.permute.xlu0 %2059  ;;  %4309 = vrot.lane.b32.xlu1 %v4287_v44, %s7474_s6  ;;  %v4348_v44 = vmul.f32 %v12364_v59, %v10183_v54 }
 0xb02   :  { %12361 = vst [vmem:[#allocation122_spill] sm:$0xff] %v10227_v21 }
 0xb03   :  { %v10232_v19 = vpop.permute.xlu1 %1997  ;;  %1801 = vrot.lane.b32.xlu0 %v1784_v1, %s7475_s29  ;;  %v12369_v1 = vld [vmem:[#allocation9_spill] sm:$0xff] }
 0xb04   :  { %12363 = vst [vmem:[#allocation21_spill] sm:$0xff] %v10232_v19  ;;  %v2032_v3 = vmul.f32 %v12369_v1, %v10220_v5 }
 0xb05   :  { %v10237_v29 = vpop.permute.xlu0 %2335  ;;  %4366 = vrot.lane.b32.xlu1 %v4346_v7, %s7473_s23 }
 0xb06   :  { %12365 = vst [vmem:[#allocation123_spill] sm:$0xff] %v10237_v29  ;;  %v12370_v29 = vrot.slane %v12300_v50, 5 }
 0xb07   :  { %v10242_v21 = vpop.permute.xlu1 %2274  ;;  %1925 = vrot.lane.b32.xlu0 %v1908_v48, %s7473_s23  ;;  %v12372_v48 = vld [vmem:[#allocation7_spill] sm:$0xff] }
 0xb08   :  { %12367 = vst [vmem:[#allocation78_spill] sm:$0xff] %v10242_v21  ;;  %v10256_v7 = vsel %vm1740_vm1, %v12370_v29, %v1737_v20  ;;  %v1846_v21 = vmul.f32 %v12372_v48, %v10220_v5  ;;  %v12375_v20 = vld [vmem:[#allocation8_spill] sm:$0xff] }
 0xb09   :  { %v10247_v19 = vpop.permute.xlu0 %2457  ;;  %4370 = vrot.lane.b32.xlu1 %v4348_v44, %s7473_s23  ;;  %v1790_v44 = vmul.f32 %v12362_v11, %v10256_v7  ;;  %v1970_v29 = vmul.f32 %v12375_v20, %v10220_v5  ;;  %v1852_v11 = vmul.f32 %v12372_v48, %v10256_v7 }
 0xb0a   :  { %12368 = vst [vmem:[#allocation29_spill] sm:$0xff] %v10247_v19 }
 0xb0b   :  { %v10258_v15 = vpop.permute.xlu1 %2121  ;;  %2049 = vrot.lane.b32.xlu0 %v2032_v3, %s7472_s1  ;;  %v12377_v3 = vld [vmem:[#allocation10_spill] sm:$0xff] }
 0xb0c   :  { %12371 = vst [vmem:[#allocation68_spill] sm:$0xff] %v10258_v15  ;;  %v2094_v56 = vmul.f32 %v12377_v3, %v10220_v5 }
 0xb0d   :  { %v10263_v54 = vpop.permute.xlu0 %2225  ;;  %1863 = vrot.lane.b32.xlu1 %v1846_v21, %s7474_s6 }
 0xb0e   :  { %12373 = vst [vmem:[#allocation124_spill] sm:$0xff] %v10263_v54  ;;  %v2153_v54 = vrot.slane %v12310_v30, 6 }
 0xb0f   :  { %v10268_v19 = vpop.permute.xlu1 %2396  ;;  %1813 = vrot.lane.b32.xlu0 %v1790_v44, %s7475_s29 }
 0xb10   :  { %12374 = vst [vmem:[#allocation77_spill] sm:$0xff] %v10268_v19 }
 0xb11   :  { %v10273_v15 = vpop.permute.xlu0 %2518  ;;  %1987 = vrot.lane.b32.xlu1 %v1970_v29, %s7471_s15  ;;  %v12380_v29 = vrot.slane %v12359_v42, 6 }
 0xb12   :  { %12376 = vst [vmem:[#allocation35_spill] sm:$0xff] %v10273_v15  ;;  %v1976_v15 = vmul.f32 %v12375_v20, %v10256_v7 }
 0xb13   :  { %v10279_v21 = vpop.permute.xlu1 %2286  ;;  %2111 = vrot.lane.b32.xlu0 %v2094_v56, %s7470_s30  ;;  %v10293_v19 = vsel %vm2154_vm2, %v2153_v54, %v12380_v29  ;;  %v1914_v56 = vmul.f32 %v12366_v17, %v10256_v7  ;;  %v12384_v29 = vld [vmem:[#allocation11_spill] sm:$0xff]  ;;  %v2100_v17 = vmul.f32 %v12377_v3, %v10256_v7 }
 0xb14   :  { %12378 = vst [vmem:[#allocation80_spill] sm:$0xff] %v10279_v21  ;;  %v2198_v21 = vmul.f32 %v12384_v29, %v10293_v19 }
 0xb15   :  { %v10284_v44 = vpop.permute.xlu0 %2408  ;;  %1875 = vrot.lane.b32.xlu1 %v1852_v11, %s7474_s6  ;;  %v12383_v11 = vld [vmem:[#allocation12_spill] sm:$0xff] }
 0xb16   :  { %12379 = vst [vmem:[#allocation13_spill] sm:$0xff] %v10284_v44  ;;  %v2259_v20 = vmul.f32 %v12383_v11, %v10293_v19 }
 0xb17   :  { %v10295_v13 = vpop.permute.xlu1 %2347  ;;  %1999 = vrot.lane.b32.xlu0 %v1976_v15, %s7471_s15 }
 0xb18   :  { %12381 = vst [vmem:[#allocation14_spill] sm:$0xff] %v10295_v13 }
 0xb19   :  { %v10300_v48 = vpop.permute.xlu0 %2682  ;;  %1937 = vrot.lane.b32.xlu1 %v1914_v56, %s7473_s23  ;;  %v2038_v56 = vmul.f32 %v12369_v1, %v10256_v7  ;;  %v2320_v1 = vmul.f32 %v12236_v4, %v10293_v19 }
 0xb1a   :  { %12382 = vst [vmem:[#allocation30_spill] sm:$0xff] %v10300_v48 }
 0xb1b   :  { %v10305_v44 = vpop.permute.xlu1 %2621  ;;  %2276 = vrot.lane.b32.xlu0 %v2259_v20, %s7474_s6  ;;  %v2381_v20 = vmul.f32 %v8447_v49, %v10293_v19 }
 0xb1d   :  { %v10310_v13 = vpop.permute.xlu0 %2530  ;;  %2215 = vrot.lane.b32.xlu1 %v2198_v21, %s7475_s29 }
 0xb1e   :  { %12385 = vst [vmem:[#allocation36_spill] sm:$0xff] %v10310_v13  ;;  %v12388_v13 = vrot.slane %v12300_v50, 6 }
 0xb1f   :  { %v10315_v15 = vpop.permute.xlu1 %2469  ;;  %2123 = vrot.lane.b32.xlu0 %v2100_v17, %s7470_s30 }
 0xb20   :  { %12386 = vst [vmem:[#allocation70_spill] sm:$0xff] %v10315_v15  ;;  %v10329_v21 = vsel %vm2154_vm2, %v12388_v13, %v2153_v54  ;;  %v2442_v54 = vmul.f32 %v12237_v25, %v10293_v19 }
 0xb21   :  { %v10320_v48 = vpop.permute.xlu0 %2804  ;;  %2061 = vrot.lane.b32.xlu1 %v2038_v56, %s7472_s1  ;;  %v2265_v56 = vmul.f32 %v12383_v11, %v10329_v21 }
 0xb22   :  { %12387 = vst [vmem:[#allocation17_spill] sm:$0xff] %v10320_v48  ;;  %v2561_v48 = vrot.slane %v12310_v30, 7 }
 0xb23   :  { %v10331_v3 = vpop.permute.xlu1 %2743  ;;  %2398 = vrot.lane.b32.xlu0 %v2381_v20, %s7471_s15  ;;  %v2326_v20 = vmul.f32 %v12236_v4, %v10329_v21 }
 0xb25   :  { %v10336_v17 = vpop.permute.xlu0 %2755  ;;  %2337 = vrot.lane.b32.xlu1 %v2320_v1, %s7473_s23  ;;  %v12392_v1 = vrot.slane %v12359_v42, 7 }
 0xb26   :  { %12389 = vst [vmem:[#allocation126_spill] sm:$0xff] %v10336_v17 }
 0xb27   :  { %v10342_v15 = vpop.permute.xlu1 %2865  ;;  %2288 = vrot.lane.b32.xlu0 %v2265_v56, %s7474_s6  ;;  %v10356_v11 = vsel %vm2562_vm3, %v2561_v48, %v12392_v1  ;;  %v2204_v56 = vmul.f32 %v12384_v29, %v10329_v21  ;;  %v2503_v1 = vmul.f32 %v8451_v51, %v10293_v19  ;;  %v2448_v29 = vmul.f32 %v12237_v25, %v10329_v21 }
 0xb28   :  { %12390 = vst [vmem:[#allocation32_spill] sm:$0xff] %v10342_v15  ;;  %v2606_v4 = vmul.f32 %v8453_v41, %v10356_v11  ;;  %v2667_v25 = vmul.f32 %v8455_v60, %v10356_v11 }
 0xb29   :  { %v10347_v13 = vpop.permute.xlu0 %2816  ;;  %2459 = vrot.lane.b32.xlu1 %v2442_v54, %s7472_s1 }
 0xb2a   :  { %12391 = vst [vmem:[#allocation38_spill] sm:$0xff] %v10347_v13 }
 0xb2b   :  { %v10358_v17 = vpop.permute.xlu1 %2633  ;;  %2349 = vrot.lane.b32.xlu0 %v2326_v20, %s7473_s23 }
 0xb2d   :  { %v10363_v15 = vpop.permute.xlu0 %2877  ;;  %2227 = vrot.lane.b32.xlu1 %v2204_v56, %s7475_s29  ;;  %v2387_v56 = vmul.f32 %v8447_v49, %v10329_v21  ;;  %v2850_v49 = vmul.f32 %v12242_v37, %v10356_v11 }
 0xb2e   :  { %12393 = vst [vmem:[#allocation44_spill] sm:$0xff] %v10363_v15 }
 0xb2f   :  { %v10368_v54 = vpop.permute.xlu1 %2926  ;;  %2623 = vrot.lane.b32.xlu0 %v2606_v4, %s7475_s29  ;;  %v2728_v4 = vmul.f32 %v12238_v57, %v10356_v11 }
 0xb31   :  { %v10373_v13 = vpop.permute.xlu0 %2938  ;;  %2520 = vrot.lane.b32.xlu1 %v2503_v1, %s7470_s30 }
 0xb32   :  { %12394 = vst [vmem:[#allocation39_spill] sm:$0xff] %v10373_v13 }
 0xb33   :  { %v10378_v20 = vpop.permute.xlu1 %2694  ;;  %2471 = vrot.lane.b32.xlu0 %v2448_v29, %s7472_s1  ;;  %v12398_v29 = vrot.slane %v12300_v50, 7 }
 0xb35   :  { %v10383_v15 = vpop.permute.xlu0 %3550  ;;  %2410 = vrot.lane.b32.xlu1 %v2387_v56, %s7471_s15  ;;  %v10402_v56 = vsel %vm2562_vm3, %v12398_v29, %v2561_v48  ;;  %v2789_v48 = vmul.f32 %v12241_v38, %v10356_v11 }
 0xb36   :  { %12395 = vst [vmem:[#allocation45_spill] sm:$0xff] %v10383_v15 }
 0xb37   :  { %v10388_v13 = vpop.permute.xlu1 %3428  ;;  %2745 = vrot.lane.b32.xlu0 %v2728_v4, %s7473_s23  ;;  %v2509_v4 = vmul.f32 %v8451_v51, %v10329_v21  ;;  %v2911_v51 = vmul.f32 %v12243_v55, %v10356_v11 }
 0xb38   :  { %12396 = vst [vmem:[#allocation42_spill] sm:$0xff] %v10388_v13 }
 0xb39   :  { %v10393_v1 = vpop.permute.xlu0 %3554  ;;  %2684 = vrot.lane.b32.xlu1 %v2667_v25, %s7474_s6  ;;  %v2612_v25 = vmul.f32 %v8453_v41, %v10402_v56  ;;  %v2734_v41 = vmul.f32 %v12238_v57, %v10402_v56  ;;  %v3409_v57 = vmul.f32 %v8548_v39, %v10069_v34 }
 0xb3a   :  { %12397 = vst [vmem:[#allocation20_spill] sm:$0xff] %v10393_v1 }
 0xb3b   :  { %v10404_v15 = vpop.permute.xlu1 %3432  ;;  %2867 = vrot.lane.b32.xlu0 %v2850_v49, %s7472_s1 }
 0xb3d   :  { %v10409_v13 = vpop.permute.xlu0 %3611  ;;  %2532 = vrot.lane.b32.xlu1 %v2509_v4, %s7470_s30 }
 0xb3e   :  { %12399 = vst [vmem:[#allocation5_spill] sm:$0xff] %v10409_v13 }
 0xb3f   :  { %v10414_v1 = vpop.permute.xlu1 %3489  ;;  %2635 = vrot.lane.b32.xlu0 %v2612_v25, %s7475_s29  ;;  %v2673_v25 = vmul.f32 %v8455_v60, %v10402_v56 }
 0xb41   :  { %v10419_v29 = vpop.permute.xlu0 %3615  ;;  %2806 = vrot.lane.b32.xlu1 %v2789_v48, %s7471_s15  ;;  %v2795_v48 = vmul.f32 %v12241_v38, %v10402_v56  ;;  %v2856_v38 = vmul.f32 %v12242_v37, %v10402_v56  ;;  %v3470_v37 = vmul.f32 %v12299_v18, %v10069_v34 }
 0xb42   :  { %12400 = vst [vmem:[#allocation43_spill] sm:$0xff] %v10419_v29 }
 0xb43   :  { %v10424_v49 = vpop.permute.xlu1 %3493  ;;  %2928 = vrot.lane.b32.xlu0 %v2911_v51, %s7470_s30  ;;  %v12403_v51 = vrot.slane %v12359_v42, 1 }
 0xb45   :  { %v10429_v4 = vpop.permute.xlu0 %3672  ;;  %2757 = vrot.lane.b32.xlu1 %v2734_v41, %s7473_s23  ;;  %v12404_v41 = vrot.slane %v12310_v30, 1 }
 0xb47   :  { %v10434_v29 = vpop.permute.xlu1 %3958  ;;  %2696 = vrot.lane.b32.xlu0 %v2673_v25, %s7474_s6  ;;  %v10450_v60 = vsel %vm3361_vm5, %v12404_v41, %v12403_v51  ;;  %v2917_v51 = vmul.f32 %v12243_v55, %v10402_v56 }
 0xb48   :  { %12401 = vst [vmem:[#allocation6_spill] sm:$0xff] %v10434_v29  ;;  %v3472_v55 = vmul.f32 %v12299_v18, %v10450_v60 }
 0xb49   :  { %v10439_v13 = vpop.permute.xlu0 %3676  ;;  %2818 = vrot.lane.b32.xlu1 %v2795_v48, %s7471_s15  ;;  %v3411_v48 = vmul.f32 %v8548_v39, %v10450_v60  ;;  %v3531_v39 = vmul.f32 %v8580_v28, %v10069_v34 }
 0xb4a   :  { %12402 = vst [vmem:[#allocation9_spill] sm:$0xff] %v10439_v13 }
 0xb4b   :  { %v10452_v29 = vpop.permute.xlu1 %3962  ;;  %3430 = vrot.lane.b32.xlu0 %v3409_v57, %s7475_s29  ;;  %v3768_v57 = vrot.slane %v12310_v30, 2 }
 0xb4c   :  { %12405 = vst [vmem:[#allocation7_spill] sm:$0xff] %v10452_v29 }
 0xb4d   :  { %v10457_v25 = vpop.permute.xlu0 %3733  ;;  %2879 = vrot.lane.b32.xlu1 %v2856_v38, %s7472_s1 }
 0xb4f   :  { %v10462_v13 = vpop.permute.xlu1 %4019  ;;  %3434 = vrot.lane.b32.xlu0 %v3411_v48, %s7475_s29 }
 0xb50   :  { %12406 = vst [vmem:[#allocation8_spill] sm:$0xff] %v10462_v13 }
 0xb51   :  { %v10467_v41 = vpop.permute.xlu0 %3737  ;;  %2940 = vrot.lane.b32.xlu1 %v2917_v51, %s7470_s30  ;;  %v12409_v51 = vrot.slane %v12300_v50, 2 }
 0xb53   :  { %v10473_v38 = vpop.permute.xlu1 %4023  ;;  %3491 = vrot.lane.b32.xlu0 %v3470_v37, %s7474_s6  ;;  %v10487_v29 = vsel %vm3769_vm4, %v12409_v51, %v3768_v57  ;;  %v3533_v37 = vmul.f32 %v8580_v28, %v10450_v60  ;;  %v3592_v28 = vmul.f32 %v12298_v12, %v10069_v34 }
 0xb54   :  { %12407 = vst [vmem:[#allocation10_spill] sm:$0xff] %v10473_v38  ;;  %v3939_v18 = vmul.f32 %v12311_v0, %v10487_v29 }
 0xb55   :  { %v10478_v48 = vpop.permute.xlu0 %3836  ;;  %3552 = vrot.lane.b32.xlu1 %v3531_v39, %s7473_s23  ;;  %v12411_v39 = vrot.slane %v12359_v42, 2 }
 0xb56   :  { %12408 = vst [vmem:[#allocation12_spill] sm:$0xff] %v10478_v48 }
 0xb57   :  { %v10489_v13 = vpop.permute.xlu1 %4080  ;;  %3495 = vrot.lane.b32.xlu0 %v3472_v55, %s7474_s6  ;;  %v10503_v51 = vsel %vm3769_vm4, %v3768_v57, %v12411_v39  ;;  %v3594_v57 = vmul.f32 %v12298_v12, %v10450_v60 }
 0xb58   :  { %12410 = vst [vmem:[#allocation11_spill] sm:$0xff] %v10489_v13  ;;  %v4002_v12 = vmul.f32 %v12329_v31, %v10503_v51 }
 0xb59   :  { %v10494_v38 = vpop.permute.xlu0 %3840  ;;  %3556 = vrot.lane.b32.xlu1 %v3533_v37, %s7473_s23  ;;  %v3941_v37 = vmul.f32 %v12311_v0, %v10503_v51  ;;  %v3653_v0 = vmul.f32 %v12307_v53, %v10069_v34 }
 0xb5b   :  { %v10505_v48 = vpop.permute.xlu1 %4084  ;;  %3960 = vrot.lane.b32.xlu0 %v3939_v18, %s7473_s23  ;;  %v4000_v18 = vmul.f32 %v12329_v31, %v10487_v29  ;;  %v3714_v31 = vmul.f32 %v12324_v47, %v10069_v34  ;;  %v4122_v34 = vmul.f32 %v12348_v45, %v10487_v29 }
 0xb5c   :  { %12412 = vst [vmem:[#allocation138_spill] sm:$0xff] %v10505_v48 }
 0xb5d   :  { %v10510_v55 = vpop.permute.xlu0 %3897  ;;  %3613 = vrot.lane.b32.xlu1 %v3592_v28, %s7471_s15 }
 0xb5f   :  { %v10515_v13 = vpop.permute.xlu1 %4141  ;;  %3964 = vrot.lane.b32.xlu0 %v3941_v37, %s7473_s23 }
 0xb60   :  { %12413 = vst [vmem:[#allocation139_spill] sm:$0xff] %v10515_v13 }
 0xb61   :  { %v10520_v39 = vpop.permute.xlu0 %3901  ;;  %3617 = vrot.lane.b32.xlu1 %v3594_v57, %s7471_s15  ;;  %v3655_v57 = vmul.f32 %v12307_v53, %v10450_v60  ;;  %v4063_v53 = vmul.f32 %v12338_v24, %v10503_v51 }
 0xb63   :  { %v10525_v48 = vpop.permute.xlu1 %4145  ;;  %4021 = vrot.lane.b32.xlu0 %v4000_v18, %s7471_s15  ;;  %v4061_v18 = vmul.f32 %v12338_v24, %v10487_v29  ;;  %v3817_v24 = vmul.f32 %v12337_v9, %v10487_v29 }
 0xb64   :  { %12414 = vst [vmem:[#allocation140_spill] sm:$0xff] %v10525_v48 }
 0xb65   :  { %v10530_v28 = vpop.permute.xlu0 %4427  ;;  %3674 = vrot.lane.b32.xlu1 %v3653_v0, %s7472_s1 }
 0xb66   :  { %12415 = vst [vmem:[#allocation141_spill] sm:$0xff] %v10530_v28 }
 0xb67   :  { %v10535_v37 = vpop.permute.xlu1 %4244  ;;  %4025 = vrot.lane.b32.xlu0 %v4002_v12, %s7471_s15 }
 0xb68   :  { %12416 = vst [vmem:[#allocation142_spill] sm:$0xff] %v10535_v37 }
 0xb69   :  { %v10540_v48 = vpop.permute.xlu0 %4431  ;;  %3678 = vrot.lane.b32.xlu1 %v3655_v57, %s7472_s1  ;;  %v3716_v57 = vmul.f32 %v12324_v47, %v10450_v60  ;;  %v4124_v47 = vmul.f32 %v12348_v45, %v10503_v51  ;;  %v12425_v45 = vrot.slane %v12359_v42, 3 }
 0xb6a   :  { %12417 = vst [vmem:[#allocation143_spill] sm:$0xff] %v10540_v48 }
 0xb6b   :  { %v10545_v28 = vpop.permute.xlu1 %4248  ;;  %4082 = vrot.lane.b32.xlu0 %v4061_v18, %s7472_s1  ;;  %v4176_v18 = vrot.slane %v12310_v30, 3 }
 0xb6c   :  { %12418 = vst [vmem:[#allocation144_spill] sm:$0xff] %v10545_v28 }
 0xb6d   :  { %v10550_v0 = vpop.permute.xlu0 %4488  ;;  %3735 = vrot.lane.b32.xlu1 %v3714_v31, %s7470_s30 }
 0xb6e   :  { %12419 = vst [vmem:[#allocation145_spill] sm:$0xff] %v10550_v0 }
 0xb6f   :  { %v10555_v12 = vpop.permute.xlu1 %4305  ;;  %4086 = vrot.lane.b32.xlu0 %v4063_v53, %s7472_s1 }
 0xb70   :  { %12420 = vst [vmem:[#allocation146_spill] sm:$0xff] %v10555_v12 }
 0xb71   :  { %v10560_v48 = vpop.permute.xlu0 %4492  ;;  %3739 = vrot.lane.b32.xlu1 %v3716_v57, %s7470_s30  ;;  %v12423_v57 = vrot.slane %v12300_v50, 3  ;;  %v10592_v50 = vsel %vm4177_vm6, %v4176_v18, %v12425_v45 }
 0xb72   :  { %12421 = vst [vmem:[#allocation147_spill] sm:$0xff] %v10560_v48 }
 0xb73   :  { %v10566_v31 = vpop.permute.xlu1 %4309  ;;  %4143 = vrot.lane.b32.xlu0 %v4122_v34, %s7470_s30  ;;  %v10578_v48 = vsel %vm4177_vm6, %v12423_v57, %v4176_v18  ;;  %v3819_v34 = vmul.f32 %v12337_v9, %v10503_v51  ;;  %v1759_v9 = vmul.f32 %v12282_v40, %v10220_v5  ;;  %v4227_v18 = vmul.f32 %v12354_v43, %v10592_v50 }
 0xb74   :  { %12422 = vst [vmem:[#allocation148_spill] sm:$0xff] %v10566_v31 }
 0xb75   :  { %v1802_v53 = vpop.permute.xlu0 %1801  ;;  %3838 = vrot.lane.b32.xlu1 %v3817_v24, %s7475_s29  ;;  %v4225_v24 = vmul.f32 %v12354_v43, %v10578_v48 }
 0xb76   :  { %v1829_v5 = vadd.f32 %v1802_v53, %v1759_v9 }
 0xb77   :  { %v10580_v0 = vpop.permute.xlu1 %4366  ;;  %4147 = vrot.lane.b32.xlu0 %v4124_v47, %s7470_s30  ;;  %v3878_v47 = vmul.f32 %v12346_v27, %v10487_v29 }
 0xb78   :  { %12424 = vst [vmem:[#allocation149_spill] sm:$0xff] %v10580_v0  ;;  %v12427_v0 = vld [vmem:[#allocation79_spill] sm:$0xff] }
 0xb79   :  { %v1926_v31 = vpop.permute.xlu0 %1925  ;;  %3842 = vrot.lane.b32.xlu1 %v3819_v34, %s7475_s29  ;;  %v1816_v34 = vsel %vm1815_vm7, %v10170_v33, %v1802_v53  ;;  %v1758_v28 = vmul.f32 %v12282_v40, %v12427_v0  ;;  %v3880_v0 = vmul.f32 %v12346_v27, %v10503_v51 }
 0xb7a   :  { %v1940_v27 = vsel %vm1939_vm9, %v10186_v61, %v1926_v31  ;;  %v4288_v61 = vmul.f32 %v12357_v35, %v10592_v50 }
 0xb7b   :  { %v10594_v57 = vpop.permute.xlu1 %4370  ;;  %4246 = vrot.lane.b32.xlu0 %v4225_v24, %s7475_s29  ;;  %v12428_v24 = vld [vmem:[#allocation16_spill] sm:$0xff]  ;;  %v1828_v33 = vadd.f32 %v1816_v34, %v1758_v28  ;;  %v4328_v28 = vadd.f32 %v9997_v58, %v4267_v52  ;;  %v4408_v34 = vmul.f32 %v12351_v46, %v10578_v48 }
 0xb7c   :  { %12426 = vst [vmem:[#allocation150_spill] sm:$0xff] %v10594_v57  ;;  %v4253_v45 = vsel %vm1815_vm7, %v12428_v24, %v9983_v32  ;;  %v4286_v32 = vmul.f32 %v12357_v35, %v10578_v48  ;;  %v4410_v35 = vmul.f32 %v12351_v46, %v10592_v50  ;;  %v4347_v46 = vmul.f32 %v12364_v59, %v10578_v48 }
 0xb7d   :  { %v2050_v12 = vpop.permute.xlu0 %2049  ;;  %3899 = vrot.lane.b32.xlu1 %v3878_v47, %s7474_s6  ;;  %v4266_v57 = vadd.f32 %v4253_v45, %v10140_v10  ;;  %v4314_v10 = vsel %vm1877_vm8, %v12429_v6, %v9997_v58 }
 0xb7f   :  { %v1864_v37 = vpop.permute.xlu1 %1863  ;;  %4250 = vrot.lane.b32.xlu0 %v4227_v18, %s7475_s29  ;;  %v4327_v9 = vadd.f32 %v4314_v10, %v4266_v57  ;;  %v4389_v57 = vadd.f32 %v10014_v23, %v4328_v28 }
 0xb80   :  { %v1878_v43 = vsel %vm1877_vm8, %v10158_v2, %v1864_v37  ;;  %v1891_v47 = vadd.f32 %v1864_v37, %v1829_v5  ;;  %v12430_v5 = vld [vmem:[#allocation15_spill] sm:$0xff] }
 0xb81   :  { %v1890_v13 = vadd.f32 %v1878_v43, %v1828_v33  ;;  %3903 = vrot.lane.b32.xlu1 %v3880_v0, %s7474_s6  ;;  %v1814_v24 = vpop.permute.xlu0 %1813  ;;  %v1764_v33 = vmul.f32 %v12282_v40, %v12430_v5 }
 0xb82   :  { %v1953_v53 = vadd.f32 %v1926_v31, %v1891_v47  ;;  %v1765_v47 = vmul.f32 %v12282_v40, %v10256_v7  ;;  %v1819_v10 = vsel %vm1815_vm7, %v10207_v26, %v1814_v24 }
 0xb83   :  { %v1988_v2 = vpop.permute.xlu1 %1987  ;;  %v1952_v37 = vadd.f32 %v1940_v27, %v1890_v13  ;;  %4307 = vrot.lane.b32.xlu0 %v4286_v32, %s7474_s6  ;;  %v12431_v13 = vld [vmem:[#allocation129_spill] sm:$0xff] }
 0xb84   :  { %v2002_v18 = vsel %vm2001_vm10, %v10174_v36, %v1988_v2  ;;  %v2015_v45 = vadd.f32 %v1988_v2, %v1953_v53  ;;  %v4375_v31 = vsel %vm1939_vm9, %v12431_v13, %v10014_v23  ;;  %v2064_v36 = vsel %vm2063_vm11, %v10196_v22, %v2050_v12  ;;  %v12433_v53 = vld [vmem:[#allocation128_spill] sm:$0xff] }
 0xb85   :  { %v2014_v52 = vadd.f32 %v2002_v18, %v1952_v37  ;;  %4429 = vrot.lane.b32.xlu1 %v4408_v34, %s7471_s15  ;;  %v2112_v58 = vpop.permute.xlu0 %2111  ;;  %v4388_v43 = vadd.f32 %v4375_v31, %v4327_v9  ;;  %v2173_v22 = vmul.f32 %v12179_v16, %v10293_v19  ;;  %v2172_v26 = vmul.f32 %v12179_v16, %v12433_v53  ;;  %v12443_v53 = vld [vmem:[#allocation94_spill] sm:$0xff] }
 0xb86   :  { %v2077_v0 = vadd.f32 %v2050_v12, %v2015_v45  ;;  %v2126_v23 = vsel %vm2125_vm12, %v10223_v14, %v2112_v58  ;;  %v12432_v12 = vld [vmem:[#allocation131_spill] sm:$0xff]  ;;  %v4450_v14 = vadd.f32 %v10032_v62, %v4389_v57  ;;  %v1835_v9 = vadd.f32 %v1814_v24, %v1765_v47  ;;  %v12435_v24 = vld [vmem:[#allocation72_spill] sm:$0xff] }
 0xb87   :  { %v2076_v32 = vadd.f32 %v2064_v36, %v2014_v52  ;;  %v1876_v6 = vpop.permute.xlu1 %1875  ;;  %4311 = vrot.lane.b32.xlu0 %v4288_v61, %s7474_s6  ;;  %v4436_v40 = vsel %vm2001_vm10, %v12432_v12, %v10032_v62  ;;  %v1834_v34 = vadd.f32 %v1819_v10, %v1764_v33  ;;  %v4469_v45 = vmul.f32 %v12356_v8, %v10578_v48  ;;  %v12436_v33 = vld [vmem:[#allocation132_spill] sm:$0xff] }
 0xb88   :  { %v2139_v28 = vadd.f32 %v2112_v58, %v2077_v0  ;;  %v1881_v19 = vsel %vm1877_vm8, %v10190_v63, %v1876_v6  ;;  %v4449_v37 = vadd.f32 %v4436_v40, %v4388_v43  ;;  %v1897_v52 = vadd.f32 %v1876_v6, %v1835_v9  ;;  %v12434_v58 = vld [vmem:[#allocation121_spill] sm:$0xff]  ;;  %v12437_v6 = vld [vmem:[#allocation26_spill] sm:$0xff]  ;;  %v12441_v12 = vld [vmem:[#allocation92_spill] sm:$0xff] }
 0xb89   :  { %v2138_v7 = vadd.f32 %v2126_v23, %v2076_v32  ;;  %4433 = vrot.lane.b32.xlu1 %v4410_v35, %s7471_s15  ;;  %v2000_v27 = vpop.permute.xlu0 %1999  ;;  %v1896_v13 = vadd.f32 %v1881_v19, %v1834_v34  ;;  %v4349_v63 = vmul.f32 %v12364_v59, %v10592_v50  ;;  %v4497_v31 = vsel %vm2063_vm11, %v12436_v33, %v12435_v24  ;;  %v12438_v35 = vld [vmem:[#allocation133_spill] sm:$0xff]  ;;  %v12439_v23 = vld [vmem:[#allocation34_spill] sm:$0xff] }
 0xb8a   :  { %v2181_v2 = vadd.f32 %v2173_v22, %v2139_v28  ;;  %v4511_v36 = vadd.f32 %v12435_v24, %v4450_v14  ;;  %v4471_v47 = vmul.f32 %v12356_v8, %v10592_v50  ;;  %v4510_v32 = vadd.f32 %v4497_v31, %v4449_v37  ;;  %v12440_v28 = vld [vmem:[#allocation46_spill] sm:$0xff]  ;;  %v4608_v24 = vld [vmem:[%s11821_s3 + $0x70] sm:$0xff] }
 0xb8b   :  { %v1938_v18 = vpop.permute.xlu1 %1937  ;;  %4368 = vrot.lane.b32.xlu0 %v4347_v46, %s7473_s23  ;;  %v2180_v5 = vadd.f32 %v2172_v26, %v2138_v7  ;;  %v4558_v10 = vsel %vm2125_vm12, %v12438_v35, %v12437_v6  ;;  %v4529_v22 = vmul.f32 %v12440_v28, %v12439_v23  ;;  %v4531_v40 = vmul.f32 %v12440_v28, %v12441_v12  ;;  %v12442_v7 = vld [vmem:[#allocation21_spill] sm:$0xff] }
 0xb8c   :  { %v1943_v61 = vsel %vm1939_vm9, %v12434_v58, %v1938_v18  ;;  %v1959_v57 = vadd.f32 %v1938_v18, %v1897_v52  ;;  %v2005_v46 = vsel %vm2001_vm10, %v12442_v7, %v2000_v27  ;;  %v4572_v14 = vadd.f32 %v12437_v6, %v4511_v36  ;;  %v12444_v52 = vld [vmem:[#allocation122_spill] sm:$0xff]  ;;  %v12446_v36 = vld [vmem:[#allocation68_spill] sm:$0xff] }
 0xb8d   :  { %4490 = vrot.lane.b32.xlu1 %v4469_v45, %s7472_s1  ;;  %v2277_v62 = vpop.permute.xlu0 %2276  ;;  %v1958_v0 = vadd.f32 %v1943_v61, %v1896_v13  ;;  %v4530_v37 = vmul.f32 %v12440_v28, %v10578_v48  ;;  %v4532_v34 = vmul.f32 %v12440_v28, %v10592_v50  ;;  %v4571_v18 = vadd.f32 %v4558_v10, %v4510_v32  ;;  %v12445_v13 = vld [vmem:[#allocation134_spill] sm:$0xff] }
 0xb8e   :  { %v2021_v26 = vadd.f32 %v2000_v27, %v1959_v57  ;;  %v2178_v27 = vmul.f32 %v12179_v16, %v12445_v13  ;;  %v2179_v57 = vmul.f32 %v12179_v16, %v10329_v21  ;;  %v12448_v6 = vld [vmem:[#allocation78_spill] sm:$0xff] }
 0xb8f   :  { %v2216_v43 = vpop.permute.xlu1 %2215  ;;  %4372 = vrot.lane.b32.xlu0 %v4349_v63, %s7473_s23  ;;  %v2020_v19 = vadd.f32 %v2005_v46, %v1958_v0  ;;  %v4609_v63 = vld [vmem:[%s11821_s3 + $0x78] sm:$0xff]  ;;  %v2290_v35 = vsel %vm1877_vm8, %v12448_v6, %v2277_v62  ;;  %v4606_v46 = vld [vmem:[%s11821_s3 + $0x60] sm:$0xff] }
 0xb90   :  { %v2229_v8 = vsel %vm1815_vm7, %v12443_v53, %v2216_v43  ;;  %v2242_v45 = vadd.f32 %v2216_v43, %v2181_v2  ;;  %7081 = vmatprep.subr.mxu1 %v4609_v63  ;;  %7127 = vmatprep.subr.mxu0 %v4609_v63 }
 0xb91   :  { %4494 = vrot.lane.b32.xlu1 %v4471_v47, %s7472_s1  ;;  %v2124_v59 = vpop.permute.xlu0 %2123  ;;  %v2241_v33 = vadd.f32 %v2229_v8, %v2180_v5  ;;  %v12447_v47 = vld [vmem:[#allocation53_spill] sm:$0xff]  ;;  %7082 = vmatpush3.msra.mxu1 %v4609_v63  ;;  %v4607_v5 = vld [vmem:[%s11821_s3 + $0x68] sm:$0xff] }
 0xb92   :  { %v2129_v0 = vsel %vm2125_vm12, %v12446_v36, %v2124_v59  ;;  %v10715_v32 = vadd.f32 %v12447_v47, %v4572_v14  ;;  %v10724_v16 = vadd.f32 %v12447_v47, %v4571_v18  ;;  %7083 = vmatprep.subr.mxu1 %v4608_v24  ;;  %v2303_v21 = vadd.f32 %v2277_v62, %v2242_v45  ;;  %v4605_v62 = vld [vmem:[%s11821_s3 + $0x58] sm:$0xff] }
 0xb93   :  { %v2062_v9 = vpop.permute.xlu1 %2061  ;;  %4549 = vrot.lane.b32.xlu0 %v4529_v22, %s7470_s30  ;;  %7084 = vmatpush3.msra.mxu1 %v4608_v24  ;;  %v2302_v53 = vadd.f32 %v2290_v35, %v2241_v33  ;;  %v12450_v18 = vld [vmem:[#allocation77_spill] sm:$0xff] }
 0xb94   :  { %v2067_v58 = vsel %vm2063_vm11, %v12444_v52, %v2062_v9  ;;  %v2083_v61 = vadd.f32 %v2062_v9, %v2021_v26  ;;  %7128 = vmatpush3.msra.mxu0 %v4609_v63  ;;  %7085 = vmatprep.subr.mxu1 %v4607_v5 }
 0xb95   :  { %v2082_v31 = vadd.f32 %v2067_v58, %v2020_v19  ;;  %4551 = vrot.lane.b32.xlu1 %v4530_v37, %s7470_s30  ;;  %v2399_v2 = vpop.permute.xlu0 %2398  ;;  %7086 = vmatpush3.msra.mxu1 %v4607_v5  ;;  %v7186_v19 = vpack.i.bf16 %v10715_v32, %v10724_v16  ;;  %v4604_v37 = vld [vmem:[%s11821_s3 + $0x50] sm:$0xff]  ;;  %v4603_v58 = vld [vmem:[%s11821_s3 + $0x48] sm:$0xff] }
 0xb96   :  { %v2145_v43 = vadd.f32 %v2124_v59, %v2083_v61  ;;  %v12449_v59 = vld [vmem:[#allocation123_spill] sm:$0xff]  ;;  %7129 = vmatprep.subr.mxu0 %v4608_v24  ;;  %7087 = vmatprep.subr.mxu1 %v4606_v46  ;;  %v2412_v45 = vsel %vm2001_vm10, %v12450_v18, %v2399_v2 }
 0xb97   :  { %v2144_v10 = vadd.f32 %v2129_v0, %v2082_v31  ;;  %v2338_v28 = vpop.permute.xlu1 %2337  ;;  %4553 = vrot.lane.b32.xlu0 %v4531_v40, %s7470_s30  ;;  %7130 = vmatpush3.msra.mxu0 %v4608_v24  ;;  %v12452_v24 = vld [vmem:[#allocation124_spill] sm:$0xff] }
 0xb98   :  { %v2351_v22 = vsel %vm1939_vm9, %v12449_v59, %v2338_v28  ;;  %v2187_v7 = vadd.f32 %v2179_v57, %v2145_v43  ;;  %v2364_v26 = vadd.f32 %v2338_v28, %v2303_v21  ;;  %7088 = vmatpush3.msra.mxu1 %v4606_v46  ;;  %7131 = vmatprep.subr.mxu0 %v4607_v5  ;;  %v4601_v43 = vld [vmem:[%s11821_s3 + $0x38] sm:$0xff] }
 0xb99   :  { %4555 = vrot.lane.b32.xlu1 %v4532_v34, %s7470_s30  ;;  %v2289_v8 = vpop.permute.xlu0 %2288  ;;  %v2186_v40 = vadd.f32 %v2178_v27, %v2144_v10  ;;  %v2363_v14 = vadd.f32 %v2351_v22, %v2302_v53  ;;  %7089 = vmatprep.subr.mxu1 %v4605_v62  ;;  %v12451_v27 = vld [vmem:[#allocation29_spill] sm:$0xff]  ;;  %v12454_v10 = vld [vmem:[#allocation40_spill] sm:$0xff]  ;;  %v12455_v22 = vld [vmem:[#allocation35_spill] sm:$0xff] }
 0xb9a   :  { %v2425_v52 = vadd.f32 %v2399_v2, %v2364_v26  ;;  %7090 = vmatpush3.msra.mxu1 %v4605_v62  ;;  %7132 = vmatpush3.msra.mxu0 %v4607_v5  ;;  %v4602_v2 = vld [vmem:[%s11821_s3 + $0x40] sm:$0xff]  ;;  %v12453_v5 = vld [vmem:[#allocation80_spill] sm:$0xff]  ;;  %v2581_v28 = vmul.f32 %v12454_v10, %v10356_v11  ;;  %v12456_v26 = vld [vmem:[#allocation25_spill] sm:$0xff] }
 0xb9b   :  { %v2460_v9 = vpop.permute.xlu1 %2459  ;;  %v2424_v61 = vadd.f32 %v2412_v45, %v2363_v14  ;;  %7091 = vmatprep.subr.mxu1 %v4604_v37  ;;  %7133 = vmatprep.subr.mxu0 %v4606_v46  ;;  %v2293_v6 = vsel %vm1877_vm8, %v12453_v5, %v2289_v8  ;;  %v4600_v53 = vld [vmem:[%s11821_s3 + $0x30] sm:$0xff] }
 0xb9c   :  { %v2473_v63 = vsel %vm2063_vm11, %v12451_v27, %v2460_v9  ;;  %7092 = vmatpush3.msra.mxu1 %v4604_v37  ;;  %7134 = vmatpush3.msra.mxu0 %v4606_v46  ;;  %v2486_v0 = vadd.f32 %v2460_v9, %v2425_v52  ;;  %v4598_v27 = vld [vmem:[%s11821_s3 + $0x20] sm:$0xff] }
 0xb9d   :  { %7187 = vrot.lane.b32.xlu1 %v7186_v19, %s7475_s29  ;;  %v2350_v34 = vpop.permute.xlu0 %2349  ;;  %7093 = vmatprep.subr.mxu1 %v4603_v58  ;;  %v2485_v35 = vadd.f32 %v2473_v63, %v2424_v61  ;;  %v12458_v61 = vld [vmem:[#allocation13_spill] sm:$0xff] }
 0xb9e   :  { %7135 = vmatprep.subr.mxu0 %v4605_v62  ;;  %7094 = vmatpush3.msra.mxu1 %v4603_v58 }
 0xb9f   :  { %v2228_v13 = vpop.permute.xlu1 %2227  ;;  %7136 = vmatpush3.msra.mxu0 %v4605_v62  ;;  %7095 = vmatprep.subr.mxu1 %v4602_v2  ;;  %v2580_v62 = vmul.f32 %v12454_v10, %v12456_v26  ;;  %v2587_v26 = vmul.f32 %v12454_v10, %v10402_v56 }
 0xba0   :  { %v2232_v33 = vsel %vm1815_vm7, %v12452_v24, %v2228_v13  ;;  %v2248_v31 = vadd.f32 %v2228_v13, %v2187_v7  ;;  %7137 = vmatprep.subr.mxu0 %v4604_v37  ;;  %7096 = vmatpush3.msra.mxu1 %v4602_v2 }
 0xba1   :  { %v2247_v57 = vadd.f32 %v2232_v33, %v2186_v40  ;;  %v2624_v36 = vpop.permute.xlu0 %2623  ;;  %7138 = vmatpush3.msra.mxu0 %v4604_v37  ;;  %7097 = vmatprep.subr.mxu1 %v4601_v43  ;;  %v12457_v37 = vld [vmem:[#allocation14_spill] sm:$0xff]  ;;  %v4597_v33 = vld [vmem:[%s11821_s3 + $0x18] sm:$0xff] }
 0xba2   :  { %v2309_v59 = vadd.f32 %v2289_v8, %v2248_v31  ;;  %7139 = vmatprep.subr.mxu0 %v4603_v58  ;;  %7098 = vmatpush3.msra.mxu1 %v4601_v43  ;;  %v4599_v8 = vld [vmem:[%s11821_s3 + $0x28] sm:$0xff]  ;;  %v2354_v45 = vsel %vm1939_vm9, %v12457_v37, %v2350_v34 }
 0xba3   :  { %v2521_v21 = vpop.permute.xlu1 %2520  ;;  %v2308_v40 = vadd.f32 %v2293_v6, %v2247_v57  ;;  %7140 = vmatpush3.msra.mxu0 %v4603_v58  ;;  %7099 = vmatprep.subr.mxu1 %v4600_v53  ;;  %v2637_v57 = vsel %vm1815_vm7, %v10305_v44, %v2624_v36  ;;  %v4596_v6 = vld [vmem:[%s11821_s3 + $0x10] sm:$0xff] }
 0xba4   :  { %v2534_v7 = vsel %vm2125_vm12, %v12455_v22, %v2521_v21  ;;  %v2547_v46 = vadd.f32 %v2521_v21, %v2486_v0  ;;  %7141 = vmatprep.subr.mxu0 %v4602_v2  ;;  %v2370_v52 = vadd.f32 %v2350_v34, %v2309_v59  ;;  %7100 = vmatpush3.msra.mxu1 %v4600_v53 }
 0xba5   :  { %v2546_v14 = vadd.f32 %v2534_v7, %v2485_v35  ;;  %v2472_v11 = vpop.permute.xlu0 %2471  ;;  %7142 = vmatpush3.msra.mxu0 %v4602_v2  ;;  %v2369_v63 = vadd.f32 %v2354_v45, %v2308_v40  ;;  %7101 = vmatprep.subr.mxu1 %v4599_v8  ;;  %v12459_v2 = vld [vmem:[#allocation30_spill] sm:$0xff] }
 0xba6   :  { %v2589_v9 = vadd.f32 %v2581_v28, %v2547_v46  ;;  %7143 = vmatprep.subr.mxu0 %v4601_v43  ;;  %7102 = vmatpush3.msra.mxu1 %v4599_v8  ;;  %v12461_v46 = vld [vmem:[#allocation36_spill] sm:$0xff] }
 0xba7   :  { %v2588_v19 = vadd.f32 %v2580_v62, %v2546_v14  ;;  %v2411_v18 = vpop.permute.xlu1 %2410  ;;  %7144 = vmatpush3.msra.mxu0 %v4601_v43  ;;  %7103 = vmatprep.subr.mxu1 %v4598_v27  ;;  %v12460_v43 = vld [vmem:[#allocation70_spill] sm:$0xff]  ;;  %v12462_v14 = vld [vmem:[#allocation109_spill] sm:$0xff] }
 0xba8   :  { %v2415_v13 = vsel %vm2001_vm10, %v12458_v61, %v2411_v18  ;;  %v2431_v58 = vadd.f32 %v2411_v18, %v2370_v52  ;;  %7145 = vmatprep.subr.mxu0 %v4600_v53  ;;  %v2650_v0 = vadd.f32 %v2624_v36, %v2589_v9  ;;  %7104 = vmatpush3.msra.mxu1 %v4598_v27  ;;  %v12463_v61 = vld [vmem:[#allocation17_spill] sm:$0xff] }
 0xba9   :  { %v2746_v24 = vpop.permute.xlu0 %2745  ;;  %v2430_v34 = vadd.f32 %v2415_v13, %v2369_v63  ;;  %7146 = vmatpush3.msra.mxu0 %v4600_v53  ;;  %v2649_v35 = vadd.f32 %v2637_v57, %v2588_v19  ;;  %7105 = vmatprep.subr.mxu1 %v4597_v33  ;;  %v2476_v21 = vsel %vm2063_vm11, %v12460_v43, %v2472_v11 }
 0xbaa   :  { %7147 = vmatprep.subr.mxu0 %v4599_v8  ;;  %v2492_v22 = vadd.f32 %v2472_v11, %v2431_v58  ;;  %7106 = vmatpush3.msra.mxu1 %v4597_v33  ;;  %v2586_v11 = vmul.f32 %v12454_v10, %v12462_v14  ;;  %v12464_v10 = vld [vmem:[#allocation32_spill] sm:$0xff] }
 0xbab   :  { %v2685_v31 = vpop.permute.xlu1 %2684  ;;  %7148 = vmatpush3.msra.mxu0 %v4599_v8  ;;  %v2491_v7 = vadd.f32 %v2476_v21, %v2430_v34  ;;  %7107 = vmatprep.subr.mxu1 %v4596_v6  ;;  %v2759_v8 = vsel %vm1939_vm9, %v10331_v3, %v2746_v24  ;;  %v12465_v3 = vld [vmem:[#allocation48_spill] sm:$0xff] }
 0xbac   :  { %v2698_v5 = vsel %vm1877_vm8, %v12459_v2, %v2685_v31  ;;  %v2711_v59 = vadd.f32 %v2685_v31, %v2650_v0  ;;  %7149 = vmatprep.subr.mxu0 %v4598_v27  ;;  %7108 = vmatpush3.msra.mxu1 %v4596_v6 }
 0xbad   :  { %v2868_v28 = vpop.permute.xlu0 %2867  ;;  %v2710_v44 = vadd.f32 %v2698_v5, %v2649_v35  ;;  %7150 = vmatpush3.msra.mxu0 %v4598_v27  ;;  %v12466_v35 = vld [vmem:[#allocation19_spill] sm:$0xff] }
 0xbae   :  { %7151 = vmatprep.subr.mxu0 %v4597_v33  ;;  %v2772_v18 = vadd.f32 %v2746_v24, %v2711_v59  ;;  %v2881_v58 = vsel %vm2063_vm11, %v12464_v10, %v2868_v28  ;;  %v2972_v24 = vmul.f32 %v12465_v3, %v12359_v42  ;;  %v2971_v43 = vmul.f32 %v12465_v3, %v12466_v35  ;;  %v12474_v10 = vld [vmem:[#allocation59_spill] sm:$0xff] }
 0xbaf   :  { %v2533_v36 = vpop.permute.xlu1 %2532  ;;  %7152 = vmatpush3.msra.mxu0 %v4597_v33  ;;  %v2771_v52 = vadd.f32 %v2759_v8, %v2710_v44 }
 0xbb0   :  { %v2537_v40 = vsel %vm2125_vm12, %v12461_v46, %v2533_v36  ;;  %v2553_v53 = vadd.f32 %v2533_v36, %v2492_v22  ;;  %7153 = vmatprep.subr.mxu0 %v4596_v6 }
 0xbb1   :  { %v2552_v62 = vadd.f32 %v2537_v40, %v2491_v7  ;;  %v2636_v9 = vpop.permute.xlu0 %2635  ;;  %7154 = vmatpush3.msra.mxu0 %v4596_v6  ;;  %v12468_v40 = vld [vmem:[#allocation54_spill] sm:$0xff] }
 0xbb2   :  { %v2595_v19 = vadd.f32 %v2587_v26, %v2553_v53  ;;  %v2640_v57 = vsel %vm1815_vm7, %v10358_v17, %v2636_v9  ;;  %v12467_v17 = vld [vmem:[#allocation55_spill] sm:$0xff]  ;;  %v12469_v26 = vld [vmem:[#allocation126_spill] sm:$0xff] }
 0xbb3   :  { %v2594_v37 = vadd.f32 %v2586_v11, %v2552_v62  ;;  %v2807_v45 = vpop.permute.xlu1 %2806  ;;  %v3028_v53 = vsel %vm1815_vm7, %v12468_v40, %v12467_v17 }
 0xbb4   :  { %v2820_v56 = vsel %vm2001_vm10, %v12463_v61, %v2807_v45  ;;  %v2833_v13 = vadd.f32 %v2807_v45, %v2772_v18  ;;  %v2656_v0 = vadd.f32 %v2636_v9, %v2595_v19  ;;  %v12470_v19 = vld [vmem:[#allocation58_spill] sm:$0xff] }
 0xbb5   :  { %v2832_v27 = vadd.f32 %v2820_v56, %v2771_v52  ;;  %v2929_v63 = vpop.permute.xlu0 %2928  ;;  %v2655_v6 = vadd.f32 %v2640_v57, %v2594_v37  ;;  %v12472_v45 = vld [vmem:[#allocation38_spill] sm:$0xff] }
 0xbb6   :  { %v2894_v34 = vadd.f32 %v2868_v28, %v2833_v13  ;;  %v2942_v2 = vsel %vm2125_vm12, %v10368_v54, %v2929_v63 }
 0xbb7   :  { %v2893_v31 = vadd.f32 %v2881_v58, %v2832_v27  ;;  %v2758_v33 = vpop.permute.xlu1 %2757 }
 0xbb8   :  { %v2955_v5 = vadd.f32 %v2929_v63, %v2894_v34  ;;  %v2762_v62 = vsel %vm1939_vm9, %v12469_v26, %v2758_v33  ;;  %v12473_v63 = vld [vmem:[#allocation60_spill] sm:$0xff]  ;;  %v12481_v26 = vld [vmem:[#allocation81_spill] sm:$0xff] }
 0xbb9   :  { %v2954_v21 = vadd.f32 %v2942_v2, %v2893_v31  ;;  %v2697_v59 = vpop.permute.xlu0 %2696  ;;  %v3150_v58 = vsel %vm1939_vm9, %v12474_v10, %v12473_v63  ;;  %v12475_v31 = vld [vmem:[#allocation44_spill] sm:$0xff]  ;;  %v12477_v2 = vld [vmem:[#allocation61_spill] sm:$0xff] }
 0xbba   :  { %v2980_v28 = vadd.f32 %v2972_v24, %v2955_v5  ;;  %v2701_v22 = vsel %vm1877_vm8, %v10378_v20, %v2697_v59  ;;  %v2717_v44 = vadd.f32 %v2697_v59, %v2656_v0  ;;  %v12471_v20 = vld [vmem:[#allocation56_spill] sm:$0xff]  ;;  %v12476_v0 = vld [vmem:[#allocation62_spill] sm:$0xff] }
 0xbbb   :  { %v2979_v36 = vadd.f32 %v2971_v43, %v2954_v21  ;;  %v2716_v7 = vadd.f32 %v2701_v22, %v2655_v6  ;;  %v2819_v46 = vpop.permute.xlu1 %2818  ;;  %v3089_v18 = vsel %vm1877_vm8, %v12471_v20, %v12470_v19  ;;  %v3211_v5 = vsel %vm2001_vm10, %v12477_v2, %v12476_v0 }
 0xbbc   :  { %v3041_v54 = vadd.f32 %v12467_v17, %v2980_v28  ;;  %v2778_v14 = vadd.f32 %v2758_v33, %v2717_v44  ;;  %v2823_v52 = vsel %vm2001_vm10, %v12472_v45, %v2819_v46  ;;  %v2978_v28 = vmul.f32 %v12465_v3, %v12310_v30  ;;  %v12478_v44 = vld [vmem:[#allocation65_spill] sm:$0xff]  ;;  %v12480_v17 = vld [vmem:[#allocation39_spill] sm:$0xff] }
 0xbbd   :  { %v3040_v11 = vadd.f32 %v3028_v53, %v2979_v36  ;;  %v2777_v9 = vadd.f32 %v2762_v62, %v2716_v7  ;;  %v10817_v8 = vpop.permute.xlu0 %3430  ;;  %v12479_v36 = vld [vmem:[#allocation63_spill] sm:$0xff]  ;;  %v2977_v62 = vmul.f32 %v12465_v3, %v12481_v26 }
 0xbbe   :  { %v3102_v37 = vadd.f32 %v12470_v19, %v3041_v54  ;;  %v2839_v61 = vadd.f32 %v2819_v46, %v2778_v14  ;;  %v3272_v7 = vsel %vm2063_vm11, %v12479_v36, %v12478_v44  ;;  %v12483_v19 = vld [vmem:[#allocation66_spill] sm:$0xff]  ;;  %v12487_v3 = vld [vmem:[#allocation71_spill] sm:$0xff] }
 0xbbf   :  { %v3101_v56 = vadd.f32 %v3089_v18, %v3040_v11  ;;  %v2838_v13 = vadd.f32 %v2823_v52, %v2777_v9  ;;  %v2880_v27 = vpop.permute.xlu1 %2879  ;;  %v12482_v9 = vld [vmem:[#allocation67_spill] sm:$0xff]  ;;  %v12484_v18 = vld [vmem:[#allocation73_spill] sm:$0xff] }
 0xbc0   :  { %v3163_v34 = vadd.f32 %v12473_v63, %v3102_v37  ;;  %v2884_v24 = vsel %vm2063_vm11, %v12475_v31, %v2880_v27  ;;  %v2900_v43 = vadd.f32 %v2880_v27, %v2839_v61  ;;  %v3333_v20 = vsel %vm2125_vm12, %v12483_v19, %v12482_v9  ;;  %v12485_v37 = vld [vmem:[#allocation49_spill] sm:$0xff] }
 0xbc1   :  { %v3162_v33 = vadd.f32 %v3150_v58, %v3101_v56  ;;  %v10831_v57 = vpop.permute.xlu0 %3434  ;;  %v2899_v59 = vadd.f32 %v2884_v24, %v2838_v13  ;;  %v3380_v45 = vmul.f32 %v12485_v37, %v12484_v18  ;;  %v12486_v56 = vld [vmem:[#allocation41_spill] sm:$0xff]  ;;  %v12488_v58 = vld [vmem:[#allocation4_spill] sm:$0xff] }
 0xbc2   :  { %v3224_v6 = vadd.f32 %v12476_v0, %v3163_v34  ;;  %v3379_v13 = vmul.f32 %v12485_v37, %v12486_v56  ;;  %v3031_v34 = vsel %vm1815_vm7, %v12488_v58, %v12487_v3 }
 0xbc3   :  { %v3223_v21 = vadd.f32 %v3211_v5, %v3162_v33  ;;  %v2941_v22 = vpop.permute.xlu1 %2940  ;;  %v12489_v5 = vld [vmem:[#allocation125_spill] sm:$0xff] }
 0xbc4   :  { %v3285_v46 = vadd.f32 %v12478_v44, %v3224_v6  ;;  %v2945_v40 = vsel %vm2125_vm12, %v12480_v17, %v2941_v22  ;;  %v2961_v53 = vadd.f32 %v2941_v22, %v2900_v43  ;;  %v12490_v6 = vld [vmem:[#allocation100_spill] sm:$0xff]  ;;  %v12493_v17 = vld [vmem:[#allocation127_spill] sm:$0xff] }
 0xbc5   :  { %v3284_v54 = vadd.f32 %v3272_v7, %v3223_v21  ;;  %v2960_v14 = vadd.f32 %v2945_v40, %v2899_v59  ;;  %v3492_v11 = vpop.permute.xlu0 %3491  ;;  %v3436_v43 = vsel %vm1815_vm7, %v12490_v6, %v12489_v5  ;;  %v12491_v21 = vld [vmem:[#allocation76_spill] sm:$0xff]  ;;  %v12492_v59 = vld [vmem:[#allocation130_spill] sm:$0xff] }
 0xbc6   :  { %v3346_v52 = vadd.f32 %v12482_v9, %v3285_v46  ;;  %v2986_v61 = vadd.f32 %v2978_v28, %v2961_v53  ;;  %v3092_v28 = vsel %vm1877_vm8, %v12492_v59, %v12491_v21  ;;  %v12494_v40 = vld [vmem:[#allocation102_spill] sm:$0xff]  ;;  %v12505_v59 = vld [vmem:[#allocation107_spill] sm:$0xff] }
 0xbc7   :  { %v3345_v27 = vadd.f32 %v3333_v20, %v3284_v54  ;;  %v2985_v63 = vadd.f32 %v2977_v62, %v2960_v14  ;;  %v10855_v10 = vpop.permute.xlu1 %3552  ;;  %v3497_v53 = vsel %vm1877_vm8, %v12494_v40, %v12493_v17  ;;  %v12495_v54 = vld [vmem:[#allocation75_spill] sm:$0xff]  ;;  %v12508_v40 = vld [vmem:[#allocation57_spill] sm:$0xff] }
 0xbc8   :  { %v3388_v31 = vadd.f32 %v3380_v45, %v3346_v52  ;;  %v3047_v24 = vadd.f32 %v12487_v3, %v2986_v61  ;;  %v12496_v62 = vld [vmem:[#allocation135_spill] sm:$0xff]  ;;  %v12498_v61 = vld [vmem:[#allocation105_spill] sm:$0xff] }
 0xbc9   :  { %v3387_v33 = vadd.f32 %v3379_v13, %v3345_v27  ;;  %v3046_v0 = vadd.f32 %v3031_v34, %v2985_v63  ;;  %v3496_v2 = vpop.permute.xlu0 %3495  ;;  %v3153_v14 = vsel %vm1939_vm9, %v12496_v62, %v12495_v54  ;;  %v12497_v52 = vld [vmem:[#allocation3_spill] sm:$0xff]  ;;  %v12499_v13 = vld [vmem:[#allocation108_spill] sm:$0xff]  ;;  %v12501_v34 = vld [vmem:[#allocation37_spill] sm:$0xff] }
 0xbca   :  { %v3449_v22 = vadd.f32 %v12489_v5, %v3388_v31  ;;  %v3108_v44 = vadd.f32 %v12491_v21, %v3047_v24  ;;  %v3558_v56 = vsel %vm1939_vm9, %v12498_v61, %v12497_v52  ;;  %v12500_v27 = vld [vmem:[#allocation136_spill] sm:$0xff]  ;;  %v12502_v31 = vld [vmem:[#allocation50_spill] sm:$0xff] }
 0xbcb   :  { %v3448_v36 = vadd.f32 %v3436_v43, %v3387_v33  ;;  %v3107_v7 = vadd.f32 %v3092_v28, %v3046_v0  ;;  %v3557_v46 = vpop.permute.xlu1 %3556  ;;  %v3214_v63 = vsel %vm2001_vm10, %v12500_v27, %v12499_v13  ;;  %v3787_v24 = vmul.f32 %v12502_v31, %v12501_v34  ;;  %v12503_v33 = vld [vmem:[#allocation89_spill] sm:$0xff]  ;;  %v12504_v21 = vld [vmem:[#allocation82_spill] sm:$0xff] }
 0xbcc   :  { %v3510_v9 = vadd.f32 %v12493_v17, %v3449_v22  ;;  %v3169_v19 = vadd.f32 %v12495_v54, %v3108_v44  ;;  %v3788_v0 = vmul.f32 %v12502_v31, %v12503_v33  ;;  %v3619_v28 = vsel %vm2001_vm10, %v12505_v59, %v12504_v21  ;;  %v12506_v22 = vld [vmem:[#allocation27_spill] sm:$0xff]  ;;  %v12507_v44 = vld [vmem:[#allocation137_spill] sm:$0xff] }
 0xbcd   :  { %v3509_v20 = vadd.f32 %v3497_v53, %v3448_v36  ;;  %v3168_v18 = vadd.f32 %v3153_v14, %v3107_v7  ;;  %v10877_v45 = vpop.permute.xlu0 %3960  ;;  %v3275_v36 = vsel %vm2063_vm11, %v12507_v44, %v12506_v22  ;;  %v12509_v53 = vld [vmem:[#allocation110_spill] sm:$0xff] }
 0xbce   :  { %v3571_v3 = vadd.f32 %v12497_v52, %v3510_v9  ;;  %v3230_v58 = vadd.f32 %v12499_v13, %v3169_v19  ;;  %v3680_v54 = vsel %vm2063_vm11, %v12509_v53, %v12508_v40  ;;  %v3386_v9 = vmul.f32 %v12485_v37, %v10450_v60  ;;  %v12514_v60 = vld [vmem:[#allocation115_spill] sm:$0xff] }
 0xbcf   :  { %v3570_v5 = vadd.f32 %v3558_v56, %v3509_v20  ;;  %v3229_v6 = vadd.f32 %v3214_v63, %v3168_v18  ;;  %v3614_v43 = vpop.permute.xlu1 %3613  ;;  %v12510_v20 = vld [vmem:[#allocation111_spill] sm:$0xff]  ;;  %v12511_v18 = vld [vmem:[#allocation104_spill] sm:$0xff]  ;;  %v12512_v56 = vld [vmem:[#allocation42_spill] sm:$0xff]  ;;  %v3385_v33 = vmul.f32 %v12485_v37, %v12514_v60  ;;  %v3439_v37 = vsel %vm1815_vm7, %v10404_v15, %v10831_v57 }
 0xbd0   :  { %v3632_v7 = vadd.f32 %v12504_v21, %v3571_v3  ;;  %v3291_v17 = vadd.f32 %v12506_v22, %v3230_v58  ;;  %v3336_v52 = vsel %vm2125_vm12, %v12511_v18, %v12510_v20  ;;  %v3438_v13 = vsel %vm1815_vm7, %v12512_v56, %v10817_v8  ;;  %v12513_v3 = vld [vmem:[#allocation24_spill] sm:$0xff]  ;;  %v12520_v56 = vld [vmem:[#allocation45_spill] sm:$0xff] }
 0xbd1   :  { %v3631_v62 = vadd.f32 %v3619_v28, %v3570_v5  ;;  %v3290_v14 = vadd.f32 %v3275_v36, %v3229_v6  ;;  %v10904_v19 = vpop.permute.xlu0 %3964  ;;  %v3453_v58 = vadd.f32 %v10817_v8, %v12513_v3  ;;  %v12515_v6 = vld [vmem:[#allocation31_spill] sm:$0xff]  ;;  %v12516_v21 = vld [vmem:[#allocation112_spill] sm:$0xff]  ;;  %v3499_v22 = vsel %vm1877_vm8, %v10414_v1, %v3492_v11 }
 0xbd2   :  { %v3693_v61 = vadd.f32 %v12508_v40, %v3632_v7  ;;  %v3352_v27 = vadd.f32 %v12510_v20, %v3291_v17  ;;  %v3741_v59 = vsel %vm2125_vm12, %v12516_v21, %v12515_v6  ;;  %v12517_v7 = vld [vmem:[#allocation69_spill] sm:$0xff]  ;;  %v12519_v20 = vld [vmem:[#allocation96_spill] sm:$0xff] }
 0xbd3   :  { %v3692_v63 = vadd.f32 %v3680_v54, %v3631_v62  ;;  %v3351_v34 = vadd.f32 %v3336_v52, %v3290_v14  ;;  %v3618_v5 = vpop.permute.xlu1 %3617  ;;  %v3452_v17 = vadd.f32 %v3438_v13, %v12517_v7  ;;  %v3514_v40 = vadd.f32 %v3492_v11, %v3453_v58  ;;  %v12518_v14 = vld [vmem:[#allocation85_spill] sm:$0xff]  ;;  %v12523_v60 = vld [vmem:[#allocation20_spill] sm:$0xff]  ;;  %v12526_v7 = vld [vmem:[#allocation99_spill] sm:$0xff] }
 0xbd4   :  { %v3754_v28 = vadd.f32 %v12515_v6, %v3693_v61  ;;  %v3394_v44 = vadd.f32 %v3386_v9, %v3352_v27  ;;  %v3844_v18 = vsel %vm1815_vm7, %v12519_v20, %v12518_v14  ;;  %v3500_v13 = vsel %vm1877_vm8, %v10424_v49, %v3496_v2  ;;  %v12521_v27 = vld [vmem:[#allocation87_spill] sm:$0xff]  ;;  %v12524_v21 = vld [vmem:[#allocation5_spill] sm:$0xff]  ;;  %v12529_v20 = vld [vmem:[#allocation120_spill] sm:$0xff] }
 0xbd5   :  { %v3753_v36 = vadd.f32 %v3741_v59, %v3692_v63  ;;  %v3393_v8 = vadd.f32 %v3385_v33, %v3351_v34  ;;  %v10925_v53 = vpop.permute.xlu0 %4021  ;;  %v3513_v9 = vadd.f32 %v3499_v22, %v3452_v17  ;;  %v3561_v33 = vsel %vm1939_vm9, %v12523_v60, %v3557_v46  ;;  %v12534_v60 = vld [vmem:[#allocation106_spill] sm:$0xff] }
 0xbd6   :  { %v3796_v54 = vadd.f32 %v3788_v0, %v3754_v28  ;;  %v3455_v62 = vadd.f32 %v10831_v57, %v3394_v44  ;;  %v3560_v0 = vsel %vm1939_vm9, %v12520_v56, %v10855_v10  ;;  %v12522_v57 = vld [vmem:[#allocation97_spill] sm:$0xff]  ;;  %v3621_v59 = vsel %vm2001_vm10, %v12524_v21, %v3614_v43 }
 0xbd7   :  { %v3795_v1 = vadd.f32 %v3787_v24, %v3753_v36  ;;  %v3454_v52 = vadd.f32 %v3439_v37, %v3393_v8  ;;  %v3675_v61 = vpop.permute.xlu1 %3674  ;;  %v3905_v63 = vsel %vm1877_vm8, %v12522_v57, %v12521_v27  ;;  %v3575_v24 = vadd.f32 %v10855_v10, %v3514_v40  ;;  %v12525_v36 = vld [vmem:[#allocation64_spill] sm:$0xff]  ;;  %v12531_v57 = vld [vmem:[#allocation93_spill] sm:$0xff] }
 0xbd8   :  { %v3857_v11 = vadd.f32 %v12518_v14, %v3796_v54  ;;  %v3516_v15 = vadd.f32 %v3496_v2, %v3455_v62  ;;  %v3574_v2 = vadd.f32 %v3560_v0, %v3513_v9  ;;  %v3966_v10 = vsel %vm1939_vm9, %v12526_v7, %v12525_v36  ;;  %v12528_v54 = vld [vmem:[#allocation101_spill] sm:$0xff]  ;;  %v12530_v9 = vld [vmem:[#allocation43_spill] sm:$0xff] }
 0xbd9   :  { %v3856_v3 = vadd.f32 %v3844_v18, %v3795_v1  ;;  %v3515_v58 = vadd.f32 %v3500_v13, %v3454_v52  ;;  %v10944_v34 = vpop.permute.xlu0 %4025  ;;  %v3636_v17 = vadd.f32 %v3614_v43, %v3575_v24  ;;  %v3682_v40 = vsel %vm2063_vm11, %v10429_v4, %v3675_v61 }
 0xbda   :  { %v3577_v6 = vadd.f32 %v3557_v46, %v3516_v15  ;;  %v3918_v49 = vadd.f32 %v12521_v27, %v3857_v11  ;;  %v12527_v46 = vld [vmem:[#allocation91_spill] sm:$0xff]  ;;  %v3635_v62 = vadd.f32 %v3621_v59, %v3574_v2  ;;  %v3791_v18 = vmul.f32 %v12502_v31, %v12529_v20 }
 0xbdb   :  { %v3576_v28 = vadd.f32 %v3561_v33, %v3515_v58  ;;  %v3679_v22 = vpop.permute.xlu1 %3678  ;;  %v3917_v44 = vadd.f32 %v3905_v63, %v3856_v3  ;;  %v4027_v37 = vsel %vm2001_vm10, %v12528_v54, %v12527_v46  ;;  %v3622_v52 = vsel %vm2001_vm10, %v12530_v9, %v3618_v5  ;;  %v12532_v63 = vld [vmem:[#allocation103_spill] sm:$0xff] }
 0xbdc   :  { %v3979_v8 = vadd.f32 %v12525_v36, %v3918_v49  ;;  %v3638_v43 = vadd.f32 %v3618_v5, %v3577_v6  ;;  %v3697_v11 = vadd.f32 %v3675_v61, %v3636_v17  ;;  %v3696_v0 = vadd.f32 %v3682_v40, %v3635_v62  ;;  %v12533_v61 = vld [vmem:[#allocation98_spill] sm:$0xff]  ;;  %v12536_v49 = vld [vmem:[#allocation52_spill] sm:$0xff] }
 0xbdd   :  { %v10960_v14 = vpop.permute.xlu0 %4082  ;;  %v3978_v1 = vadd.f32 %v3966_v10, %v3917_v44  ;;  %v3637_v56 = vadd.f32 %v3622_v52, %v3576_v28  ;;  %v3792_v15 = vmul.f32 %v12502_v31, %v10487_v29  ;;  %v4088_v3 = vsel %vm2063_vm11, %v12532_v63, %v12531_v57  ;;  %v12535_v29 = vld [vmem:[#allocation84_spill] sm:$0xff]  ;;  %v12537_v28 = vld [vmem:[#allocation9_spill] sm:$0xff]  ;;  %v12539_v52 = vld [vmem:[#allocation74_spill] sm:$0xff] }
 0xbde   :  { %v4040_v4 = vadd.f32 %v12527_v46, %v3979_v8  ;;  %v4149_v33 = vsel %vm2125_vm12, %v12534_v60, %v12533_v61  ;;  %v4196_v2 = vmul.f32 %v12536_v49, %v12535_v29  ;;  %v3683_v44 = vsel %vm2063_vm11, %v12537_v28, %v3679_v22  ;;  %v12538_v46 = vld [vmem:[#allocation51_spill] sm:$0xff]  ;;  %v12547_v28 = vld [vmem:[#allocation117_spill] sm:$0xff] }
 0xbdf   :  { %v3736_v13 = vpop.permute.xlu1 %3735  ;;  %v4039_v27 = vadd.f32 %v4027_v37, %v3978_v1  ;;  %v3699_v36 = vadd.f32 %v3679_v22, %v3638_v43  ;;  %v3698_v10 = vadd.f32 %v3683_v44, %v3637_v56  ;;  %v4195_v54 = vmul.f32 %v12536_v49, %v12538_v46  ;;  %v12549_v46 = vld [vmem:[#allocation90_spill] sm:$0xff] }
 0xbe0   :  { %v3743_v24 = vsel %vm2125_vm12, %v10457_v25, %v3736_v13  ;;  %v3758_v58 = vadd.f32 %v3736_v13, %v3697_v11  ;;  %v4101_v5 = vadd.f32 %v12531_v57, %v4040_v4  ;;  %v3794_v20 = vmul.f32 %v12502_v31, %v10503_v51  ;;  %v12541_v4 = vld [vmem:[#allocation113_spill] sm:$0xff]  ;;  %v12542_v57 = vld [vmem:[#allocation28_spill] sm:$0xff]  ;;  %v12543_v51 = vld [vmem:[#allocation114_spill] sm:$0xff] }
 0xbe1   :  { %v3757_v6 = vadd.f32 %v3743_v24, %v3696_v0  ;;  %v10978_v21 = vpop.permute.xlu0 %4086  ;;  %v4100_v59 = vadd.f32 %v4088_v3, %v4039_v27  ;;  %v3793_v43 = vmul.f32 %v12502_v31, %v12539_v52  ;;  %v4313_v63 = vsel %vm1877_vm8, %v12543_v51, %v12542_v57  ;;  %v12553_v51 = vld [vmem:[#allocation6_spill] sm:$0xff] }
 0xbe2   :  { %v3800_v7 = vadd.f32 %v3792_v15, %v3758_v58  ;;  %v4162_v25 = vadd.f32 %v12533_v61, %v4101_v5  ;;  %v12544_v58 = vld [vmem:[#allocation86_spill] sm:$0xff]  ;;  %v12545_v5 = vld [vmem:[#allocation116_spill] sm:$0xff] }
 0xbe3   :  { %v3740_v17 = vpop.permute.xlu1 %3739  ;;  %v3799_v40 = vadd.f32 %v3791_v18, %v3757_v6  ;;  %v4161_v8 = vadd.f32 %v4149_v33, %v4100_v59  ;;  %v12540_v18 = vld [vmem:[#allocation83_spill] sm:$0xff]  ;;  %v4374_v61 = vsel %vm1939_vm9, %v12545_v5, %v12544_v58  ;;  %v4594_v6 = vld [vmem:[%s11821_s3] sm:$0xff] }
 0xbe4   :  { %v3744_v37 = vsel %vm2125_vm12, %v10467_v41, %v3740_v17  ;;  %v3760_v62 = vadd.f32 %v3740_v17, %v3699_v36  ;;  %v4204_v1 = vadd.f32 %v4196_v2, %v4162_v25  ;;  %v4252_v56 = vsel %vm1815_vm7, %v12541_v4, %v12540_v18  ;;  %v4595_v33 = vld [vmem:[%s11821_s3 + $0x8] sm:$0xff]  ;;  %v12546_v2 = vld [vmem:[#allocation88_spill] sm:$0xff] }
 0xbe5   :  { %v3759_v9 = vadd.f32 %v3744_v37, %v3698_v10  ;;  %v10991_v22 = vpop.permute.xlu0 %4143  ;;  %v4203_v11 = vadd.f32 %v4195_v54, %v4161_v8  ;;  %7109 = vmatprep.subr.mxu1 %v4595_v33  ;;  %7155 = vmatprep.subr.mxu0 %v4595_v33  ;;  %v4435_v44 = vsel %vm2001_vm10, %v12547_v28, %v12546_v2  ;;  %v12548_v36 = vld [vmem:[#allocation12_spill] sm:$0xff]  ;;  %v12550_v54 = vld [vmem:[#allocation118_spill] sm:$0xff] }
 0xbe6   :  { %v3802_v0 = vadd.f32 %v3794_v20, %v3760_v62  ;;  %v4265_v13 = vadd.f32 %v12540_v18, %v4204_v1  ;;  %7110 = vmatpush3.msra.mxu1 %v4595_v33  ;;  %7156 = vmatpush3.msra.mxu0 %v4595_v33  ;;  %v4496_v37 = vsel %vm2063_vm11, %v12550_v54, %v12549_v46  ;;  %v12551_v1 = vld [vmem:[#allocation33_spill] sm:$0xff]  ;;  %v12557_v54 = vld [vmem:[#allocation10_spill] sm:$0xff] }
 0xbe7   :  { %v3839_v41 = vpop.permute.xlu1 %3838  ;;  %v3801_v15 = vadd.f32 %v3793_v43, %v3759_v9  ;;  %v4264_v27 = vadd.f32 %v4252_v56, %v4203_v11  ;;  %7111 = vmatprep.subr.mxu1 %v4594_v6  ;;  %7157 = vmatprep.subr.mxu0 %v4594_v6  ;;  %v12552_v9 = vld [vmem:[#allocation119_spill] sm:$0xff] }
 0xbe8   :  { %v4326_v3 = vadd.f32 %v12542_v57, %v4265_v13  ;;  %v3846_v25 = vsel %vm1815_vm7, %v12548_v36, %v3839_v41  ;;  %v3861_v62 = vadd.f32 %v3839_v41, %v3800_v7  ;;  %7112 = vmatpush3.msra.mxu1 %v4594_v6  ;;  %7158 = vmatpush3.msra.mxu0 %v4594_v6 }
 0xbe9   :  { %v11003_v24 = vpop.permute.xlu0 %4147  ;;  %v4325_v31 = vadd.f32 %v4313_v63, %v4264_v27  ;;  %v4557_v52 = vsel %vm2125_vm12, %v12552_v9, %v12551_v1  ;;  %v3860_v43 = vadd.f32 %v3846_v25, %v3799_v40  ;;  %v3968_v63 = vsel %vm1939_vm9, %v12553_v51, %v10877_v45 }
 0xbea   :  { %v4387_v60 = vadd.f32 %v12544_v58, %v4326_v3 }
 0xbeb   :  { %v3843_v59 = vpop.permute.xlu1 %3842  ;;  %v4386_v29 = vadd.f32 %v4374_v61, %v4325_v31  ;;  %v12554_v61 = vld [vmem:[#allocation8_spill] sm:$0xff] }
 0xbec   :  { %v4448_v10 = vadd.f32 %v12546_v2, %v4387_v60  ;;  %v3847_v4 = vsel %vm1815_vm7, %v10494_v38, %v3843_v59  ;;  %v3863_v3 = vadd.f32 %v3843_v59, %v3802_v0  ;;  %v4029_v60 = vsel %vm2001_vm10, %v12554_v61, %v10925_v53  ;;  %v12555_v2 = vld [vmem:[#allocation7_spill] sm:$0xff] }
 0xbed   :  { %v4247_v17 = vpop.permute.xlu0 %4246  ;;  %v4447_v8 = vadd.f32 %v4435_v44, %v4386_v29  ;;  %v3862_v38 = vadd.f32 %v3847_v4, %v3801_v15  ;;  %v3969_v28 = vsel %vm1939_vm9, %v12555_v2, %v10904_v19  ;;  %v12556_v44 = vld [vmem:[#allocation11_spill] sm:$0xff] }
 0xbee   :  { %v4509_v20 = vadd.f32 %v12549_v46, %v4448_v10  ;;  %v4090_v36 = vsel %vm2063_vm11, %v12556_v44, %v10960_v14 }
 0xbef   :  { %v3900_v11 = vpop.permute.xlu1 %3899  ;;  %v4508_v18 = vadd.f32 %v4496_v37, %v4447_v8  ;;  %v4200_v8 = vmul.f32 %v12536_v49, %v10578_v48  ;;  %v4030_v37 = vsel %vm2001_vm10, %v12557_v54, %v10944_v34  ;;  %v4199_v48 = vmul.f32 %v12536_v49, %v12439_v23  ;;  %v12567_v54 = vld [vmem:[#allocation150_spill] sm:$0xff] }
 0xbf0   :  { %v3907_v56 = vsel %vm1877_vm8, %v10510_v55, %v3900_v11  ;;  %v3922_v13 = vadd.f32 %v3900_v11, %v3861_v62  ;;  %v4570_v7 = vadd.f32 %v12551_v1, %v4509_v20  ;;  %v12558_v62 = vld [vmem:[#allocation139_spill] sm:$0xff] }
 0xbf1   :  { %v3921_v41 = vadd.f32 %v3907_v56, %v3860_v43  ;;  %v4251_v27 = vpop.permute.xlu0 %4250  ;;  %v4569_v57 = vadd.f32 %v4557_v52, %v4508_v18  ;;  %v4151_v20 = vsel %vm2125_vm12, %v12558_v62, %v10991_v22  ;;  %v12559_v43 = vld [vmem:[#allocation138_spill] sm:$0xff] }
 0xbf2   :  { %v3983_v40 = vadd.f32 %v10877_v45, %v3922_v13  ;;  %v11038_v31 = vadd.f32 %v12447_v47, %v4570_v7  ;;  %v4091_v11 = vsel %vm2063_vm11, %v12559_v43, %v10978_v21 }
 0xbf3   :  { %v3982_v58 = vadd.f32 %v3968_v63, %v3921_v41  ;;  %v3904_v5 = vpop.permute.xlu1 %3903  ;;  %v11041_v55 = vadd.f32 %v12447_v47, %v4569_v57  ;;  %v12561_v57 = vld [vmem:[#allocation142_spill] sm:$0xff] }
 0xbf4   :  { %v4044_v33 = vadd.f32 %v10925_v53, %v3983_v40  ;;  %v3908_v0 = vsel %vm1877_vm8, %v10520_v39, %v3904_v5  ;;  %v3924_v6 = vadd.f32 %v3904_v5, %v3863_v3  ;;  %v4254_v23 = vsel %vm1815_vm7, %v12561_v57, %v4247_v17 }
 0xbf5   :  { %v4043_v45 = vadd.f32 %v4029_v60, %v3982_v58  ;;  %v3923_v59 = vadd.f32 %v3908_v0, %v3862_v38  ;;  %v4308_v29 = vpop.permute.xlu0 %4307  ;;  %v7181_v15 = vpack.i.bf16 %v11038_v31, %v11041_v55  ;;  %v12562_v58 = vld [vmem:[#allocation146_spill] sm:$0xff] }
 0xbf6   :  { %v4105_v53 = vadd.f32 %v10960_v14, %v4044_v33  ;;  %v3985_v25 = vadd.f32 %v10904_v19, %v3924_v6  ;;  %v12563_v6 = vld [vmem:[#allocation144_spill] sm:$0xff] }
 0xbf7   :  { %v4104_v39 = vadd.f32 %v4090_v36, %v4043_v45  ;;  %v3984_v10 = vadd.f32 %v3969_v28, %v3923_v59  ;;  %v4430_v46 = vpop.permute.xlu1 %4429  ;;  %7182 = vrot.lane.b32.xlu0 %v7181_v15, %s7475_s29  ;;  %v4255_v45 = vsel %vm1815_vm7, %v12563_v6, %v4251_v27  ;;  %v12564_v59 = vld [vmem:[#allocation149_spill] sm:$0xff]  ;;  %v12566_v36 = vld [vmem:[#allocation148_spill] sm:$0xff] }
 0xbf8   :  { %v4046_v14 = vadd.f32 %v10944_v34, %v3985_v25  ;;  %v4166_v19 = vadd.f32 %v10991_v22, %v4105_v53  ;;  %v4202_v34 = vmul.f32 %v12536_v49, %v10592_v50  ;;  %v12560_v22 = vld [vmem:[#allocation140_spill] sm:$0xff]  ;;  %v4315_v50 = vsel %vm1877_vm8, %v12562_v58, %v4308_v29 }
 0xbf9   :  { %v4045_v1 = vadd.f32 %v4030_v37, %v3984_v10  ;;  %v4165_v9 = vadd.f32 %v4151_v20, %v4104_v39  ;;  %v4312_v52 = vpop.permute.xlu0 %4311  ;;  %v4152_v41 = vsel %vm2125_vm12, %v12560_v22, %v11003_v24 }
 0xbfa   :  { %v4107_v18 = vadd.f32 %v10978_v21, %v4046_v14  ;;  %v4208_v4 = vadd.f32 %v4200_v8, %v4166_v19  ;;  %v4201_v21 = vmul.f32 %v12536_v49, %v12441_v12  ;;  %v12565_v49 = vld [vmem:[#allocation141_spill] sm:$0xff]  ;;  %v12568_v14 = vld [vmem:[#allocation143_spill] sm:$0xff] }
 0xbfb   :  { %v4106_v56 = vadd.f32 %v4091_v11, %v4045_v1  ;;  %v4207_v13 = vadd.f32 %v4199_v48, %v4165_v9  ;;  %v4434_v7 = vpop.permute.xlu1 %4433  ;;  %v4437_v44 = vsel %vm2001_vm10, %v12565_v49, %v4430_v46  ;;  %v12569_v1 = vld [vmem:[#allocation145_spill] sm:$0xff] }
 0xbfc   :  { %v4269_v51 = vadd.f32 %v4247_v17, %v4208_v4  ;;  %v4168_v63 = vadd.f32 %v11003_v24, %v4107_v18  ;;  %v4438_v19 = vsel %vm2001_vm10, %v12568_v14, %v4434_v7 }
 0xbfd   :  { %v4268_v3 = vadd.f32 %v4254_v23, %v4207_v13  ;;  %v4167_v40 = vadd.f32 %v4152_v41, %v4106_v56  ;;  %v4369_v38 = vpop.permute.xlu0 %4368  ;;  %v12570_v13 = vld [vmem:[#allocation147_spill] sm:$0xff] }
 0xbfe   :  { %v4330_v5 = vadd.f32 %v4308_v29, %v4269_v51  ;;  %v4210_v61 = vadd.f32 %v4202_v34, %v4168_v63  ;;  %v4376_v24 = vsel %vm1939_vm9, %v12564_v59, %v4369_v38  ;;  %v4316_v29 = vsel %vm1877_vm8, %v12566_v36, %v4312_v52 }
 0xbff   :  { %v4329_v60 = vadd.f32 %v4315_v50, %v4268_v3  ;;  %v4209_v33 = vadd.f32 %v4201_v21, %v4167_v40  ;;  %v4491_v0 = vpop.permute.xlu1 %4490 }
 0xc00   :  { %v4271_v17 = vadd.f32 %v4251_v27, %v4210_v61  ;;  %v4391_v15 = vadd.f32 %v4369_v38, %v4330_v5  ;;  %v4498_v9 = vsel %vm2063_vm11, %v12569_v1, %v4491_v0 }
 0xc01   :  { %v4270_v2 = vadd.f32 %v4255_v45, %v4209_v33  ;;  %v4390_v28 = vadd.f32 %v4376_v24, %v4329_v60  ;;  %v4373_v12 = vpop.permute.xlu0 %4372 }
 0xc02   :  { %v4332_v53 = vadd.f32 %v4312_v52, %v4271_v17  ;;  %v4452_v25 = vadd.f32 %v4430_v46, %v4391_v15  ;;  %v4377_v27 = vsel %vm1939_vm9, %v12567_v54, %v4373_v12 }
 0xc03   :  { %v4331_v39 = vadd.f32 %v4316_v29, %v4270_v2  ;;  %v4451_v10 = vadd.f32 %v4437_v44, %v4390_v28  ;;  %v4495_v8 = vpop.permute.xlu1 %4494  ;;  %v4610_v44 = vld [vmem:[%s11822_s4] sm:$0xff] }
 0xc04   :  { %v4393_v37 = vadd.f32 %v4373_v12, %v4332_v53  ;;  %v4513_v48 = vadd.f32 %v4491_v0, %v4452_v25  ;;  %v4499_v34 = vsel %vm2063_vm11, %v12570_v13, %v4495_v8  ;;  %7119 = vmatprep.subr.mxu1 %v4610_v44 }
 0xc05   :  { %v4392_v62 = vadd.f32 %v4377_v27, %v4331_v39  ;;  %v4550_v20 = vpop.permute.xlu0 %4549  ;;  %v4512_v11 = vadd.f32 %v4498_v9, %v4451_v10 }
 0xc06   :  { %v4454_v43 = vadd.f32 %v4434_v7, %v4393_v37 }
 0xc07   :  { %v4453_v52 = vadd.f32 %v4438_v19, %v4392_v62  ;;  %v4552_v46 = vpop.permute.xlu1 %4551 }
 0xc08   :  { %v4559_v18 = vsel %vm2125_vm12, %v4550_v20, %v4552_v46  ;;  %v4574_v4 = vadd.f32 %v4552_v46, %v4513_v48  ;;  %v4515_v22 = vadd.f32 %v4495_v8, %v4454_v43 }
 0xc09   :  { %v4573_v56 = vadd.f32 %v4559_v18, %v4512_v11  ;;  %v4514_v57 = vadd.f32 %v4499_v34, %v4453_v52  ;;  %v4554_v51 = vpop.permute.xlu0 %4553 }
 0xc0a   :  { %v11106_v41 = vadd.f32 %v12447_v47, %v4574_v4 }
 0xc0b   :  { %v11109_v23 = vadd.f32 %v12447_v47, %v4573_v56  ;;  %v4556_v7 = vpop.permute.xlu1 %4555 }
 0xc0c   :  { %v4560_v63 = vsel %vm2125_vm12, %v4554_v51, %v4556_v7  ;;  %v4576_v3 = vadd.f32 %v4556_v7, %v4515_v22 }
 0xc0d   :  { %v7191_v40 = vpack.i.bf16 %v11106_v41, %v11109_v23  ;;  %v4575_v21 = vadd.f32 %v4560_v63, %v4514_v57 }
 0xc0e   :  { %v11115_v38 = vadd.f32 %v12447_v47, %v4576_v3 }
 0xc0f   :  { %v11118_v58 = vadd.f32 %v12447_v47, %v4575_v21  ;;  %7192 = vrot.lane.b32.xlu0 %v7191_v40, %s7475_s29  ;;  %v7188_v5 = vpop.permute.xlu1 %7187 }
 0xc10   :  { %v7190_v61 = vunpack.i.h.bf16 %v7188_v5  ;;  %v7189_v60 = vunpack.i.l.bf16 %v7188_v5 }
 0xc11   :  { %v7196_v50 = vpack.i.bf16 %v11115_v38, %v11118_v58 }
 0xc12   :  { %v4636_v17 = vsel %vm1815_vm7, %v7189_v60, %v7190_v61 }
 0xc13   :  { %7197 = vrot.lane.b32.xlu1 %v7196_v50, %s7475_s29 }
 0xc69   :  { %v7183_v33 = vpop.permute.xlu0 %7182 }
 0xc6a   :  { %v7185_v0 = vunpack.i.h.bf16 %v7183_v33  ;;  %v7184_v6 = vunpack.i.l.bf16 %v7183_v33 }
 0xc6c   :  { %v4635_v45 = vsel %vm1815_vm7, %v7184_v6, %v7185_v0 }
 0xc6d   :  { %7113 = vmatprep.mubr.f32.mxu1 %v4635_v45 }
 0xc6e   :  { %7114 = vmatmul.mubr.f32.vlgmr.msra.gmra.mxu1 %v4636_v17 }
 0xc6f   :  { %7120 = vmatpush3.msra.mxu1 %v4610_v44 }
 0xc70   :  { %7165 = vmatprep.subr.mxu1 %v4610_v44 }
 0xc81   :  { %v7193_v47 = vpop.permute.xlu0 %7192 }
 0xc82   :  { %v7195_v59 = vunpack.i.h.bf16 %v7193_v47  ;;  %v7194_v24 = vunpack.i.l.bf16 %v7193_v47 }
 0xc84   :  { %v4637_v15 = vsel %vm1815_vm7, %v7194_v24, %v7195_v59  ;;  %v12571_v59 = vmov 0  }
 0xc85   :  { %7116 = vmatprep.mubr.f32.mxu1 %v4637_v15  ;;  %v7198_v2 = vpop.permute.xlu1 %7197 }
 0xc86   :  { %v7200_v28 = vunpack.i.h.bf16 %v7198_v2  ;;  %v7199_v12 = vunpack.i.l.bf16 %v7198_v2 }
 0xc88   :  { %v4638_v49 = vsel %vm1815_vm7, %v7199_v12, %v7200_v28 }
 0xc89   :  { %7117 = vmatmul.mubr.f32.gmra.mxu1 %v4638_v49 }
 0xd2e   :  { %v7115_v36 = vpop.f32.mrf.mxu1 }
 0xd2f   :  { %v4729_v25 = vmul.f32 0.0625, %v7115_v36 }
 0xd30   :  { %v4709_v29 = vpop.f32.mrf.mxu1 }
 0xd31   :  { %v4728_v53 = vmul.f32 0.0625, %v4709_v29 }
 0xd33   :  { %7121 = vmatprep.mubr.msk.f32.mxu1 %vm4732_vm13, %v4728_v53 }
 0xd34   :  { %7122 = vmatmul.mubr.msk.f32.vlgmr.msra.gmra.mxu1 %vm4732_vm13, %v4729_v25 }
 0xd35   :  { %7166 = vmatpush3.msra.mxu1 %v4610_v44 }
 0xd49   :  { %v7118_v39 = vpop.f32.mrf.mxu1 }
 0xd4a   :  { %v4731_v54 = vmul.f32 0.0625, %v7118_v39 }
 0xd4b   :  { %v4719_v10 = vpop.f32.mrf.mxu1 }
 0xd4c   :  { %v4730_v8 = vmul.f32 0.0625, %v4719_v10 }
 0xd4e   :  { %7124 = vmatprep.mubr.msk.f32.mxu1 %vm4732_vm13, %v4730_v8 }
 0xd4f   :  { %7125 = vmatmul.mubr.msk.f32.gmra.mxu1 %vm4732_vm13, %v4731_v54 }
 0xdf4   :  { %v7123_v27 = vpop.f32.mrf.mxu1 }
 0xdf5   :  { %4836 = vrot.lane.b32.xlu1 %v7123_v27, %s7476_s22 }
 0xdf6   :  { %v4811_v37 = vpop.f32.mrf.mxu1 }
 0xdf7   :  { %4834 = vrot.lane.b32.xlu0 %v4811_v37, %s7476_s22 }
 0xe0f   :  { %v7126_v62 = vpop.f32.mrf.mxu1 }
 0xe10   :  { %4840 = vrot.lane.b32.xlu1 %v7126_v62, %s7476_s22 }
 0xe11   :  { %v4821_v20 = vpop.f32.mrf.mxu1 }
 0xe12   :  { %4838 = vrot.lane.b32.xlu0 %v4821_v20, %s7476_s22  ;;  %v7293_v20 = vld [vmem:[%s11823_s9 + $0xe0] ss:$16 sps:$4 sm:$0xff]  }
 0xe67   :  { %v4837_v14 = vpop.permute.xlu1 %4836 }
 0xe68   :  { %v11140_v19 = vsub.f32 %v10724_v16, %v4837_v14  ;;  %v11143_v1 = vsub.f32 %v10715_v32, %v4837_v14  ;;  %v7295_v14 = vld [vmem:[%s11823_s9 + $0xe4] ss:$16 sps:$4 sm:$0xff]  }
 0xe69   :  { %v4835_v9 = vpop.permute.xlu0 %4834  ;;  %5343 = vmatprep.subr.bf16.mxu1 %v7295_v14 }
 0xe6a   :  { %v4856_v48 = vmul.f32 %v11140_v19, %v11140_v19  ;;  %v4857_v43 = vmul.f32 %v11143_v1, %v11143_v1  ;;  %v11150_v11 = vsub.f32 %v11041_v55, %v4835_v9  ;;  %v11153_v52 = vsub.f32 %v11038_v31, %v4835_v9  ;;  %v7296_v9 = vld [vmem:[%s11823_s9 + $0xe8] ss:$16 sps:$4 sm:$0xff]  }
 0xe6c   :  { %v7206_v46 = vpack.i.bf16 %v4857_v43, %v4856_v48  ;;  %v4854_v16 = vmul.f32 %v11150_v11, %v11150_v11  ;;  %v4855_v32 = vmul.f32 %v11153_v52, %v11153_v52  ;;  %v7298_v48 = vld [vmem:[%s11823_s9 + $0xec] ss:$16 sps:$4 sm:$0xff]   ;;  %v7299_v43 = vld [vmem:[%s11823_s9 + $0xc0] ss:$16 sps:$4 sm:$0xff]  }
 0xe6d   :  { %5396 = vmatprep.subr.bf16.mxu0 %v7298_v48 }
 0xe6e   :  { %v7201_v18 = vpack.i.bf16 %v4855_v32, %v4854_v16  ;;  %7207 = vrot.lane.b32.xlu1 %v7206_v46, %s7475_s29  ;;  %v7301_v46 = vld [vmem:[%s11823_s9 + $0xc4] ss:$16 sps:$4 sm:$0xff]   ;;  %v7302_v16 = vld [vmem:[%s11823_s9 + $0xc8] ss:$16 sps:$4 sm:$0xff]  }
 0xe70   :  { %7202 = vrot.lane.b32.xlu0 %v7201_v18, %s7475_s29  ;;  %v7304_v18 = vld [vmem:[%s11823_s9 + $0xcc] ss:$16 sps:$4 sm:$0xff]  }
 0xe82   :  { %v4841_v4 = vpop.permute.xlu1 %4840 }
 0xe83   :  { %v11162_v56 = vsub.f32 %v11118_v58, %v4841_v4  ;;  %v11165_v55 = vsub.f32 %v11115_v38, %v4841_v4  ;;  %v7307_v4 = vld [vmem:[%s11823_s9 + $0xa4] ss:$16 sps:$4 sm:$0xff]  }
 0xe84   :  { %v4839_v31 = vpop.permute.xlu0 %4838 }
 0xe85   :  { %v4860_v13 = vmul.f32 %v11162_v56, %v11162_v56  ;;  %v4861_v34 = vmul.f32 %v11165_v55, %v11165_v55  ;;  %v11172_v22 = vsub.f32 %v11109_v23, %v4839_v31  ;;  %v11175_v57 = vsub.f32 %v11106_v41, %v4839_v31 }
 0xe87   :  { %v7216_v51 = vpack.i.bf16 %v4861_v34, %v4860_v13  ;;  %v4858_v7 = vmul.f32 %v11172_v22, %v11172_v22  ;;  %v4859_v63 = vmul.f32 %v11175_v57, %v11175_v57  ;;  %v7305_v13 = vld [vmem:[%s11823_s9 + $0xa0] ss:$16 sps:$4 sm:$0xff]   ;;  %v7310_v34 = vld [vmem:[%s11823_s9 + $0xac] ss:$16 sps:$4 sm:$0xff]  }
 0xe89   :  { %v7211_v3 = vpack.i.bf16 %v4859_v63, %v4858_v7  ;;  %7217 = vrot.lane.b32.xlu1 %v7216_v51, %s7475_s29  ;;  %v7308_v51 = vld [vmem:[%s11823_s9 + $0xa8] ss:$16 sps:$4 sm:$0xff]   ;;  %v7313_v7 = vld [vmem:[%s11823_s9 + $0x84] ss:$16 sps:$4 sm:$0xff]   ;;  %v7316_v63 = vld [vmem:[%s11823_s9 + $0x8c] ss:$16 sps:$4 sm:$0xff]  }
 0xe8b   :  { %7212 = vrot.lane.b32.xlu0 %v7211_v3, %s7475_s29  ;;  %v7311_v3 = vld [vmem:[%s11823_s9 + $0x80] ss:$16 sps:$4 sm:$0xff]  }
 0xee0   :  { %v7208_v40 = vpop.permute.xlu1 %7207 }
 0xee1   :  { %v7210_v21 = vunpack.i.h.bf16 %v7208_v40  ;;  %v7209_v38 = vunpack.i.l.bf16 %v7208_v40  ;;  %v7314_v40 = vld [vmem:[%s11823_s9 + $0x88] ss:$16 sps:$4 sm:$0xff]  }
 0xee2   :  { %v7203_v23 = vpop.permute.xlu0 %7202 }
 0xee3   :  { %v7205_v58 = vunpack.i.h.bf16 %v7203_v23  ;;  %v7204_v50 = vunpack.i.l.bf16 %v7203_v23  ;;  %v4887_v5 = vsel %vm1815_vm7, %v7209_v38, %v7210_v21  ;;  %v7319_v21 = vld [vmem:[%s11823_s9 + $0x64] ss:$16 sps:$4 sm:$0xff]   ;;  %v7322_v38 = vld [vmem:[%s11823_s9 + $0x6c] ss:$16 sps:$4 sm:$0xff]   ;;  %v7317_v23 = vld [vmem:[%s11823_s9 + $0x60] ss:$16 sps:$4 sm:$0xff]  }
 0xee5   :  { %v4886_v41 = vsel %vm1815_vm7, %v7204_v50, %v7205_v58  ;;  %v7320_v58 = vld [vmem:[%s11823_s9 + $0x68] ss:$16 sps:$4 sm:$0xff]   ;;  %v7325_v50 = vld [vmem:[%s11823_s9 + $0x44] ss:$16 sps:$4 sm:$0xff]  }
 0xee6   :  { %7159 = vmatprep.mubr.f32.mxu0 %v4886_v41  ;;  %v7328_v41 = vld [vmem:[%s11823_s9 + $0x4c] ss:$16 sps:$4 sm:$0xff]  }
 0xee7   :  { %7160 = vmatmul.mubr.f32.vlgmr.msra.gmra.mxu0 %v4887_v5  ;;  %v7323_v5 = vld [vmem:[%s11823_s9 + $0x40] ss:$16 sps:$4 sm:$0xff]  }
 0xee8   :  { %5397 = vmatpush1.bf16.msra.mxu0 %v7296_v9 }
 0xee9   :  { %5398 = vmatprep.subr.bf16.mxu0 %v7304_v18 }
 0xeec   :  { %5399 = vmatpush1.bf16.msra.mxu0 %v7302_v16 }
 0xeed   :  { %5400 = vmatprep.subr.bf16.mxu0 %v7310_v34 }
 0xef0   :  { %5401 = vmatpush1.bf16.msra.mxu0 %v7308_v51  ;;  %v7344_v51 = vld [vmem:[%s11825_s11 + $0xb8] sm:$0xff]  }
 0xef1   :  { %5402 = vmatprep.subr.bf16.mxu0 %v7316_v63 }
 0xef4   :  { %5403 = vmatpush1.bf16.msra.mxu0 %v7314_v40 }
 0xef5   :  { %5404 = vmatprep.subr.bf16.mxu0 %v7322_v38 }
 0xef8   :  { %5405 = vmatpush1.bf16.msra.mxu0 %v7320_v58 }
 0xef9   :  { %5406 = vmatprep.subr.bf16.mxu0 %v7328_v41 }
 0xefb   :  { %v7218_v61 = vpop.permute.xlu1 %7217 }
 0xefc   :  { %v7220_v60 = vunpack.i.h.bf16 %v7218_v61  ;;  %v7219_v33 = vunpack.i.l.bf16 %v7218_v61  ;;  %v7326_v61 = vld [vmem:[%s11823_s9 + $0x48] ss:$16 sps:$4 sm:$0xff]  }
 0xefd   :  { %v7213_v0 = vpop.permute.xlu0 %7212  ;;  %5407 = vmatpush1.bf16.msra.mxu0 %v7326_v61 }
 0xefe   :  { %v7215_v6 = vunpack.i.h.bf16 %v7213_v0  ;;  %v7214_v45 = vunpack.i.l.bf16 %v7213_v0  ;;  %v4889_v47 = vsel %vm1815_vm7, %v7219_v33, %v7220_v60  ;;  %v7331_v60 = vld [vmem:[%s11823_s9 + $0x24] ss:$16 sps:$4 sm:$0xff]   ;;  %v7334_v33 = vld [vmem:[%s11823_s9 + $0x2c] ss:$16 sps:$4 sm:$0xff]   ;;  %v7329_v0 = vld [vmem:[%s11823_s9 + $0x20] ss:$16 sps:$4 sm:$0xff]  }
 0xeff   :  { %5408 = vmatprep.subr.bf16.mxu0 %v7334_v33 }
 0xf00   :  { %v4888_v17 = vsel %vm1815_vm7, %v7214_v45, %v7215_v6  ;;  %v7332_v6 = vld [vmem:[%s11823_s9 + $0x28] ss:$16 sps:$4 sm:$0xff]   ;;  %v7337_v45 = vld [vmem:[%s11823_s9 + $0x4] ss:$16 sps:$4 sm:$0xff]  }
 0xf01   :  { %7162 = vmatprep.mubr.f32.mxu0 %v4888_v17  ;;  %v7340_v17 = vld [vmem:[%s11823_s9 + $0xc] ss:$16 sps:$4 sm:$0xff]   ;;  %5409 = vmatpush1.bf16.msra.mxu0 %v7332_v6 }
 0xf02   :  { %7163 = vmatmul.mubr.f32.gmra.mxu0 %v4889_v47  ;;  %v7335_v47 = vld [vmem:[%s11823_s9] ss:$16 sps:$4 sm:$0xff]   ;;  %5410 = vmatprep.subr.bf16.mxu0 %v7340_v17 }
 0xf03   :  { %5428 = vmatprep.mubr.bf16.mxu0 %v12571_v59 }
 0xfa7   :  { %v7161_v24 = vpop.f32.mrf.mxu0 }
 0xfa8   :  { %v4980_v28 = vmul.f32 0.0625, %v7161_v24  ;;  %v7338_v24 = vld [vmem:[%s11823_s9 + $0x8] ss:$16 sps:$4 sm:$0xff]  }
 0xfa9   :  { %v4960_v15 = vpop.f32.mrf.mxu0  ;;  %5411 = vmatpush1.bf16.msra.mxu0 %v7338_v24  ;;  %v7345_v24 = vld [vmem:[%s11825_s11 + $0x70] sm:$0xff]  }
 0xfaa   :  { %v4979_v2 = vmul.f32 0.0625, %v4960_v15 }
 0xfac   :  { %7167 = vmatprep.mubr.msk.f32.mxu1 %vm4732_vm13, %v4979_v2 }
 0xfad   :  { %7168 = vmatmul.mubr.msk.f32.vlgmr.msra.gmra.mxu1 %vm4732_vm13, %v4980_v28 }
 0xfae   :  { %5344 = vmatpush1.bf16.msra.mxu1 %v7293_v20 }
 0xfaf   :  { %5345 = vmatprep.subr.bf16.mxu1 %v7301_v46 }
 0xfb2   :  { %5346 = vmatpush1.bf16.msra.mxu1 %v7299_v43  ;;  %v7342_v43 = vld [vmem:[%s11825_s11 + $0xf8] sm:$0xff]  }
 0xfb3   :  { %5347 = vmatprep.subr.bf16.mxu1 %v7307_v4  ;;  %6765 = vmatprep.subr.bf16.mxu0 %v7342_v43 }
 0xfb6   :  { %5348 = vmatpush1.bf16.msra.mxu1 %v7305_v13 }
 0xfb7   :  { %5349 = vmatprep.subr.bf16.mxu1 %v7313_v7 }
 0xfba   :  { %5350 = vmatpush1.bf16.msra.mxu1 %v7311_v3 }
 0xfbb   :  { %5351 = vmatprep.subr.bf16.mxu1 %v7319_v21 }
 0xfbe   :  { %5352 = vmatpush1.bf16.msra.mxu1 %v7317_v23 }
 0xfbf   :  { %5353 = vmatprep.subr.bf16.mxu1 %v7325_v50 }
 0xfc2   :  { %v7164_v12 = vpop.f32.mrf.mxu0  ;;  %5354 = vmatpush1.bf16.msra.mxu1 %v7323_v5 }
 0xfc3   :  { %v4982_v36 = vmul.f32 0.0625, %v7164_v12  ;;  %5355 = vmatprep.subr.bf16.mxu1 %v7331_v60 }
 0xfc4   :  { %v4970_v49 = vpop.f32.mrf.mxu0 }
 0xfc5   :  { %v4981_v44 = vmul.f32 0.0625, %v4970_v49 }
 0xfc6   :  { %5356 = vmatpush1.bf16.msra.mxu1 %v7329_v0 }
 0xfc7   :  { %7170 = vmatprep.mubr.msk.f32.mxu1 %vm4732_vm13, %v4981_v44  ;;  %5357 = vmatprep.subr.bf16.mxu1 %v7337_v45 }
 0xfc8   :  { %7171 = vmatmul.mubr.msk.f32.gmra.mxu1 %vm4732_vm13, %v4982_v36 }
 0xfc9   :  { %5375 = vmatprep.mubr.bf16.mxu1 %v12571_v59 }
 0xfca   :  { %5358 = vmatpush1.bf16.msra.mxu1 %v7335_v47 }
0x106d   :  { %v7169_v29 = vpop.f32.mrf.mxu1 }
0x106e   :  { %v5067_v53 = vadd.f32 1e-06, %v7169_v29 }
0x106f   :  { %v5061_v25 = vpop.f32.mrf.mxu1 }
0x1070   :  { %7397 = vrsqrt.f32 %v5067_v53  ;;  %v5062_v39 = vadd.f32 1e-06, %v5061_v25 }
0x1072   :  { %7399 = vrsqrt.f32 %v5062_v39 }
0x107d   :  { %v7398_v10 = vpop.eup %7397 }
0x107e   :  { %5090 = vrot.lane.b32.xlu1 %v7398_v10, %s7476_s22 }
0x107f   :  { %v7400_v8 = vpop.eup %7399 }
0x1080   :  { %5088 = vrot.lane.b32.xlu0 %v7400_v8, %s7476_s22 }
0x1088   :  { %v7172_v54 = vpop.f32.mrf.mxu1 }
0x1089   :  { %v5077_v27 = vadd.f32 1e-06, %v7172_v54 }
0x108a   :  { %v5071_v37 = vpop.f32.mrf.mxu1 }
0x108b   :  { %7401 = vrsqrt.f32 %v5077_v27  ;;  %v5072_v62 = vadd.f32 1e-06, %v5071_v37 }
0x108d   :  { %7403 = vrsqrt.f32 %v5072_v62  ;;  %v5144_v62 = vld [vmem:[%s11824_s10] sm:$0xf] }
0x1098   :  { %v7402_v32 = vpop.eup %7401 }
0x1099   :  { %5094 = vrot.lane.b32.xlu1 %v7402_v32, %s7476_s22 }
0x109a   :  { %v7404_v31 = vpop.eup %7403 }
0x109b   :  { %5092 = vrot.lane.b32.xlu0 %v7404_v31, %s7476_s22  ;;  %v7343_v31 = vld [vmem:[%s11825_s11 + $0x38] sm:$0xff]  }
0x10f0   :  { %v5091_v15 = vpop.permute.xlu1 %5090 }
0x10f1   :  { %v5102_v28 = vmul.f32 %v5091_v15, %v11140_v19  ;;  %v5103_v12 = vmul.f32 %v5091_v15, %v11143_v1  ;;  %v7346_v15 = vld [vmem:[%s11825_s11 + $0xf0] sm:$0xff]  }
0x10f2   :  { %v5089_v2 = vpop.permute.xlu0 %5088 }
0x10f3   :  { %v5100_v49 = vmul.f32 %v5089_v2, %v11150_v11  ;;  %v5101_v44 = vmul.f32 %v5089_v2, %v11153_v52  ;;  %v7347_v2 = vld [vmem:[%s11825_s11 + $0x30] sm:$0xff]  }
0x10f5   :  { %v5108_v36 = vpack.c.bf16 %v5102_v28, %v5100_v49  ;;  %v5109_v29 = vpack.c.bf16 %v5103_v12, %v5101_v44 }
0x10f7   :  { %5172 = vrot.lane.b32.xlu1 %v5109_v29, %s7475_s29  ;;  %5170 = vrot.lane.b32.xlu0 %v5108_v36, %s7475_s29 }
0x110b   :  { %v5095_v53 = vpop.permute.xlu1 %5094 }
0x110c   :  { %v5106_v39 = vmul.f32 %v5095_v53, %v11162_v56  ;;  %v5107_v10 = vmul.f32 %v5095_v53, %v11165_v55 }
0x110d   :  { %v5093_v25 = vpop.permute.xlu0 %5092 }
0x110e   :  { %v5104_v19 = vmul.f32 %v5093_v25, %v11172_v22  ;;  %v5105_v1 = vmul.f32 %v5093_v25, %v11175_v57  ;;  %v12572_v57 = vld [vmem:[#allocation2_spill] sm:$0xff] }
0x110f   :  { %v5156_v37 = vsub.s32 2, %v12572_v57  ;;  %v5160_v20 = vsub.s32 3, %v12572_v57  ;;  %v12573_v14 = vsub.s32 0, %v12572_v57  ;;  %v12574_v32 = vsub.s32 1, %v12572_v57  ;;  %v7351_v57 = vld [vmem:[%s11825_s11 + $0x28] sm:$0xff]  }
0x1110   :  { %v5110_v8 = vpack.c.bf16 %v5106_v39, %v5104_v19  ;;  %v5111_v11 = vpack.c.bf16 %v5107_v10, %v5105_v1  ;;  %v7348_v19 = vld [vmem:[%s11825_s11 + $0xb0] sm:$0xff]   ;;  %v7349_v1 = vld [vmem:[%s11825_s11 + $0x68] sm:$0xff]  }
0x1111   :  { %v11316_v9 = vrot.slane %v5144_v62, %v12573_v14  ;;  %v11318_v48 = vrot.slane %v5144_v62, %v5156_v37  ;;  %v11328_v18 = vrot.slane %v5144_v62, %v12574_v32  ;;  %v11330_v4 = vrot.slane %v5144_v62, %v5160_v20 }
0x1112   :  { %5176 = vrot.lane.b32.xlu1 %v5111_v11, %s7475_s29  ;;  %5174 = vrot.lane.b32.xlu0 %v5110_v8, %s7475_s29 }
0x1169   :  { %v5173_v52 = vpop.permute.xlu1 %5172  ;;  %v5171_v54 = vpop.permute.xlu0 %5170 }
0x116a   :  { %v5179_v27 = vsel %vm1815_vm7, %v5171_v54, %v5173_v52  ;;  %v7350_v52 = vld [vmem:[%s11825_s11 + $0xe8] sm:$0xff]  }
0x116b   :  { %5376 = vmatmul.mubr.bf16.vlgmr.msra.gmra.mxu1 %v5179_v27  ;;  %5429 = vmatmul.mubr.bf16.vlgmr.msra.gmra.mxu0 %v5179_v27 }
0x116c   :  { %5385 = vmatprep.mubr.bf16.mxu1 %v12571_v59  ;;  %5438 = vmatprep.mubr.bf16.mxu0 %v12571_v59  ;;  %v7341_v59 = vld [vmem:[%s11825_s11 + $0x78] sm:$0xff]  }
0x116d   :  { %6737 = vmatprep.subr.bf16.mxu1 %v7341_v59  ;;  %6766 = vmatpush3.bf16.msra.mxu0 %v7344_v51  ;;  %v7353_v51 = vld [vmem:[%s11825_s11 + $0x60] sm:$0xff]  }
0x116e   :  { %6738 = vmatpush3.bf16.msra.mxu1 %v7343_v31  ;;  %6767 = vmatprep.subr.bf16.mxu0 %v7346_v15 }
0x116f   :  { %6739 = vmatprep.subr.bf16.mxu1 %v7345_v24 }
0x1171   :  { %6768 = vmatpush3.bf16.msra.mxu0 %v7348_v19 }
0x1172   :  { %6740 = vmatpush3.bf16.msra.mxu1 %v7347_v2  ;;  %6769 = vmatprep.subr.bf16.mxu0 %v7350_v52 }
0x1173   :  { %6741 = vmatprep.subr.bf16.mxu1 %v7349_v1 }
0x1176   :  { %6742 = vmatpush3.bf16.msra.mxu1 %v7351_v57 }
0x1177   :  { %6743 = vmatprep.subr.bf16.mxu1 %v7353_v51 }
0x1184   :  { %v5177_v56 = vpop.permute.xlu1 %5176  ;;  %v5175_v55 = vpop.permute.xlu0 %5174 }
0x1185   :  { %v5180_v22 = vsel %vm1815_vm7, %v5175_v55, %v5177_v56 }
0x1186   :  { %5386 = vmatmul.mubr.bf16.gmra.mxu1 %v5180_v22  ;;  %5439 = vmatmul.mubr.bf16.gmra.mxu0 %v5180_v22 }
0x122b   :  { %v5377_v46 = vpop.f32.mrf.mxu1  ;;  %v5430_v16 = vpop.f32.mrf.mxu0 }
0x122c   :  { %v11336_v13 = vadd.f32 %v5377_v46, %v11316_v9  ;;  %v11339_v34 = vadd.f32 %v5430_v16, %v11318_v48  ;;  %v7352_v16 = vld [vmem:[%s11825_s11 + $0xa8] sm:$0xff]  }
0x122d   :  { %v5379_v7 = vpop.f32.mrf.mxu1  ;;  %v5432_v63 = vpop.f32.mrf.mxu0  ;;  %6770 = vmatpush3.bf16.msra.mxu0 %v7352_v16 }
0x122e   :  { %v11345_v3 = vmul.f32 0.70710677, %v11336_v13  ;;  %v11348_v40 = vmul.f32 0.70710677, %v11339_v34  ;;  %v11351_v21 = vadd.f32 %v5379_v7, %v11328_v18  ;;  %v11354_v38 = vadd.f32 %v5432_v63, %v11330_v4 }
0x122f   :  { %v5381_v33 = vpop.f32.mrf.mxu1  ;;  %v5434_v29 = vpop.f32.mrf.mxu0 }
0x1230   :  { %v5481_v23 = vand.u32 2147483647, %v11345_v3  ;;  %v5483_v58 = vand.u32 2147483647, %v11348_v40  ;;  %v11359_v50 = vmul.f32 0.70710677, %v11351_v21  ;;  %v11376_v36 = vadd.f32 %v5381_v33, %v11316_v9 }
0x1231   :  { %v11362_v41 = vmul.f32 0.70710677, %v11354_v38  ;;  %v5383_v53 = vpop.f32.mrf.mxu1  ;;  %v11391_v54 = vadd.f32 %v5434_v29, %v11318_v48  ;;  %v5436_v22 = vpop.f32.mrf.mxu0  ;;  %vm5785_vm14 = vcmp.lt.f32.partialorder %v11345_v3, 0.0  ;;  %vm5787_vm2 = vcmp.lt.f32.partialorder %v11348_v40, 0.0 }
0x1232   :  { %v5497_v5 = vmul.f32 0.3275911, %v5481_v23  ;;  %v5689_v61 = vsub.f32 0.0, %v5481_v23  ;;  %v5499_v60 = vmul.f32 0.3275911, %v5483_v58  ;;  %v5691_v0 = vsub.f32 0.0, %v5483_v58 }
0x1233   :  { %v5482_v6 = vand.u32 2147483647, %v11359_v50  ;;  %v5484_v45 = vand.u32 2147483647, %v11362_v41  ;;  %v11385_v11 = vmul.f32 0.70710677, %v11376_v36  ;;  %v11394_v27 = vadd.f32 %v5383_v53, %v11328_v18 }
0x1234   :  { %v5513_v17 = vadd.f32 1.0, %v5497_v5  ;;  %v5515_v47 = vadd.f32 1.0, %v5499_v60  ;;  %v5705_v49 = vmul.f32 %v5689_v61, %v5481_v23  ;;  %v5707_v25 = vmul.f32 %v5691_v0, %v5483_v58  ;;  %v7354_v0 = vld [vmem:[%s11825_s11 + $0xe0] sm:$0xff]  }
0x1235   :  { %v5498_v28 = vmul.f32 0.3275911, %v5482_v6  ;;  %v5500_v12 = vmul.f32 0.3275911, %v5484_v45  ;;  %v5690_v44 = vsub.f32 0.0, %v5482_v6  ;;  %v5692_v10 = vsub.f32 0.0, %v5484_v45  ;;  %6771 = vmatprep.subr.bf16.mxu0 %v7354_v0 }
0x1236   :  { %7405 = vrcp.f32 %v5513_v17  ;;  %v11396_v56 = vmul.f32 1.442695, %v5705_v49  ;;  %v5485_v55 = vand.u32 2147483647, %v11385_v11  ;;  %v11402_v37 = vmul.f32 1.442695, %v5707_v25 }
0x1237   :  { %7407 = vrcp.f32 %v5515_v47  ;;  %v5514_v39 = vadd.f32 1.0, %v5498_v28  ;;  %v5516_v8 = vadd.f32 1.0, %v5500_v12  ;;  %v5706_v62 = vmul.f32 %v5690_v44, %v5482_v6  ;;  %v7355_v47 = vld [vmem:[%s11825_s11 + $0x20] sm:$0xff]  }
0x1238   :  { %v5708_v20 = vmul.f32 %v5692_v10, %v5484_v45  ;;  %v11405_v14 = vmul.f32 0.70710677, %v11391_v54  ;;  %v5501_v59 = vmul.f32 0.3275911, %v5485_v55  ;;  %v5693_v43 = vsub.f32 0.0, %v5485_v55  ;;  %v7356_v12 = vld [vmem:[%s11825_s11 + $0xa0] sm:$0xff]   ;;  %6744 = vmatpush3.bf16.msra.mxu1 %v7355_v47 }
0x1239   :  { %7409 = vrcp.f32 %v5514_v39  ;;  %v11408_v46 = vmul.f32 0.70710677, %v11394_v27  ;;  %v11415_v31 = vadd.f32 %v5436_v22, %v11330_v4  ;;  %v11421_v23 = vmul.f32 1.442695, %v5706_v62  ;;  %6772 = vmatpush3.bf16.msra.mxu0 %v7356_v12  ;;  %v7357_v10 = vld [vmem:[%s11825_s11 + $0x58] sm:$0xff]  }
0x123a   :  { %7411 = vrcp.f32 %v5516_v8  ;;  %v5487_v32 = vand.u32 2147483647, %v11405_v14  ;;  %v5517_v7 = vadd.f32 1.0, %v5501_v59  ;;  %v5709_v58 = vmul.f32 %v5693_v43, %v5485_v55  ;;  %6745 = vmatprep.subr.bf16.mxu1 %v7357_v10 }
0x123b   :  { %v5486_v63 = vand.u32 2147483647, %v11408_v46  ;;  %v11424_v61 = vmul.f32 0.70710677, %v11415_v31  ;;  %v11426_v60 = vmul.f32 1.442695, %v5708_v20 }
0x123c   :  { %v5503_v5 = vmul.f32 0.3275911, %v5487_v32  ;;  %7413 = vrcp.f32 %v5517_v7  ;;  %v11437_v15 = vmul.f32 1.442695, %v5709_v58  ;;  %v5695_v2 = vsub.f32 0.0, %v5487_v32  ;;  %v7358_v58 = vld [vmem:[%s11825_s11 + $0xd8] sm:$0xff]  }
0x123d   :  { %v5502_v33 = vmul.f32 0.3275911, %v5486_v63  ;;  %v5488_v45 = vand.u32 2147483647, %v11424_v61  ;;  %v5694_v29 = vsub.f32 0.0, %v5486_v63  ;;  %6773 = vmatprep.subr.bf16.mxu0 %v7358_v58  ;;  %vm5789_vm15 = vcmp.lt.f32.partialorder %v11385_v11, 0.0 }
0x123e   :  { %v5519_v6 = vadd.f32 1.0, %v5503_v5  ;;  %v5711_v22 = vmul.f32 %v5695_v2, %v5487_v32  ;;  %vm5786_vm0 = vcmp.lt.f32.partialorder %v11359_v50, 0.0  ;;  %vm5788_vm1 = vcmp.lt.f32.partialorder %v11362_v41, 0.0 }
0x123f   :  { %v5518_v17 = vadd.f32 1.0, %v5502_v33  ;;  %v5504_v28 = vmul.f32 0.3275911, %v5488_v45  ;;  %v5696_v53 = vsub.f32 0.0, %v5488_v45  ;;  %v5710_v59 = vmul.f32 %v5694_v29, %v5486_v63 }
0x1240   :  { %7415 = vrcp.f32 %v5519_v6  ;;  %v11469_v6 = vmul.f32 1.442695, %v5711_v22  ;;  %vm5791_vm3 = vcmp.lt.f32.partialorder %v11405_v14, 0.0  ;;  %vm5790_vm4 = vcmp.lt.f32.partialorder %v11408_v46, 0.0 }
0x1241   :  { %7417 = vrcp.f32 %v5518_v17  ;;  %v5520_v39 = vadd.f32 1.0, %v5504_v28  ;;  %v5712_v51 = vmul.f32 %v5696_v53, %v5488_v45  ;;  %v5731_v28 = vmul.f32 1.442695, %v5710_v59 }
0x1242   :  { %vm5792_vm5 = vcmp.lt.f32.partialorder %v11424_v61, 0.0 }
0x1243   :  { %v11435_v24 = vpop.eup %7405  ;;  %7419 = vrcp.f32 %v5520_v39  ;;  %v11479_v29 = vmul.f32 1.442695, %v5712_v51 }
0x1244   :  { %v11442_v49 = vpop.eup %7407  ;;  %v5545_v44 = vmul.f32 1.0614054, %v11435_v24  ;;  %7421 = vpow2.f32 %v11396_v56 }
0x1245   :  { %v5547_v25 = vmul.f32 1.0614054, %v11442_v49  ;;  %7423 = vpow2.f32 %v11402_v37 }
0x1246   :  { %v5561_v19 = vadd.f32 -1.4531521, %v5545_v44  ;;  %v5387_v1 = vpop.f32.mrf.mxu1  ;;  %v5440_v8 = vpop.f32.mrf.mxu0  ;;  %7425 = vpow2.f32 %v11421_v23  ;;  %v7362_v23 = vld [vmem:[%s11825_s11 + $0xd0] sm:$0xff]  }
0x1247   :  { %v11449_v52 = vpop.eup %7409  ;;  %v5563_v55 = vadd.f32 -1.4531521, %v5547_v25  ;;  %v11452_v57 = vadd.f32 %v5387_v1, %v11316_v9  ;;  %v11463_v32 = vadd.f32 %v5440_v8, %v11318_v48  ;;  %7427 = vpow2.f32 %v5731_v28 }
0x1248   :  { %v5577_v62 = vmul.f32 %v11435_v24, %v5561_v19  ;;  %v5546_v20 = vmul.f32 1.0614054, %v11449_v52  ;;  %v11456_v43 = vpop.eup %7411  ;;  %7429 = vpow2.f32 %v11437_v15  ;;  %v7364_v15 = vld [vmem:[%s11825_s11 + $0x90] sm:$0xff]  }
0x1249   :  { %v5579_v16 = vmul.f32 %v11442_v49, %v5563_v55  ;;  %v11460_v7 = vmul.f32 0.70710677, %v11452_v57  ;;  %v5548_v0 = vmul.f32 1.0614054, %v11456_v43  ;;  %v11476_v12 = vpop.eup %7413  ;;  %v11482_v53 = vmul.f32 0.70710677, %v11463_v32 }
0x124a   :  { %v5593_v5 = vadd.f32 1.4214138, %v5577_v62  ;;  %v5562_v33 = vadd.f32 -1.4531521, %v5546_v20  ;;  %v5549_v19 = vmul.f32 1.0614054, %v11476_v12  ;;  %7431 = vpow2.f32 %v11426_v60 }
0x124b   :  { %v5595_v63 = vadd.f32 1.4214138, %v5579_v16  ;;  %v11472_v17 = vand.u32 2147483647, %v11460_v7  ;;  %v5564_v2 = vadd.f32 -1.4531521, %v5548_v0  ;;  %7433 = vpow2.f32 %v11469_v6 }
0x124c   :  { %v5609_v45 = vmul.f32 %v11435_v24, %v5593_v5  ;;  %v5578_v47 = vmul.f32 %v11449_v52, %v5562_v33  ;;  %v7359_v55 = vld [vmem:[%s11825_s11 + $0x18] sm:$0xff]   ;;  %v5565_v16 = vadd.f32 -1.4531521, %v5549_v19  ;;  %v11498_v5 = vand.u32 2147483647, %v11482_v53  ;;  %v7366_v6 = vld [vmem:[%s11825_s11 + $0xc8] sm:$0xff]  }
0x124d   :  { %v5611_v44 = vmul.f32 %v11442_v49, %v5595_v63  ;;  %v5580_v10 = vmul.f32 %v11456_v43, %v5564_v2  ;;  %v5505_v8 = vmul.f32 0.3275911, %v11472_v17  ;;  %v11490_v22 = vpop.eup %7415  ;;  %6746 = vmatpush3.bf16.msra.mxu1 %v7359_v55  ;;  %7435 = vpow2.f32 %v11479_v29  ;;  %v7368_v29 = vld [vmem:[%s11825_s11 + $0x88] sm:$0xff]  }
0x124e   :  { %v5625_v25 = vadd.f32 -0.28449672, %v5609_v45  ;;  %v5594_v39 = vadd.f32 1.4214138, %v5578_v47  ;;  %v11494_v51 = vpop.eup %7417  ;;  %v5551_v58 = vmul.f32 1.0614054, %v11490_v22  ;;  %v5581_v45 = vmul.f32 %v11476_v12, %v5565_v16 }
0x124f   :  { %v5627_v1 = vadd.f32 -0.28449672, %v5611_v44  ;;  %v5596_v59 = vadd.f32 1.4214138, %v5580_v10  ;;  %v5550_v44 = vmul.f32 1.0614054, %v11494_v51 }
0x1250   :  { %v5641_v62 = vmul.f32 %v11435_v24, %v5625_v25  ;;  %v5610_v20 = vmul.f32 %v11449_v52, %v5594_v39  ;;  %v5567_v2 = vadd.f32 -1.4531521, %v5551_v58  ;;  %v11505_v25 = vpop.eup %7419  ;;  %v5597_v19 = vadd.f32 1.4214138, %v5581_v45  ;;  %v7361_v16 = vld [vmem:[%s11825_s11 + $0x50] sm:$0xff]  }
0x1251   :  { %v5643_v33 = vmul.f32 %v11442_v49, %v5627_v1  ;;  %v5612_v63 = vmul.f32 %v11456_v43, %v5596_v59  ;;  %v5566_v55 = vadd.f32 -1.4531521, %v5550_v44  ;;  %6747 = vmatprep.subr.bf16.mxu1 %v7361_v16  ;;  %vm5793_vm7 = vcmp.lt.f32.partialorder %v11460_v7, 0.0 }
0x1252   :  { %v5626_v0 = vadd.f32 -0.28449672, %v5610_v20  ;;  %v5657_v47 = vadd.f32 0.2548296, %v5641_v62  ;;  %v5583_v1 = vmul.f32 %v11490_v22, %v5567_v2  ;;  %v5552_v20 = vmul.f32 1.0614054, %v11505_v25 }
0x1253   :  { %v5628_v10 = vadd.f32 -0.28449672, %v5612_v63  ;;  %v11511_v59 = vadd.f32 0.2548296, %v5643_v33  ;;  %v5613_v56 = vmul.f32 %v11476_v12, %v5597_v19  ;;  %v7360_v62 = vld [vmem:[%s11825_s11 + $0x98] sm:$0xff]   ;;  %v5582_v58 = vmul.f32 %v11494_v51, %v5566_v55  ;;  %v7365_v55 = vld [vmem:[%s11825_s11 + $0x48] sm:$0xff]  }
0x1254   :  { %v5642_v39 = vmul.f32 %v11449_v52, %v5626_v0  ;;  %v5599_v37 = vadd.f32 1.4214138, %v5583_v1  ;;  %v5568_v0 = vadd.f32 -1.4531521, %v5552_v20  ;;  %6774 = vmatpush3.bf16.msra.mxu0 %v7360_v62  ;;  %v5673_v62 = vmul.f32 %v11435_v24, %v5657_v47  ;;  %v7422_v24 = vpop.eup %7421  ;;  %v7369_v47 = vld [vmem:[%s11825_s11 + $0x40] sm:$0xff]  }
0x1255   :  { %v5644_v33 = vmul.f32 %v11456_v43, %v5628_v10  ;;  %v5629_v45 = vadd.f32 -0.28449672, %v5613_v56  ;;  %v5598_v44 = vadd.f32 1.4214138, %v5582_v58  ;;  %6775 = vmatprep.subr.bf16.mxu0 %v7362_v23  ;;  %v5521_v56 = vadd.f32 1.0, %v5505_v8  ;;  %v7367_v58 = vld [vmem:[%s11825_s11 + $0x8] sm:$0xff]  }
0x1256   :  { %v5658_v63 = vadd.f32 0.2548296, %v5642_v39  ;;  %v5615_v2 = vmul.f32 %v11490_v22, %v5599_v37  ;;  %v5584_v28 = vmul.f32 %v11505_v25, %v5568_v0  ;;  %v7363_v39 = vld [vmem:[%s11825_s11 + $0x10] sm:$0xff]   ;;  %v11559_v23 = vmul.f32 %v7422_v24, %v5673_v62 }
0x1257   :  { %v5645_v10 = vmul.f32 %v11476_v12, %v5629_v45  ;;  %v5614_v60 = vmul.f32 %v11494_v51, %v5598_v44  ;;  %6748 = vmatpush3.bf16.msra.mxu1 %v7363_v39  ;;  %v5660_v20 = vadd.f32 0.2548296, %v5644_v33  ;;  %7437 = vrcp.f32 %v5521_v56  ;;  %v5389_v39 = vpop.f32.mrf.mxu1 }
0x1258   :  { %v5631_v19 = vadd.f32 -0.28449672, %v5615_v2  ;;  %v5600_v1 = vadd.f32 1.4214138, %v5584_v28  ;;  %6776 = vmatpush3.bf16.msra.mxu0 %v7364_v15  ;;  %6749 = vmatprep.subr.bf16.mxu1 %v7365_v55  ;;  %v5674_v2 = vmul.f32 %v11449_v52, %v5658_v63  ;;  %v7424_v15 = vpop.eup %7423  ;;  %v7371_v52 = vld [vmem:[%s11825_s11] sm:$0xff]   ;;  %v11574_v55 = vmul.f32 0.5, %v11339_v34 }
0x1259   :  { %v5630_v37 = vadd.f32 -0.28449672, %v5614_v60  ;;  %v5661_v0 = vadd.f32 0.2548296, %v5645_v10  ;;  %6777 = vmatprep.subr.bf16.mxu0 %v7366_v6  ;;  %v7370_v10 = vld [vmem:[%s11825_s11 + $0xc0] sm:$0xff]   ;;  %v7426_v63 = vpop.eup %7425  ;;  %v5676_v56 = vmul.f32 %v11456_v43, %v5660_v20  ;;  %v5675_v62 = vmul.f32 %v11442_v49, %v11511_v59 }
0x125a   :  { %v5647_v16 = vmul.f32 %v11490_v22, %v5631_v19  ;;  %v5616_v45 = vmul.f32 %v11505_v25, %v5600_v1  ;;  %v11566_v19 = vmul.f32 0.5, %v11336_v13  ;;  %v5507_v1 = vmul.f32 0.3275911, %v11498_v5  ;;  %v7372_v13 = vld [vmem:[%s11825_s11 + $0x80] sm:$0xff]  }
0x125b   :  { %v5646_v33 = vmul.f32 %v11494_v51, %v5630_v37  ;;  %6750 = vmatpush3.bf16.msra.mxu1 %v7367_v58  ;;  %v5677_v60 = vmul.f32 %v11476_v12, %v5661_v0  ;;  %v7428_v12 = vpop.eup %7427  ;;  %v11586_v34 = vadd.f32 %v5389_v39, %v11328_v18  ;;  %v11590_v20 = vmul.f32 %v7426_v63, %v5674_v2 }
0x125c   :  { %v5663_v8 = vadd.f32 0.2548296, %v5647_v16  ;;  %6778 = vmatpush3.bf16.msra.mxu0 %v7368_v29  ;;  %v5632_v28 = vadd.f32 -0.28449672, %v5616_v45  ;;  %6751 = vmatprep.subr.bf16.mxu1 %v7369_v47  ;;  %v7430_v43 = vpop.eup %7429  ;;  %v5523_v0 = vadd.f32 1.0, %v5507_v1  ;;  %v11599_v24 = vmul.f32 0.5, %v11376_v36  ;;  %v5391_v1 = vpop.f32.mrf.mxu1 }
0x125d   :  { %v5662_v44 = vadd.f32 0.2548296, %v5646_v33  ;;  %6779 = vmatprep.subr.bf16.mxu0 %v7370_v10  ;;  %v7432_v29 = vpop.eup %7431  ;;  %v5757_v49 = vmul.f32 %v7430_v43, %v5677_v60  ;;  %v11596_v33 = vmul.f32 0.5, %v11354_v38  ;;  %v5755_v47 = vmul.f32 %v7424_v15, %v5675_v62  ;;  %v5442_v60 = vpop.f32.mrf.mxu0 }
0x125e   :  { %v5679_v16 = vmul.f32 %v11490_v22, %v5663_v8  ;;  %v5648_v37 = vmul.f32 %v11505_v25, %v5632_v28  ;;  %v7434_v22 = vpop.eup %7433  ;;  %v11593_v8 = vmul.f32 0.5, %v11351_v21  ;;  %v5756_v45 = vmul.f32 %v7432_v29, %v5676_v56 }
0x125f   :  { %v5678_v6 = vmul.f32 %v11494_v51, %v5662_v44  ;;  %6752 = vmatpush3.bf16.msra.mxu1 %v7371_v52  ;;  %v5769_v51 = vsub.f32 1.0, %v11559_v23  ;;  %v11603_v44 = vmul.f32 0.70710677, %v11586_v34  ;;  %v7436_v28 = vpop.eup %7435  ;;  %v5770_v10 = vsub.f32 1.0, %v11590_v20 }
0x1260   :  { %6780 = vmatpush3.bf16.msra.mxu0 %v7372_v13  ;;  %v5664_v59 = vadd.f32 0.2548296, %v5648_v37  ;;  %v5759_v23 = vmul.f32 %v7434_v22, %v5679_v16  ;;  %v11608_v21 = vmul.f32 0.5, %v11391_v54  ;;  %v5773_v36 = vsub.f32 1.0, %v5757_v49 }
0x1261   :  { %v5758_v58 = vmul.f32 %v7428_v12, %v5678_v6  ;;  %v5801_v39 = vsub.f32 0.0, %v5769_v51  ;;  %7439 = vrcp.f32 %v5523_v0  ;;  %v5772_v52 = vsub.f32 1.0, %v5756_v45 }
0x1262   :  { %v5680_v2 = vmul.f32 %v11505_v25, %v5664_v59  ;;  %v11613_v25 = vand.u32 2147483647, %v11603_v44  ;;  %v5454_v63 = vmul.f32 0.5, %v11394_v27  ;;  %v5771_v56 = vsub.f32 1.0, %v5755_v47 }
0x1263   :  { %v5774_v38 = vsub.f32 1.0, %v5758_v58  ;;  %v5775_v54 = vsub.f32 1.0, %v5759_v23  ;;  %v11622_v16 = vadd.f32 %v5442_v60, %v11330_v4  ;;  %v11625_v37 = vadd.f32 %v5391_v1, %v11316_v9  ;;  %v5393_v60 = vpop.f32.mrf.mxu1 }
0x1264   :  { %v5760_v15 = vmul.f32 %v7436_v28, %v5680_v2  ;;  %v11618_v13 = vpop.eup %7437  ;;  %v5506_v62 = vmul.f32 0.3275911, %v11613_v25  ;;  %v5817_v27 = vsel %vm5785_vm14, %v5801_v39, %v5769_v51  ;;  %v5802_v43 = vsub.f32 0.0, %v5770_v10 }
0x1265   :  { %v5806_v12 = vsub.f32 0.0, %v5774_v38  ;;  %v5805_v20 = vsub.f32 0.0, %v5773_v36  ;;  %v5804_v58 = vsub.f32 0.0, %v5772_v52  ;;  %v11631_v49 = vmul.f32 0.70710677, %v11622_v16 }
0x1266   :  { %v5776_v6 = vsub.f32 1.0, %v5760_v15  ;;  %v5522_v29 = vadd.f32 1.0, %v5506_v62  ;;  %v5807_v59 = vsub.f32 0.0, %v5775_v54  ;;  %v5456_v22 = vmul.f32 0.5, %v11415_v31  ;;  %v5444_v31 = vpop.f32.mrf.mxu0 }
0x1267   :  { %v5553_v45 = vmul.f32 1.0614054, %v11618_v13  ;;  %v11636_v9 = vmul.f32 0.70710677, %v11625_v37  ;;  %v5803_v3 = vsub.f32 0.0, %v5771_v56  ;;  %v5822_v51 = vsel %vm5790_vm4, %v5806_v12, %v5774_v38 }
0x1268   :  { %v5808_v0 = vsub.f32 0.0, %v5776_v6  ;;  %7441 = vrcp.f32 %v5522_v29  ;;  %v11639_v47 = vand.u32 2147483647, %v11631_v49  ;;  %v5833_v46 = vadd.f32 1.0, %v5817_v27 }
0x1269   :  { %v5821_v23 = vsel %vm5789_vm15, %v5805_v20, %v5773_v36  ;;  %v11645_v2 = vand.u32 2147483647, %v11636_v9  ;;  %v5818_v28 = vsel %vm5786_vm0, %v5802_v43, %v5770_v10  ;;  %v5820_v39 = vsel %vm5788_vm1, %v5804_v58, %v5772_v52  ;;  %v5446_v58 = vpop.f32.mrf.mxu0 }
0x126a   :  { %v5824_v38 = vsel %vm5792_vm5, %v5808_v0, %v5776_v6  ;;  %v5508_v15 = vmul.f32 0.3275911, %v11639_v47  ;;  %v5823_v11 = vsel %vm5791_vm3, %v5807_v59, %v5775_v54  ;;  %v5838_v36 = vadd.f32 1.0, %v5822_v51 }
0x126b   :  { %v5569_v1 = vadd.f32 -1.4531521, %v5553_v45  ;;  %v5509_v61 = vmul.f32 0.3275911, %v11645_v2  ;;  %v5819_v12 = vsel %vm5787_vm2, %v5803_v3, %v5771_v56  ;;  %v5837_v62 = vadd.f32 1.0, %v5821_v23 }
0x126c   :  { %v5524_v50 = vadd.f32 1.0, %v5508_v15  ;;  %v11658_v10 = vadd.f32 %v5444_v31, %v11318_v48  ;;  %v5834_v41 = vadd.f32 1.0, %v5818_v28  ;;  %v5840_v52 = vadd.f32 1.0, %v5824_v38 }
0x126d   :  { %v5525_v6 = vadd.f32 1.0, %v5509_v61  ;;  %v11661_v27 = vadd.f32 %v5393_v60, %v11328_v18  ;;  %v5836_v54 = vadd.f32 1.0, %v5820_v39  ;;  %v5839_v43 = vadd.f32 1.0, %v5823_v11 }
0x126e   :  { %v11663_v14 = vpop.eup %7439  ;;  %7443 = vrcp.f32 %v5524_v50  ;;  %v11666_v20 = vmul.f32 0.70710677, %v11658_v10  ;;  %v5854_v40 = vmul.f32 %v5838_v36, %v5454_v63  ;;  %v5585_v56 = vmul.f32 %v11618_v13, %v5569_v1 }
0x126f   :  { %v5697_v48 = vsub.f32 0.0, %v11472_v17  ;;  %7445 = vrcp.f32 %v5525_v6  ;;  %v5849_v0 = vmul.f32 %v5833_v46, %v11566_v19  ;;  %v5835_v29 = vadd.f32 1.0, %v5819_v12 }
0x1270   :  { %v5853_v18 = vmul.f32 %v5837_v62, %v11599_v24  ;;  %v11673_v59 = vand.u32 2147483647, %v11666_v20  ;;  %v5850_v45 = vmul.f32 %v5834_v41, %v11593_v8  ;;  %v5856_v3 = vmul.f32 %v5840_v52, %v5456_v22 }
0x1271   :  { %v5555_v51 = vmul.f32 1.0614054, %v11663_v14  ;;  %v11678_v63 = vmul.f32 0.70710677, %v11661_v27  ;;  %v5852_v23 = vmul.f32 %v5836_v54, %v11596_v33  ;;  %v5855_v31 = vmul.f32 %v5839_v43, %v11608_v21 }
0x1272   :  { %v5511_v19 = vmul.f32 0.3275911, %v11673_v59  ;;  %v11684_v46 = vadd.f32 %v5446_v58, %v11330_v4  ;;  %v5601_v24 = vadd.f32 1.4214138, %v5585_v56  ;;  %v5698_v28 = vsub.f32 0.0, %v11613_v25 }
0x1273   :  { %v5494_v8 = vand.u32 2147483647, %v11678_v63  ;;  %v5866_v22 = vpack.c.bf16 %v5854_v40, %v5850_v45  ;;  %v5851_v39 = vmul.f32 %v5835_v29, %v11574_v55  ;;  %v5865_v38 = vpack.c.bf16 %v5853_v18, %v5849_v0 }
0x1274   :  { %v5713_v15 = vmul.f32 %v5697_v48, %v11472_v17  ;;  %v5527_v60 = vadd.f32 1.0, %v5511_v19  ;;  %v5571_v21 = vadd.f32 -1.4531521, %v5555_v51  ;;  %v5701_v11 = vsub.f32 0.0, %v11645_v2 }
0x1275   :  { %v11690_v33 = vpop.eup %7441  ;;  %v5510_v36 = vmul.f32 0.3275911, %v5494_v8  ;;  %6166 = vmatprep.mubr.bf16.mxu1 %v5866_v22  ;;  %v5868_v4 = vpack.c.bf16 %v5856_v3, %v5852_v23  ;;  %v5867_v1 = vpack.c.bf16 %v5855_v31, %v5851_v39  ;;  %v11695_v12 = vmul.f32 0.70710677, %v11684_v46 }
0x1276   :  { %v5554_v61 = vmul.f32 1.0614054, %v11690_v33  ;;  %7447 = vrcp.f32 %v5527_v60  ;;  %6167 = vmatmul.mubr.bf16.vlgmr.msra.gmra.mxu1 %v5865_v38  ;;  %v5617_v55 = vmul.f32 %v11618_v13, %v5601_v24  ;;  %v5714_v17 = vmul.f32 %v5698_v28, %v11613_v25 }
0x1277   :  { %v5526_v62 = vadd.f32 1.0, %v5510_v36  ;;  %6215 = vmatprep.mubr.bf16.mxu0 %v5868_v4  ;;  %v11700_v41 = vand.u32 2147483647, %v11695_v12  ;;  %v5587_v52 = vmul.f32 %v11663_v14, %v5571_v21  ;;  %v5700_v6 = vsub.f32 0.0, %v11639_v47 }
0x1278   :  { %v5570_v50 = vadd.f32 -1.4531521, %v5554_v61  ;;  %6216 = vmatmul.mubr.bf16.vlgmr.msra.gmra.mxu0 %v5867_v1  ;;  %v5717_v54 = vmul.f32 %v5701_v11, %v11645_v2  ;;  %v5737_v43 = vmul.f32 1.442695, %v5713_v15  ;;  %v5633_v48 = vadd.f32 -0.28449672, %v5617_v55 }
0x1279   :  { %7449 = vrcp.f32 %v5526_v62  ;;  %v5512_v56 = vmul.f32 0.3275911, %v11700_v41  ;;  %v5699_v58 = vsub.f32 0.0, %v11498_v5  ;;  %v5739_v0 = vmul.f32 1.442695, %v5714_v17 }
0x127a   :  { %v5586_v40 = vmul.f32 %v11690_v33, %v5570_v50  ;;  %v5703_v3 = vsub.f32 0.0, %v11673_v59  ;;  %v5603_v51 = vadd.f32 1.4214138, %v5587_v52  ;;  %v5716_v23 = vmul.f32 %v5700_v6, %v11639_v47 }
0x127b   :  { %v11707_v25 = vpop.eup %7443  ;;  %v5528_v2 = vadd.f32 1.0, %v5512_v56  ;;  %v5745_v19 = vmul.f32 1.442695, %v5717_v54  ;;  %v5702_v22 = vsub.f32 0.0, %v5494_v8  ;;  %v5715_v39 = vmul.f32 %v5699_v58, %v11498_v5 }
0x127c   :  { %v11710_v29 = vpop.eup %7445  ;;  %v5602_v18 = vadd.f32 1.4214138, %v5586_v40  ;;  %v5556_v45 = vmul.f32 1.0614054, %v11707_v25  ;;  %v5719_v21 = vmul.f32 %v5703_v3, %v11673_v59  ;;  %v5649_v47 = vmul.f32 %v11618_v13, %v5633_v48 }
0x127d   :  { %v5557_v31 = vmul.f32 1.0614054, %v11710_v29  ;;  %7451 = vrcp.f32 %v5528_v2  ;;  %v5619_v11 = vmul.f32 %v11663_v14, %v5603_v51  ;;  %v5743_v1 = vmul.f32 1.442695, %v5716_v23 }
0x127e   :  { %v5618_v24 = vmul.f32 %v11690_v33, %v5602_v18  ;;  %v5572_v28 = vadd.f32 -1.4531521, %v5556_v45  ;;  %7453 = vpow2.f32 %v5737_v43  ;;  %v5718_v61 = vmul.f32 %v5702_v22, %v5494_v8 }
0x127f   :  { %v5573_v38 = vadd.f32 -1.4531521, %v5557_v31  ;;  %7455 = vpow2.f32 %v5739_v0  ;;  %v5741_v5 = vmul.f32 1.442695, %v5715_v39  ;;  %v5749_v52 = vmul.f32 1.442695, %v5719_v21 }
0x1280   :  { %v5634_v15 = vadd.f32 -0.28449672, %v5618_v24  ;;  %v5588_v60 = vmul.f32 %v11707_v25, %v5572_v28  ;;  %7457 = vpow2.f32 %v5745_v19  ;;  %v5704_v6 = vsub.f32 0.0, %v11700_v41 }
0x1281   :  { %v5589_v36 = vmul.f32 %v11710_v29, %v5573_v38  ;;  %v5665_v54 = vadd.f32 0.2548296, %v5649_v47  ;;  %v5635_v43 = vadd.f32 -0.28449672, %v5619_v11  ;;  %7459 = vpow2.f32 %v5743_v1 }
0x1282   :  { %v5604_v4 = vadd.f32 1.4214138, %v5588_v60  ;;  %v5650_v17 = vmul.f32 %v11690_v33, %v5634_v15  ;;  %v5747_v58 = vmul.f32 1.442695, %v5718_v61  ;;  %7461 = vpow2.f32 %v5741_v5 }
0x1283   :  { %v11723_v55 = vpop.eup %7447  ;;  %v5605_v62 = vadd.f32 1.4214138, %v5589_v36  ;;  %7463 = vpow2.f32 %v5749_v52  ;;  %v5720_v51 = vmul.f32 %v5704_v6, %v11700_v41  ;;  %v5651_v23 = vmul.f32 %v11663_v14, %v5635_v43 }
0x1284   :  { %v5620_v50 = vmul.f32 %v11707_v25, %v5604_v4  ;;  %v5559_v59 = vmul.f32 1.0614054, %v11723_v55  ;;  %v5666_v0 = vadd.f32 0.2548296, %v5650_v17  ;;  %v5681_v24 = vmul.f32 %v11618_v13, %v5665_v54 }
0x1285   :  { %v5621_v40 = vmul.f32 %v11710_v29, %v5605_v62  ;;  %7465 = vpow2.f32 %v5747_v58  ;;  %v5751_v11 = vmul.f32 1.442695, %v5720_v51  ;;  %v5667_v4 = vadd.f32 0.2548296, %v5651_v23 }
0x1286   :  { %v11730_v56 = vpop.eup %7449  ;;  %v5636_v8 = vadd.f32 -0.28449672, %v5620_v50  ;;  %v5575_v48 = vadd.f32 -1.4531521, %v5559_v59  ;;  %v5682_v39 = vmul.f32 %v11690_v33, %v5666_v0  ;;  %vm5797_vm6 = vcmp.lt.f32.partialorder %v11636_v9, 0.0 }
0x1287   :  { %v5637_v18 = vadd.f32 -0.28449672, %v5621_v40  ;;  %v5558_v45 = vmul.f32 1.0614054, %v11730_v56  ;;  %7467 = vpow2.f32 %v5751_v11  ;;  %v5683_v43 = vmul.f32 %v11663_v14, %v5667_v4 }
0x1288   :  { %v5652_v3 = vmul.f32 %v11707_v25, %v5636_v8  ;;  %v5591_v2 = vmul.f32 %v11723_v55, %v5575_v48  ;;  %vm5794_vm8 = vcmp.lt.f32.partialorder %v11603_v44, 0.0  ;;  %vm5795_vm9 = vcmp.lt.f32.partialorder %v11482_v53, 0.0 }
0x1289   :  { %v5653_v31 = vmul.f32 %v11710_v29, %v5637_v18  ;;  %v5574_v19 = vadd.f32 -1.4531521, %v5558_v45  ;;  %vm5799_vm11 = vcmp.lt.f32.partialorder %v11666_v20, 0.0  ;;  %vm5798_vm12 = vcmp.lt.f32.partialorder %v11678_v63, 0.0 }
0x128a   :  { %v5607_v28 = vadd.f32 1.4214138, %v5591_v2  ;;  %v11739_v22 = vpop.eup %7451  ;;  %v5668_v21 = vadd.f32 0.2548296, %v5652_v3  ;;  %vm5796_vm13 = vcmp.lt.f32.partialorder %v11631_v49, 0.0  ;;  %vm5800_vm14 = vcmp.lt.f32.partialorder %v11695_v12, 0.0 }
0x128b   :  { %v5669_v38 = vadd.f32 0.2548296, %v5653_v31  ;;  %v5590_v15 = vmul.f32 %v11730_v56, %v5574_v19  ;;  %v7454_v60 = vpop.eup %7453  ;;  %v5560_v47 = vmul.f32 1.0614054, %v11739_v22 }
0x128c   :  { %v5623_v41 = vmul.f32 %v11723_v55, %v5607_v28  ;;  %v7456_v36 = vpop.eup %7455  ;;  %v5761_v33 = vmul.f32 %v7454_v60, %v5681_v24  ;;  %v5684_v52 = vmul.f32 %v11707_v25, %v5668_v21 }
0x128d   :  { %v5685_v13 = vmul.f32 %v11710_v29, %v5669_v38  ;;  %v5606_v1 = vadd.f32 1.4214138, %v5590_v15  ;;  %v7458_v61 = vpop.eup %7457  ;;  %v5576_v17 = vadd.f32 -1.4531521, %v5560_v47  ;;  %v5762_v62 = vmul.f32 %v7456_v36, %v5682_v39 }
0x128e   :  { %v5639_v5 = vadd.f32 -0.28449672, %v5623_v41  ;;  %v7460_v58 = vpop.eup %7459  ;;  %v5777_v3 = vsub.f32 1.0, %v5761_v33 }
0x128f   :  { %v5765_v50 = vmul.f32 %v7458_v61, %v5685_v13  ;;  %v5622_v59 = vmul.f32 %v11730_v56, %v5606_v1  ;;  %v5592_v54 = vmul.f32 %v11739_v22, %v5576_v17  ;;  %v5778_v0 = vsub.f32 1.0, %v5762_v62  ;;  %v7462_v45 = vpop.eup %7461 }
0x1290   :  { %v5655_v6 = vmul.f32 %v11723_v55, %v5639_v5  ;;  %v5764_v2 = vmul.f32 %v7460_v58, %v5684_v52  ;;  %v7464_v23 = vpop.eup %7463  ;;  %v5763_v31 = vmul.f32 %v7462_v45, %v5683_v43  ;;  %v5809_v60 = vsub.f32 0.0, %v5777_v3 }
0x1291   :  { %v5638_v40 = vadd.f32 -0.28449672, %v5622_v59  ;;  %v5781_v29 = vsub.f32 1.0, %v5765_v50  ;;  %v5608_v48 = vadd.f32 1.4214138, %v5592_v54  ;;  %v5810_v39 = vsub.f32 0.0, %v5778_v0 }
0x1292   :  { %v5671_v8 = vadd.f32 0.2548296, %v5655_v6  ;;  %v7466_v15 = vpop.eup %7465  ;;  %v5780_v21 = vsub.f32 1.0, %v5764_v2  ;;  %v5779_v11 = vsub.f32 1.0, %v5763_v31  ;;  %v5458_v13 = vmul.f32 0.5, %v11586_v34 }
0x1293   :  { %v5654_v18 = vmul.f32 %v11730_v56, %v5638_v40  ;;  %v5624_v51 = vmul.f32 %v11739_v22, %v5608_v48  ;;  %v5813_v24 = vsub.f32 0.0, %v5781_v29  ;;  %v5826_v1 = vsel %vm5794_vm8, %v5810_v39, %v5778_v0 }
0x1294   :  { %v5687_v25 = vmul.f32 %v11723_v55, %v5671_v8  ;;  %v5825_v5 = vsel %vm5793_vm7, %v5809_v60, %v5777_v3  ;;  %v5812_v17 = vsub.f32 0.0, %v5780_v21  ;;  %v7468_v62 = vpop.eup %7467  ;;  %v5811_v9 = vsub.f32 0.0, %v5779_v11 }
0x1295   :  { %v5670_v19 = vadd.f32 0.2548296, %v5654_v18  ;;  %v5640_v28 = vadd.f32 -0.28449672, %v5624_v51  ;;  %v5829_v36 = vsel %vm5797_vm6, %v5813_v24, %v5781_v29  ;;  %v5461_v50 = vmul.f32 0.5, %v11625_v37 }
0x1296   :  { %v5767_v14 = vmul.f32 %v7464_v23, %v5687_v25  ;;  %v5845_v7 = vadd.f32 1.0, %v5829_v36  ;;  %v5842_v44 = vadd.f32 1.0, %v5826_v1  ;;  %v5841_v52 = vadd.f32 1.0, %v5825_v5 }
0x1297   :  { %v5686_v38 = vmul.f32 %v11730_v56, %v5670_v19  ;;  %v5656_v47 = vmul.f32 %v11739_v22, %v5640_v28  ;;  %v5828_v43 = vsel %vm5796_vm13, %v5812_v17, %v5780_v21  ;;  %v5457_v37 = vmul.f32 0.5, %v11452_v57 }
0x1298   :  { %v5783_v41 = vsub.f32 1.0, %v5767_v14  ;;  %v5827_v8 = vsel %vm5795_vm9, %v5811_v9, %v5779_v11  ;;  %v5861_v48 = vmul.f32 %v5845_v7, %v5461_v50  ;;  %v5858_v20 = vmul.f32 %v5842_v44, %v5458_v13 }
0x1299   :  { %v5766_v55 = vmul.f32 %v7466_v15, %v5686_v38  ;;  %v5672_v4 = vadd.f32 0.2548296, %v5656_v47  ;;  %v5857_v18 = vmul.f32 %v5841_v52, %v5457_v37  ;;  %v5844_v45 = vadd.f32 1.0, %v5828_v43 }
0x129a   :  { %v5815_v56 = vsub.f32 0.0, %v5783_v41  ;;  %v5843_v49 = vadd.f32 1.0, %v5827_v8  ;;  %v5463_v3 = vmul.f32 0.5, %v11658_v10  ;;  %v5460_v25 = vmul.f32 0.5, %v11622_v16  ;;  %v6498_v16 = vld [vmem:[%s11820_s8 + $0x1] ss:$0 sm:$0xff] }
0x129b   :  { %v5782_v61 = vsub.f32 1.0, %v5766_v55  ;;  %v5688_v33 = vmul.f32 %v11739_v22, %v5672_v4  ;;  %v5462_v22 = vmul.f32 0.5, %v11661_v27  ;;  %v5464_v57 = vmul.f32 0.5, %v11684_v46  ;;  %v12575_v8 = vld [vmem:[#allocation22_spill] sm:$0xff] }
0x129c   :  { %v5831_v6 = vsel %vm5799_vm11, %v5815_v56, %v5783_v41  ;;  %v5869_v51 = vpack.c.bf16 %v5861_v48, %v5857_v18  ;;  %v5459_v23 = vmul.f32 0.5, %v11463_v32  ;;  %v5860_v19 = vmul.f32 %v5844_v45, %v5460_v25  ;;  %v12578_v45 = vld [vmem:[#allocation95_spill] sm:$0xff] }
0x129d   :  { %v5814_v59 = vsub.f32 0.0, %v5782_v61  ;;  %v5768_v34 = vmul.f32 %v7468_v62, %v5688_v33  ;;  %v5847_v58 = vadd.f32 1.0, %v5831_v6 }
0x129e   :  { %v5859_v14 = vmul.f32 %v5843_v49, %v5459_v23 }
0x129f   :  { %v5830_v54 = vsel %vm5798_vm12, %v5814_v59, %v5782_v61  ;;  %v5784_v29 = vsub.f32 1.0, %v5768_v34  ;;  %v5863_v31 = vmul.f32 %v5847_v58, %v5463_v3 }
0x12a0   :  { %v5846_v40 = vadd.f32 1.0, %v5830_v54 }
0x12a1   :  { %v5816_v0 = vsub.f32 0.0, %v5784_v29  ;;  %v5871_v28 = vpack.c.bf16 %v5863_v31, %v5859_v14 }
0x12a2   :  { %v5862_v63 = vmul.f32 %v5846_v40, %v5462_v22 }
0x12a3   :  { %v5832_v27 = vsel %vm5800_vm14, %v5816_v0, %v5784_v29  ;;  %v12577_v0 = vld [vmem:[#allocation47_spill] sm:$0xff] }
0x12a4   :  { %v5870_v2 = vpack.c.bf16 %v5862_v63, %v5858_v20  ;;  %v5848_v53 = vadd.f32 1.0, %v5832_v27  ;;  %v12576_v20 = vld [vmem:[#allocation23_spill] sm:$0xff] }
0x12a6   :  { %6174 = vmatprep.mubr.bf16.mxu1 %v5870_v2  ;;  %v5864_v24 = vmul.f32 %v5848_v53, %v5464_v57 }
0x12a7   :  { %6175 = vmatmul.mubr.bf16.gmra.mxu1 %v5869_v51 }
0x12a8   :  { %v5872_v12 = vpack.c.bf16 %v5864_v24, %v5860_v19 }
0x12aa   :  { %6223 = vmatprep.mubr.bf16.mxu0 %v5872_v12 }
0x12ab   :  { %6224 = vmatmul.mubr.bf16.gmra.mxu0 %v5871_v28 }
0x1336   :  { %v6753_v10 = vpop.f32.mrf.mxu1 }
0x1338   :  { %v6781_v46 = vpop.f32.mrf.mxu0  ;;  %v6754_v39 = vpop.f32.mrf.mxu1 }
0x1339   :  { %v6755_v38 = vadd.f32 %v6754_v39, %v6753_v10 }
0x133a   :  { %v6782_v15 = vpop.f32.mrf.mxu0  ;;  %v6756_v32 = vpop.f32.mrf.mxu1 }
0x133b   :  { %v6169_v60 = vadd.f32 %v6755_v38, %v6498_v16  ;;  %v6783_v21 = vadd.f32 %v6782_v15, %v6781_v46 }
0x133c   :  { %v6784_v41 = vpop.f32.mrf.mxu0  ;;  %v6757_v47 = vpop.f32.mrf.mxu1 }
0x133d   :  { %v6218_v11 = vadd.f32 %v6783_v21, %v6169_v60  ;;  %v6758_v55 = vadd.f32 %v6757_v47, %v6756_v32 }
0x133e   :  { %v6785_v36 = vpop.f32.mrf.mxu0 }
0x133f   :  { %v6172_v4 = vadd.f32 %v6758_v55, %v6498_v16  ;;  %v6786_v13 = vadd.f32 %v6785_v36, %v6784_v41  ;;  %6236 = vrot.lane.b32.xlu0 %v6218_v11, %s7471_s15 }
0x1341   :  { %v6221_v1 = vadd.f32 %v6786_v13, %v6172_v4 }
0x1343   :  { %6238 = vrot.lane.b32.xlu1 %v6221_v1, %s7471_s15 }
0x1367   :  { %v6759_v56 = vpop.f32.mrf.mxu1 }
0x1369   :  { %v6760_v61 = vpop.f32.mrf.mxu1 }
0x136a   :  { %v6761_v5 = vadd.f32 %v6760_v61, %v6759_v56 }
0x136b   :  { %v6762_v17 = vpop.f32.mrf.mxu1  ;;  %v6787_v33 = vpop.f32.mrf.mxu0 }
0x136c   :  { %v6177_v62 = vadd.f32 %v6761_v5, %v6498_v16 }
0x136d   :  { %v6763_v9 = vpop.f32.mrf.mxu1  ;;  %v6788_v50 = vpop.f32.mrf.mxu0 }
0x136e   :  { %v6764_v7 = vadd.f32 %v6763_v9, %v6762_v17  ;;  %v6789_v59 = vadd.f32 %v6788_v50, %v6787_v33 }
0x136f   :  { %v6790_v44 = vpop.f32.mrf.mxu0 }
0x1370   :  { %v6226_v34 = vadd.f32 %v6789_v59, %v6177_v62  ;;  %v6180_v52 = vadd.f32 %v6764_v7, %v6498_v16 }
0x1371   :  { %v6791_v6 = vpop.f32.mrf.mxu0 }
0x1372   :  { %v6792_v54 = vadd.f32 %v6791_v6, %v6790_v44  ;;  %6240 = vrot.lane.b32.xlu0 %v6226_v34, %s7471_s15 }
0x1374   :  { %v6229_v43 = vadd.f32 %v6792_v54, %v6180_v52 }
0x1376   :  { %6242 = vrot.lane.b32.xlu1 %v6229_v43, %s7471_s15 }
0x13b1   :  { %v6237_v22 = vpop.permute.xlu0 %6236 }
0x13b2   :  { %v6248_v40 = vadd.f32 %v6237_v22, %v12466_v35  ;;  %v6249_v29 = vadd.f32 %v6237_v22, %v12359_v42 }
0x13b4   :  { %6266 = vrot.lane.b32.xlu1 %v6249_v29, %s7471_s15  ;;  %6264 = vrot.lane.b32.xlu0 %v6248_v40, %s7471_s15 }
0x13b5   :  { %v6239_v37 = vpop.permute.xlu1 %6238 }
0x13b6   :  { %v6250_v48 = vadd.f32 %v6239_v37, %v12575_v8  ;;  %v6251_v58 = vadd.f32 %v6239_v37, %v12576_v20 }
0x13b8   :  { %6270 = vrot.lane.b32.xlu1 %v6251_v58, %s7471_s15  ;;  %6268 = vrot.lane.b32.xlu0 %v6250_v48, %s7471_s15 }
0x13e4   :  { %v6241_v63 = vpop.permute.xlu0 %6240 }
0x13e5   :  { %v6252_v18 = vadd.f32 %v6241_v63, %v12577_v0  ;;  %v6253_v35 = vadd.f32 %v6241_v63, %v12578_v45 }
0x13e7   :  { %6274 = vrot.lane.b32.xlu1 %v6253_v35, %s7471_s15  ;;  %6272 = vrot.lane.b32.xlu0 %v6252_v18, %s7471_s15 }
0x13e8   :  { %v6243_v42 = vpop.permute.xlu1 %6242 }
0x13e9   :  { %v6254_v49 = vadd.f32 %v6243_v42, %v12481_v26  ;;  %v6255_v3 = vadd.f32 %v6243_v42, %v12310_v30 }
0x13eb   :  { %6278 = vrot.lane.b32.xlu1 %v6255_v3, %s7471_s15  ;;  %6276 = vrot.lane.b32.xlu0 %v6254_v49, %s7471_s15 }
0x1426   :  { %v6267_v27 = vpop.permute.xlu1 %6266  ;;  %v6265_v2 = vpop.permute.xlu0 %6264 }
0x1427   :  { %v6280_v25 = vsel %vm2001_vm10, %v6265_v2, %v6267_v27 }
0x1428   :  { %6288 = vst [vmem:[%s11826_s12] sm:$0xff] %v6280_v25 }
0x142a   :  { %v6271_v57 = vpop.permute.xlu1 %6270  ;;  %v6269_v53 = vpop.permute.xlu0 %6268 }
0x142b   :  { %v6281_v51 = vsel %vm2001_vm10, %v6269_v53, %v6271_v57 }
0x142c   :  { %6289 = vst [vmem:[%s11826_s12 + $0x8] sm:$0xff] %v6281_v51 }
0x1459   :  { %v6275_v30 = vpop.permute.xlu1 %6274  ;;  %v6273_v26 = vpop.permute.xlu0 %6272 }
0x145a   :  { %v6282_v23 = vsel %vm2001_vm10, %v6273_v26, %v6275_v30 }
0x145b   :  { %6290 = vst [vmem:[%s11826_s12 + $0x10] sm:$0xff] %v6282_v23 }
0x145d   :  { %v6279_v31 = vpop.permute.xlu1 %6278  ;;  %v6277_v19 = vpop.permute.xlu0 %6276 }
0x145e   :  { %v6283_v24 = vsel %vm2001_vm10, %v6277_v19, %v6279_v31 }
0x145f   :  { %6291 = vst [vmem:[%s11826_s12 + $0x18] sm:$0xff] %v6283_v24 }

</bundles_post_ra>
